<compile_context>
chip_gen: v7x
topology: tpu7x:2x2x1
jax: 0.10.0
libtpu: 0.0.40
codegen_flags: <defaults>
</compile_context>

<pallas_src>
import functools

import numpy as np

import jax
import jax.numpy as jnp
from jax import lax
from jax.experimental import pallas as pl
from jax.experimental.pallas import tpu as pltpu

BN_EPS = 1e-5
_VMEM = pl.BlockSpec(memory_space=pltpu.MemorySpace.VMEM)
_ANY = pl.BlockSpec(memory_space=pl.ANY)


# ------------------------------- Pallas kernel ------------------------------- #

def _generator_kernel(
    # l1 (augmented: row placement + bias folded into the operands)
    zaug_ref, w1_ref,
    # deconv banded weights, stacked (3, W*Cin, 4*2W*Cout) -- left in HBM, prefetched
    rw_hbm,
    # height overlap-add / interleave scatter matrices, stacked (4, 2R, R) per layer
    sh1_ref, sh2_ref, sh3_ref,
    # per-layer channel fold / tile matrices + BN affine params
    f1_ref, ft1_ref, f2_ref, ft2_ref, f3_ref, ft3_ref,
    g1_ref, be1_ref, g2_ref, be2_ref, g3_ref, be3_ref,
    # conv4: fused banded weight (3*W*Cin, 128-padded lanes) in HBM + tiled bias
    rc_hbm, b4_ref,
    # output canvas (B*H, 128-padded lanes)
    o_ref,
    # scratch: VMEM landing buffers for the streamed weights + DMA semaphores
    rw_vmem, rc_vmem, sem,
    *, h_out,
):
    f32 = jnp.float32

    # Kick off all weight DMAs up front, ordered by first use; waits are placed just
    # before each use so the later-layer transfers overlap the earlier-layer compute.
    rw_cp = [pltpu.make_async_copy(rw_hbm.at[k], rw_vmem.at[k], sem.at[k])
             for k in range(3)]
    rc_cp = pltpu.make_async_copy(rc_hbm, rc_vmem, sem.at[3])
    for cp in rw_cp:
        cp.start()
    rc_cp.start()

    # ---- l1: single matmul.  The augmented z/weight (built in the wrapper) already
    # encode the per-h block selection and the bias, so the result is directly the
    # (B*fk, fk*C1) canvas with rows=(b, h) and lanes=(w, c).
    x = jnp.dot(zaug_ref[...], w1_ref[...], preferred_element_type=f32)

    # ---- fused ConvTranspose2d(4,2,1) + BatchNorm2d(batch stats) + ReLU --------------
    def deconv_bn_relu(x, rw, sh_ref, fold, foldt, gamma, beta):
        # x:      (R, W*Cin) canvas, rows=(b,h), lanes=(w,cin)
        # rw:     (W*Cin, 4*2W*Cout) banded weight, lanes=(kh, ow, cout); the width
        #         overlap-add / interleave of the stride-2 deconv is folded in.
        # sh_ref: (4, 2R, R) 0/1 matrices doing the height overlap-add / interleave
        #         (oh = 2h - 1 + kh, cropped to [0, 2H)).
        y0 = jnp.dot(x, rw, preferred_element_type=f32)              # (R, 4*n)
        n = y0.shape[1] // 4                                         # 2W * Cout
        # Sequential accumulation over kh: lane slices at 256-multiples (tile aligned),
        # no ytall concat; linear += chain keeps partials in the MRB on v7x.
        y = jnp.dot(sh_ref[0], y0[:, 0:n], preferred_element_type=f32)
        for kh in range(1, 4):
            y = y + jnp.dot(sh_ref[kh], y0[:, kh * n:(kh + 1) * n],
                            preferred_element_type=f32)              # (2R, n) rows=(b,oh)

        # BatchNorm over (B, OH, OW) per channel.  Row-reduce first (XLU), then fold
        # the (ow, c) lane groups with tiny M=1 matmuls.  The ConvTranspose2d bias is a
        # per-channel constant and cancels exactly under train-mode batch stats.
        c = gamma.shape[1]
        inv_cnt = 1.0 / float(y.shape[0] * (n // c))                 # 1 / (B*2H*2W)
        ysum = jnp.sum(y, axis=0, keepdims=True)                     # (1, n)
        ysq = jnp.sum(y * y, axis=0, keepdims=True)                  # (1, n)
        mean = jnp.dot(ysum, fold, preferred_element_type=f32) * inv_cnt   # (1, C)
        ex2 = jnp.dot(ysq, fold, preferred_element_type=f32) * inv_cnt     # (1, C)
        var = ex2 - mean * mean
        scale = gamma * lax.rsqrt(var + BN_EPS)                      # (1, C)
        shift = beta - mean * scale                                  # (1, C)
        sf = jnp.dot(scale, foldt, preferred_element_type=f32)       # (1, n) tiled
        hf = jnp.dot(shift, foldt, preferred_element_type=f32)       # (1, n) tiled
        return jnp.maximum(y * sf + hf, 0.0)

    rw_cp[0].wait()
    x = deconv_bn_relu(x, rw_vmem[0], sh1_ref, f1_ref[...], ft1_ref[...],
                       g1_ref[...], be1_ref[...])
    rw_cp[1].wait()
    x = deconv_bn_relu(x, rw_vmem[1], sh2_ref, f2_ref[...], ft2_ref[...],
                       g2_ref[...], be2_ref[...])
    rw_cp[2].wait()
    x = deconv_bn_relu(x, rw_vmem[2], sh3_ref, f3_ref[...], ft3_ref[...],
                       g3_ref[...], be3_ref[...])

    # ---- conv4: Conv2d(3,1,1) + bias + tanh ------------------------------------------
    # Height shifts via XLU roll + VPU border mask (off the MXU chain); the three
    # kernel-row matmuls are fused into a single K = 3*W*Cin matmul; output lanes are
    # padded to a multiple of 128 so the final store is unmasked / lane-dense.
    r_rows = x.shape[0]
    row_in_img = lax.broadcasted_iota(jnp.int32, x.shape, 0) % h_out
    xu = jnp.where(row_in_img == 0, 0.0, pltpu.roll(x, 1, axis=0))            # row h-1
    xd = jnp.where(row_in_img == h_out - 1, 0.0,
                   pltpu.roll(x, r_rows - 1, axis=0))                         # row h+1
    x_cat = jnp.concatenate([xu, x, xd], axis=1)        # lane concat at 256-multiples
    rc_cp.wait()
    y = jnp.dot(x_cat, rc_vmem[...], preferred_element_type=f32) + b4_ref[...]
    o_ref[...] = jnp.tanh(y)


# -------------------- host-side constant / weight preprocessing -------------------- #

def _build_row_scatter(batch, h_in):
    """(4, B*2H, B*H) 0/1: height overlap-add + interleave of the k4/s2/p1 deconv."""
    s = np.zeros((4, batch * 2 * h_in, batch * h_in), np.float32)
    for kh in range(4):
        for h in range(h_in):
            oh = 2 * h - 1 + kh
            if 0 <= oh < 2 * h_in:
                for b in range(batch):
                    s[kh, b * 2 * h_in + oh, b * h_in + h] = 1.0
    return s


def _build_fold(w_out, c):
    """(w_out*c, c) 0/1: sums the (ow, c) lane groups per channel; its transpose tiles."""
    return np.tile(np.eye(c, dtype=np.float32), (w_out, 1))


def _deconv_banded_weight(wt, w_in):
    """ConvTranspose2d weight (Cin, Cout, 4, 4) -> (W*Cin, 4*2W*Cout) banded matrix.

    Column order (kh, ow, cout); entry [(w, ci), (kh, ow, co)] = wt[ci, co, kh, kw] with
    kw = ow + 1 - 2*w when 0 <= kw < 4, else 0 (width scatter of the s2/p1 deconv folded
    into the weight so the kernel only does dense lane-aligned matmuls).
    """
    cin, cout = wt.shape[0], wt.shape[1]
    r = jnp.zeros((w_in, cin, 4, 2 * w_in, cout), wt.dtype)
    for kw in range(4):
        w_idx = np.arange(w_in)
        ow_idx = 2 * w_idx - 1 + kw
        keep = (ow_idx >= 0) & (ow_idx < 2 * w_in)
        w_idx, ow_idx = w_idx[keep], ow_idx[keep]
        blk = jnp.transpose(wt[:, :, :, kw], (0, 2, 1))             # (Cin, kh, Cout)
        r = r.at[w_idx, :, :, ow_idx, :].set(
            jnp.broadcast_to(blk, (len(w_idx), cin, 4, cout)))
    return r.reshape(w_in * cin, 4 * 2 * w_in * cout)


def _conv3_banded_weight(wc, w, dh):
    """Conv2d weight (Cout, Cin, 3, 3), one kernel row dh -> (W*Cin, W*Cout) band."""
    cout, cin = wc.shape[0], wc.shape[1]
    r = jnp.zeros((w, cin, w, cout), wc.dtype)
    for dw in range(3):
        wo_idx = np.arange(w)
        wi_idx = wo_idx - 1 + dw
        keep = (wi_idx >= 0) & (wi_idx < w)
        wo_idx, wi_idx = wo_idx[keep], wi_idx[keep]
        blk = jnp.transpose(wc[:, :, dh, dw], (1, 0))               # (Cin, Cout)
        r = r.at[wi_idx, :, wo_idx, :].set(
            jnp.broadcast_to(blk, (len(wo_idx), cin, cout)))
    return r.reshape(w * cin, w * cout)


def _prep_l1_aug(w_l1, b_l1, c1, fk):
    """Fold the Linear's (h)-block selection and its bias into one augmented weight.

    Returns W_aug of shape (fk*dim_z + fk, fk*c1) such that
      x[(b,h), (w,c)] = sum_d z[b,d] * W_aug[h*dim_z + d, (w,c)] + W_aug[fk*dim_z + h, (w,c)]
    matches the PyTorch l1 + view(-1, C, H, W) output at (b, c, h, w).
    """
    dim_z = w_l1.shape[1]
    blk = fk * c1
    w = w_l1.reshape(c1, fk, fk, dim_z).transpose(1, 2, 0, 3)        # (h, w, c, d)
    b = b_l1.reshape(c1, fk, fk).transpose(1, 2, 0)                  # (h, w, c)
    w_top = w.reshape(fk, blk, dim_z).transpose(0, 2, 1).reshape(fk * dim_z, blk)
    w_bot = b.reshape(fk, blk)
    return jnp.concatenate([w_top, w_bot], axis=0)


# ------------------------------------ wrapper ------------------------------------- #

def generator_forward_pallas(z, p, *, nf, fk):
    """Mirrors DCGenerator32BN.forward. z: (B, dim_z). Returns NCHW image."""
    batch, dim_z = z.shape
    c1, c2, c3, c4 = nf * 8, nf * 4, nf * 2, nf
    h1, h2, h3, h4 = fk, 2 * fk, 4 * fk, 8 * fk       # per-layer input spatial sizes
    ch = p["w_c4"].shape[0]

    # Parameter-derived dense operands (tiny, wrapper-side layout plumbing).
    w1_aug = _prep_l1_aug(p["w_l1"], p["b_l1"], c1, fk)              # (fk*dz+fk, fk*c1)
    rw_all = jnp.stack([_deconv_banded_weight(p["w_d1"], h1),
                        _deconv_banded_weight(p["w_d2"], h2),
                        _deconv_banded_weight(p["w_d3"], h3)])       # (3, 8nf*fk, 32nf*fk)
    rc = jnp.concatenate([_conv3_banded_weight(p["w_c4"], h4, d) for d in range(3)],
                         axis=0)                                     # (3*h4*c4, h4*ch)
    out_lanes = 128 * ((h4 * ch + 127) // 128)                       # lane-dense output
    rc = jnp.pad(rc, ((0, 0), (0, out_lanes - h4 * ch)))
    b4t = jnp.pad(jnp.tile(p["b_c4"], (h4,)),
                  (0, out_lanes - h4 * ch)).reshape(1, out_lanes)

    # Data-independent 0/1 scatter / fold constants (numpy, fixed at trace time).
    sh1 = jnp.asarray(_build_row_scatter(batch, h1))
    sh2 = jnp.asarray(_build_row_scatter(batch, h2))
    sh3 = jnp.asarray(_build_row_scatter(batch, h3))
    f1 = _build_fold(2 * h1, c2)
    f2 = _build_fold(2 * h2, c3)
    f3 = _build_fold(2 * h3, c4)

    # Augmented z: one-hot(h) (x) z plus a one-hot bias column per h-block, so the l1
    # output is already the (B*fk, fk*C1) canvas (rows=(b,h), lanes=(w,c)).
    eye_fk = jnp.eye(fk, dtype=z.dtype)
    z_aug = jnp.concatenate(
        [jnp.einsum("hg,bd->bhgd", eye_fk, z).reshape(batch * fk, fk * dim_z),
         jnp.tile(eye_fk, (batch, 1))], axis=1)                      # (B*fk, fk*dz+fk)

    kernel = functools.partial(_generator_kernel, h_out=h4)
    out = pl.pallas_call(
        kernel,
        out_shape=jax.ShapeDtypeStruct((batch * h4, out_lanes), jnp.float32),
        in_specs=[_VMEM, _VMEM, _ANY] + [_VMEM] * 15 + [_ANY, _VMEM],
        out_specs=_VMEM,
        scratch_shapes=[pltpu.VMEM(rw_all.shape, jnp.float32),
                        pltpu.VMEM(rc.shape, jnp.float32),
                        pltpu.SemaphoreType.DMA((4,))],
        compiler_params=pltpu.CompilerParams(vmem_limit_bytes=32 * 1024 * 1024),
    )(z_aug, w1_aug, rw_all,
      sh1, sh2, sh3,
      jnp.asarray(f1), jnp.asarray(f1.T),
      jnp.asarray(f2), jnp.asarray(f2.T),
      jnp.asarray(f3), jnp.asarray(f3.T),
      p["g1"].reshape(1, -1), p["be1"].reshape(1, -1),
      p["g2"].reshape(1, -1), p["be2"].reshape(1, -1),
      p["g3"].reshape(1, -1), p["be3"].reshape(1, -1),
      rc, b4t)

    # Canvas (rows=(b, h), lanes=(w, c)) -> crop lane padding -> NCHW.
    return out[:, :h4 * ch].reshape(batch, h4, h4, ch).transpose(0, 3, 1, 2)


# --------------------------- pure-JAX reference ------------------------------ #

def reference_forward(z, p, *, nf, fk):
    B = z.shape[0]
    x = z @ p["w_l1"].T + p["b_l1"]
    x = x.reshape(B, nf * 8, fk, fk)

    def deconv(x, w_t, b):
        w_conv = jnp.transpose(jnp.flip(w_t, axis=(2, 3)), (1, 0, 2, 3))
        y = lax.conv_general_dilated(
            x, w_conv, window_strides=(1, 1), padding=((2, 2), (2, 2)),
            lhs_dilation=(2, 2), dimension_numbers=("NCHW", "OIHW", "NCHW"))
        return y + b[None, :, None, None]

    def bn_relu(x, g, be):
        mean = jnp.mean(x, axis=(0, 2, 3), keepdims=True)
        var = jnp.mean(jnp.square(x - mean), axis=(0, 2, 3), keepdims=True)
        y = (x - mean) * lax.rsqrt(var + BN_EPS)
        return jnp.maximum(y * g[None, :, None, None] + be[None, :, None, None], 0.0)

    x = bn_relu(deconv(x, p["w_d1"], p["b_d1"]), p["g1"], p["be1"])
    x = bn_relu(deconv(x, p["w_d2"], p["b_d2"]), p["g2"], p["be2"])
    x = bn_relu(deconv(x, p["w_d3"], p["b_d3"]), p["g3"], p["be3"])
    y = lax.conv_general_dilated(
        x, p["w_c4"], window_strides=(1, 1), padding=((1, 1), (1, 1)),
        dimension_numbers=("NCHW", "OIHW", "NCHW"))
    return jnp.tanh(y + p["b_c4"][None, :, None, None])


# ------------------------------ parameters ----------------------------------- #

def init_params(key, dim_z, nf, channel, fk):
    ks = jax.random.split(key, 16)

    def nrm(k, shape, s=0.05):
        return jax.random.normal(k, shape, jnp.float32) * s

    p = {}
    p["w_l1"] = nrm(ks[0], (nf * 8 * fk * fk, dim_z))   # Linear weight (out, in)
    p["b_l1"] = nrm(ks[1], (nf * 8 * fk * fk,))
    p["w_d1"] = nrm(ks[2], (nf * 8, nf * 4, 4, 4))      # ConvTranspose2d (Cin,Cout,4,4)
    p["b_d1"] = nrm(ks[3], (nf * 4,))
    p["w_d2"] = nrm(ks[4], (nf * 4, nf * 2, 4, 4))
    p["b_d2"] = nrm(ks[5], (nf * 2,))
    p["w_d3"] = nrm(ks[6], (nf * 2, nf, 4, 4))
    p["b_d3"] = nrm(ks[7], (nf,))
    p["w_c4"] = nrm(ks[8], (channel, nf, 3, 3))         # Conv2d (Cout,Cin,3,3)
    p["b_c4"] = nrm(ks[9], (channel,))
    p["g1"] = 1.0 + nrm(ks[10], (nf * 4,), 0.1)
    p["be1"] = nrm(ks[11], (nf * 4,), 0.1)
    p["g2"] = 1.0 + nrm(ks[12], (nf * 2,), 0.1)
    p["be2"] = nrm(ks[13], (nf * 2,), 0.1)
    p["g3"] = 1.0 + nrm(ks[14], (nf,), 0.1)
    p["be3"] = nrm(ks[15], (nf,), 0.1)
    return p


# --------------------------------- main -------------------------------------- #

if __name__ == "__main__":
    # small shapes consistent with the module: dim_z=32, num_features=8, channel=3,
    # first_kernel=4, batch=2  ->  output (2, 3, 32, 32)
    B, DIM_Z, NF, CH, FK = 2, 32, 8, 3, 4

    key = jax.random.PRNGKey(0)
    kz, kp = jax.random.split(key)
    z = jax.random.normal(kz, (B, DIM_Z), jnp.float32)
    params = init_params(kp, DIM_Z, NF, CH, FK)

    fwd = jax.jit(functools.partial(generator_forward_pallas, nf=NF, fk=FK))
    out = jax.block_until_ready(fwd(z, params))

    assert out.shape == (B, CH, 8 * FK, 8 * FK), out.shape

    ref = jax.block_until_ready(reference_forward(z, params, nf=NF, fk=FK))
    max_err = float(jnp.max(jnp.abs(out - ref)))
    assert jnp.allclose(out, ref, rtol=2e-4, atol=2e-4), max_err

    print("KERNEL_OK")
</pallas_src>

<mosaic_0001>
module attributes {stable_mosaic.version = 11 : i64} {
  func.func @_generator_kernel(%arg0: memref<8x132xf32, #tpu.memory_space<vmem>>, %arg1: memref<132x256xf32, #tpu.memory_space<vmem>>, %arg2: memref<3x256x1024xf32, #tpu.memory_space<any>>, %arg3: memref<4x16x8xf32, #tpu.memory_space<vmem>>, %arg4: memref<4x32x16xf32, #tpu.memory_space<vmem>>, %arg5: memref<4x64x32xf32, #tpu.memory_space<vmem>>, %arg6: memref<256x32xf32, #tpu.memory_space<vmem>>, %arg7: memref<32x256xf32, #tpu.memory_space<vmem>>, %arg8: memref<256x16xf32, #tpu.memory_space<vmem>>, %arg9: memref<16x256xf32, #tpu.memory_space<vmem>>, %arg10: memref<256x8xf32, #tpu.memory_space<vmem>>, %arg11: memref<8x256xf32, #tpu.memory_space<vmem>>, %arg12: memref<1x32xf32, #tpu.memory_space<vmem>>, %arg13: memref<1x32xf32, #tpu.memory_space<vmem>>, %arg14: memref<1x16xf32, #tpu.memory_space<vmem>>, %arg15: memref<1x16xf32, #tpu.memory_space<vmem>>, %arg16: memref<1x8xf32, #tpu.memory_space<vmem>>, %arg17: memref<1x8xf32, #tpu.memory_space<vmem>>, %arg18: memref<768x128xf32, #tpu.memory_space<any>>, %arg19: memref<1x128xf32, #tpu.memory_space<vmem>>, %arg20: memref<64x128xf32, #tpu.memory_space<vmem>>, %arg21: memref<3x256x1024xf32, #tpu.memory_space<vmem>>, %arg22: memref<768x128xf32, #tpu.memory_space<vmem>>, %arg23: memref<4x!tpu.dma_semaphore, #tpu.memory_space<semaphore_mem>>) attributes {dimension_semantics = [], scalar_prefetch = 0 : i64, scratch_operands = 3 : i64, tpu.core_type = #tpu.core_type<tc>} {
    %c0_i32 = arith.constant 0 : i32
    %c0_i32_0 = arith.constant 0 : i32
    %c0_i32_1 = arith.constant 0 : i32
    %c0_i32_2 = arith.constant 0 : i32
    %c0_i32_3 = arith.constant 0 : i32
    %0 = tpu.memref_slice %arg2[%c0_i32, %c0_i32_2, %c0_i32_3] : memref<3x256x1024xf32, #tpu.memory_space<any>> -> memref<1x256x1024xf32, #tpu.memory_space<any>>
    %1 = tpu.memref_squeeze %0 : memref<1x256x1024xf32, #tpu.memory_space<any>> -> memref<256x1024xf32, #tpu.memory_space<any>>
    %c0_i32_4 = arith.constant 0 : i32
    %c0_i32_5 = arith.constant 0 : i32
    %2 = tpu.memref_slice %arg21[%c0_i32_0, %c0_i32_4, %c0_i32_5] : memref<3x256x1024xf32, #tpu.memory_space<vmem>> -> memref<1x256x1024xf32, #tpu.memory_space<vmem>>
    %3 = tpu.memref_squeeze %2 : memref<1x256x1024xf32, #tpu.memory_space<vmem>> -> memref<256x1024xf32, #tpu.memory_space<vmem>>
    %4 = tpu.memref_slice %arg23[%c0_i32_1] : memref<4x!tpu.dma_semaphore, #tpu.memory_space<semaphore_mem>> -> memref<1x!tpu.dma_semaphore, #tpu.memory_space<semaphore_mem>>
    %5 = tpu.memref_squeeze %4 : memref<1x!tpu.dma_semaphore, #tpu.memory_space<semaphore_mem>> -> memref<!tpu.dma_semaphore, #tpu.memory_space<semaphore_mem>>
    tpu.enqueue_dma source(%1 : memref<256x1024xf32, #tpu.memory_space<any>>) target(%3 : memref<256x1024xf32, #tpu.memory_space<vmem>>) target_semaphore(%5 : memref<!tpu.dma_semaphore, #tpu.memory_space<semaphore_mem>>)
    %c1_i32 = arith.constant 1 : i32
    %c1_i32_6 = arith.constant 1 : i32
    %c1_i32_7 = arith.constant 1 : i32
    %c0_i32_8 = arith.constant 0 : i32
    %c0_i32_9 = arith.constant 0 : i32
    %6 = tpu.memref_slice %arg2[%c1_i32, %c0_i32_8, %c0_i32_9] : memref<3x256x1024xf32, #tpu.memory_space<any>> -> memref<1x256x1024xf32, #tpu.memory_space<any>>
    %7 = tpu.memref_squeeze %6 : memref<1x256x1024xf32, #tpu.memory_space<any>> -> memref<256x1024xf32, #tpu.memory_space<any>>
    %c0_i32_10 = arith.constant 0 : i32
    %c0_i32_11 = arith.constant 0 : i32
    %8 = tpu.memref_slice %arg21[%c1_i32_6, %c0_i32_10, %c0_i32_11] : memref<3x256x1024xf32, #tpu.memory_space<vmem>> -> memref<1x256x1024xf32, #tpu.memory_space<vmem>>
    %9 = tpu.memref_squeeze %8 : memref<1x256x1024xf32, #tpu.memory_space<vmem>> -> memref<256x1024xf32, #tpu.memory_space<vmem>>
    %10 = tpu.memref_slice %arg23[%c1_i32_7] : memref<4x!tpu.dma_semaphore, #tpu.memory_space<semaphore_mem>> -> memref<1x!tpu.dma_semaphore, #tpu.memory_space<semaphore_mem>>
    %11 = tpu.memref_squeeze %10 : memref<1x!tpu.dma_semaphore, #tpu.memory_space<semaphore_mem>> -> memref<!tpu.dma_semaphore, #tpu.memory_space<semaphore_mem>>
    tpu.enqueue_dma source(%7 : memref<256x1024xf32, #tpu.memory_space<any>>) target(%9 : memref<256x1024xf32, #tpu.memory_space<vmem>>) target_semaphore(%11 : memref<!tpu.dma_semaphore, #tpu.memory_space<semaphore_mem>>)
    %c2_i32 = arith.constant 2 : i32
    %c2_i32_12 = arith.constant 2 : i32
    %c2_i32_13 = arith.constant 2 : i32
    %c0_i32_14 = arith.constant 0 : i32
    %c0_i32_15 = arith.constant 0 : i32
    %12 = tpu.memref_slice %arg2[%c2_i32, %c0_i32_14, %c0_i32_15] : memref<3x256x1024xf32, #tpu.memory_space<any>> -> memref<1x256x1024xf32, #tpu.memory_space<any>>
    %13 = tpu.memref_squeeze %12 : memref<1x256x1024xf32, #tpu.memory_space<any>> -> memref<256x1024xf32, #tpu.memory_space<any>>
    %c0_i32_16 = arith.constant 0 : i32
    %c0_i32_17 = arith.constant 0 : i32
    %14 = tpu.memref_slice %arg21[%c2_i32_12, %c0_i32_16, %c0_i32_17] : memref<3x256x1024xf32, #tpu.memory_space<vmem>> -> memref<1x256x1024xf32, #tpu.memory_space<vmem>>
    %15 = tpu.memref_squeeze %14 : memref<1x256x1024xf32, #tpu.memory_space<vmem>> -> memref<256x1024xf32, #tpu.memory_space<vmem>>
    %16 = tpu.memref_slice %arg23[%c2_i32_13] : memref<4x!tpu.dma_semaphore, #tpu.memory_space<semaphore_mem>> -> memref<1x!tpu.dma_semaphore, #tpu.memory_space<semaphore_mem>>
    %17 = tpu.memref_squeeze %16 : memref<1x!tpu.dma_semaphore, #tpu.memory_space<semaphore_mem>> -> memref<!tpu.dma_semaphore, #tpu.memory_space<semaphore_mem>>
    tpu.enqueue_dma source(%13 : memref<256x1024xf32, #tpu.memory_space<any>>) target(%15 : memref<256x1024xf32, #tpu.memory_space<vmem>>) target_semaphore(%17 : memref<!tpu.dma_semaphore, #tpu.memory_space<semaphore_mem>>)
    %c3_i32 = arith.constant 3 : i32
    %18 = tpu.memref_slice %arg23[%c3_i32] : memref<4x!tpu.dma_semaphore, #tpu.memory_space<semaphore_mem>> -> memref<1x!tpu.dma_semaphore, #tpu.memory_space<semaphore_mem>>
    %19 = tpu.memref_squeeze %18 : memref<1x!tpu.dma_semaphore, #tpu.memory_space<semaphore_mem>> -> memref<!tpu.dma_semaphore, #tpu.memory_space<semaphore_mem>>
    tpu.enqueue_dma source(%arg18 : memref<768x128xf32, #tpu.memory_space<any>>) target(%arg22 : memref<768x128xf32, #tpu.memory_space<vmem>>) target_semaphore(%19 : memref<!tpu.dma_semaphore, #tpu.memory_space<semaphore_mem>>)
    %c0 = arith.constant 0 : index
    %c0_18 = arith.constant 0 : index
    %20 = vector.load %arg0[%c0, %c0_18] : memref<8x132xf32, #tpu.memory_space<vmem>>, vector<8x132xf32>
    %c0_19 = arith.constant 0 : index
    %c0_20 = arith.constant 0 : index
    %21 = vector.load %arg1[%c0_19, %c0_20] : memref<132x256xf32, #tpu.memory_space<vmem>>, vector<132x256xf32>
    %cst = arith.constant dense<0.000000e+00> : vector<8x256xf32>
    %22 = tpu.matmul %20, %21, %cst {dimension_numbers = #tpu.dot_dimension_numbers<[1], [0], [0], [1], [0, 0, 1, 1], [], []>} : vector<8x132xf32>, vector<132x256xf32>, vector<8x256xf32> -> vector<8x256xf32>
    %c0_i32_21 = arith.constant 0 : i32
    %c0_i32_22 = arith.constant 0 : i32
    %c0_i32_23 = arith.constant 0 : i32
    %c0_i32_24 = arith.constant 0 : i32
    %c0_i32_25 = arith.constant 0 : i32
    %23 = tpu.memref_slice %arg2[%c0_i32_21, %c0_i32_24, %c0_i32_25] : memref<3x256x1024xf32, #tpu.memory_space<any>> -> memref<1x256x1024xf32, #tpu.memory_space<any>>
    %24 = tpu.memref_squeeze %23 : memref<1x256x1024xf32, #tpu.memory_space<any>> -> memref<256x1024xf32, #tpu.memory_space<any>>
    %c0_i32_26 = arith.constant 0 : i32
    %c0_i32_27 = arith.constant 0 : i32
    %25 = tpu.memref_slice %arg21[%c0_i32_22, %c0_i32_26, %c0_i32_27] : memref<3x256x1024xf32, #tpu.memory_space<vmem>> -> memref<1x256x1024xf32, #tpu.memory_space<vmem>>
    %26 = tpu.memref_squeeze %25 : memref<1x256x1024xf32, #tpu.memory_space<vmem>> -> memref<256x1024xf32, #tpu.memory_space<vmem>>
    %27 = tpu.memref_slice %arg23[%c0_i32_23] : memref<4x!tpu.dma_semaphore, #tpu.memory_space<semaphore_mem>> -> memref<1x!tpu.dma_semaphore, #tpu.memory_space<semaphore_mem>>
    %28 = tpu.memref_squeeze %27 : memref<1x!tpu.dma_semaphore, #tpu.memory_space<semaphore_mem>> -> memref<!tpu.dma_semaphore, #tpu.memory_space<semaphore_mem>>
    tpu.wait_dma2 semaphore(%28 : memref<!tpu.dma_semaphore, #tpu.memory_space<semaphore_mem>>) src(%24 : memref<256x1024xf32, #tpu.memory_space<any>>) dst(%26 : memref<256x1024xf32, #tpu.memory_space<vmem>>)
    %c0_28 = arith.constant 0 : index
    %c0_29 = arith.constant 0 : index
    %c0_30 = arith.constant 0 : index
    %29 = vector.load %arg21[%c0_28, %c0_29, %c0_30] : memref<3x256x1024xf32, #tpu.memory_space<vmem>>, vector<1x256x1024xf32>
    %30 = vector.shape_cast %29 : vector<1x256x1024xf32> to vector<256x1024xf32>
    %c0_31 = arith.constant 0 : index
    %c0_32 = arith.constant 0 : index
    %31 = vector.load %arg6[%c0_31, %c0_32] : memref<256x32xf32, #tpu.memory_space<vmem>>, vector<256x32xf32>
    %c0_33 = arith.constant 0 : index
    %c0_34 = arith.constant 0 : index
    %32 = vector.load %arg7[%c0_33, %c0_34] : memref<32x256xf32, #tpu.memory_space<vmem>>, vector<32x256xf32>
    %c0_35 = arith.constant 0 : index
    %c0_36 = arith.constant 0 : index
    %33 = vector.load %arg12[%c0_35, %c0_36] : memref<1x32xf32, #tpu.memory_space<vmem>>, vector<1x32xf32>
    %c0_37 = arith.constant 0 : index
    %c0_38 = arith.constant 0 : index
    %34 = vector.load %arg13[%c0_37, %c0_38] : memref<1x32xf32, #tpu.memory_space<vmem>>, vector<1x32xf32>
    %cst_39 = arith.constant dense<0.000000e+00> : vector<8x1024xf32>
    %35 = tpu.matmul %22, %30, %cst_39 {dimension_numbers = #tpu.dot_dimension_numbers<[1], [0], [0], [1], [0, 0, 1, 1], [], []>} : vector<8x256xf32>, vector<256x1024xf32>, vector<8x1024xf32> -> vector<8x1024xf32>
    %c0_40 = arith.constant 0 : index
    %c0_41 = arith.constant 0 : index
    %c0_42 = arith.constant 0 : index
    %36 = vector.load %arg3[%c0_40, %c0_41, %c0_42] : memref<4x16x8xf32, #tpu.memory_space<vmem>>, vector<1x16x8xf32>
    %37 = vector.shape_cast %36 : vector<1x16x8xf32> to vector<16x8xf32>
    %38 = vector.extract_strided_slice %35 {offsets = [0, 0], sizes = [8, 256], strides = [1, 1]} : vector<8x1024xf32> to vector<8x256xf32>
    %cst_43 = arith.constant dense<0.000000e+00> : vector<16x256xf32>
    %39 = tpu.matmul %37, %38, %cst_43 {dimension_numbers = #tpu.dot_dimension_numbers<[1], [0], [0], [1], [0, 0, 1, 1], [], []>} : vector<16x8xf32>, vector<8x256xf32>, vector<16x256xf32> -> vector<16x256xf32>
    %c1 = arith.constant 1 : index
    %c0_44 = arith.constant 0 : index
    %c0_45 = arith.constant 0 : index
    %40 = vector.load %arg3[%c1, %c0_44, %c0_45] : memref<4x16x8xf32, #tpu.memory_space<vmem>>, vector<1x16x8xf32>
    %41 = vector.shape_cast %40 : vector<1x16x8xf32> to vector<16x8xf32>
    %42 = vector.extract_strided_slice %35 {offsets = [0, 256], sizes = [8, 256], strides = [1, 1]} : vector<8x1024xf32> to vector<8x256xf32>
    %cst_46 = arith.constant dense<0.000000e+00> : vector<16x256xf32>
    %43 = tpu.matmul %41, %42, %cst_46 {dimension_numbers = #tpu.dot_dimension_numbers<[1], [0], [0], [1], [0, 0, 1, 1], [], []>} : vector<16x8xf32>, vector<8x256xf32>, vector<16x256xf32> -> vector<16x256xf32>
    %44 = arith.addf %39, %43 : vector<16x256xf32>
    %c2 = arith.constant 2 : index
    %c0_47 = arith.constant 0 : index
    %c0_48 = arith.constant 0 : index
    %45 = vector.load %arg3[%c2, %c0_47, %c0_48] : memref<4x16x8xf32, #tpu.memory_space<vmem>>, vector<1x16x8xf32>
    %46 = vector.shape_cast %45 : vector<1x16x8xf32> to vector<16x8xf32>
    %47 = vector.extract_strided_slice %35 {offsets = [0, 512], sizes = [8, 256], strides = [1, 1]} : vector<8x1024xf32> to vector<8x256xf32>
    %cst_49 = arith.constant dense<0.000000e+00> : vector<16x256xf32>
    %48 = tpu.matmul %46, %47, %cst_49 {dimension_numbers = #tpu.dot_dimension_numbers<[1], [0], [0], [1], [0, 0, 1, 1], [], []>} : vector<16x8xf32>, vector<8x256xf32>, vector<16x256xf32> -> vector<16x256xf32>
    %49 = arith.addf %44, %48 : vector<16x256xf32>
    %c3 = arith.constant 3 : index
    %c0_50 = arith.constant 0 : index
    %c0_51 = arith.constant 0 : index
    %50 = vector.load %arg3[%c3, %c0_50, %c0_51] : memref<4x16x8xf32, #tpu.memory_space<vmem>>, vector<1x16x8xf32>
    %51 = vector.shape_cast %50 : vector<1x16x8xf32> to vector<16x8xf32>
    %52 = vector.extract_strided_slice %35 {offsets = [0, 768], sizes = [8, 256], strides = [1, 1]} : vector<8x1024xf32> to vector<8x256xf32>
    %cst_52 = arith.constant dense<0.000000e+00> : vector<16x256xf32>
    %53 = tpu.matmul %51, %52, %cst_52 {dimension_numbers = #tpu.dot_dimension_numbers<[1], [0], [0], [1], [0, 0, 1, 1], [], []>} : vector<16x8xf32>, vector<8x256xf32>, vector<16x256xf32> -> vector<16x256xf32>
    %54 = arith.addf %49, %53 : vector<16x256xf32>
    %cst_53 = arith.constant dense<0.000000e+00> : vector<256xf32>
    %55 = vector.multi_reduction <add>, %54, %cst_53 [0] : vector<16x256xf32> to vector<256xf32>
    %56 = vector.shape_cast %55 : vector<256xf32> to vector<1x256xf32>
    %57 = arith.mulf %54, %54 : vector<16x256xf32>
    %cst_54 = arith.constant dense<0.000000e+00> : vector<256xf32>
    %58 = vector.multi_reduction <add>, %57, %cst_54 [0] : vector<16x256xf32> to vector<256xf32>
    %59 = vector.shape_cast %58 : vector<256xf32> to vector<1x256xf32>
    %cst_55 = arith.constant dense<0.000000e+00> : vector<1x32xf32>
    %60 = tpu.matmul %56, %31, %cst_55 {dimension_numbers = #tpu.dot_dimension_numbers<[1], [0], [0], [1], [0, 0, 1, 1], [], []>} : vector<1x256xf32>, vector<256x32xf32>, vector<1x32xf32> -> vector<1x32xf32>
    %cst_56 = arith.constant 7.812500e-03 : f32
    %61 = vector.broadcast %cst_56 : f32 to vector<1x32xf32>
    %62 = arith.mulf %60, %61 : vector<1x32xf32>
    %cst_57 = arith.constant dense<0.000000e+00> : vector<1x32xf32>
    %63 = tpu.matmul %59, %31, %cst_57 {dimension_numbers = #tpu.dot_dimension_numbers<[1], [0], [0], [1], [0, 0, 1, 1], [], []>} : vector<1x256xf32>, vector<256x32xf32>, vector<1x32xf32> -> vector<1x32xf32>
    %cst_58 = arith.constant 7.812500e-03 : f32
    %64 = vector.broadcast %cst_58 : f32 to vector<1x32xf32>
    %65 = arith.mulf %63, %64 : vector<1x32xf32>
    %66 = arith.mulf %62, %62 : vector<1x32xf32>
    %67 = arith.subf %65, %66 : vector<1x32xf32>
    %cst_59 = arith.constant 9.99999974E-6 : f32
    %68 = vector.broadcast %cst_59 : f32 to vector<1x32xf32>
    %69 = arith.addf %67, %68 : vector<1x32xf32>
    %70 = math.rsqrt %69 : vector<1x32xf32>
    %71 = arith.mulf %33, %70 : vector<1x32xf32>
    %72 = arith.mulf %62, %71 : vector<1x32xf32>
    %73 = arith.subf %34, %72 : vector<1x32xf32>
    %cst_60 = arith.constant dense<0.000000e+00> : vector<1x256xf32>
    %74 = tpu.matmul %71, %32, %cst_60 {dimension_numbers = #tpu.dot_dimension_numbers<[1], [0], [0], [1], [0, 0, 1, 1], [], []>} : vector<1x32xf32>, vector<32x256xf32>, vector<1x256xf32> -> vector<1x256xf32>
    %cst_61 = arith.constant dense<0.000000e+00> : vector<1x256xf32>
    %75 = tpu.matmul %73, %32, %cst_61 {dimension_numbers = #tpu.dot_dimension_numbers<[1], [0], [0], [1], [0, 0, 1, 1], [], []>} : vector<1x32xf32>, vector<32x256xf32>, vector<1x256xf32> -> vector<1x256xf32>
    %76 = vector.broadcast %74 : vector<1x256xf32> to vector<16x256xf32>
    %77 = arith.mulf %54, %76 : vector<16x256xf32>
    %78 = vector.broadcast %75 : vector<1x256xf32> to vector<16x256xf32>
    %79 = arith.addf %77, %78 : vector<16x256xf32>
    %cst_62 = arith.constant 0.000000e+00 : f32
    %80 = vector.broadcast %cst_62 : f32 to vector<16x256xf32>
    %81 = arith.maximumf %79, %80 : vector<16x256xf32>
    %c1_i32_63 = arith.constant 1 : i32
    %c1_i32_64 = arith.constant 1 : i32
    %c1_i32_65 = arith.constant 1 : i32
    %c0_i32_66 = arith.constant 0 : i32
    %c0_i32_67 = arith.constant 0 : i32
    %82 = tpu.memref_slice %arg2[%c1_i32_63, %c0_i32_66, %c0_i32_67] : memref<3x256x1024xf32, #tpu.memory_space<any>> -> memref<1x256x1024xf32, #tpu.memory_space<any>>
    %83 = tpu.memref_squeeze %82 : memref<1x256x1024xf32, #tpu.memory_space<any>> -> memref<256x1024xf32, #tpu.memory_space<any>>
    %c0_i32_68 = arith.constant 0 : i32
    %c0_i32_69 = arith.constant 0 : i32
    %84 = tpu.memref_slice %arg21[%c1_i32_64, %c0_i32_68, %c0_i32_69] : memref<3x256x1024xf32, #tpu.memory_space<vmem>> -> memref<1x256x1024xf32, #tpu.memory_space<vmem>>
    %85 = tpu.memref_squeeze %84 : memref<1x256x1024xf32, #tpu.memory_space<vmem>> -> memref<256x1024xf32, #tpu.memory_space<vmem>>
    %86 = tpu.memref_slice %arg23[%c1_i32_65] : memref<4x!tpu.dma_semaphore, #tpu.memory_space<semaphore_mem>> -> memref<1x!tpu.dma_semaphore, #tpu.memory_space<semaphore_mem>>
    %87 = tpu.memref_squeeze %86 : memref<1x!tpu.dma_semaphore, #tpu.memory_space<semaphore_mem>> -> memref<!tpu.dma_semaphore, #tpu.memory_space<semaphore_mem>>
    tpu.wait_dma2 semaphore(%87 : memref<!tpu.dma_semaphore, #tpu.memory_space<semaphore_mem>>) src(%83 : memref<256x1024xf32, #tpu.memory_space<any>>) dst(%85 : memref<256x1024xf32, #tpu.memory_space<vmem>>)
    %c1_70 = arith.constant 1 : index
    %c0_71 = arith.constant 0 : index
    %c0_72 = arith.constant 0 : index
    %88 = vector.load %arg21[%c1_70, %c0_71, %c0_72] : memref<3x256x1024xf32, #tpu.memory_space<vmem>>, vector<1x256x1024xf32>
    %89 = vector.shape_cast %88 : vector<1x256x1024xf32> to vector<256x1024xf32>
    %c0_73 = arith.constant 0 : index
    %c0_74 = arith.constant 0 : index
    %90 = vector.load %arg8[%c0_73, %c0_74] : memref<256x16xf32, #tpu.memory_space<vmem>>, vector<256x16xf32>
    %c0_75 = arith.constant 0 : index
    %c0_76 = arith.constant 0 : index
    %91 = vector.load %arg9[%c0_75, %c0_76] : memref<16x256xf32, #tpu.memory_space<vmem>>, vector<16x256xf32>
    %c0_77 = arith.constant 0 : index
    %c0_78 = arith.constant 0 : index
    %92 = vector.load %arg14[%c0_77, %c0_78] : memref<1x16xf32, #tpu.memory_space<vmem>>, vector<1x16xf32>
    %c0_79 = arith.constant 0 : index
    %c0_80 = arith.constant 0 : index
    %93 = vector.load %arg15[%c0_79, %c0_80] : memref<1x16xf32, #tpu.memory_space<vmem>>, vector<1x16xf32>
    %cst_81 = arith.constant dense<0.000000e+00> : vector<16x1024xf32>
    %94 = tpu.matmul %81, %89, %cst_81 {dimension_numbers = #tpu.dot_dimension_numbers<[1], [0], [0], [1], [0, 0, 1, 1], [], []>} : vector<16x256xf32>, vector<256x1024xf32>, vector<16x1024xf32> -> vector<16x1024xf32>
    %c0_82 = arith.constant 0 : index
    %c0_83 = arith.constant 0 : index
    %c0_84 = arith.constant 0 : index
    %95 = vector.load %arg4[%c0_82, %c0_83, %c0_84] : memref<4x32x16xf32, #tpu.memory_space<vmem>>, vector<1x32x16xf32>
    %96 = vector.shape_cast %95 : vector<1x32x16xf32> to vector<32x16xf32>
    %97 = vector.extract_strided_slice %94 {offsets = [0, 0], sizes = [16, 256], strides = [1, 1]} : vector<16x1024xf32> to vector<16x256xf32>
    %cst_85 = arith.constant dense<0.000000e+00> : vector<32x256xf32>
    %98 = tpu.matmul %96, %97, %cst_85 {dimension_numbers = #tpu.dot_dimension_numbers<[1], [0], [0], [1], [0, 0, 1, 1], [], []>} : vector<32x16xf32>, vector<16x256xf32>, vector<32x256xf32> -> vector<32x256xf32>
    %c1_86 = arith.constant 1 : index
    %c0_87 = arith.constant 0 : index
    %c0_88 = arith.constant 0 : index
    %99 = vector.load %arg4[%c1_86, %c0_87, %c0_88] : memref<4x32x16xf32, #tpu.memory_space<vmem>>, vector<1x32x16xf32>
    %100 = vector.shape_cast %99 : vector<1x32x16xf32> to vector<32x16xf32>
    %101 = vector.extract_strided_slice %94 {offsets = [0, 256], sizes = [16, 256], strides = [1, 1]} : vector<16x1024xf32> to vector<16x256xf32>
    %cst_89 = arith.constant dense<0.000000e+00> : vector<32x256xf32>
    %102 = tpu.matmul %100, %101, %cst_89 {dimension_numbers = #tpu.dot_dimension_numbers<[1], [0], [0], [1], [0, 0, 1, 1], [], []>} : vector<32x16xf32>, vector<16x256xf32>, vector<32x256xf32> -> vector<32x256xf32>
    %103 = arith.addf %98, %102 : vector<32x256xf32>
    %c2_90 = arith.constant 2 : index
    %c0_91 = arith.constant 0 : index
    %c0_92 = arith.constant 0 : index
    %104 = vector.load %arg4[%c2_90, %c0_91, %c0_92] : memref<4x32x16xf32, #tpu.memory_space<vmem>>, vector<1x32x16xf32>
    %105 = vector.shape_cast %104 : vector<1x32x16xf32> to vector<32x16xf32>
    %106 = vector.extract_strided_slice %94 {offsets = [0, 512], sizes = [16, 256], strides = [1, 1]} : vector<16x1024xf32> to vector<16x256xf32>
    %cst_93 = arith.constant dense<0.000000e+00> : vector<32x256xf32>
    %107 = tpu.matmul %105, %106, %cst_93 {dimension_numbers = #tpu.dot_dimension_numbers<[1], [0], [0], [1], [0, 0, 1, 1], [], []>} : vector<32x16xf32>, vector<16x256xf32>, vector<32x256xf32> -> vector<32x256xf32>
    %108 = arith.addf %103, %107 : vector<32x256xf32>
    %c3_94 = arith.constant 3 : index
    %c0_95 = arith.constant 0 : index
    %c0_96 = arith.constant 0 : index
    %109 = vector.load %arg4[%c3_94, %c0_95, %c0_96] : memref<4x32x16xf32, #tpu.memory_space<vmem>>, vector<1x32x16xf32>
    %110 = vector.shape_cast %109 : vector<1x32x16xf32> to vector<32x16xf32>
    %111 = vector.extract_strided_slice %94 {offsets = [0, 768], sizes = [16, 256], strides = [1, 1]} : vector<16x1024xf32> to vector<16x256xf32>
    %cst_97 = arith.constant dense<0.000000e+00> : vector<32x256xf32>
    %112 = tpu.matmul %110, %111, %cst_97 {dimension_numbers = #tpu.dot_dimension_numbers<[1], [0], [0], [1], [0, 0, 1, 1], [], []>} : vector<32x16xf32>, vector<16x256xf32>, vector<32x256xf32> -> vector<32x256xf32>
    %113 = arith.addf %108, %112 : vector<32x256xf32>
    %cst_98 = arith.constant dense<0.000000e+00> : vector<256xf32>
    %114 = vector.multi_reduction <add>, %113, %cst_98 [0] : vector<32x256xf32> to vector<256xf32>
    %115 = vector.shape_cast %114 : vector<256xf32> to vector<1x256xf32>
    %116 = arith.mulf %113, %113 : vector<32x256xf32>
    %cst_99 = arith.constant dense<0.000000e+00> : vector<256xf32>
    %117 = vector.multi_reduction <add>, %116, %cst_99 [0] : vector<32x256xf32> to vector<256xf32>
    %118 = vector.shape_cast %117 : vector<256xf32> to vector<1x256xf32>
    %cst_100 = arith.constant dense<0.000000e+00> : vector<1x16xf32>
    %119 = tpu.matmul %115, %90, %cst_100 {dimension_numbers = #tpu.dot_dimension_numbers<[1], [0], [0], [1], [0, 0, 1, 1], [], []>} : vector<1x256xf32>, vector<256x16xf32>, vector<1x16xf32> -> vector<1x16xf32>
    %cst_101 = arith.constant 0.001953125 : f32
    %120 = vector.broadcast %cst_101 : f32 to vector<1x16xf32>
    %121 = arith.mulf %119, %120 : vector<1x16xf32>
    %cst_102 = arith.constant dense<0.000000e+00> : vector<1x16xf32>
    %122 = tpu.matmul %118, %90, %cst_102 {dimension_numbers = #tpu.dot_dimension_numbers<[1], [0], [0], [1], [0, 0, 1, 1], [], []>} : vector<1x256xf32>, vector<256x16xf32>, vector<1x16xf32> -> vector<1x16xf32>
    %cst_103 = arith.constant 0.001953125 : f32
    %123 = vector.broadcast %cst_103 : f32 to vector<1x16xf32>
    %124 = arith.mulf %122, %123 : vector<1x16xf32>
    %125 = arith.mulf %121, %121 : vector<1x16xf32>
    %126 = arith.subf %124, %125 : vector<1x16xf32>
    %cst_104 = arith.constant 9.99999974E-6 : f32
    %127 = vector.broadcast %cst_104 : f32 to vector<1x16xf32>
    %128 = arith.addf %126, %127 : vector<1x16xf32>
    %129 = math.rsqrt %128 : vector<1x16xf32>
    %130 = arith.mulf %92, %129 : vector<1x16xf32>
    %131 = arith.mulf %121, %130 : vector<1x16xf32>
    %132 = arith.subf %93, %131 : vector<1x16xf32>
    %cst_105 = arith.constant dense<0.000000e+00> : vector<1x256xf32>
    %133 = tpu.matmul %130, %91, %cst_105 {dimension_numbers = #tpu.dot_dimension_numbers<[1], [0], [0], [1], [0, 0, 1, 1], [], []>} : vector<1x16xf32>, vector<16x256xf32>, vector<1x256xf32> -> vector<1x256xf32>
    %cst_106 = arith.constant dense<0.000000e+00> : vector<1x256xf32>
    %134 = tpu.matmul %132, %91, %cst_106 {dimension_numbers = #tpu.dot_dimension_numbers<[1], [0], [0], [1], [0, 0, 1, 1], [], []>} : vector<1x16xf32>, vector<16x256xf32>, vector<1x256xf32> -> vector<1x256xf32>
    %135 = vector.broadcast %133 : vector<1x256xf32> to vector<32x256xf32>
    %136 = arith.mulf %113, %135 : vector<32x256xf32>
    %137 = vector.broadcast %134 : vector<1x256xf32> to vector<32x256xf32>
    %138 = arith.addf %136, %137 : vector<32x256xf32>
    %cst_107 = arith.constant 0.000000e+00 : f32
    %139 = vector.broadcast %cst_107 : f32 to vector<32x256xf32>
    %140 = arith.maximumf %138, %139 : vector<32x256xf32>
    %c2_i32_108 = arith.constant 2 : i32
    %c2_i32_109 = arith.constant 2 : i32
    %c2_i32_110 = arith.constant 2 : i32
    %c0_i32_111 = arith.constant 0 : i32
    %c0_i32_112 = arith.constant 0 : i32
    %141 = tpu.memref_slice %arg2[%c2_i32_108, %c0_i32_111, %c0_i32_112] : memref<3x256x1024xf32, #tpu.memory_space<any>> -> memref<1x256x1024xf32, #tpu.memory_space<any>>
    %142 = tpu.memref_squeeze %141 : memref<1x256x1024xf32, #tpu.memory_space<any>> -> memref<256x1024xf32, #tpu.memory_space<any>>
    %c0_i32_113 = arith.constant 0 : i32
    %c0_i32_114 = arith.constant 0 : i32
    %143 = tpu.memref_slice %arg21[%c2_i32_109, %c0_i32_113, %c0_i32_114] : memref<3x256x1024xf32, #tpu.memory_space<vmem>> -> memref<1x256x1024xf32, #tpu.memory_space<vmem>>
    %144 = tpu.memref_squeeze %143 : memref<1x256x1024xf32, #tpu.memory_space<vmem>> -> memref<256x1024xf32, #tpu.memory_space<vmem>>
    %145 = tpu.memref_slice %arg23[%c2_i32_110] : memref<4x!tpu.dma_semaphore, #tpu.memory_space<semaphore_mem>> -> memref<1x!tpu.dma_semaphore, #tpu.memory_space<semaphore_mem>>
    %146 = tpu.memref_squeeze %145 : memref<1x!tpu.dma_semaphore, #tpu.memory_space<semaphore_mem>> -> memref<!tpu.dma_semaphore, #tpu.memory_space<semaphore_mem>>
    tpu.wait_dma2 semaphore(%146 : memref<!tpu.dma_semaphore, #tpu.memory_space<semaphore_mem>>) src(%142 : memref<256x1024xf32, #tpu.memory_space<any>>) dst(%144 : memref<256x1024xf32, #tpu.memory_space<vmem>>)
    %c2_115 = arith.constant 2 : index
    %c0_116 = arith.constant 0 : index
    %c0_117 = arith.constant 0 : index
    %147 = vector.load %arg21[%c2_115, %c0_116, %c0_117] : memref<3x256x1024xf32, #tpu.memory_space<vmem>>, vector<1x256x1024xf32>
    %148 = vector.shape_cast %147 : vector<1x256x1024xf32> to vector<256x1024xf32>
    %c0_118 = arith.constant 0 : index
    %c0_119 = arith.constant 0 : index
    %149 = vector.load %arg10[%c0_118, %c0_119] : memref<256x8xf32, #tpu.memory_space<vmem>>, vector<256x8xf32>
    %c0_120 = arith.constant 0 : index
    %c0_121 = arith.constant 0 : index
    %150 = vector.load %arg11[%c0_120, %c0_121] : memref<8x256xf32, #tpu.memory_space<vmem>>, vector<8x256xf32>
    %c0_122 = arith.constant 0 : index
    %c0_123 = arith.constant 0 : index
    %151 = vector.load %arg16[%c0_122, %c0_123] : memref<1x8xf32, #tpu.memory_space<vmem>>, vector<1x8xf32>
    %c0_124 = arith.constant 0 : index
    %c0_125 = arith.constant 0 : index
    %152 = vector.load %arg17[%c0_124, %c0_125] : memref<1x8xf32, #tpu.memory_space<vmem>>, vector<1x8xf32>
    %cst_126 = arith.constant dense<0.000000e+00> : vector<32x1024xf32>
    %153 = tpu.matmul %140, %148, %cst_126 {dimension_numbers = #tpu.dot_dimension_numbers<[1], [0], [0], [1], [0, 0, 1, 1], [], []>} : vector<32x256xf32>, vector<256x1024xf32>, vector<32x1024xf32> -> vector<32x1024xf32>
    %c0_127 = arith.constant 0 : index
    %c0_128 = arith.constant 0 : index
    %c0_129 = arith.constant 0 : index
    %154 = vector.load %arg5[%c0_127, %c0_128, %c0_129] : memref<4x64x32xf32, #tpu.memory_space<vmem>>, vector<1x64x32xf32>
    %155 = vector.shape_cast %154 : vector<1x64x32xf32> to vector<64x32xf32>
    %156 = vector.extract_strided_slice %153 {offsets = [0, 0], sizes = [32, 256], strides = [1, 1]} : vector<32x1024xf32> to vector<32x256xf32>
    %cst_130 = arith.constant dense<0.000000e+00> : vector<64x256xf32>
    %157 = tpu.matmul %155, %156, %cst_130 {dimension_numbers = #tpu.dot_dimension_numbers<[1], [0], [0], [1], [0, 0, 1, 1], [], []>} : vector<64x32xf32>, vector<32x256xf32>, vector<64x256xf32> -> vector<64x256xf32>
    %c1_131 = arith.constant 1 : index
    %c0_132 = arith.constant 0 : index
    %c0_133 = arith.constant 0 : index
    %158 = vector.load %arg5[%c1_131, %c0_132, %c0_133] : memref<4x64x32xf32, #tpu.memory_space<vmem>>, vector<1x64x32xf32>
    %159 = vector.shape_cast %158 : vector<1x64x32xf32> to vector<64x32xf32>
    %160 = vector.extract_strided_slice %153 {offsets = [0, 256], sizes = [32, 256], strides = [1, 1]} : vector<32x1024xf32> to vector<32x256xf32>
    %cst_134 = arith.constant dense<0.000000e+00> : vector<64x256xf32>
    %161 = tpu.matmul %159, %160, %cst_134 {dimension_numbers = #tpu.dot_dimension_numbers<[1], [0], [0], [1], [0, 0, 1, 1], [], []>} : vector<64x32xf32>, vector<32x256xf32>, vector<64x256xf32> -> vector<64x256xf32>
    %162 = arith.addf %157, %161 : vector<64x256xf32>
    %c2_135 = arith.constant 2 : index
    %c0_136 = arith.constant 0 : index
    %c0_137 = arith.constant 0 : index
    %163 = vector.load %arg5[%c2_135, %c0_136, %c0_137] : memref<4x64x32xf32, #tpu.memory_space<vmem>>, vector<1x64x32xf32>
    %164 = vector.shape_cast %163 : vector<1x64x32xf32> to vector<64x32xf32>
    %165 = vector.extract_strided_slice %153 {offsets = [0, 512], sizes = [32, 256], strides = [1, 1]} : vector<32x1024xf32> to vector<32x256xf32>
    %cst_138 = arith.constant dense<0.000000e+00> : vector<64x256xf32>
    %166 = tpu.matmul %164, %165, %cst_138 {dimension_numbers = #tpu.dot_dimension_numbers<[1], [0], [0], [1], [0, 0, 1, 1], [], []>} : vector<64x32xf32>, vector<32x256xf32>, vector<64x256xf32> -> vector<64x256xf32>
    %167 = arith.addf %162, %166 : vector<64x256xf32>
    %c3_139 = arith.constant 3 : index
    %c0_140 = arith.constant 0 : index
    %c0_141 = arith.constant 0 : index
    %168 = vector.load %arg5[%c3_139, %c0_140, %c0_141] : memref<4x64x32xf32, #tpu.memory_space<vmem>>, vector<1x64x32xf32>
    %169 = vector.shape_cast %168 : vector<1x64x32xf32> to vector<64x32xf32>
    %170 = vector.extract_strided_slice %153 {offsets = [0, 768], sizes = [32, 256], strides = [1, 1]} : vector<32x1024xf32> to vector<32x256xf32>
    %cst_142 = arith.constant dense<0.000000e+00> : vector<64x256xf32>
    %171 = tpu.matmul %169, %170, %cst_142 {dimension_numbers = #tpu.dot_dimension_numbers<[1], [0], [0], [1], [0, 0, 1, 1], [], []>} : vector<64x32xf32>, vector<32x256xf32>, vector<64x256xf32> -> vector<64x256xf32>
    %172 = arith.addf %167, %171 : vector<64x256xf32>
    %cst_143 = arith.constant dense<0.000000e+00> : vector<256xf32>
    %173 = vector.multi_reduction <add>, %172, %cst_143 [0] : vector<64x256xf32> to vector<256xf32>
    %174 = vector.shape_cast %173 : vector<256xf32> to vector<1x256xf32>
    %175 = arith.mulf %172, %172 : vector<64x256xf32>
    %cst_144 = arith.constant dense<0.000000e+00> : vector<256xf32>
    %176 = vector.multi_reduction <add>, %175, %cst_144 [0] : vector<64x256xf32> to vector<256xf32>
    %177 = vector.shape_cast %176 : vector<256xf32> to vector<1x256xf32>
    %cst_145 = arith.constant dense<0.000000e+00> : vector<1x8xf32>
    %178 = tpu.matmul %174, %149, %cst_145 {dimension_numbers = #tpu.dot_dimension_numbers<[1], [0], [0], [1], [0, 0, 1, 1], [], []>} : vector<1x256xf32>, vector<256x8xf32>, vector<1x8xf32> -> vector<1x8xf32>
    %cst_146 = arith.constant 4.8828125E-4 : f32
    %179 = vector.broadcast %cst_146 : f32 to vector<1x8xf32>
    %180 = arith.mulf %178, %179 : vector<1x8xf32>
    %cst_147 = arith.constant dense<0.000000e+00> : vector<1x8xf32>
    %181 = tpu.matmul %177, %149, %cst_147 {dimension_numbers = #tpu.dot_dimension_numbers<[1], [0], [0], [1], [0, 0, 1, 1], [], []>} : vector<1x256xf32>, vector<256x8xf32>, vector<1x8xf32> -> vector<1x8xf32>
    %cst_148 = arith.constant 4.8828125E-4 : f32
    %182 = vector.broadcast %cst_148 : f32 to vector<1x8xf32>
    %183 = arith.mulf %181, %182 : vector<1x8xf32>
    %184 = arith.mulf %180, %180 : vector<1x8xf32>
    %185 = arith.subf %183, %184 : vector<1x8xf32>
    %cst_149 = arith.constant 9.99999974E-6 : f32
    %186 = vector.broadcast %cst_149 : f32 to vector<1x8xf32>
    %187 = arith.addf %185, %186 : vector<1x8xf32>
    %188 = math.rsqrt %187 : vector<1x8xf32>
    %189 = arith.mulf %151, %188 : vector<1x8xf32>
    %190 = arith.mulf %180, %189 : vector<1x8xf32>
    %191 = arith.subf %152, %190 : vector<1x8xf32>
    %cst_150 = arith.constant dense<0.000000e+00> : vector<1x256xf32>
    %192 = tpu.matmul %189, %150, %cst_150 {dimension_numbers = #tpu.dot_dimension_numbers<[1], [0], [0], [1], [0, 0, 1, 1], [], []>} : vector<1x8xf32>, vector<8x256xf32>, vector<1x256xf32> -> vector<1x256xf32>
    %cst_151 = arith.constant dense<0.000000e+00> : vector<1x256xf32>
    %193 = tpu.matmul %191, %150, %cst_151 {dimension_numbers = #tpu.dot_dimension_numbers<[1], [0], [0], [1], [0, 0, 1, 1], [], []>} : vector<1x8xf32>, vector<8x256xf32>, vector<1x256xf32> -> vector<1x256xf32>
    %194 = vector.broadcast %192 : vector<1x256xf32> to vector<64x256xf32>
    %195 = arith.mulf %172, %194 : vector<64x256xf32>
    %196 = vector.broadcast %193 : vector<1x256xf32> to vector<64x256xf32>
    %197 = arith.addf %195, %196 : vector<64x256xf32>
    %cst_152 = arith.constant 0.000000e+00 : f32
    %198 = vector.broadcast %cst_152 : f32 to vector<64x256xf32>
    %199 = arith.maximumf %197, %198 : vector<64x256xf32>
    %200 = tpu.iota {dimensions = array<i32: 0>} : vector<64x256xi32>
    %c32_i32 = arith.constant 32 : i32
    %c0_i32_153 = arith.constant 0 : i32
    %201 = arith.cmpi eq, %c32_i32, %c0_i32_153 : i32
    %c1_i32_154 = arith.constant 1 : i32
    %202 = arith.select %201, %c1_i32_154, %c32_i32 : i32
    %203 = vector.broadcast %202 : i32 to vector<64x256xi32>
    %204 = arith.remsi %200, %203 : vector<64x256xi32>
    %c0_i32_155 = arith.constant 0 : i32
    %205 = vector.broadcast %c0_i32_155 : i32 to vector<64x256xi32>
    %206 = arith.cmpi ne, %204, %205 : vector<64x256xi32>
    %c0_i32_156 = arith.constant 0 : i32
    %207 = vector.broadcast %c0_i32_156 : i32 to vector<64x256xi32>
    %208 = arith.cmpi slt, %204, %207 : vector<64x256xi32>
    %c0_i32_157 = arith.constant 0 : i32
    %209 = arith.cmpi slt, %202, %c0_i32_157 : i32
    %210 = vector.broadcast %209 : i1 to vector<64x256xi1>
    %211 = vector.broadcast %210 : vector<64x256xi1> to vector<64x256xi1>
    %212 = arith.xori %208, %211 : vector<64x256xi1>
    %213 = arith.andi %212, %206 : vector<64x256xi1>
    %214 = vector.broadcast %202 : i32 to vector<64x256xi32>
    %215 = arith.addi %204, %214 : vector<64x256xi32>
    %216 = arith.select %213, %215, %204 : vector<64x256xi1>, vector<64x256xi32>
    %c0_i32_158 = arith.constant 0 : i32
    %217 = vector.broadcast %c0_i32_158 : i32 to vector<64x256xi32>
    %218 = arith.cmpi eq, %216, %217 : vector<64x256xi32>
    %c1_i32_159 = arith.constant 1 : i32
    %219 = tpu.dynamic_rotate %199 by %c1_i32_159 dim 0 : vector<64x256xf32>, i32 -> vector<64x256xf32>
    %cst_160 = arith.constant 0.000000e+00 : f32
    %220 = vector.broadcast %cst_160 : f32 to vector<64x256xf32>
    %221 = arith.select %218, %220, %219 : vector<64x256xi1>, vector<64x256xf32>
    %c31_i32 = arith.constant 31 : i32
    %222 = vector.broadcast %c31_i32 : i32 to vector<64x256xi32>
    %223 = arith.cmpi eq, %216, %222 : vector<64x256xi32>
    %c63_i32 = arith.constant 63 : i32
    %224 = tpu.dynamic_rotate %199 by %c63_i32 dim 0 : vector<64x256xf32>, i32 -> vector<64x256xf32>
    %cst_161 = arith.constant 0.000000e+00 : f32
    %225 = vector.broadcast %cst_161 : f32 to vector<64x256xf32>
    %226 = arith.select %223, %225, %224 : vector<64x256xi1>, vector<64x256xf32>
    %227 = tpu.concatenate %221, %199, %226 in 1 : vector<64x256xf32>, vector<64x256xf32>, vector<64x256xf32> -> vector<64x768xf32>
    %c3_i32_162 = arith.constant 3 : i32
    %228 = tpu.memref_slice %arg23[%c3_i32_162] : memref<4x!tpu.dma_semaphore, #tpu.memory_space<semaphore_mem>> -> memref<1x!tpu.dma_semaphore, #tpu.memory_space<semaphore_mem>>
    %229 = tpu.memref_squeeze %228 : memref<1x!tpu.dma_semaphore, #tpu.memory_space<semaphore_mem>> -> memref<!tpu.dma_semaphore, #tpu.memory_space<semaphore_mem>>
    tpu.wait_dma2 semaphore(%229 : memref<!tpu.dma_semaphore, #tpu.memory_space<semaphore_mem>>) src(%arg18 : memref<768x128xf32, #tpu.memory_space<any>>) dst(%arg22 : memref<768x128xf32, #tpu.memory_space<vmem>>)
    %c0_163 = arith.constant 0 : index
    %c0_164 = arith.constant 0 : index
    %230 = vector.load %arg22[%c0_163, %c0_164] : memref<768x128xf32, #tpu.memory_space<vmem>>, vector<768x128xf32>
    %cst_165 = arith.constant dense<0.000000e+00> : vector<64x128xf32>
    %231 = tpu.matmul %227, %230, %cst_165 {dimension_numbers = #tpu.dot_dimension_numbers<[1], [0], [0], [1], [0, 0, 1, 1], [], []>} : vector<64x768xf32>, vector<768x128xf32>, vector<64x128xf32> -> vector<64x128xf32>
    %c0_166 = arith.constant 0 : index
    %c0_167 = arith.constant 0 : index
    %232 = vector.load %arg19[%c0_166, %c0_167] : memref<1x128xf32, #tpu.memory_space<vmem>>, vector<1x128xf32>
    %233 = vector.broadcast %232 : vector<1x128xf32> to vector<64x128xf32>
    %234 = arith.addf %231, %233 : vector<64x128xf32>
    %235 = math.tanh %234 : vector<64x128xf32>
    %c0_168 = arith.constant 0 : index
    %c0_169 = arith.constant 0 : index
    %236 = vector.load %arg20[%c0_168, %c0_169] : memref<64x128xf32, #tpu.memory_space<vmem>>, vector<64x128xf32>
    tpu.vector_store %arg20[%c0_168, %c0_169], %235 {strides = array<i32>} : memref<64x128xf32, #tpu.memory_space<vmem>>, vector<64x128xf32>,
    return
  }
}

</mosaic_0001>

<bundles_post_ra>
// kernel: tile.13
= control target key start
LH: loop header
LB: loop body
LE: loop exit
PB: predicated region body
PF: predicated region fallthrough
CT: control target
= control target key end

     0   :  { %s40_s0 = inlined_call_operand.vmem [shape: f32[3], index: 0, kind: input, shape index: {}]   ;;  %s41_s1 = inlined_call_operand.vmem [shape: f32[32,3], index: 1, kind: output, shape index: {}]  }
   0x1   :  { %v4_v0 = vld [vmem:[%s40_s0] ss:$0 sm:$0xff] }
   0x2   :  { %5 = vst [vmem:[%s41_s1] sm:$0xff] %v4_v0  ;;  %12 = vst [vmem:[%s41_s1 + $0x8] sm:$0xff] %v4_v0 }
   0x3   :  { %13 = vst [vmem:[%s41_s1 + $0x10] sm:$0xff] %v4_v0  ;;  %14 = vst [vmem:[%s41_s1 + $0x18] sm:$0xff] %v4_v0 }

// kernel: tile.14
= control target key start
LH: loop header
LB: loop body
LE: loop exit
PB: predicated region body
PF: predicated region fallthrough
CT: control target
= control target key end

     0   :  { %s259_s10 = smov 93   ;;  %s260_s11 = smov 87   ;;  %vm3_vm0 = vcmask 23552   ;;  %vm9_vm1 = vcmask 786152   ;;  %vm15_vm2 = vcmask 761552   ;;  %vm21_vm3 = vcmask 736952   ;;  %s399_s0 = inlined_call_operand.vmem [shape: f32[32,3], index: 0, kind: input, shape index: {}]   ;;  %s400_s1 = inlined_call_operand.vmem [shape: f32[96], index: 1, kind: output, shape index: {}]  }
   0x1   :  { %v197_v0 = vld [vmem:[%s399_s0 + $0x1f] sm:$0x1]   ;;  %v199_v1 = vld [vmem:[%s399_s0 + $0x1d] sm:$0x1]   ;;  %v198_v2 = vld [vmem:[%s399_s0 + $0x1e] sm:$0x1]  }
   0x2   :  { %7 = vrot.lane.b32.xlu0 %v197_v0, %s259_s10  ;;  %19 = vrot.lane.b32.xlu1 %v199_v1, %s260_s11  ;;  %v200_v3 = vld [vmem:[%s399_s0 + $0x1c] sm:$0x1]   ;;  %s261_s16 = smov 90   ;;  %s262_s17 = smov 84   ;;  %v201_v4 = vld [vmem:[%s399_s0 + $0x1b] sm:$0x1]  }
   0x3   :  { %v202_v5 = vld [vmem:[%s399_s0 + $0x1a] sm:$0x1]   ;;  %s263_s22 = smov 81   ;;  %s264_s23 = smov 78   ;;  %v203_v6 = vld [vmem:[%s399_s0 + $0x19] sm:$0x1]  }
   0x4   :  { %v204_v7 = vld [vmem:[%s399_s0 + $0x18] sm:$0x1]   ;;  %s265_s28 = smov 75   ;;  %s266_s29 = smov 72   ;;  %v205_v8 = vld [vmem:[%s399_s0 + $0x17] sm:$0x1]  }
   0x5   :  { %v206_v9 = vld [vmem:[%s399_s0 + $0x16] sm:$0x1]   ;;  %v2_v10 = vld [vmem:[%s399_s0] sm:$0x1]   ;;  %s267_s7 = smov 69   ;;  %s268_s8 = smov 66  }
   0x6   :  { %13 = vrot.lane.b32.xlu0 %v198_v2, %s261_s16  ;;  %25 = vrot.lane.b32.xlu1 %v200_v3, %s262_s17  ;;  %4 = vst.msk [vmem:[#allocation0] sm:$0x1] %vm3_vm0, %v2_v10   ;;  %v207_v11 = vld [vmem:[%s399_s0 + $0x15] sm:$0x1]   ;;  %v208_v12 = vld [vmem:[%s399_s0 + $0x14] sm:$0x1]  }
   0x7   :  { %s269_s13 = smov 63   ;;  %s270_s14 = smov 60   ;;  %v209_v13 = vld [vmem:[%s399_s0 + $0x13] sm:$0x1]   ;;  %v210_v14 = vld [vmem:[%s399_s0 + $0x12] sm:$0x1]  }
   0x8   :  { %s271_s19 = smov 57   ;;  %s272_s20 = smov 54   ;;  %v211_v15 = vld [vmem:[%s399_s0 + $0x11] sm:$0x1]   ;;  %v212_v16 = vld [vmem:[%s399_s0 + $0x10] sm:$0x1]  }
   0x9   :  { %s273_s25 = smov 51   ;;  %s274_s26 = smov 48   ;;  %v213_v17 = vld [vmem:[%s399_s0 + $0xf] sm:$0x1]   ;;  %v214_v18 = vld [vmem:[%s399_s0 + $0xe] sm:$0x1]  }
   0xa   :  { %31 = vrot.lane.b32.xlu0 %v201_v4, %s263_s22  ;;  %37 = vrot.lane.b32.xlu1 %v202_v5, %s264_s23  ;;  %s275_s2 = smov 45   ;;  %s276_s3 = smov 42   ;;  %v215_v19 = vld [vmem:[%s399_s0 + $0xd] sm:$0x1]   ;;  %v216_v20 = vld [vmem:[%s399_s0 + $0xc] sm:$0x1]  }
   0xb   :  { %s278_s9 = smov 36   ;;  %v217_v21 = vld [vmem:[%s399_s0 + $0xb] sm:$0x1]   ;;  %v218_v22 = vld [vmem:[%s399_s0 + $0xa] sm:$0x1]   ;;  %s280_s15 = smov 30  }
   0xc   :  { %v219_v23 = vld [vmem:[%s399_s0 + $0x9] sm:$0x1]   ;;  %v220_v24 = vld [vmem:[%s399_s0 + $0x8] sm:$0x1]   ;;  %s282_s21 = smov 24   ;;  %s284_s27 = smov 18  }
   0xd   :  { %v221_v25 = vld [vmem:[%s399_s0 + $0x7] sm:$0x1]   ;;  %v222_v26 = vld [vmem:[%s399_s0 + $0x6] sm:$0x1]   ;;  %v223_v27 = vld [vmem:[%s399_s0 + $0x5] sm:$0x1]  }
   0xe   :  { %43 = vrot.lane.b32.xlu0 %v203_v6, %s265_s28  ;;  %49 = vrot.lane.b32.xlu1 %v204_v7, %s266_s29  ;;  %v224_v28 = vld [vmem:[%s399_s0 + $0x4] sm:$0x1]   ;;  %s286_s4 = smov 12   ;;  %v225_v29 = vld [vmem:[%s399_s0 + $0x3] sm:$0x1]   ;;  %s288_s10 = smov 6  }
   0xf   :  { %v226_v30 = vld [vmem:[%s399_s0 + $0x2] sm:$0x1]   ;;  %v227_v31 = vld [vmem:[%s399_s0 + $0x1] sm:$0x1]   ;;  %s289_s0 = smov 3   ;;  %vm27_vm4 = vcmask 712352  }
  0x10   :  { %vm33_vm5 = vcmask 687752   ;;  %vm39_vm6 = vcmask 663152   ;;  %vm45_vm7 = vcmask 638552   ;;  %vm51_vm8 = vcmask 613952  }
  0x11   :  { %vm57_vm9 = vcmask 589352   ;;  %vm63_vm10 = vcmask 564752   ;;  %vm69_vm11 = vcmask 540152   ;;  %vm75_vm12 = vcmask 515552  }
  0x12   :  { %55 = vrot.lane.b32.xlu0 %v205_v8, %s267_s7  ;;  %61 = vrot.lane.b32.xlu1 %v206_v9, %s268_s8  ;;  %s277_s8 = smov 39   ;;  %vm81_vm13 = vcmask 490952   ;;  %vm87_vm14 = vcmask 466352   ;;  %vm93_vm15 = vcmask 441752   ;;  %vm99_vm0 = vcmask 417152  }
  0x16   :  { %67 = vrot.lane.b32.xlu0 %v207_v11, %s269_s13  ;;  %73 = vrot.lane.b32.xlu1 %v208_v12, %s270_s14  ;;  %s279_s14 = smov 33  }
  0x1a   :  { %79 = vrot.lane.b32.xlu0 %v209_v13, %s271_s19  ;;  %85 = vrot.lane.b32.xlu1 %v210_v14, %s272_s20  ;;  %s281_s20 = smov 27  }
  0x1e   :  { %91 = vrot.lane.b32.xlu0 %v211_v15, %s273_s25  ;;  %97 = vrot.lane.b32.xlu1 %v212_v16, %s274_s26  ;;  %s283_s26 = smov 21  }
  0x22   :  { %103 = vrot.lane.b32.xlu0 %v213_v17, %s275_s2  ;;  %109 = vrot.lane.b32.xlu1 %v214_v18, %s276_s3  ;;  %s285_s3 = smov 15  }
  0x26   :  { %115 = vrot.lane.b32.xlu0 %v215_v19, %s277_s8  ;;  %121 = vrot.lane.b32.xlu1 %v216_v20, %s278_s9  ;;  %s287_s9 = smov 9  }
  0x2a   :  { %127 = vrot.lane.b32.xlu0 %v217_v21, %s279_s14  ;;  %133 = vrot.lane.b32.xlu1 %v218_v22, %s280_s15 }
  0x2e   :  { %139 = vrot.lane.b32.xlu0 %v219_v23, %s281_s20  ;;  %145 = vrot.lane.b32.xlu1 %v220_v24, %s282_s21 }
  0x32   :  { %151 = vrot.lane.b32.xlu0 %v221_v25, %s283_s26  ;;  %157 = vrot.lane.b32.xlu1 %v222_v26, %s284_s27 }
  0x36   :  { %163 = vrot.lane.b32.xlu0 %v223_v27, %s285_s3  ;;  %169 = vrot.lane.b32.xlu1 %v224_v28, %s286_s4 }
  0x3a   :  { %175 = vrot.lane.b32.xlu0 %v225_v29, %s287_s9  ;;  %181 = vrot.lane.b32.xlu1 %v226_v30, %s288_s10 }
  0x3e   :  { %187 = vrot.lane.b32.xlu0 %v227_v31, %s289_s0 }
  0x74   :  { %v8_v32 = vpop.permute.xlu0 %7   ;;  %v20_v33 = vpop.permute.xlu1 %19  }
  0x75   :  { %10 = vst.msk [vmem:[#allocation0] sm:$0x1] %vm9_vm1, %v8_v32   ;;  %vm105_vm1 = vcmask 392552  }
  0x78   :  { %v14_v34 = vpop.permute.xlu0 %13   ;;  %v26_v35 = vpop.permute.xlu1 %25  }
  0x79   :  { %16 = vst.msk [vmem:[#allocation0] sm:$0x1] %vm15_vm2, %v14_v34   ;;  %vm111_vm2 = vcmask 367952  }
  0x7a   :  { %22 = vst.msk [vmem:[#allocation0] sm:$0x1] %vm21_vm3, %v20_v33   ;;  %vm117_vm3 = vcmask 343352  }
  0x7b   :  { %28 = vst.msk [vmem:[#allocation0] sm:$0x1] %vm27_vm4, %v26_v35   ;;  %vm123_vm4 = vcmask 318752  }
  0x7c   :  { %v32_v36 = vpop.permute.xlu0 %31   ;;  %v38_v37 = vpop.permute.xlu1 %37  }
  0x7d   :  { %34 = vst.msk [vmem:[#allocation0] sm:$0x1] %vm33_vm5, %v32_v36   ;;  %vm129_vm5 = vcmask 294152  }
  0x7e   :  { %40 = vst.msk [vmem:[#allocation0] sm:$0x1] %vm39_vm6, %v38_v37   ;;  %vm135_vm6 = vcmask 269552  }
  0x80   :  { %v44_v38 = vpop.permute.xlu0 %43   ;;  %v50_v39 = vpop.permute.xlu1 %49  }
  0x81   :  { %46 = vst.msk [vmem:[#allocation0] sm:$0x1] %vm45_vm7, %v44_v38   ;;  %vm141_vm7 = vcmask 244952  }
  0x82   :  { %52 = vst.msk [vmem:[#allocation0] sm:$0x1] %vm51_vm8, %v50_v39   ;;  %vm147_vm8 = vcmask 220352  }
  0x84   :  { %v56_v40 = vpop.permute.xlu0 %55   ;;  %v62_v41 = vpop.permute.xlu1 %61  }
  0x85   :  { %58 = vst.msk [vmem:[#allocation0] sm:$0x1] %vm57_vm9, %v56_v40   ;;  %vm153_vm9 = vcmask 195752  }
  0x86   :  { %64 = vst.msk [vmem:[#allocation0] sm:$0x1] %vm63_vm10, %v62_v41   ;;  %vm159_vm10 = vcmask 171152  }
  0x88   :  { %v68_v42 = vpop.permute.xlu0 %67   ;;  %v74_v43 = vpop.permute.xlu1 %73  }
  0x89   :  { %70 = vst.msk [vmem:[#allocation0] sm:$0x1] %vm69_vm11, %v68_v42   ;;  %vm165_vm11 = vcmask 146552  }
  0x8a   :  { %76 = vst.msk [vmem:[#allocation0] sm:$0x1] %vm75_vm12, %v74_v43   ;;  %vm171_vm12 = vcmask 121952  }
  0x8c   :  { %v80_v44 = vpop.permute.xlu0 %79   ;;  %v86_v45 = vpop.permute.xlu1 %85  }
  0x8d   :  { %82 = vst.msk [vmem:[#allocation0] sm:$0x1] %vm81_vm13, %v80_v44   ;;  %vm177_vm13 = vcmask 97352  }
  0x8e   :  { %88 = vst.msk [vmem:[#allocation0] sm:$0x1] %vm87_vm14, %v86_v45   ;;  %vm183_vm14 = vcmask 72752  }
  0x90   :  { %v92_v46 = vpop.permute.xlu0 %91   ;;  %v98_v47 = vpop.permute.xlu1 %97  }
  0x91   :  { %94 = vst.msk [vmem:[#allocation0] sm:$0x1] %vm93_vm15, %v92_v46   ;;  %vm189_vm15 = vcmask 48152  }
  0x92   :  { %100 = vst.msk [vmem:[#allocation0] sm:$0x1] %vm99_vm0, %v98_v47  }
  0x94   :  { %v104_v48 = vpop.permute.xlu0 %103   ;;  %v110_v49 = vpop.permute.xlu1 %109  }
  0x95   :  { %106 = vst.msk [vmem:[#allocation0] sm:$0x1] %vm105_vm1, %v104_v48  }
  0x96   :  { %112 = vst.msk [vmem:[#allocation0] sm:$0x1] %vm111_vm2, %v110_v49  }
  0x98   :  { %v116_v50 = vpop.permute.xlu0 %115   ;;  %v122_v51 = vpop.permute.xlu1 %121  }
  0x99   :  { %118 = vst.msk [vmem:[#allocation0] sm:$0x1] %vm117_vm3, %v116_v50  }
  0x9a   :  { %124 = vst.msk [vmem:[#allocation0] sm:$0x1] %vm123_vm4, %v122_v51  }
  0x9c   :  { %v128_v52 = vpop.permute.xlu0 %127   ;;  %v134_v53 = vpop.permute.xlu1 %133  }
  0x9d   :  { %130 = vst.msk [vmem:[#allocation0] sm:$0x1] %vm129_vm5, %v128_v52  }
  0x9e   :  { %136 = vst.msk [vmem:[#allocation0] sm:$0x1] %vm135_vm6, %v134_v53  }
  0xa0   :  { %v140_v54 = vpop.permute.xlu0 %139   ;;  %v146_v55 = vpop.permute.xlu1 %145  }
  0xa1   :  { %142 = vst.msk [vmem:[#allocation0] sm:$0x1] %vm141_vm7, %v140_v54  }
  0xa2   :  { %148 = vst.msk [vmem:[#allocation0] sm:$0x1] %vm147_vm8, %v146_v55  }
  0xa4   :  { %v152_v56 = vpop.permute.xlu0 %151   ;;  %v158_v57 = vpop.permute.xlu1 %157  }
  0xa5   :  { %154 = vst.msk [vmem:[#allocation0] sm:$0x1] %vm153_vm9, %v152_v56  }
  0xa6   :  { %160 = vst.msk [vmem:[#allocation0] sm:$0x1] %vm159_vm10, %v158_v57  }
  0xa8   :  { %v164_v58 = vpop.permute.xlu0 %163   ;;  %v170_v59 = vpop.permute.xlu1 %169  }
  0xa9   :  { %166 = vst.msk [vmem:[#allocation0] sm:$0x1] %vm165_vm11, %v164_v58  }
  0xaa   :  { %172 = vst.msk [vmem:[#allocation0] sm:$0x1] %vm171_vm12, %v170_v59  }
  0xac   :  { %v176_v60 = vpop.permute.xlu0 %175   ;;  %v182_v61 = vpop.permute.xlu1 %181  }
  0xad   :  { %178 = vst.msk [vmem:[#allocation0] sm:$0x1] %vm177_vm13, %v176_v60  }
  0xae   :  { %184 = vst.msk [vmem:[#allocation0] sm:$0x1] %vm183_vm14, %v182_v61  }
  0xb0   :  { %v188_v62 = vpop.permute.xlu0 %187  }
  0xb1   :  { %190 = vst.msk [vmem:[#allocation0] sm:$0x1] %vm189_vm15, %v188_v62  }
  0xb8   :  { %v194_v63 = vld [vmem:[#allocation0] sm:$0x1] }
  0xb9   :  { %196 = vst [vmem:[%s400_s1] sm:$0x1] %v194_v63 }

// kernel: generator_forward_pallas.1
= control target key start
LH: loop header
LB: loop body
LE: loop exit
PB: predicated region body
PF: predicated region fallthrough
CT: control target
= control target key end

     0   :  { %s16233_s0 = inlined_call_operand.vmem [shape: f32[8,132], index: 0, kind: input, shape index: {}]   ;;  %s16234_s1 = inlined_call_operand.vmem [shape: f32[132,256], index: 1, kind: input, shape index: {}]   ;;  %s16235_s2 = inlined_call_operand.vmem [shape: f32[3,256,1024], index: 2, kind: input, shape index: {}]   ;;  %s16236_s3 = inlined_call_operand.vmem [shape: f32[4,16,8], index: 3, kind: input, shape index: {}]   ;;  %s16237_s4 = inlined_call_operand.vmem [shape: f32[4,32,16], index: 4, kind: input, shape index: {}]   ;;  %s16238_s5 = inlined_call_operand.vmem [shape: f32[4,64,32], index: 5, kind: input, shape index: {}]   ;;  %s16239_s6 = inlined_call_operand.vmem [shape: f32[256,32], index: 6, kind: input, shape index: {}]   ;;  %s16240_s7 = inlined_call_operand.vmem [shape: f32[32,256], index: 7, kind: input, shape index: {}]   ;;  %s16241_s8 = inlined_call_operand.vmem [shape: f32[256,16], index: 8, kind: input, shape index: {}]   ;;  %s16242_s9 = inlined_call_operand.vmem [shape: f32[16,256], index: 9, kind: input, shape index: {}]   ;;  %s16243_s10 = inlined_call_operand.vmem [shape: f32[256,8], index: 10, kind: input, shape index: {}]   ;;  %s16244_s11 = inlined_call_operand.vmem [shape: f32[8,256], index: 11, kind: input, shape index: {}]   ;;  %s16245_s12 = inlined_call_operand.vmem [shape: f32[1,32], index: 12, kind: input, shape index: {}]   ;;  %s16246_s13 = inlined_call_operand.vmem [shape: f32[1,32], index: 13, kind: input, shape index: {}]   ;;  %s16247_s14 = inlined_call_operand.vmem [shape: f32[1,16], index: 14, kind: input, shape index: {}]   ;;  %s16248_s15 = inlined_call_operand.vmem [shape: f32[1,16], index: 15, kind: input, shape index: {}]   ;;  %s16249_s16 = inlined_call_operand.vmem [shape: f32[1,8], index: 16, kind: input, shape index: {}]   ;;  %s16250_s17 = inlined_call_operand.vmem [shape: f32[1,8], index: 17, kind: input, shape index: {}]   ;;  %s16251_s18 = inlined_call_operand.vmem [shape: f32[768,128], index: 18, kind: input, shape index: {}]   ;;  %s16252_s19 = inlined_call_operand.vmem [shape: f32[1,128], index: 19, kind: input, shape index: {}]   ;;  %s16253_s20 = inlined_call_operand.vmem [shape: f32[64,128], index: 20, kind: output, shape index: {}]  }
   0x1   :  { %16265 = sst [smem:[#allocation825_spill]] %s16233_s0 }
   0x2   :  { %16266 = sst [smem:[#allocation826_spill]] %s16234_s1 }
   0x3   :  { %16267 = sst [smem:[#allocation827_spill]] %s16235_s2 }
   0x4   :  { %16268 = sst [smem:[#allocation828_spill]] %s16236_s3  ;;  %s16270_s23 = sld [smem:[#allocation827_spill]] }
   0x5   :  { %16269 = sst [smem:[#allocation829_spill]] %s16237_s4 }
   0xa   :  { %v9616_v0 = vld [vmem:[%s16270_s23] sm:$0xff]  ;;  %v9621_v1 = vld [vmem:[%s16270_s23 + $0x8] sm:$0xff]  ;;  %v9626_v2 = vld [vmem:[%s16270_s23 + $0x10] sm:$0xff] }
   0xb   :  { %v9631_v3 = vld [vmem:[%s16270_s23 + $0x18] sm:$0xff]  ;;  %v9636_v4 = vld [vmem:[%s16270_s23 + $0x20] sm:$0xff]  ;;  %v9641_v5 = vld [vmem:[%s16270_s23 + $0x28] sm:$0xff] }
   0xc   :  { %16271 = vst [vmem:[#allocation13_spill] sm:$0xff] %v9636_v4  ;;  %16272 = vst [vmem:[#allocation14_spill] sm:$0xff] %v9641_v5  ;;  %v9646_v6 = vld [vmem:[%s16270_s23 + $0x30] sm:$0xff]  ;;  %v9651_v7 = vld [vmem:[%s16270_s23 + $0x38] sm:$0xff] }
   0xd   :  { %16273 = vst [vmem:[#allocation15_spill] sm:$0xff] %v9646_v6  ;;  %16274 = vst [vmem:[#allocation16_spill] sm:$0xff] %v9651_v7  ;;  %v9656_v8 = vld [vmem:[%s16270_s23 + $0x40] sm:$0xff]  ;;  %v9661_v9 = vld [vmem:[%s16270_s23 + $0x48] sm:$0xff] }
   0xe   :  { %v9666_v10 = vld [vmem:[%s16270_s23 + $0x50] sm:$0xff]  ;;  %v9671_v11 = vld [vmem:[%s16270_s23 + $0x58] sm:$0xff]  ;;  %v9676_v12 = vld [vmem:[%s16270_s23 + $0x60] sm:$0xff] }
   0xf   :  { %16275 = vst [vmem:[#allocation17_spill] sm:$0xff] %v9676_v12  ;;  %v9681_v13 = vld [vmem:[%s16270_s23 + $0x68] sm:$0xff]  ;;  %v9686_v14 = vld [vmem:[%s16270_s23 + $0x70] sm:$0xff]  ;;  %v9691_v15 = vld [vmem:[%s16270_s23 + $0x78] sm:$0xff] }
  0x10   :  { %16276 = vst [vmem:[#allocation18_spill] sm:$0xff] %v9681_v13  ;;  %16277 = vst [vmem:[#allocation19_spill] sm:$0xff] %v9686_v14  ;;  %v9696_v16 = vld [vmem:[%s16270_s23 + $0x80] sm:$0xff]  ;;  %v9701_v17 = vld [vmem:[%s16270_s23 + $0x88] sm:$0xff] }
  0x11   :  { %16278 = vst [vmem:[#allocation20_spill] sm:$0xff] %v9691_v15  ;;  %v9706_v18 = vld [vmem:[%s16270_s23 + $0x90] sm:$0xff]  ;;  %v9711_v19 = vld [vmem:[%s16270_s23 + $0x98] sm:$0xff]  ;;  %v9716_v20 = vld [vmem:[%s16270_s23 + $0xa0] sm:$0xff] }
  0x12   :  { %16279 = vst [vmem:[#allocation21_spill] sm:$0xff] %v9716_v20  ;;  %v9721_v21 = vld [vmem:[%s16270_s23 + $0xa8] sm:$0xff]  ;;  %v9726_v22 = vld [vmem:[%s16270_s23 + $0xb0] sm:$0xff]  ;;  %v9731_v23 = vld [vmem:[%s16270_s23 + $0xb8] sm:$0xff] }
  0x13   :  { %16280 = vst [vmem:[#allocation22_spill] sm:$0xff] %v9721_v21  ;;  %16281 = vst [vmem:[#allocation23_spill] sm:$0xff] %v9726_v22  ;;  %v9736_v24 = vld [vmem:[%s16270_s23 + $0xc0] sm:$0xff]  ;;  %v9741_v25 = vld [vmem:[%s16270_s23 + $0xc8] sm:$0xff] }
  0x14   :  { %16282 = vst [vmem:[#allocation24_spill] sm:$0xff] %v9731_v23  ;;  %v9746_v26 = vld [vmem:[%s16270_s23 + $0xd0] sm:$0xff]  ;;  %v9751_v27 = vld [vmem:[%s16270_s23 + $0xd8] sm:$0xff]  ;;  %v9756_v28 = vld [vmem:[%s16270_s23 + $0xe0] sm:$0xff] }
  0x15   :  { %16283 = vst [vmem:[#allocation25_spill] sm:$0xff] %v9756_v28  ;;  %v9761_v29 = vld [vmem:[%s16270_s23 + $0xe8] sm:$0xff]  ;;  %v9766_v30 = vld [vmem:[%s16270_s23 + $0xf0] sm:$0xff]  ;;  %v9771_v31 = vld [vmem:[%s16270_s23 + $0xf8] sm:$0xff] }
  0x16   :  { %16284 = vst [vmem:[#allocation26_spill] sm:$0xff] %v9761_v29  ;;  %16285 = vst [vmem:[#allocation27_spill] sm:$0xff] %v9766_v30  ;;  %v9776_v32 = vld [vmem:[%s16270_s23 + $0x100] sm:$0xff]  ;;  %v9781_v33 = vld [vmem:[%s16270_s23 + $0x108] sm:$0xff] }
  0x17   :  { %16286 = vst [vmem:[#allocation28_spill] sm:$0xff] %v9771_v31  ;;  %v9786_v34 = vld [vmem:[%s16270_s23 + $0x110] sm:$0xff]  ;;  %v9791_v35 = vld [vmem:[%s16270_s23 + $0x118] sm:$0xff]  ;;  %v9796_v36 = vld [vmem:[%s16270_s23 + $0x120] sm:$0xff] }
  0x18   :  { %16287 = vst [vmem:[#allocation29_spill] sm:$0xff] %v9796_v36  ;;  %v9801_v37 = vld [vmem:[%s16270_s23 + $0x128] sm:$0xff]  ;;  %v9806_v38 = vld [vmem:[%s16270_s23 + $0x130] sm:$0xff]  ;;  %v9811_v39 = vld [vmem:[%s16270_s23 + $0x138] sm:$0xff] }
  0x19   :  { %16288 = vst [vmem:[#allocation30_spill] sm:$0xff] %v9801_v37  ;;  %16289 = vst [vmem:[#allocation31_spill] sm:$0xff] %v9806_v38  ;;  %v9816_v40 = vld [vmem:[%s16270_s23 + $0x140] sm:$0xff]  ;;  %v9821_v41 = vld [vmem:[%s16270_s23 + $0x148] sm:$0xff] }
  0x1a   :  { %16290 = vst [vmem:[#allocation32_spill] sm:$0xff] %v9811_v39  ;;  %v9826_v42 = vld [vmem:[%s16270_s23 + $0x150] sm:$0xff]  ;;  %v9831_v43 = vld [vmem:[%s16270_s23 + $0x158] sm:$0xff]  ;;  %v9836_v44 = vld [vmem:[%s16270_s23 + $0x160] sm:$0xff] }
  0x1b   :  { %16291 = vst [vmem:[#allocation33_spill] sm:$0xff] %v9836_v44  ;;  %v9841_v45 = vld [vmem:[%s16270_s23 + $0x168] sm:$0xff]  ;;  %v9846_v46 = vld [vmem:[%s16270_s23 + $0x170] sm:$0xff]  ;;  %v9851_v47 = vld [vmem:[%s16270_s23 + $0x178] sm:$0xff] }
  0x1c   :  { %16292 = vst [vmem:[#allocation34_spill] sm:$0xff] %v9841_v45  ;;  %16293 = vst [vmem:[#allocation35_spill] sm:$0xff] %v9846_v46  ;;  %v9856_v48 = vld [vmem:[%s16270_s23 + $0x180] sm:$0xff]  ;;  %v9861_v49 = vld [vmem:[%s16270_s23 + $0x188] sm:$0xff] }
  0x1d   :  { %16294 = vst [vmem:[#allocation36_spill] sm:$0xff] %v9851_v47  ;;  %v9866_v50 = vld [vmem:[%s16270_s23 + $0x190] sm:$0xff]  ;;  %v9871_v51 = vld [vmem:[%s16270_s23 + $0x198] sm:$0xff]  ;;  %v9876_v52 = vld [vmem:[%s16270_s23 + $0x1a0] sm:$0xff] }
  0x1e   :  { %16295 = vst [vmem:[#allocation37_spill] sm:$0xff] %v9876_v52  ;;  %v9881_v53 = vld [vmem:[%s16270_s23 + $0x1a8] sm:$0xff]  ;;  %v9886_v54 = vld [vmem:[%s16270_s23 + $0x1b0] sm:$0xff]  ;;  %v9891_v55 = vld [vmem:[%s16270_s23 + $0x1b8] sm:$0xff] }
  0x1f   :  { %16296 = vst [vmem:[#allocation38_spill] sm:$0xff] %v9881_v53  ;;  %16297 = vst [vmem:[#allocation39_spill] sm:$0xff] %v9886_v54  ;;  %v9896_v56 = vld [vmem:[%s16270_s23 + $0x1c0] sm:$0xff]  ;;  %v9901_v57 = vld [vmem:[%s16270_s23 + $0x1c8] sm:$0xff] }
  0x20   :  { %16298 = vst [vmem:[#allocation40_spill] sm:$0xff] %v9891_v55  ;;  %v9906_v58 = vld [vmem:[%s16270_s23 + $0x1d0] sm:$0xff]  ;;  %v9911_v59 = vld [vmem:[%s16270_s23 + $0x1d8] sm:$0xff]  ;;  %v9916_v60 = vld [vmem:[%s16270_s23 + $0x1e0] sm:$0xff] }
  0x21   :  { %16299 = vst [vmem:[#allocation41_spill] sm:$0xff] %v9916_v60  ;;  %v9921_v61 = vld [vmem:[%s16270_s23 + $0x1e8] sm:$0xff]  ;;  %v9926_v62 = vld [vmem:[%s16270_s23 + $0x1f0] sm:$0xff]  ;;  %v9931_v63 = vld [vmem:[%s16270_s23 + $0x1f8] sm:$0xff] }
  0x22   :  { %16300 = vst [vmem:[#allocation42_spill] sm:$0xff] %v9921_v61  ;;  %16301 = vst [vmem:[#allocation43_spill] sm:$0xff] %v9926_v62  ;;  %v9936_v54 = vld [vmem:[%s16270_s23 + $0x200] sm:$0xff]  ;;  %v9941_v60 = vld [vmem:[%s16270_s23 + $0x208] sm:$0xff] }
  0x23   :  { %16302 = vst [vmem:[#allocation44_spill] sm:$0xff] %v9931_v63  ;;  %v9946_v52 = vld [vmem:[%s16270_s23 + $0x210] sm:$0xff]  ;;  %v9951_v62 = vld [vmem:[%s16270_s23 + $0x218] sm:$0xff]  ;;  %v9956_v63 = vld [vmem:[%s16270_s23 + $0x220] sm:$0xff] }
  0x24   :  { %16303 = vst [vmem:[#allocation45_spill] sm:$0xff] %v9956_v63  ;;  %v9961_v55 = vld [vmem:[%s16270_s23 + $0x228] sm:$0xff]  ;;  %v9966_v46 = vld [vmem:[%s16270_s23 + $0x230] sm:$0xff]  ;;  %v9971_v38 = vld [vmem:[%s16270_s23 + $0x238] sm:$0xff] }
  0x25   :  { %16304 = vst [vmem:[#allocation46_spill] sm:$0xff] %v9961_v55  ;;  %16305 = vst [vmem:[#allocation47_spill] sm:$0xff] %v9966_v46  ;;  %v9976_v61 = vld [vmem:[%s16270_s23 + $0x240] sm:$0xff]  ;;  %v9981_v63 = vld [vmem:[%s16270_s23 + $0x248] sm:$0xff] }
  0x26   :  { %16306 = vst [vmem:[#allocation48_spill] sm:$0xff] %v9971_v38  ;;  %v9986_v55 = vld [vmem:[%s16270_s23 + $0x250] sm:$0xff]  ;;  %v9991_v46 = vld [vmem:[%s16270_s23 + $0x258] sm:$0xff]  ;;  %v9996_v38 = vld [vmem:[%s16270_s23 + $0x260] sm:$0xff] }
  0x27   :  { %16307 = vst [vmem:[#allocation49_spill] sm:$0xff] %v9996_v38  ;;  %v10001_v53 = vld [vmem:[%s16270_s23 + $0x268] sm:$0xff]  ;;  %v10006_v44 = vld [vmem:[%s16270_s23 + $0x270] sm:$0xff]  ;;  %v10011_v36 = vld [vmem:[%s16270_s23 + $0x278] sm:$0xff] }
  0x28   :  { %16308 = vst [vmem:[#allocation50_spill] sm:$0xff] %v10001_v53  ;;  %16309 = vst [vmem:[#allocation51_spill] sm:$0xff] %v10006_v44  ;;  %v10016_v47 = vld [vmem:[%s16270_s23 + $0x280] sm:$0xff]  ;;  %v10021_v38 = vld [vmem:[%s16270_s23 + $0x288] sm:$0xff] }
  0x29   :  { %16310 = vst [vmem:[#allocation52_spill] sm:$0xff] %v10011_v36  ;;  %v10026_v53 = vld [vmem:[%s16270_s23 + $0x290] sm:$0xff]  ;;  %v10031_v44 = vld [vmem:[%s16270_s23 + $0x298] sm:$0xff]  ;;  %v10036_v36 = vld [vmem:[%s16270_s23 + $0x2a0] sm:$0xff] }
  0x2a   :  { %16311 = vst [vmem:[#allocation53_spill] sm:$0xff] %v10036_v36  ;;  %v10041_v39 = vld [vmem:[%s16270_s23 + $0x2a8] sm:$0xff]  ;;  %v10046_v30 = vld [vmem:[%s16270_s23 + $0x2b0] sm:$0xff]  ;;  %v10051_v22 = vld [vmem:[%s16270_s23 + $0x2b8] sm:$0xff] }
  0x2b   :  { %16312 = vst [vmem:[#allocation54_spill] sm:$0xff] %v10041_v39  ;;  %16313 = vst [vmem:[#allocation55_spill] sm:$0xff] %v10046_v30  ;;  %v10056_v45 = vld [vmem:[%s16270_s23 + $0x2c0] sm:$0xff]  ;;  %v10061_v36 = vld [vmem:[%s16270_s23 + $0x2c8] sm:$0xff] }
  0x2c   :  { %16314 = vst [vmem:[#allocation56_spill] sm:$0xff] %v10051_v22  ;;  %v10066_v39 = vld [vmem:[%s16270_s23 + $0x2d0] sm:$0xff]  ;;  %v10071_v30 = vld [vmem:[%s16270_s23 + $0x2d8] sm:$0xff]  ;;  %v10076_v22 = vld [vmem:[%s16270_s23 + $0x2e0] sm:$0xff] }
  0x2d   :  { %16315 = vst [vmem:[#allocation57_spill] sm:$0xff] %v10076_v22  ;;  %v10081_v37 = vld [vmem:[%s16270_s23 + $0x2e8] sm:$0xff]  ;;  %v10086_v28 = vld [vmem:[%s16270_s23 + $0x2f0] sm:$0xff]  ;;  %v10091_v20 = vld [vmem:[%s16270_s23 + $0x2f8] sm:$0xff] }
  0x2e   :  { %16316 = vst [vmem:[#allocation58_spill] sm:$0xff] %v10081_v37  ;;  %16317 = vst [vmem:[#allocation59_spill] sm:$0xff] %v10086_v28  ;;  %v10096_v31 = vld [vmem:[%s16270_s23 + $0x300] sm:$0xff]  ;;  %v10101_v22 = vld [vmem:[%s16270_s23 + $0x308] sm:$0xff] }
  0x2f   :  { %16318 = vst [vmem:[#allocation60_spill] sm:$0xff] %v10091_v20  ;;  %16319 = vst [vmem:[#allocation61_spill] sm:$0xff] %v10096_v31  ;;  %v10106_v37 = vld [vmem:[%s16270_s23 + $0x310] sm:$0xff]  ;;  %v10111_v28 = vld [vmem:[%s16270_s23 + $0x318] sm:$0xff] }
  0x30   :  { %16320 = vst [vmem:[#allocation62_spill] sm:$0xff] %v10106_v37  ;;  %v10116_v20 = vld [vmem:[%s16270_s23 + $0x320] sm:$0xff]  ;;  %v10121_v23 = vld [vmem:[%s16270_s23 + $0x328] sm:$0xff]  ;;  %v10126_v14 = vld [vmem:[%s16270_s23 + $0x330] sm:$0xff] }
  0x31   :  { %16321 = vst [vmem:[#allocation63_spill] sm:$0xff] %v10116_v20  ;;  %16322 = vst [vmem:[#allocation64_spill] sm:$0xff] %v10121_v23  ;;  %v10131_v6 = vld [vmem:[%s16270_s23 + $0x338] sm:$0xff]  ;;  %v10136_v29 = vld [vmem:[%s16270_s23 + $0x340] sm:$0xff] }
  0x32   :  { %16323 = vst [vmem:[#allocation65_spill] sm:$0xff] %v10126_v14  ;;  %16324 = vst [vmem:[#allocation66_spill] sm:$0xff] %v10131_v6  ;;  %v10141_v20 = vld [vmem:[%s16270_s23 + $0x348] sm:$0xff]  ;;  %v10146_v23 = vld [vmem:[%s16270_s23 + $0x350] sm:$0xff] }
  0x33   :  { %16325 = vst [vmem:[#allocation67_spill] sm:$0xff] %v10136_v29  ;;  %16326 = vst [vmem:[#allocation68_spill] sm:$0xff] %v10146_v23  ;;  %v10151_v14 = vld [vmem:[%s16270_s23 + $0x358] sm:$0xff]  ;;  %v10156_v6 = vld [vmem:[%s16270_s23 + $0x360] sm:$0xff] }
  0x34   :  { %16327 = vst [vmem:[#allocation69_spill] sm:$0xff] %v10156_v6  ;;  %v10161_v21 = vld [vmem:[%s16270_s23 + $0x368] sm:$0xff]  ;;  %v10166_v12 = vld [vmem:[%s16270_s23 + $0x370] sm:$0xff]  ;;  %v10171_v4 = vld [vmem:[%s16270_s23 + $0x378] sm:$0xff] }
  0x35   :  { %16328 = vst [vmem:[#allocation70_spill] sm:$0xff] %v10161_v21  ;;  %16329 = vst [vmem:[#allocation71_spill] sm:$0xff] %v10166_v12  ;;  %v10176_v15 = vld [vmem:[%s16270_s23 + $0x380] sm:$0xff]  ;;  %v10181_v6 = vld [vmem:[%s16270_s23 + $0x388] sm:$0xff] }
  0x36   :  { %16330 = vst [vmem:[#allocation72_spill] sm:$0xff] %v10171_v4  ;;  %16331 = vst [vmem:[#allocation73_spill] sm:$0xff] %v10176_v15  ;;  %v10186_v21 = vld [vmem:[%s16270_s23 + $0x390] sm:$0xff]  ;;  %v10191_v12 = vld [vmem:[%s16270_s23 + $0x398] sm:$0xff] }
  0x37   :  { %16332 = vst [vmem:[#allocation74_spill] sm:$0xff] %v10181_v6  ;;  %16333 = vst [vmem:[#allocation75_spill] sm:$0xff] %v10186_v21  ;;  %v10196_v4 = vld [vmem:[%s16270_s23 + $0x3a0] sm:$0xff]  ;;  %v10201_v7 = vld [vmem:[%s16270_s23 + $0x3a8] sm:$0xff] }
  0x38   :  { %16334 = vst [vmem:[#allocation76_spill] sm:$0xff] %v10191_v12  ;;  %16335 = vst [vmem:[#allocation77_spill] sm:$0xff] %v10196_v4  ;;  %v10206_v13 = vld [vmem:[%s16270_s23 + $0x3b0] sm:$0xff]  ;;  %v10211_v5 = vld [vmem:[%s16270_s23 + $0x3b8] sm:$0xff] }
  0x39   :  { %16336 = vst [vmem:[#allocation78_spill] sm:$0xff] %v10201_v7  ;;  %16337 = vst [vmem:[#allocation79_spill] sm:$0xff] %v10206_v13  ;;  %v10216_v21 = vld [vmem:[%s16270_s23 + $0x3c0] sm:$0xff]  ;;  %v10221_v4 = vld [vmem:[%s16270_s23 + $0x3c8] sm:$0xff] }
  0x3a   :  { %16338 = vst [vmem:[#allocation80_spill] sm:$0xff] %v10211_v5  ;;  %16339 = vst [vmem:[#allocation81_spill] sm:$0xff] %v10216_v21  ;;  %v10226_v7 = vld [vmem:[%s16270_s23 + $0x3d0] sm:$0xff]  ;;  %v10231_v13 = vld [vmem:[%s16270_s23 + $0x3d8] sm:$0xff] }
  0x3b   :  { %16340 = vst [vmem:[#allocation82_spill] sm:$0xff] %v10221_v4  ;;  %16341 = vst [vmem:[#allocation83_spill] sm:$0xff] %v10226_v7  ;;  %v10236_v5 = vld [vmem:[%s16270_s23 + $0x3e0] sm:$0xff]  ;;  %v10241_v21 = vld [vmem:[%s16270_s23 + $0x3e8] sm:$0xff] }
  0x3c   :  { %16342 = vst [vmem:[#allocation84_spill] sm:$0xff] %v10231_v13  ;;  %16343 = vst [vmem:[#allocation85_spill] sm:$0xff] %v10236_v5  ;;  %v10246_v15 = vld [vmem:[%s16270_s23 + $0x3f0] sm:$0xff]  ;;  %v10251_v7 = vld [vmem:[%s16270_s23 + $0x3f8] sm:$0xff] }
  0x3d   :  { %16344 = vst [vmem:[#allocation86_spill] sm:$0xff] %v10241_v21  ;;  %16345 = vst [vmem:[#allocation87_spill] sm:$0xff] %v10246_v15  ;;  %v10256_v13 = vld [vmem:[%s16270_s23 + $0x400] sm:$0xff]  ;;  %v10261_v5 = vld [vmem:[%s16270_s23 + $0x408] sm:$0xff] }
  0x3e   :  { %16346 = vst [vmem:[#allocation88_spill] sm:$0xff] %v10251_v7  ;;  %16347 = vst [vmem:[#allocation89_spill] sm:$0xff] %v10256_v13  ;;  %v10266_v21 = vld [vmem:[%s16270_s23 + $0x410] sm:$0xff]  ;;  %v10271_v15 = vld [vmem:[%s16270_s23 + $0x418] sm:$0xff] }
  0x3f   :  { %16348 = vst [vmem:[#allocation90_spill] sm:$0xff] %v10261_v5  ;;  %16349 = vst [vmem:[#allocation91_spill] sm:$0xff] %v10266_v21  ;;  %v10276_v7 = vld [vmem:[%s16270_s23 + $0x420] sm:$0xff]  ;;  %v10281_v13 = vld [vmem:[%s16270_s23 + $0x428] sm:$0xff] }
  0x40   :  { %16350 = vst [vmem:[#allocation92_spill] sm:$0xff] %v10271_v15  ;;  %16351 = vst [vmem:[#allocation93_spill] sm:$0xff] %v10276_v7  ;;  %v10286_v5 = vld [vmem:[%s16270_s23 + $0x430] sm:$0xff]  ;;  %v10291_v21 = vld [vmem:[%s16270_s23 + $0x438] sm:$0xff] }
  0x41   :  { %16352 = vst [vmem:[#allocation94_spill] sm:$0xff] %v10281_v13  ;;  %16353 = vst [vmem:[#allocation95_spill] sm:$0xff] %v10286_v5  ;;  %v10296_v15 = vld [vmem:[%s16270_s23 + $0x440] sm:$0xff]  ;;  %v10301_v7 = vld [vmem:[%s16270_s23 + $0x448] sm:$0xff] }
  0x42   :  { %16354 = vst [vmem:[#allocation96_spill] sm:$0xff] %v10291_v21  ;;  %16355 = vst [vmem:[#allocation97_spill] sm:$0xff] %v10296_v15  ;;  %v10306_v13 = vld [vmem:[%s16270_s23 + $0x450] sm:$0xff]  ;;  %v10311_v5 = vld [vmem:[%s16270_s23 + $0x458] sm:$0xff] }
  0x43   :  { %16356 = vst [vmem:[#allocation98_spill] sm:$0xff] %v10301_v7  ;;  %16357 = vst [vmem:[#allocation99_spill] sm:$0xff] %v10306_v13  ;;  %v10316_v21 = vld [vmem:[%s16270_s23 + $0x460] sm:$0xff]  ;;  %v10321_v15 = vld [vmem:[%s16270_s23 + $0x468] sm:$0xff] }
  0x44   :  { %16358 = vst [vmem:[#allocation100_spill] sm:$0xff] %v10311_v5  ;;  %16359 = vst [vmem:[#allocation101_spill] sm:$0xff] %v10316_v21  ;;  %v10326_v7 = vld [vmem:[%s16270_s23 + $0x470] sm:$0xff]  ;;  %v10331_v13 = vld [vmem:[%s16270_s23 + $0x478] sm:$0xff] }
  0x45   :  { %16360 = vst [vmem:[#allocation102_spill] sm:$0xff] %v10321_v15  ;;  %16361 = vst [vmem:[#allocation103_spill] sm:$0xff] %v10326_v7  ;;  %v10336_v5 = vld [vmem:[%s16270_s23 + $0x480] sm:$0xff]  ;;  %v10341_v21 = vld [vmem:[%s16270_s23 + $0x488] sm:$0xff] }
  0x46   :  { %16362 = vst [vmem:[#allocation104_spill] sm:$0xff] %v10331_v13  ;;  %16363 = vst [vmem:[#allocation105_spill] sm:$0xff] %v10336_v5  ;;  %v10346_v15 = vld [vmem:[%s16270_s23 + $0x490] sm:$0xff]  ;;  %v10351_v7 = vld [vmem:[%s16270_s23 + $0x498] sm:$0xff] }
  0x47   :  { %16364 = vst [vmem:[#allocation106_spill] sm:$0xff] %v10341_v21  ;;  %16365 = vst [vmem:[#allocation107_spill] sm:$0xff] %v10346_v15  ;;  %v10356_v13 = vld [vmem:[%s16270_s23 + $0x4a0] sm:$0xff]  ;;  %v10361_v5 = vld [vmem:[%s16270_s23 + $0x4a8] sm:$0xff] }
  0x48   :  { %16366 = vst [vmem:[#allocation108_spill] sm:$0xff] %v10351_v7  ;;  %16367 = vst [vmem:[#allocation109_spill] sm:$0xff] %v10356_v13  ;;  %v10366_v21 = vld [vmem:[%s16270_s23 + $0x4b0] sm:$0xff]  ;;  %v10371_v15 = vld [vmem:[%s16270_s23 + $0x4b8] sm:$0xff] }
  0x49   :  { %16368 = vst [vmem:[#allocation110_spill] sm:$0xff] %v10361_v5  ;;  %16369 = vst [vmem:[#allocation111_spill] sm:$0xff] %v10366_v21  ;;  %v10376_v7 = vld [vmem:[%s16270_s23 + $0x4c0] sm:$0xff]  ;;  %v10381_v13 = vld [vmem:[%s16270_s23 + $0x4c8] sm:$0xff] }
  0x4a   :  { %16370 = vst [vmem:[#allocation112_spill] sm:$0xff] %v10371_v15  ;;  %16371 = vst [vmem:[#allocation113_spill] sm:$0xff] %v10376_v7  ;;  %v10386_v5 = vld [vmem:[%s16270_s23 + $0x4d0] sm:$0xff]  ;;  %v10391_v21 = vld [vmem:[%s16270_s23 + $0x4d8] sm:$0xff] }
  0x4b   :  { %16372 = vst [vmem:[#allocation114_spill] sm:$0xff] %v10381_v13  ;;  %16373 = vst [vmem:[#allocation115_spill] sm:$0xff] %v10386_v5  ;;  %v10396_v15 = vld [vmem:[%s16270_s23 + $0x4e0] sm:$0xff]  ;;  %v10401_v7 = vld [vmem:[%s16270_s23 + $0x4e8] sm:$0xff] }
  0x4c   :  { %16374 = vst [vmem:[#allocation116_spill] sm:$0xff] %v10391_v21  ;;  %16375 = vst [vmem:[#allocation117_spill] sm:$0xff] %v10396_v15  ;;  %v10406_v13 = vld [vmem:[%s16270_s23 + $0x4f0] sm:$0xff]  ;;  %v10411_v5 = vld [vmem:[%s16270_s23 + $0x4f8] sm:$0xff] }
  0x4d   :  { %16376 = vst [vmem:[#allocation118_spill] sm:$0xff] %v10401_v7  ;;  %16377 = vst [vmem:[#allocation119_spill] sm:$0xff] %v10406_v13  ;;  %v10416_v21 = vld [vmem:[%s16270_s23 + $0x500] sm:$0xff]  ;;  %v10421_v15 = vld [vmem:[%s16270_s23 + $0x508] sm:$0xff] }
  0x4e   :  { %16378 = vst [vmem:[#allocation120_spill] sm:$0xff] %v10411_v5  ;;  %16379 = vst [vmem:[#allocation121_spill] sm:$0xff] %v10416_v21  ;;  %v10426_v7 = vld [vmem:[%s16270_s23 + $0x510] sm:$0xff]  ;;  %v10431_v13 = vld [vmem:[%s16270_s23 + $0x518] sm:$0xff] }
  0x4f   :  { %16380 = vst [vmem:[#allocation122_spill] sm:$0xff] %v10421_v15  ;;  %16381 = vst [vmem:[#allocation123_spill] sm:$0xff] %v10426_v7  ;;  %v10436_v5 = vld [vmem:[%s16270_s23 + $0x520] sm:$0xff]  ;;  %v10441_v21 = vld [vmem:[%s16270_s23 + $0x528] sm:$0xff] }
  0x50   :  { %16382 = vst [vmem:[#allocation124_spill] sm:$0xff] %v10431_v13  ;;  %16383 = vst [vmem:[#allocation125_spill] sm:$0xff] %v10436_v5  ;;  %v10446_v15 = vld [vmem:[%s16270_s23 + $0x530] sm:$0xff]  ;;  %v10451_v7 = vld [vmem:[%s16270_s23 + $0x538] sm:$0xff] }
  0x51   :  { %16384 = vst [vmem:[#allocation126_spill] sm:$0xff] %v10441_v21  ;;  %16385 = vst [vmem:[#allocation127_spill] sm:$0xff] %v10446_v15  ;;  %v10456_v13 = vld [vmem:[%s16270_s23 + $0x540] sm:$0xff]  ;;  %v10461_v5 = vld [vmem:[%s16270_s23 + $0x548] sm:$0xff] }
  0x52   :  { %16386 = vst [vmem:[#allocation128_spill] sm:$0xff] %v10451_v7  ;;  %16387 = vst [vmem:[#allocation129_spill] sm:$0xff] %v10456_v13  ;;  %v10466_v21 = vld [vmem:[%s16270_s23 + $0x550] sm:$0xff]  ;;  %v10471_v15 = vld [vmem:[%s16270_s23 + $0x558] sm:$0xff] }
  0x53   :  { %16388 = vst [vmem:[#allocation130_spill] sm:$0xff] %v10461_v5  ;;  %16389 = vst [vmem:[#allocation131_spill] sm:$0xff] %v10466_v21  ;;  %v10476_v7 = vld [vmem:[%s16270_s23 + $0x560] sm:$0xff]  ;;  %v10481_v13 = vld [vmem:[%s16270_s23 + $0x568] sm:$0xff] }
  0x54   :  { %16390 = vst [vmem:[#allocation132_spill] sm:$0xff] %v10471_v15  ;;  %16391 = vst [vmem:[#allocation133_spill] sm:$0xff] %v10476_v7  ;;  %v10486_v5 = vld [vmem:[%s16270_s23 + $0x570] sm:$0xff]  ;;  %v10491_v21 = vld [vmem:[%s16270_s23 + $0x578] sm:$0xff] }
  0x55   :  { %16392 = vst [vmem:[#allocation134_spill] sm:$0xff] %v10481_v13  ;;  %16393 = vst [vmem:[#allocation135_spill] sm:$0xff] %v10486_v5  ;;  %v10496_v15 = vld [vmem:[%s16270_s23 + $0x580] sm:$0xff]  ;;  %v10501_v7 = vld [vmem:[%s16270_s23 + $0x588] sm:$0xff] }
  0x56   :  { %16394 = vst [vmem:[#allocation136_spill] sm:$0xff] %v10491_v21  ;;  %16395 = vst [vmem:[#allocation137_spill] sm:$0xff] %v10496_v15  ;;  %v10506_v13 = vld [vmem:[%s16270_s23 + $0x590] sm:$0xff]  ;;  %v10511_v5 = vld [vmem:[%s16270_s23 + $0x598] sm:$0xff] }
  0x57   :  { %16396 = vst [vmem:[#allocation138_spill] sm:$0xff] %v10501_v7  ;;  %16397 = vst [vmem:[#allocation139_spill] sm:$0xff] %v10506_v13  ;;  %v10516_v21 = vld [vmem:[%s16270_s23 + $0x5a0] sm:$0xff]  ;;  %v10521_v15 = vld [vmem:[%s16270_s23 + $0x5a8] sm:$0xff] }
  0x58   :  { %16398 = vst [vmem:[#allocation140_spill] sm:$0xff] %v10511_v5  ;;  %16399 = vst [vmem:[#allocation141_spill] sm:$0xff] %v10516_v21  ;;  %v10526_v7 = vld [vmem:[%s16270_s23 + $0x5b0] sm:$0xff]  ;;  %v10531_v13 = vld [vmem:[%s16270_s23 + $0x5b8] sm:$0xff] }
  0x59   :  { %16400 = vst [vmem:[#allocation142_spill] sm:$0xff] %v10521_v15  ;;  %16401 = vst [vmem:[#allocation143_spill] sm:$0xff] %v10526_v7  ;;  %v10536_v5 = vld [vmem:[%s16270_s23 + $0x5c0] sm:$0xff]  ;;  %v10541_v21 = vld [vmem:[%s16270_s23 + $0x5c8] sm:$0xff] }
  0x5a   :  { %16402 = vst [vmem:[#allocation144_spill] sm:$0xff] %v10531_v13  ;;  %16403 = vst [vmem:[#allocation145_spill] sm:$0xff] %v10536_v5  ;;  %v10546_v15 = vld [vmem:[%s16270_s23 + $0x5d0] sm:$0xff]  ;;  %v10551_v7 = vld [vmem:[%s16270_s23 + $0x5d8] sm:$0xff] }
  0x5b   :  { %16404 = vst [vmem:[#allocation146_spill] sm:$0xff] %v10541_v21  ;;  %16405 = vst [vmem:[#allocation147_spill] sm:$0xff] %v10546_v15  ;;  %v10556_v13 = vld [vmem:[%s16270_s23 + $0x5e0] sm:$0xff]  ;;  %v10561_v5 = vld [vmem:[%s16270_s23 + $0x5e8] sm:$0xff] }
  0x5c   :  { %16406 = vst [vmem:[#allocation148_spill] sm:$0xff] %v10551_v7  ;;  %16407 = vst [vmem:[#allocation149_spill] sm:$0xff] %v10556_v13  ;;  %v10566_v21 = vld [vmem:[%s16270_s23 + $0x5f0] sm:$0xff]  ;;  %v10571_v15 = vld [vmem:[%s16270_s23 + $0x5f8] sm:$0xff] }
  0x5d   :  { %16408 = vst [vmem:[#allocation150_spill] sm:$0xff] %v10561_v5  ;;  %16409 = vst [vmem:[#allocation151_spill] sm:$0xff] %v10566_v21  ;;  %v10576_v7 = vld [vmem:[%s16270_s23 + $0x600] sm:$0xff]  ;;  %v10581_v13 = vld [vmem:[%s16270_s23 + $0x608] sm:$0xff] }
  0x5e   :  { %16410 = vst [vmem:[#allocation152_spill] sm:$0xff] %v10571_v15  ;;  %16411 = vst [vmem:[#allocation153_spill] sm:$0xff] %v10576_v7  ;;  %v10586_v5 = vld [vmem:[%s16270_s23 + $0x610] sm:$0xff]  ;;  %v10591_v21 = vld [vmem:[%s16270_s23 + $0x618] sm:$0xff] }
  0x5f   :  { %16412 = vst [vmem:[#allocation154_spill] sm:$0xff] %v10581_v13  ;;  %16413 = vst [vmem:[#allocation155_spill] sm:$0xff] %v10586_v5  ;;  %v10596_v15 = vld [vmem:[%s16270_s23 + $0x620] sm:$0xff]  ;;  %v10601_v7 = vld [vmem:[%s16270_s23 + $0x628] sm:$0xff] }
  0x60   :  { %16414 = vst [vmem:[#allocation156_spill] sm:$0xff] %v10591_v21  ;;  %16415 = vst [vmem:[#allocation157_spill] sm:$0xff] %v10596_v15  ;;  %v10606_v13 = vld [vmem:[%s16270_s23 + $0x630] sm:$0xff]  ;;  %v10611_v5 = vld [vmem:[%s16270_s23 + $0x638] sm:$0xff] }
  0x61   :  { %16416 = vst [vmem:[#allocation158_spill] sm:$0xff] %v10601_v7  ;;  %16417 = vst [vmem:[#allocation159_spill] sm:$0xff] %v10606_v13  ;;  %v10616_v21 = vld [vmem:[%s16270_s23 + $0x640] sm:$0xff]  ;;  %v10621_v15 = vld [vmem:[%s16270_s23 + $0x648] sm:$0xff] }
  0x62   :  { %16418 = vst [vmem:[#allocation160_spill] sm:$0xff] %v10611_v5  ;;  %16419 = vst [vmem:[#allocation161_spill] sm:$0xff] %v10616_v21  ;;  %v10626_v7 = vld [vmem:[%s16270_s23 + $0x650] sm:$0xff]  ;;  %v10631_v13 = vld [vmem:[%s16270_s23 + $0x658] sm:$0xff] }
  0x63   :  { %16420 = vst [vmem:[#allocation162_spill] sm:$0xff] %v10621_v15  ;;  %16421 = vst [vmem:[#allocation163_spill] sm:$0xff] %v10626_v7  ;;  %v10636_v5 = vld [vmem:[%s16270_s23 + $0x660] sm:$0xff]  ;;  %v10641_v21 = vld [vmem:[%s16270_s23 + $0x668] sm:$0xff] }
  0x64   :  { %16422 = vst [vmem:[#allocation164_spill] sm:$0xff] %v10631_v13  ;;  %16423 = vst [vmem:[#allocation165_spill] sm:$0xff] %v10636_v5  ;;  %v10646_v15 = vld [vmem:[%s16270_s23 + $0x670] sm:$0xff]  ;;  %v10651_v7 = vld [vmem:[%s16270_s23 + $0x678] sm:$0xff] }
  0x65   :  { %16424 = vst [vmem:[#allocation166_spill] sm:$0xff] %v10641_v21  ;;  %16425 = vst [vmem:[#allocation167_spill] sm:$0xff] %v10646_v15  ;;  %v10656_v13 = vld [vmem:[%s16270_s23 + $0x680] sm:$0xff]  ;;  %v10661_v5 = vld [vmem:[%s16270_s23 + $0x688] sm:$0xff] }
  0x66   :  { %16426 = vst [vmem:[#allocation168_spill] sm:$0xff] %v10651_v7  ;;  %16427 = vst [vmem:[#allocation169_spill] sm:$0xff] %v10656_v13  ;;  %v10666_v21 = vld [vmem:[%s16270_s23 + $0x690] sm:$0xff]  ;;  %v10671_v15 = vld [vmem:[%s16270_s23 + $0x698] sm:$0xff] }
  0x67   :  { %16428 = vst [vmem:[#allocation170_spill] sm:$0xff] %v10661_v5  ;;  %16429 = vst [vmem:[#allocation171_spill] sm:$0xff] %v10666_v21  ;;  %v10676_v7 = vld [vmem:[%s16270_s23 + $0x6a0] sm:$0xff]  ;;  %v10681_v13 = vld [vmem:[%s16270_s23 + $0x6a8] sm:$0xff] }
  0x68   :  { %16430 = vst [vmem:[#allocation172_spill] sm:$0xff] %v10671_v15  ;;  %16431 = vst [vmem:[#allocation173_spill] sm:$0xff] %v10676_v7  ;;  %v10686_v5 = vld [vmem:[%s16270_s23 + $0x6b0] sm:$0xff]  ;;  %v10691_v21 = vld [vmem:[%s16270_s23 + $0x6b8] sm:$0xff] }
  0x69   :  { %16432 = vst [vmem:[#allocation174_spill] sm:$0xff] %v10681_v13  ;;  %16433 = vst [vmem:[#allocation175_spill] sm:$0xff] %v10686_v5  ;;  %v10696_v15 = vld [vmem:[%s16270_s23 + $0x6c0] sm:$0xff]  ;;  %v10701_v7 = vld [vmem:[%s16270_s23 + $0x6c8] sm:$0xff] }
  0x6a   :  { %16434 = vst [vmem:[#allocation176_spill] sm:$0xff] %v10691_v21  ;;  %16435 = vst [vmem:[#allocation177_spill] sm:$0xff] %v10696_v15  ;;  %v10706_v13 = vld [vmem:[%s16270_s23 + $0x6d0] sm:$0xff]  ;;  %v10711_v5 = vld [vmem:[%s16270_s23 + $0x6d8] sm:$0xff] }
  0x6b   :  { %16436 = vst [vmem:[#allocation178_spill] sm:$0xff] %v10701_v7  ;;  %16437 = vst [vmem:[#allocation179_spill] sm:$0xff] %v10706_v13  ;;  %v10716_v21 = vld [vmem:[%s16270_s23 + $0x6e0] sm:$0xff]  ;;  %v10721_v15 = vld [vmem:[%s16270_s23 + $0x6e8] sm:$0xff] }
  0x6c   :  { %16438 = vst [vmem:[#allocation180_spill] sm:$0xff] %v10711_v5  ;;  %16439 = vst [vmem:[#allocation181_spill] sm:$0xff] %v10716_v21  ;;  %v10726_v7 = vld [vmem:[%s16270_s23 + $0x6f0] sm:$0xff]  ;;  %v10731_v13 = vld [vmem:[%s16270_s23 + $0x6f8] sm:$0xff] }
  0x6d   :  { %16440 = vst [vmem:[#allocation182_spill] sm:$0xff] %v10721_v15  ;;  %16441 = vst [vmem:[#allocation183_spill] sm:$0xff] %v10726_v7  ;;  %v10736_v5 = vld [vmem:[%s16270_s23 + $0x700] sm:$0xff]  ;;  %v10741_v21 = vld [vmem:[%s16270_s23 + $0x708] sm:$0xff] }
  0x6e   :  { %16442 = vst [vmem:[#allocation184_spill] sm:$0xff] %v10731_v13  ;;  %16443 = vst [vmem:[#allocation185_spill] sm:$0xff] %v10736_v5  ;;  %v10746_v15 = vld [vmem:[%s16270_s23 + $0x710] sm:$0xff]  ;;  %v10751_v7 = vld [vmem:[%s16270_s23 + $0x718] sm:$0xff] }
  0x6f   :  { %16444 = vst [vmem:[#allocation186_spill] sm:$0xff] %v10741_v21  ;;  %16445 = vst [vmem:[#allocation187_spill] sm:$0xff] %v10746_v15  ;;  %v10756_v13 = vld [vmem:[%s16270_s23 + $0x720] sm:$0xff]  ;;  %v10761_v5 = vld [vmem:[%s16270_s23 + $0x728] sm:$0xff] }
  0x70   :  { %16446 = vst [vmem:[#allocation188_spill] sm:$0xff] %v10751_v7  ;;  %16447 = vst [vmem:[#allocation189_spill] sm:$0xff] %v10756_v13  ;;  %v10766_v21 = vld [vmem:[%s16270_s23 + $0x730] sm:$0xff]  ;;  %v10771_v15 = vld [vmem:[%s16270_s23 + $0x738] sm:$0xff] }
  0x71   :  { %16448 = vst [vmem:[#allocation190_spill] sm:$0xff] %v10761_v5  ;;  %16449 = vst [vmem:[#allocation191_spill] sm:$0xff] %v10766_v21  ;;  %v10776_v7 = vld [vmem:[%s16270_s23 + $0x740] sm:$0xff]  ;;  %v10781_v13 = vld [vmem:[%s16270_s23 + $0x748] sm:$0xff] }
  0x72   :  { %16450 = vst [vmem:[#allocation192_spill] sm:$0xff] %v10771_v15  ;;  %16451 = vst [vmem:[#allocation193_spill] sm:$0xff] %v10776_v7  ;;  %v10786_v5 = vld [vmem:[%s16270_s23 + $0x750] sm:$0xff]  ;;  %v10791_v21 = vld [vmem:[%s16270_s23 + $0x758] sm:$0xff] }
  0x73   :  { %16452 = vst [vmem:[#allocation194_spill] sm:$0xff] %v10781_v13  ;;  %16453 = vst [vmem:[#allocation195_spill] sm:$0xff] %v10786_v5  ;;  %v10796_v15 = vld [vmem:[%s16270_s23 + $0x760] sm:$0xff]  ;;  %v10801_v7 = vld [vmem:[%s16270_s23 + $0x768] sm:$0xff] }
  0x74   :  { %16454 = vst [vmem:[#allocation196_spill] sm:$0xff] %v10791_v21  ;;  %16455 = vst [vmem:[#allocation197_spill] sm:$0xff] %v10796_v15  ;;  %v10806_v13 = vld [vmem:[%s16270_s23 + $0x770] sm:$0xff]  ;;  %v10811_v5 = vld [vmem:[%s16270_s23 + $0x778] sm:$0xff] }
  0x75   :  { %16456 = vst [vmem:[#allocation198_spill] sm:$0xff] %v10801_v7  ;;  %16457 = vst [vmem:[#allocation199_spill] sm:$0xff] %v10806_v13  ;;  %v10816_v21 = vld [vmem:[%s16270_s23 + $0x780] sm:$0xff]  ;;  %v10821_v15 = vld [vmem:[%s16270_s23 + $0x788] sm:$0xff] }
  0x76   :  { %16458 = vst [vmem:[#allocation200_spill] sm:$0xff] %v10811_v5  ;;  %16459 = vst [vmem:[#allocation201_spill] sm:$0xff] %v10816_v21  ;;  %v10826_v7 = vld [vmem:[%s16270_s23 + $0x790] sm:$0xff]  ;;  %v10831_v13 = vld [vmem:[%s16270_s23 + $0x798] sm:$0xff] }
  0x77   :  { %16460 = vst [vmem:[#allocation202_spill] sm:$0xff] %v10821_v15  ;;  %16461 = vst [vmem:[#allocation203_spill] sm:$0xff] %v10826_v7  ;;  %v10836_v5 = vld [vmem:[%s16270_s23 + $0x7a0] sm:$0xff]  ;;  %v10841_v21 = vld [vmem:[%s16270_s23 + $0x7a8] sm:$0xff] }
  0x78   :  { %16462 = vst [vmem:[#allocation204_spill] sm:$0xff] %v10831_v13  ;;  %16463 = vst [vmem:[#allocation205_spill] sm:$0xff] %v10836_v5  ;;  %v10846_v15 = vld [vmem:[%s16270_s23 + $0x7b0] sm:$0xff]  ;;  %v10851_v7 = vld [vmem:[%s16270_s23 + $0x7b8] sm:$0xff] }
  0x79   :  { %16464 = vst [vmem:[#allocation206_spill] sm:$0xff] %v10841_v21  ;;  %16465 = vst [vmem:[#allocation207_spill] sm:$0xff] %v10846_v15  ;;  %v10856_v13 = vld [vmem:[%s16270_s23 + $0x7c0] sm:$0xff]  ;;  %v10861_v5 = vld [vmem:[%s16270_s23 + $0x7c8] sm:$0xff] }
  0x7a   :  { %16466 = vst [vmem:[#allocation208_spill] sm:$0xff] %v10851_v7  ;;  %16467 = vst [vmem:[#allocation209_spill] sm:$0xff] %v10856_v13  ;;  %v10866_v21 = vld [vmem:[%s16270_s23 + $0x7d0] sm:$0xff]  ;;  %v10871_v15 = vld [vmem:[%s16270_s23 + $0x7d8] sm:$0xff] }
  0x7b   :  { %16468 = vst [vmem:[#allocation210_spill] sm:$0xff] %v10861_v5  ;;  %16469 = vst [vmem:[#allocation211_spill] sm:$0xff] %v10866_v21  ;;  %v10876_v7 = vld [vmem:[%s16270_s23 + $0x7e0] sm:$0xff]  ;;  %v10881_v13 = vld [vmem:[%s16270_s23 + $0x7e8] sm:$0xff] }
  0x7c   :  { %16470 = vst [vmem:[#allocation212_spill] sm:$0xff] %v10871_v15  ;;  %16471 = vst [vmem:[#allocation213_spill] sm:$0xff] %v10876_v7  ;;  %v10886_v5 = vld [vmem:[%s16270_s23 + $0x7f0] sm:$0xff]  ;;  %v10891_v21 = vld [vmem:[%s16270_s23 + $0x7f8] sm:$0xff] }
  0x7d   :  { %16472 = vst [vmem:[#allocation214_spill] sm:$0xff] %v10881_v13  ;;  %16473 = vst [vmem:[#allocation215_spill] sm:$0xff] %v10886_v5 }
  0x7e   :  { %16474 = vst [vmem:[#allocation216_spill] sm:$0xff] %v10891_v21 }
  0x7f   :  { %612 = vsyncadd [#allocation4], 32768  ;;  %v10896_v7 = vld [vmem:[%s16270_s23 + $0x800] sm:$0xff]  ;;  %v10901_v13 = vld [vmem:[%s16270_s23 + $0x808] sm:$0xff] }
  0x80   :  { %16475 = vst [vmem:[#allocation217_spill] sm:$0xff] %v10896_v7  ;;  %16476 = vst [vmem:[#allocation218_spill] sm:$0xff] %v10901_v13  ;;  %v10906_v5 = vld [vmem:[%s16270_s23 + $0x810] sm:$0xff]  ;;  %v10911_v21 = vld [vmem:[%s16270_s23 + $0x818] sm:$0xff] }
  0x81   :  { %16477 = vst [vmem:[#allocation219_spill] sm:$0xff] %v10906_v5  ;;  %16478 = vst [vmem:[#allocation220_spill] sm:$0xff] %v10911_v21  ;;  %v10916_v15 = vld [vmem:[%s16270_s23 + $0x820] sm:$0xff]  ;;  %v10921_v7 = vld [vmem:[%s16270_s23 + $0x828] sm:$0xff] }
  0x82   :  { %16479 = vst [vmem:[#allocation221_spill] sm:$0xff] %v10916_v15  ;;  %16480 = vst [vmem:[#allocation222_spill] sm:$0xff] %v10921_v7  ;;  %v10926_v13 = vld [vmem:[%s16270_s23 + $0x830] sm:$0xff]  ;;  %v10931_v5 = vld [vmem:[%s16270_s23 + $0x838] sm:$0xff] }
  0x83   :  { %16481 = vst [vmem:[#allocation223_spill] sm:$0xff] %v10926_v13  ;;  %16482 = vst [vmem:[#allocation224_spill] sm:$0xff] %v10931_v5  ;;  %v10936_v21 = vld [vmem:[%s16270_s23 + $0x840] sm:$0xff]  ;;  %v10941_v15 = vld [vmem:[%s16270_s23 + $0x848] sm:$0xff] }
  0x84   :  { %16483 = vst [vmem:[#allocation225_spill] sm:$0xff] %v10936_v21  ;;  %16484 = vst [vmem:[#allocation226_spill] sm:$0xff] %v10941_v15  ;;  %v10946_v7 = vld [vmem:[%s16270_s23 + $0x850] sm:$0xff]  ;;  %v10951_v13 = vld [vmem:[%s16270_s23 + $0x858] sm:$0xff] }
  0x85   :  { %16485 = vst [vmem:[#allocation227_spill] sm:$0xff] %v10946_v7  ;;  %16486 = vst [vmem:[#allocation228_spill] sm:$0xff] %v10951_v13  ;;  %v10956_v5 = vld [vmem:[%s16270_s23 + $0x860] sm:$0xff]  ;;  %v10961_v21 = vld [vmem:[%s16270_s23 + $0x868] sm:$0xff] }
  0x86   :  { %16487 = vst [vmem:[#allocation229_spill] sm:$0xff] %v10956_v5  ;;  %16488 = vst [vmem:[#allocation230_spill] sm:$0xff] %v10961_v21  ;;  %v10966_v15 = vld [vmem:[%s16270_s23 + $0x870] sm:$0xff]  ;;  %v10971_v7 = vld [vmem:[%s16270_s23 + $0x878] sm:$0xff] }
  0x87   :  { %16489 = vst [vmem:[#allocation231_spill] sm:$0xff] %v10966_v15  ;;  %16490 = vst [vmem:[#allocation232_spill] sm:$0xff] %v10971_v7  ;;  %v10976_v13 = vld [vmem:[%s16270_s23 + $0x880] sm:$0xff]  ;;  %v10981_v5 = vld [vmem:[%s16270_s23 + $0x888] sm:$0xff] }
  0x88   :  { %16491 = vst [vmem:[#allocation233_spill] sm:$0xff] %v10976_v13  ;;  %16492 = vst [vmem:[#allocation234_spill] sm:$0xff] %v10981_v5  ;;  %v10986_v21 = vld [vmem:[%s16270_s23 + $0x890] sm:$0xff]  ;;  %v10991_v15 = vld [vmem:[%s16270_s23 + $0x898] sm:$0xff] }
  0x89   :  { %16493 = vst [vmem:[#allocation235_spill] sm:$0xff] %v10986_v21  ;;  %16494 = vst [vmem:[#allocation236_spill] sm:$0xff] %v10991_v15  ;;  %v10996_v7 = vld [vmem:[%s16270_s23 + $0x8a0] sm:$0xff]  ;;  %v11001_v13 = vld [vmem:[%s16270_s23 + $0x8a8] sm:$0xff] }
  0x8a   :  { %16495 = vst [vmem:[#allocation237_spill] sm:$0xff] %v10996_v7  ;;  %16496 = vst [vmem:[#allocation238_spill] sm:$0xff] %v11001_v13  ;;  %v11006_v5 = vld [vmem:[%s16270_s23 + $0x8b0] sm:$0xff]  ;;  %v11011_v21 = vld [vmem:[%s16270_s23 + $0x8b8] sm:$0xff] }
  0x8b   :  { %16497 = vst [vmem:[#allocation239_spill] sm:$0xff] %v11006_v5  ;;  %16498 = vst [vmem:[#allocation240_spill] sm:$0xff] %v11011_v21  ;;  %v11016_v15 = vld [vmem:[%s16270_s23 + $0x8c0] sm:$0xff]  ;;  %v11021_v7 = vld [vmem:[%s16270_s23 + $0x8c8] sm:$0xff] }
  0x8c   :  { %16499 = vst [vmem:[#allocation241_spill] sm:$0xff] %v11016_v15  ;;  %16500 = vst [vmem:[#allocation242_spill] sm:$0xff] %v11021_v7  ;;  %v11026_v13 = vld [vmem:[%s16270_s23 + $0x8d0] sm:$0xff]  ;;  %v11031_v5 = vld [vmem:[%s16270_s23 + $0x8d8] sm:$0xff] }
  0x8d   :  { %16501 = vst [vmem:[#allocation243_spill] sm:$0xff] %v11026_v13  ;;  %16502 = vst [vmem:[#allocation244_spill] sm:$0xff] %v11031_v5  ;;  %v11036_v21 = vld [vmem:[%s16270_s23 + $0x8e0] sm:$0xff]  ;;  %v11041_v15 = vld [vmem:[%s16270_s23 + $0x8e8] sm:$0xff] }
  0x8e   :  { %16503 = vst [vmem:[#allocation245_spill] sm:$0xff] %v11036_v21  ;;  %16504 = vst [vmem:[#allocation246_spill] sm:$0xff] %v11041_v15  ;;  %v11046_v7 = vld [vmem:[%s16270_s23 + $0x8f0] sm:$0xff]  ;;  %v11051_v13 = vld [vmem:[%s16270_s23 + $0x8f8] sm:$0xff] }
  0x8f   :  { %16505 = vst [vmem:[#allocation247_spill] sm:$0xff] %v11046_v7  ;;  %16506 = vst [vmem:[#allocation248_spill] sm:$0xff] %v11051_v13  ;;  %v11056_v5 = vld [vmem:[%s16270_s23 + $0x900] sm:$0xff]  ;;  %v11061_v21 = vld [vmem:[%s16270_s23 + $0x908] sm:$0xff] }
  0x90   :  { %16507 = vst [vmem:[#allocation249_spill] sm:$0xff] %v11056_v5  ;;  %16508 = vst [vmem:[#allocation250_spill] sm:$0xff] %v11061_v21  ;;  %v11066_v15 = vld [vmem:[%s16270_s23 + $0x910] sm:$0xff]  ;;  %v11071_v7 = vld [vmem:[%s16270_s23 + $0x918] sm:$0xff] }
  0x91   :  { %16509 = vst [vmem:[#allocation251_spill] sm:$0xff] %v11066_v15  ;;  %16510 = vst [vmem:[#allocation252_spill] sm:$0xff] %v11071_v7  ;;  %v11076_v13 = vld [vmem:[%s16270_s23 + $0x920] sm:$0xff]  ;;  %v11081_v5 = vld [vmem:[%s16270_s23 + $0x928] sm:$0xff] }
  0x92   :  { %16511 = vst [vmem:[#allocation253_spill] sm:$0xff] %v11076_v13  ;;  %16512 = vst [vmem:[#allocation254_spill] sm:$0xff] %v11081_v5  ;;  %v11086_v21 = vld [vmem:[%s16270_s23 + $0x930] sm:$0xff]  ;;  %v11091_v15 = vld [vmem:[%s16270_s23 + $0x938] sm:$0xff] }
  0x93   :  { %16513 = vst [vmem:[#allocation255_spill] sm:$0xff] %v11086_v21  ;;  %16514 = vst [vmem:[#allocation256_spill] sm:$0xff] %v11091_v15  ;;  %v11096_v7 = vld [vmem:[%s16270_s23 + $0x940] sm:$0xff]  ;;  %v11101_v13 = vld [vmem:[%s16270_s23 + $0x948] sm:$0xff] }
  0x94   :  { %16515 = vst [vmem:[#allocation257_spill] sm:$0xff] %v11096_v7  ;;  %16516 = vst [vmem:[#allocation258_spill] sm:$0xff] %v11101_v13  ;;  %v11106_v5 = vld [vmem:[%s16270_s23 + $0x950] sm:$0xff]  ;;  %v11111_v21 = vld [vmem:[%s16270_s23 + $0x958] sm:$0xff] }
  0x95   :  { %16517 = vst [vmem:[#allocation259_spill] sm:$0xff] %v11106_v5  ;;  %16518 = vst [vmem:[#allocation260_spill] sm:$0xff] %v11111_v21  ;;  %v11116_v15 = vld [vmem:[%s16270_s23 + $0x960] sm:$0xff]  ;;  %v11121_v7 = vld [vmem:[%s16270_s23 + $0x968] sm:$0xff] }
  0x96   :  { %16519 = vst [vmem:[#allocation261_spill] sm:$0xff] %v11116_v15  ;;  %16520 = vst [vmem:[#allocation262_spill] sm:$0xff] %v11121_v7  ;;  %v11126_v13 = vld [vmem:[%s16270_s23 + $0x970] sm:$0xff]  ;;  %v11131_v5 = vld [vmem:[%s16270_s23 + $0x978] sm:$0xff] }
  0x97   :  { %16521 = vst [vmem:[#allocation263_spill] sm:$0xff] %v11126_v13  ;;  %16522 = vst [vmem:[#allocation264_spill] sm:$0xff] %v11131_v5  ;;  %v11136_v21 = vld [vmem:[%s16270_s23 + $0x980] sm:$0xff]  ;;  %v11141_v15 = vld [vmem:[%s16270_s23 + $0x988] sm:$0xff] }
  0x98   :  { %16523 = vst [vmem:[#allocation265_spill] sm:$0xff] %v11136_v21  ;;  %16524 = vst [vmem:[#allocation266_spill] sm:$0xff] %v11141_v15  ;;  %v11146_v7 = vld [vmem:[%s16270_s23 + $0x990] sm:$0xff]  ;;  %v11151_v13 = vld [vmem:[%s16270_s23 + $0x998] sm:$0xff] }
  0x99   :  { %16525 = vst [vmem:[#allocation267_spill] sm:$0xff] %v11146_v7  ;;  %16526 = vst [vmem:[#allocation268_spill] sm:$0xff] %v11151_v13  ;;  %v11156_v5 = vld [vmem:[%s16270_s23 + $0x9a0] sm:$0xff]  ;;  %v11161_v21 = vld [vmem:[%s16270_s23 + $0x9a8] sm:$0xff] }
  0x9a   :  { %16527 = vst [vmem:[#allocation269_spill] sm:$0xff] %v11156_v5  ;;  %16528 = vst [vmem:[#allocation270_spill] sm:$0xff] %v11161_v21  ;;  %v11166_v15 = vld [vmem:[%s16270_s23 + $0x9b0] sm:$0xff]  ;;  %v11171_v7 = vld [vmem:[%s16270_s23 + $0x9b8] sm:$0xff] }
  0x9b   :  { %16529 = vst [vmem:[#allocation271_spill] sm:$0xff] %v11166_v15  ;;  %16530 = vst [vmem:[#allocation272_spill] sm:$0xff] %v11171_v7  ;;  %v11176_v13 = vld [vmem:[%s16270_s23 + $0x9c0] sm:$0xff]  ;;  %v11181_v5 = vld [vmem:[%s16270_s23 + $0x9c8] sm:$0xff] }
  0x9c   :  { %16531 = vst [vmem:[#allocation273_spill] sm:$0xff] %v11176_v13  ;;  %16532 = vst [vmem:[#allocation274_spill] sm:$0xff] %v11181_v5  ;;  %v11186_v21 = vld [vmem:[%s16270_s23 + $0x9d0] sm:$0xff]  ;;  %v11191_v15 = vld [vmem:[%s16270_s23 + $0x9d8] sm:$0xff] }
  0x9d   :  { %16533 = vst [vmem:[#allocation275_spill] sm:$0xff] %v11186_v21  ;;  %16534 = vst [vmem:[#allocation276_spill] sm:$0xff] %v11191_v15  ;;  %v11196_v7 = vld [vmem:[%s16270_s23 + $0x9e0] sm:$0xff]  ;;  %v11201_v13 = vld [vmem:[%s16270_s23 + $0x9e8] sm:$0xff] }
  0x9e   :  { %16535 = vst [vmem:[#allocation277_spill] sm:$0xff] %v11196_v7  ;;  %16536 = vst [vmem:[#allocation278_spill] sm:$0xff] %v11201_v13  ;;  %v11206_v5 = vld [vmem:[%s16270_s23 + $0x9f0] sm:$0xff]  ;;  %v11211_v21 = vld [vmem:[%s16270_s23 + $0x9f8] sm:$0xff] }
  0x9f   :  { %16537 = vst [vmem:[#allocation279_spill] sm:$0xff] %v11206_v5  ;;  %16538 = vst [vmem:[#allocation280_spill] sm:$0xff] %v11211_v21  ;;  %v11216_v15 = vld [vmem:[%s16270_s23 + $0xa00] sm:$0xff]  ;;  %v11221_v7 = vld [vmem:[%s16270_s23 + $0xa08] sm:$0xff] }
  0xa0   :  { %16539 = vst [vmem:[#allocation281_spill] sm:$0xff] %v11216_v15  ;;  %16540 = vst [vmem:[#allocation282_spill] sm:$0xff] %v11221_v7  ;;  %v11226_v13 = vld [vmem:[%s16270_s23 + $0xa10] sm:$0xff]  ;;  %v11231_v5 = vld [vmem:[%s16270_s23 + $0xa18] sm:$0xff] }
  0xa1   :  { %16541 = vst [vmem:[#allocation283_spill] sm:$0xff] %v11226_v13  ;;  %16542 = vst [vmem:[#allocation284_spill] sm:$0xff] %v11231_v5  ;;  %v11236_v21 = vld [vmem:[%s16270_s23 + $0xa20] sm:$0xff]  ;;  %v11241_v15 = vld [vmem:[%s16270_s23 + $0xa28] sm:$0xff] }
  0xa2   :  { %16543 = vst [vmem:[#allocation285_spill] sm:$0xff] %v11236_v21  ;;  %16544 = vst [vmem:[#allocation286_spill] sm:$0xff] %v11241_v15  ;;  %v11246_v7 = vld [vmem:[%s16270_s23 + $0xa30] sm:$0xff]  ;;  %v11251_v13 = vld [vmem:[%s16270_s23 + $0xa38] sm:$0xff] }
  0xa3   :  { %16545 = vst [vmem:[#allocation287_spill] sm:$0xff] %v11246_v7  ;;  %16546 = vst [vmem:[#allocation288_spill] sm:$0xff] %v11251_v13  ;;  %v11256_v5 = vld [vmem:[%s16270_s23 + $0xa40] sm:$0xff]  ;;  %v11261_v21 = vld [vmem:[%s16270_s23 + $0xa48] sm:$0xff] }
  0xa4   :  { %16547 = vst [vmem:[#allocation289_spill] sm:$0xff] %v11256_v5  ;;  %16548 = vst [vmem:[#allocation290_spill] sm:$0xff] %v11261_v21  ;;  %v11266_v15 = vld [vmem:[%s16270_s23 + $0xa50] sm:$0xff]  ;;  %v11271_v7 = vld [vmem:[%s16270_s23 + $0xa58] sm:$0xff] }
  0xa5   :  { %16549 = vst [vmem:[#allocation291_spill] sm:$0xff] %v11266_v15  ;;  %16550 = vst [vmem:[#allocation292_spill] sm:$0xff] %v11271_v7  ;;  %v11276_v13 = vld [vmem:[%s16270_s23 + $0xa60] sm:$0xff]  ;;  %v11281_v5 = vld [vmem:[%s16270_s23 + $0xa68] sm:$0xff] }
  0xa6   :  { %16551 = vst [vmem:[#allocation293_spill] sm:$0xff] %v11276_v13  ;;  %16552 = vst [vmem:[#allocation294_spill] sm:$0xff] %v11281_v5  ;;  %v11286_v21 = vld [vmem:[%s16270_s23 + $0xa70] sm:$0xff]  ;;  %v11291_v15 = vld [vmem:[%s16270_s23 + $0xa78] sm:$0xff] }
  0xa7   :  { %16553 = vst [vmem:[#allocation295_spill] sm:$0xff] %v11286_v21  ;;  %16554 = vst [vmem:[#allocation296_spill] sm:$0xff] %v11291_v15  ;;  %v11296_v7 = vld [vmem:[%s16270_s23 + $0xa80] sm:$0xff]  ;;  %v11301_v13 = vld [vmem:[%s16270_s23 + $0xa88] sm:$0xff] }
  0xa8   :  { %16555 = vst [vmem:[#allocation297_spill] sm:$0xff] %v11296_v7  ;;  %16556 = vst [vmem:[#allocation298_spill] sm:$0xff] %v11301_v13  ;;  %v11306_v5 = vld [vmem:[%s16270_s23 + $0xa90] sm:$0xff]  ;;  %v11311_v21 = vld [vmem:[%s16270_s23 + $0xa98] sm:$0xff] }
  0xa9   :  { %16557 = vst [vmem:[#allocation299_spill] sm:$0xff] %v11306_v5  ;;  %16558 = vst [vmem:[#allocation300_spill] sm:$0xff] %v11311_v21  ;;  %v11316_v15 = vld [vmem:[%s16270_s23 + $0xaa0] sm:$0xff]  ;;  %v11321_v7 = vld [vmem:[%s16270_s23 + $0xaa8] sm:$0xff] }
  0xaa   :  { %16559 = vst [vmem:[#allocation301_spill] sm:$0xff] %v11316_v15  ;;  %16560 = vst [vmem:[#allocation302_spill] sm:$0xff] %v11321_v7  ;;  %v11326_v13 = vld [vmem:[%s16270_s23 + $0xab0] sm:$0xff]  ;;  %v11331_v5 = vld [vmem:[%s16270_s23 + $0xab8] sm:$0xff] }
  0xab   :  { %16561 = vst [vmem:[#allocation303_spill] sm:$0xff] %v11326_v13  ;;  %16562 = vst [vmem:[#allocation304_spill] sm:$0xff] %v11331_v5  ;;  %v11336_v21 = vld [vmem:[%s16270_s23 + $0xac0] sm:$0xff]  ;;  %v11341_v15 = vld [vmem:[%s16270_s23 + $0xac8] sm:$0xff] }
  0xac   :  { %16563 = vst [vmem:[#allocation305_spill] sm:$0xff] %v11336_v21  ;;  %16564 = vst [vmem:[#allocation306_spill] sm:$0xff] %v11341_v15  ;;  %v11346_v7 = vld [vmem:[%s16270_s23 + $0xad0] sm:$0xff]  ;;  %v11351_v13 = vld [vmem:[%s16270_s23 + $0xad8] sm:$0xff] }
  0xad   :  { %16565 = vst [vmem:[#allocation307_spill] sm:$0xff] %v11346_v7  ;;  %16566 = vst [vmem:[#allocation308_spill] sm:$0xff] %v11351_v13  ;;  %v11356_v5 = vld [vmem:[%s16270_s23 + $0xae0] sm:$0xff]  ;;  %v11361_v21 = vld [vmem:[%s16270_s23 + $0xae8] sm:$0xff] }
  0xae   :  { %16567 = vst [vmem:[#allocation309_spill] sm:$0xff] %v11356_v5  ;;  %16568 = vst [vmem:[#allocation310_spill] sm:$0xff] %v11361_v21  ;;  %v11366_v15 = vld [vmem:[%s16270_s23 + $0xaf0] sm:$0xff]  ;;  %v11371_v7 = vld [vmem:[%s16270_s23 + $0xaf8] sm:$0xff] }
  0xaf   :  { %16569 = vst [vmem:[#allocation311_spill] sm:$0xff] %v11366_v15  ;;  %16570 = vst [vmem:[#allocation312_spill] sm:$0xff] %v11371_v7  ;;  %v11376_v13 = vld [vmem:[%s16270_s23 + $0xb00] sm:$0xff]  ;;  %v11381_v5 = vld [vmem:[%s16270_s23 + $0xb08] sm:$0xff] }
  0xb0   :  { %16571 = vst [vmem:[#allocation313_spill] sm:$0xff] %v11376_v13  ;;  %16572 = vst [vmem:[#allocation314_spill] sm:$0xff] %v11381_v5  ;;  %v11386_v21 = vld [vmem:[%s16270_s23 + $0xb10] sm:$0xff]  ;;  %v11391_v15 = vld [vmem:[%s16270_s23 + $0xb18] sm:$0xff] }
  0xb1   :  { %16573 = vst [vmem:[#allocation315_spill] sm:$0xff] %v11386_v21  ;;  %16574 = vst [vmem:[#allocation316_spill] sm:$0xff] %v11391_v15  ;;  %v11396_v7 = vld [vmem:[%s16270_s23 + $0xb20] sm:$0xff]  ;;  %v11401_v13 = vld [vmem:[%s16270_s23 + $0xb28] sm:$0xff] }
  0xb2   :  { %16575 = vst [vmem:[#allocation317_spill] sm:$0xff] %v11396_v7  ;;  %16576 = vst [vmem:[#allocation318_spill] sm:$0xff] %v11401_v13  ;;  %v11406_v5 = vld [vmem:[%s16270_s23 + $0xb30] sm:$0xff]  ;;  %v11411_v21 = vld [vmem:[%s16270_s23 + $0xb38] sm:$0xff] }
  0xb3   :  { %16577 = vst [vmem:[#allocation319_spill] sm:$0xff] %v11406_v5  ;;  %16578 = vst [vmem:[#allocation320_spill] sm:$0xff] %v11411_v21  ;;  %v11416_v15 = vld [vmem:[%s16270_s23 + $0xb40] sm:$0xff]  ;;  %v11421_v7 = vld [vmem:[%s16270_s23 + $0xb48] sm:$0xff] }
  0xb4   :  { %16579 = vst [vmem:[#allocation321_spill] sm:$0xff] %v11416_v15  ;;  %16580 = vst [vmem:[#allocation322_spill] sm:$0xff] %v11421_v7  ;;  %v11426_v13 = vld [vmem:[%s16270_s23 + $0xb50] sm:$0xff]  ;;  %v11431_v5 = vld [vmem:[%s16270_s23 + $0xb58] sm:$0xff] }
  0xb5   :  { %16581 = vst [vmem:[#allocation323_spill] sm:$0xff] %v11426_v13  ;;  %16582 = vst [vmem:[#allocation324_spill] sm:$0xff] %v11431_v5  ;;  %v11436_v21 = vld [vmem:[%s16270_s23 + $0xb60] sm:$0xff]  ;;  %v11441_v15 = vld [vmem:[%s16270_s23 + $0xb68] sm:$0xff] }
  0xb6   :  { %16583 = vst [vmem:[#allocation325_spill] sm:$0xff] %v11436_v21  ;;  %16584 = vst [vmem:[#allocation326_spill] sm:$0xff] %v11441_v15  ;;  %v11446_v7 = vld [vmem:[%s16270_s23 + $0xb70] sm:$0xff]  ;;  %v11451_v13 = vld [vmem:[%s16270_s23 + $0xb78] sm:$0xff] }
  0xb7   :  { %16585 = vst [vmem:[#allocation327_spill] sm:$0xff] %v11446_v7  ;;  %16586 = vst [vmem:[#allocation328_spill] sm:$0xff] %v11451_v13  ;;  %v11456_v5 = vld [vmem:[%s16270_s23 + $0xb80] sm:$0xff]  ;;  %v11461_v21 = vld [vmem:[%s16270_s23 + $0xb88] sm:$0xff] }
  0xb8   :  { %16587 = vst [vmem:[#allocation329_spill] sm:$0xff] %v11456_v5  ;;  %16588 = vst [vmem:[#allocation330_spill] sm:$0xff] %v11461_v21  ;;  %v11466_v15 = vld [vmem:[%s16270_s23 + $0xb90] sm:$0xff]  ;;  %v11471_v7 = vld [vmem:[%s16270_s23 + $0xb98] sm:$0xff] }
  0xb9   :  { %16589 = vst [vmem:[#allocation331_spill] sm:$0xff] %v11466_v15  ;;  %16590 = vst [vmem:[#allocation332_spill] sm:$0xff] %v11471_v7  ;;  %v11476_v13 = vld [vmem:[%s16270_s23 + $0xba0] sm:$0xff]  ;;  %v11481_v5 = vld [vmem:[%s16270_s23 + $0xba8] sm:$0xff] }
  0xba   :  { %16591 = vst [vmem:[#allocation333_spill] sm:$0xff] %v11476_v13  ;;  %16592 = vst [vmem:[#allocation334_spill] sm:$0xff] %v11481_v5  ;;  %v11486_v21 = vld [vmem:[%s16270_s23 + $0xbb0] sm:$0xff]  ;;  %v11491_v15 = vld [vmem:[%s16270_s23 + $0xbb8] sm:$0xff] }
  0xbb   :  { %16593 = vst [vmem:[#allocation335_spill] sm:$0xff] %v11486_v21  ;;  %16594 = vst [vmem:[#allocation336_spill] sm:$0xff] %v11491_v15  ;;  %v11496_v7 = vld [vmem:[%s16270_s23 + $0xbc0] sm:$0xff]  ;;  %v11501_v13 = vld [vmem:[%s16270_s23 + $0xbc8] sm:$0xff] }
  0xbc   :  { %16595 = vst [vmem:[#allocation337_spill] sm:$0xff] %v11496_v7  ;;  %16596 = vst [vmem:[#allocation338_spill] sm:$0xff] %v11501_v13  ;;  %v11506_v5 = vld [vmem:[%s16270_s23 + $0xbd0] sm:$0xff]  ;;  %v11511_v21 = vld [vmem:[%s16270_s23 + $0xbd8] sm:$0xff] }
  0xbd   :  { %16597 = vst [vmem:[#allocation339_spill] sm:$0xff] %v11506_v5  ;;  %16598 = vst [vmem:[#allocation340_spill] sm:$0xff] %v11511_v21  ;;  %v11516_v15 = vld [vmem:[%s16270_s23 + $0xbe0] sm:$0xff]  ;;  %v11521_v7 = vld [vmem:[%s16270_s23 + $0xbe8] sm:$0xff] }
  0xbe   :  { %16599 = vst [vmem:[#allocation341_spill] sm:$0xff] %v11516_v15  ;;  %16600 = vst [vmem:[#allocation342_spill] sm:$0xff] %v11521_v7  ;;  %v11526_v13 = vld [vmem:[%s16270_s23 + $0xbf0] sm:$0xff]  ;;  %v11531_v5 = vld [vmem:[%s16270_s23 + $0xbf8] sm:$0xff] }
  0xbf   :  { %16601 = vst [vmem:[#allocation343_spill] sm:$0xff] %v11526_v13  ;;  %16602 = vst [vmem:[#allocation344_spill] sm:$0xff] %v11531_v5  ;;  %v11536_v21 = vld [vmem:[%s16270_s23 + $0xc00] sm:$0xff]  ;;  %v11541_v15 = vld [vmem:[%s16270_s23 + $0xc08] sm:$0xff] }
  0xc0   :  { %16603 = vst [vmem:[#allocation345_spill] sm:$0xff] %v11536_v21  ;;  %16604 = vst [vmem:[#allocation346_spill] sm:$0xff] %v11541_v15  ;;  %v11546_v7 = vld [vmem:[%s16270_s23 + $0xc10] sm:$0xff]  ;;  %v11551_v13 = vld [vmem:[%s16270_s23 + $0xc18] sm:$0xff] }
  0xc1   :  { %16605 = vst [vmem:[#allocation347_spill] sm:$0xff] %v11546_v7  ;;  %16606 = vst [vmem:[#allocation348_spill] sm:$0xff] %v11551_v13  ;;  %v11556_v5 = vld [vmem:[%s16270_s23 + $0xc20] sm:$0xff]  ;;  %v11561_v21 = vld [vmem:[%s16270_s23 + $0xc28] sm:$0xff] }
  0xc2   :  { %16607 = vst [vmem:[#allocation349_spill] sm:$0xff] %v11556_v5  ;;  %16608 = vst [vmem:[#allocation350_spill] sm:$0xff] %v11561_v21  ;;  %v11566_v15 = vld [vmem:[%s16270_s23 + $0xc30] sm:$0xff]  ;;  %v11571_v7 = vld [vmem:[%s16270_s23 + $0xc38] sm:$0xff] }
  0xc3   :  { %16609 = vst [vmem:[#allocation351_spill] sm:$0xff] %v11566_v15  ;;  %16610 = vst [vmem:[#allocation352_spill] sm:$0xff] %v11571_v7  ;;  %v11576_v13 = vld [vmem:[%s16270_s23 + $0xc40] sm:$0xff]  ;;  %v11581_v5 = vld [vmem:[%s16270_s23 + $0xc48] sm:$0xff] }
  0xc4   :  { %16611 = vst [vmem:[#allocation353_spill] sm:$0xff] %v11576_v13  ;;  %16612 = vst [vmem:[#allocation354_spill] sm:$0xff] %v11581_v5  ;;  %v11586_v21 = vld [vmem:[%s16270_s23 + $0xc50] sm:$0xff]  ;;  %v11591_v15 = vld [vmem:[%s16270_s23 + $0xc58] sm:$0xff] }
  0xc5   :  { %16613 = vst [vmem:[#allocation355_spill] sm:$0xff] %v11586_v21  ;;  %16614 = vst [vmem:[#allocation356_spill] sm:$0xff] %v11591_v15  ;;  %v11596_v7 = vld [vmem:[%s16270_s23 + $0xc60] sm:$0xff]  ;;  %v11601_v13 = vld [vmem:[%s16270_s23 + $0xc68] sm:$0xff] }
  0xc6   :  { %16615 = vst [vmem:[#allocation357_spill] sm:$0xff] %v11596_v7  ;;  %16616 = vst [vmem:[#allocation358_spill] sm:$0xff] %v11601_v13  ;;  %v11606_v5 = vld [vmem:[%s16270_s23 + $0xc70] sm:$0xff]  ;;  %v11611_v21 = vld [vmem:[%s16270_s23 + $0xc78] sm:$0xff] }
  0xc7   :  { %16617 = vst [vmem:[#allocation359_spill] sm:$0xff] %v11606_v5  ;;  %16618 = vst [vmem:[#allocation360_spill] sm:$0xff] %v11611_v21  ;;  %v11616_v15 = vld [vmem:[%s16270_s23 + $0xc80] sm:$0xff]  ;;  %v11621_v7 = vld [vmem:[%s16270_s23 + $0xc88] sm:$0xff] }
  0xc8   :  { %16619 = vst [vmem:[#allocation361_spill] sm:$0xff] %v11616_v15  ;;  %16620 = vst [vmem:[#allocation362_spill] sm:$0xff] %v11621_v7  ;;  %v11626_v13 = vld [vmem:[%s16270_s23 + $0xc90] sm:$0xff]  ;;  %v11631_v5 = vld [vmem:[%s16270_s23 + $0xc98] sm:$0xff] }
  0xc9   :  { %16621 = vst [vmem:[#allocation363_spill] sm:$0xff] %v11626_v13  ;;  %16622 = vst [vmem:[#allocation364_spill] sm:$0xff] %v11631_v5  ;;  %v11636_v21 = vld [vmem:[%s16270_s23 + $0xca0] sm:$0xff]  ;;  %v11641_v15 = vld [vmem:[%s16270_s23 + $0xca8] sm:$0xff] }
  0xca   :  { %16623 = vst [vmem:[#allocation365_spill] sm:$0xff] %v11636_v21  ;;  %16624 = vst [vmem:[#allocation366_spill] sm:$0xff] %v11641_v15  ;;  %v11646_v7 = vld [vmem:[%s16270_s23 + $0xcb0] sm:$0xff]  ;;  %v11651_v13 = vld [vmem:[%s16270_s23 + $0xcb8] sm:$0xff] }
  0xcb   :  { %16625 = vst [vmem:[#allocation367_spill] sm:$0xff] %v11646_v7  ;;  %16626 = vst [vmem:[#allocation368_spill] sm:$0xff] %v11651_v13  ;;  %v11656_v5 = vld [vmem:[%s16270_s23 + $0xcc0] sm:$0xff]  ;;  %v11661_v21 = vld [vmem:[%s16270_s23 + $0xcc8] sm:$0xff] }
  0xcc   :  { %16627 = vst [vmem:[#allocation369_spill] sm:$0xff] %v11656_v5  ;;  %16628 = vst [vmem:[#allocation370_spill] sm:$0xff] %v11661_v21  ;;  %v11666_v15 = vld [vmem:[%s16270_s23 + $0xcd0] sm:$0xff]  ;;  %v11671_v7 = vld [vmem:[%s16270_s23 + $0xcd8] sm:$0xff] }
  0xcd   :  { %16629 = vst [vmem:[#allocation371_spill] sm:$0xff] %v11666_v15  ;;  %16630 = vst [vmem:[#allocation372_spill] sm:$0xff] %v11671_v7  ;;  %v11676_v13 = vld [vmem:[%s16270_s23 + $0xce0] sm:$0xff]  ;;  %v11681_v5 = vld [vmem:[%s16270_s23 + $0xce8] sm:$0xff] }
  0xce   :  { %16631 = vst [vmem:[#allocation373_spill] sm:$0xff] %v11676_v13  ;;  %16632 = vst [vmem:[#allocation374_spill] sm:$0xff] %v11681_v5  ;;  %v11686_v21 = vld [vmem:[%s16270_s23 + $0xcf0] sm:$0xff]  ;;  %v11691_v15 = vld [vmem:[%s16270_s23 + $0xcf8] sm:$0xff] }
  0xcf   :  { %16633 = vst [vmem:[#allocation375_spill] sm:$0xff] %v11686_v21  ;;  %16634 = vst [vmem:[#allocation376_spill] sm:$0xff] %v11691_v15  ;;  %v11696_v7 = vld [vmem:[%s16270_s23 + $0xd00] sm:$0xff]  ;;  %v11701_v13 = vld [vmem:[%s16270_s23 + $0xd08] sm:$0xff] }
  0xd0   :  { %16635 = vst [vmem:[#allocation377_spill] sm:$0xff] %v11696_v7  ;;  %16636 = vst [vmem:[#allocation378_spill] sm:$0xff] %v11701_v13  ;;  %v11706_v5 = vld [vmem:[%s16270_s23 + $0xd10] sm:$0xff]  ;;  %v11711_v21 = vld [vmem:[%s16270_s23 + $0xd18] sm:$0xff] }
  0xd1   :  { %16637 = vst [vmem:[#allocation379_spill] sm:$0xff] %v11706_v5  ;;  %16638 = vst [vmem:[#allocation380_spill] sm:$0xff] %v11711_v21  ;;  %v11716_v15 = vld [vmem:[%s16270_s23 + $0xd20] sm:$0xff]  ;;  %v11721_v7 = vld [vmem:[%s16270_s23 + $0xd28] sm:$0xff] }
  0xd2   :  { %16639 = vst [vmem:[#allocation381_spill] sm:$0xff] %v11716_v15  ;;  %16640 = vst [vmem:[#allocation382_spill] sm:$0xff] %v11721_v7  ;;  %v11726_v13 = vld [vmem:[%s16270_s23 + $0xd30] sm:$0xff]  ;;  %v11731_v5 = vld [vmem:[%s16270_s23 + $0xd38] sm:$0xff] }
  0xd3   :  { %16641 = vst [vmem:[#allocation383_spill] sm:$0xff] %v11726_v13  ;;  %16642 = vst [vmem:[#allocation384_spill] sm:$0xff] %v11731_v5  ;;  %v11736_v21 = vld [vmem:[%s16270_s23 + $0xd40] sm:$0xff]  ;;  %v11741_v15 = vld [vmem:[%s16270_s23 + $0xd48] sm:$0xff] }
  0xd4   :  { %16643 = vst [vmem:[#allocation385_spill] sm:$0xff] %v11736_v21  ;;  %16644 = vst [vmem:[#allocation386_spill] sm:$0xff] %v11741_v15  ;;  %v11746_v7 = vld [vmem:[%s16270_s23 + $0xd50] sm:$0xff]  ;;  %v11751_v13 = vld [vmem:[%s16270_s23 + $0xd58] sm:$0xff] }
  0xd5   :  { %16645 = vst [vmem:[#allocation387_spill] sm:$0xff] %v11746_v7  ;;  %16646 = vst [vmem:[#allocation388_spill] sm:$0xff] %v11751_v13  ;;  %v11756_v5 = vld [vmem:[%s16270_s23 + $0xd60] sm:$0xff]  ;;  %v11761_v21 = vld [vmem:[%s16270_s23 + $0xd68] sm:$0xff] }
  0xd6   :  { %16647 = vst [vmem:[#allocation389_spill] sm:$0xff] %v11756_v5  ;;  %16648 = vst [vmem:[#allocation390_spill] sm:$0xff] %v11761_v21  ;;  %v11766_v15 = vld [vmem:[%s16270_s23 + $0xd70] sm:$0xff]  ;;  %v11771_v7 = vld [vmem:[%s16270_s23 + $0xd78] sm:$0xff] }
  0xd7   :  { %16649 = vst [vmem:[#allocation391_spill] sm:$0xff] %v11766_v15  ;;  %16650 = vst [vmem:[#allocation392_spill] sm:$0xff] %v11771_v7  ;;  %v11776_v13 = vld [vmem:[%s16270_s23 + $0xd80] sm:$0xff]  ;;  %v11781_v5 = vld [vmem:[%s16270_s23 + $0xd88] sm:$0xff] }
  0xd8   :  { %16651 = vst [vmem:[#allocation393_spill] sm:$0xff] %v11776_v13  ;;  %16652 = vst [vmem:[#allocation394_spill] sm:$0xff] %v11781_v5  ;;  %v11786_v21 = vld [vmem:[%s16270_s23 + $0xd90] sm:$0xff]  ;;  %v11791_v15 = vld [vmem:[%s16270_s23 + $0xd98] sm:$0xff] }
  0xd9   :  { %16653 = vst [vmem:[#allocation395_spill] sm:$0xff] %v11786_v21  ;;  %16654 = vst [vmem:[#allocation396_spill] sm:$0xff] %v11791_v15  ;;  %v11796_v7 = vld [vmem:[%s16270_s23 + $0xda0] sm:$0xff]  ;;  %v11801_v13 = vld [vmem:[%s16270_s23 + $0xda8] sm:$0xff] }
  0xda   :  { %16655 = vst [vmem:[#allocation397_spill] sm:$0xff] %v11796_v7  ;;  %16656 = vst [vmem:[#allocation398_spill] sm:$0xff] %v11801_v13  ;;  %v11806_v5 = vld [vmem:[%s16270_s23 + $0xdb0] sm:$0xff]  ;;  %v11811_v21 = vld [vmem:[%s16270_s23 + $0xdb8] sm:$0xff] }
  0xdb   :  { %16657 = vst [vmem:[#allocation399_spill] sm:$0xff] %v11806_v5  ;;  %16658 = vst [vmem:[#allocation400_spill] sm:$0xff] %v11811_v21  ;;  %v11816_v15 = vld [vmem:[%s16270_s23 + $0xdc0] sm:$0xff]  ;;  %v11821_v7 = vld [vmem:[%s16270_s23 + $0xdc8] sm:$0xff] }
  0xdc   :  { %16659 = vst [vmem:[#allocation401_spill] sm:$0xff] %v11816_v15  ;;  %16660 = vst [vmem:[#allocation402_spill] sm:$0xff] %v11821_v7  ;;  %v11826_v13 = vld [vmem:[%s16270_s23 + $0xdd0] sm:$0xff]  ;;  %v11831_v5 = vld [vmem:[%s16270_s23 + $0xdd8] sm:$0xff] }
  0xdd   :  { %16661 = vst [vmem:[#allocation403_spill] sm:$0xff] %v11826_v13  ;;  %16662 = vst [vmem:[#allocation404_spill] sm:$0xff] %v11831_v5  ;;  %v11836_v21 = vld [vmem:[%s16270_s23 + $0xde0] sm:$0xff]  ;;  %v11841_v15 = vld [vmem:[%s16270_s23 + $0xde8] sm:$0xff] }
  0xde   :  { %16663 = vst [vmem:[#allocation405_spill] sm:$0xff] %v11836_v21  ;;  %16664 = vst [vmem:[#allocation406_spill] sm:$0xff] %v11841_v15  ;;  %v11846_v7 = vld [vmem:[%s16270_s23 + $0xdf0] sm:$0xff]  ;;  %v11851_v13 = vld [vmem:[%s16270_s23 + $0xdf8] sm:$0xff] }
  0xdf   :  { %16665 = vst [vmem:[#allocation407_spill] sm:$0xff] %v11846_v7  ;;  %16666 = vst [vmem:[#allocation408_spill] sm:$0xff] %v11851_v13  ;;  %v11856_v5 = vld [vmem:[%s16270_s23 + $0xe00] sm:$0xff]  ;;  %v11861_v21 = vld [vmem:[%s16270_s23 + $0xe08] sm:$0xff] }
  0xe0   :  { %16667 = vst [vmem:[#allocation409_spill] sm:$0xff] %v11856_v5  ;;  %16668 = vst [vmem:[#allocation410_spill] sm:$0xff] %v11861_v21  ;;  %v11866_v15 = vld [vmem:[%s16270_s23 + $0xe10] sm:$0xff]  ;;  %v11871_v7 = vld [vmem:[%s16270_s23 + $0xe18] sm:$0xff] }
  0xe1   :  { %16669 = vst [vmem:[#allocation411_spill] sm:$0xff] %v11866_v15  ;;  %16670 = vst [vmem:[#allocation412_spill] sm:$0xff] %v11871_v7  ;;  %v11876_v13 = vld [vmem:[%s16270_s23 + $0xe20] sm:$0xff]  ;;  %v11881_v5 = vld [vmem:[%s16270_s23 + $0xe28] sm:$0xff] }
  0xe2   :  { %16671 = vst [vmem:[#allocation413_spill] sm:$0xff] %v11876_v13  ;;  %16672 = vst [vmem:[#allocation414_spill] sm:$0xff] %v11881_v5  ;;  %v11886_v21 = vld [vmem:[%s16270_s23 + $0xe30] sm:$0xff]  ;;  %v11891_v15 = vld [vmem:[%s16270_s23 + $0xe38] sm:$0xff] }
  0xe3   :  { %16673 = vst [vmem:[#allocation415_spill] sm:$0xff] %v11886_v21  ;;  %16674 = vst [vmem:[#allocation416_spill] sm:$0xff] %v11891_v15  ;;  %v11896_v7 = vld [vmem:[%s16270_s23 + $0xe40] sm:$0xff]  ;;  %v11901_v13 = vld [vmem:[%s16270_s23 + $0xe48] sm:$0xff] }
  0xe4   :  { %16675 = vst [vmem:[#allocation417_spill] sm:$0xff] %v11896_v7  ;;  %16676 = vst [vmem:[#allocation418_spill] sm:$0xff] %v11901_v13  ;;  %v11906_v5 = vld [vmem:[%s16270_s23 + $0xe50] sm:$0xff]  ;;  %v11911_v21 = vld [vmem:[%s16270_s23 + $0xe58] sm:$0xff] }
  0xe5   :  { %16677 = vst [vmem:[#allocation419_spill] sm:$0xff] %v11906_v5  ;;  %16678 = vst [vmem:[#allocation420_spill] sm:$0xff] %v11911_v21  ;;  %v11916_v15 = vld [vmem:[%s16270_s23 + $0xe60] sm:$0xff]  ;;  %v11921_v7 = vld [vmem:[%s16270_s23 + $0xe68] sm:$0xff] }
  0xe6   :  { %16679 = vst [vmem:[#allocation421_spill] sm:$0xff] %v11916_v15  ;;  %16680 = vst [vmem:[#allocation422_spill] sm:$0xff] %v11921_v7  ;;  %v11926_v13 = vld [vmem:[%s16270_s23 + $0xe70] sm:$0xff]  ;;  %v11931_v5 = vld [vmem:[%s16270_s23 + $0xe78] sm:$0xff] }
  0xe7   :  { %16681 = vst [vmem:[#allocation423_spill] sm:$0xff] %v11926_v13  ;;  %16682 = vst [vmem:[#allocation424_spill] sm:$0xff] %v11931_v5  ;;  %v11936_v21 = vld [vmem:[%s16270_s23 + $0xe80] sm:$0xff]  ;;  %v11941_v15 = vld [vmem:[%s16270_s23 + $0xe88] sm:$0xff] }
  0xe8   :  { %16683 = vst [vmem:[#allocation425_spill] sm:$0xff] %v11936_v21  ;;  %16684 = vst [vmem:[#allocation426_spill] sm:$0xff] %v11941_v15  ;;  %v11946_v7 = vld [vmem:[%s16270_s23 + $0xe90] sm:$0xff]  ;;  %v11951_v13 = vld [vmem:[%s16270_s23 + $0xe98] sm:$0xff] }
  0xe9   :  { %16685 = vst [vmem:[#allocation427_spill] sm:$0xff] %v11946_v7  ;;  %16686 = vst [vmem:[#allocation428_spill] sm:$0xff] %v11951_v13  ;;  %v11956_v5 = vld [vmem:[%s16270_s23 + $0xea0] sm:$0xff]  ;;  %v11961_v21 = vld [vmem:[%s16270_s23 + $0xea8] sm:$0xff] }
  0xea   :  { %16687 = vst [vmem:[#allocation429_spill] sm:$0xff] %v11956_v5  ;;  %16688 = vst [vmem:[#allocation430_spill] sm:$0xff] %v11961_v21  ;;  %v11966_v15 = vld [vmem:[%s16270_s23 + $0xeb0] sm:$0xff]  ;;  %v11971_v7 = vld [vmem:[%s16270_s23 + $0xeb8] sm:$0xff] }
  0xeb   :  { %16689 = vst [vmem:[#allocation431_spill] sm:$0xff] %v11966_v15  ;;  %16690 = vst [vmem:[#allocation432_spill] sm:$0xff] %v11971_v7  ;;  %v11976_v13 = vld [vmem:[%s16270_s23 + $0xec0] sm:$0xff]  ;;  %v11981_v5 = vld [vmem:[%s16270_s23 + $0xec8] sm:$0xff] }
  0xec   :  { %16691 = vst [vmem:[#allocation433_spill] sm:$0xff] %v11976_v13  ;;  %16692 = vst [vmem:[#allocation434_spill] sm:$0xff] %v11981_v5  ;;  %v11986_v21 = vld [vmem:[%s16270_s23 + $0xed0] sm:$0xff]  ;;  %v11991_v15 = vld [vmem:[%s16270_s23 + $0xed8] sm:$0xff] }
  0xed   :  { %16693 = vst [vmem:[#allocation435_spill] sm:$0xff] %v11986_v21  ;;  %16694 = vst [vmem:[#allocation436_spill] sm:$0xff] %v11991_v15  ;;  %v11996_v7 = vld [vmem:[%s16270_s23 + $0xee0] sm:$0xff]  ;;  %v12001_v13 = vld [vmem:[%s16270_s23 + $0xee8] sm:$0xff] }
  0xee   :  { %16695 = vst [vmem:[#allocation437_spill] sm:$0xff] %v11996_v7  ;;  %16696 = vst [vmem:[#allocation438_spill] sm:$0xff] %v12001_v13  ;;  %v12006_v5 = vld [vmem:[%s16270_s23 + $0xef0] sm:$0xff]  ;;  %v12011_v21 = vld [vmem:[%s16270_s23 + $0xef8] sm:$0xff] }
  0xef   :  { %16697 = vst [vmem:[#allocation439_spill] sm:$0xff] %v12006_v5  ;;  %16698 = vst [vmem:[#allocation440_spill] sm:$0xff] %v12011_v21  ;;  %v12016_v15 = vld [vmem:[%s16270_s23 + $0xf00] sm:$0xff]  ;;  %v12021_v7 = vld [vmem:[%s16270_s23 + $0xf08] sm:$0xff] }
  0xf0   :  { %16699 = vst [vmem:[#allocation441_spill] sm:$0xff] %v12016_v15  ;;  %16700 = vst [vmem:[#allocation442_spill] sm:$0xff] %v12021_v7  ;;  %v12026_v13 = vld [vmem:[%s16270_s23 + $0xf10] sm:$0xff]  ;;  %v12031_v5 = vld [vmem:[%s16270_s23 + $0xf18] sm:$0xff] }
  0xf1   :  { %16701 = vst [vmem:[#allocation443_spill] sm:$0xff] %v12026_v13  ;;  %16702 = vst [vmem:[#allocation444_spill] sm:$0xff] %v12031_v5  ;;  %v12036_v21 = vld [vmem:[%s16270_s23 + $0xf20] sm:$0xff]  ;;  %v12041_v15 = vld [vmem:[%s16270_s23 + $0xf28] sm:$0xff] }
  0xf2   :  { %16703 = vst [vmem:[#allocation445_spill] sm:$0xff] %v12036_v21  ;;  %16704 = vst [vmem:[#allocation446_spill] sm:$0xff] %v12041_v15  ;;  %v12046_v7 = vld [vmem:[%s16270_s23 + $0xf30] sm:$0xff]  ;;  %v12051_v13 = vld [vmem:[%s16270_s23 + $0xf38] sm:$0xff] }
  0xf3   :  { %16705 = vst [vmem:[#allocation447_spill] sm:$0xff] %v12046_v7  ;;  %16706 = vst [vmem:[#allocation448_spill] sm:$0xff] %v12051_v13  ;;  %v12056_v5 = vld [vmem:[%s16270_s23 + $0xf40] sm:$0xff]  ;;  %v12061_v21 = vld [vmem:[%s16270_s23 + $0xf48] sm:$0xff] }
  0xf4   :  { %16707 = vst [vmem:[#allocation449_spill] sm:$0xff] %v12056_v5  ;;  %16708 = vst [vmem:[#allocation450_spill] sm:$0xff] %v12061_v21  ;;  %v12066_v15 = vld [vmem:[%s16270_s23 + $0xf50] sm:$0xff]  ;;  %v12071_v7 = vld [vmem:[%s16270_s23 + $0xf58] sm:$0xff] }
  0xf5   :  { %16709 = vst [vmem:[#allocation451_spill] sm:$0xff] %v12066_v15  ;;  %16710 = vst [vmem:[#allocation452_spill] sm:$0xff] %v12071_v7  ;;  %v12076_v13 = vld [vmem:[%s16270_s23 + $0xf60] sm:$0xff]  ;;  %v12081_v5 = vld [vmem:[%s16270_s23 + $0xf68] sm:$0xff] }
  0xf6   :  { %16711 = vst [vmem:[#allocation453_spill] sm:$0xff] %v12076_v13  ;;  %16712 = vst [vmem:[#allocation454_spill] sm:$0xff] %v12081_v5  ;;  %v12086_v21 = vld [vmem:[%s16270_s23 + $0xf70] sm:$0xff]  ;;  %v12091_v15 = vld [vmem:[%s16270_s23 + $0xf78] sm:$0xff] }
  0xf7   :  { %16713 = vst [vmem:[#allocation455_spill] sm:$0xff] %v12086_v21  ;;  %16714 = vst [vmem:[#allocation456_spill] sm:$0xff] %v12091_v15  ;;  %v12096_v7 = vld [vmem:[%s16270_s23 + $0xf80] sm:$0xff]  ;;  %v12101_v13 = vld [vmem:[%s16270_s23 + $0xf88] sm:$0xff] }
  0xf8   :  { %16715 = vst [vmem:[#allocation457_spill] sm:$0xff] %v12096_v7  ;;  %16716 = vst [vmem:[#allocation458_spill] sm:$0xff] %v12101_v13  ;;  %v12106_v5 = vld [vmem:[%s16270_s23 + $0xf90] sm:$0xff]  ;;  %v12111_v21 = vld [vmem:[%s16270_s23 + $0xf98] sm:$0xff] }
  0xf9   :  { %16717 = vst [vmem:[#allocation459_spill] sm:$0xff] %v12106_v5  ;;  %16718 = vst [vmem:[#allocation460_spill] sm:$0xff] %v12111_v21  ;;  %v12116_v15 = vld [vmem:[%s16270_s23 + $0xfa0] sm:$0xff]  ;;  %v12121_v7 = vld [vmem:[%s16270_s23 + $0xfa8] sm:$0xff] }
  0xfa   :  { %16719 = vst [vmem:[#allocation461_spill] sm:$0xff] %v12116_v15  ;;  %16720 = vst [vmem:[#allocation462_spill] sm:$0xff] %v12121_v7  ;;  %v12126_v13 = vld [vmem:[%s16270_s23 + $0xfb0] sm:$0xff]  ;;  %v12131_v5 = vld [vmem:[%s16270_s23 + $0xfb8] sm:$0xff] }
  0xfb   :  { %16721 = vst [vmem:[#allocation463_spill] sm:$0xff] %v12126_v13  ;;  %16722 = vst [vmem:[#allocation464_spill] sm:$0xff] %v12131_v5  ;;  %v12136_v21 = vld [vmem:[%s16270_s23 + $0xfc0] sm:$0xff]  ;;  %v12141_v15 = vld [vmem:[%s16270_s23 + $0xfc8] sm:$0xff] }
  0xfc   :  { %16723 = vst [vmem:[#allocation465_spill] sm:$0xff] %v12136_v21  ;;  %16724 = vst [vmem:[#allocation466_spill] sm:$0xff] %v12141_v15  ;;  %v12146_v7 = vld [vmem:[%s16270_s23 + $0xfd0] sm:$0xff]  ;;  %v12151_v13 = vld [vmem:[%s16270_s23 + $0xfd8] sm:$0xff] }
  0xfd   :  { %16725 = vst [vmem:[#allocation467_spill] sm:$0xff] %v12146_v7  ;;  %16726 = vst [vmem:[#allocation468_spill] sm:$0xff] %v12151_v13  ;;  %v12156_v5 = vld [vmem:[%s16270_s23 + $0xfe0] sm:$0xff]  ;;  %v12161_v21 = vld [vmem:[%s16270_s23 + $0xfe8] sm:$0xff] }
  0xfe   :  { %16727 = vst [vmem:[#allocation469_spill] sm:$0xff] %v12156_v5  ;;  %16728 = vst [vmem:[#allocation470_spill] sm:$0xff] %v12161_v21  ;;  %v12166_v15 = vld [vmem:[%s16270_s23 + $0xff0] sm:$0xff]  ;;  %v12171_v7 = vld [vmem:[%s16270_s23 + $0xff8] sm:$0xff] }
  0xff   :  { %16729 = vst [vmem:[#allocation471_spill] sm:$0xff] %v12166_v15  ;;  %16730 = vst [vmem:[#allocation472_spill] sm:$0xff] %v12171_v7 }
 0x100   :  { %1167 = vsyncadd [#allocation4 + $0x1], 32768  ;;  %v12176_v5 = vld [vmem:[%s16270_s23 + $0x1000] sm:$0xff]  ;;  %v12181_v21 = vld [vmem:[%s16270_s23 + $0x1008] sm:$0xff] }
 0x101   :  { %16731 = vst [vmem:[#allocation473_spill] sm:$0xff] %v12176_v5  ;;  %16732 = vst [vmem:[#allocation474_spill] sm:$0xff] %v12181_v21  ;;  %v12186_v15 = vld [vmem:[%s16270_s23 + $0x1010] sm:$0xff]  ;;  %v12191_v7 = vld [vmem:[%s16270_s23 + $0x1018] sm:$0xff] }
 0x102   :  { %16733 = vst [vmem:[#allocation475_spill] sm:$0xff] %v12186_v15  ;;  %16734 = vst [vmem:[#allocation476_spill] sm:$0xff] %v12191_v7  ;;  %v12196_v13 = vld [vmem:[%s16270_s23 + $0x1020] sm:$0xff]  ;;  %v12201_v5 = vld [vmem:[%s16270_s23 + $0x1028] sm:$0xff] }
 0x103   :  { %16735 = vst [vmem:[#allocation477_spill] sm:$0xff] %v12196_v13  ;;  %16736 = vst [vmem:[#allocation478_spill] sm:$0xff] %v12201_v5  ;;  %v12206_v21 = vld [vmem:[%s16270_s23 + $0x1030] sm:$0xff]  ;;  %v12211_v15 = vld [vmem:[%s16270_s23 + $0x1038] sm:$0xff] }
 0x104   :  { %16737 = vst [vmem:[#allocation479_spill] sm:$0xff] %v12206_v21  ;;  %16738 = vst [vmem:[#allocation480_spill] sm:$0xff] %v12211_v15  ;;  %v12216_v7 = vld [vmem:[%s16270_s23 + $0x1040] sm:$0xff]  ;;  %v12221_v13 = vld [vmem:[%s16270_s23 + $0x1048] sm:$0xff] }
 0x105   :  { %16739 = vst [vmem:[#allocation481_spill] sm:$0xff] %v12216_v7  ;;  %16740 = vst [vmem:[#allocation482_spill] sm:$0xff] %v12221_v13  ;;  %v12226_v5 = vld [vmem:[%s16270_s23 + $0x1050] sm:$0xff]  ;;  %v12231_v21 = vld [vmem:[%s16270_s23 + $0x1058] sm:$0xff] }
 0x106   :  { %16741 = vst [vmem:[#allocation483_spill] sm:$0xff] %v12226_v5  ;;  %16742 = vst [vmem:[#allocation484_spill] sm:$0xff] %v12231_v21  ;;  %v12236_v15 = vld [vmem:[%s16270_s23 + $0x1060] sm:$0xff]  ;;  %v12241_v7 = vld [vmem:[%s16270_s23 + $0x1068] sm:$0xff] }
 0x107   :  { %16743 = vst [vmem:[#allocation485_spill] sm:$0xff] %v12236_v15  ;;  %16744 = vst [vmem:[#allocation486_spill] sm:$0xff] %v12241_v7  ;;  %v12246_v13 = vld [vmem:[%s16270_s23 + $0x1070] sm:$0xff]  ;;  %v12251_v5 = vld [vmem:[%s16270_s23 + $0x1078] sm:$0xff] }
 0x108   :  { %16745 = vst [vmem:[#allocation487_spill] sm:$0xff] %v12246_v13  ;;  %16746 = vst [vmem:[#allocation488_spill] sm:$0xff] %v12251_v5  ;;  %v12256_v21 = vld [vmem:[%s16270_s23 + $0x1080] sm:$0xff]  ;;  %v12261_v15 = vld [vmem:[%s16270_s23 + $0x1088] sm:$0xff] }
 0x109   :  { %16747 = vst [vmem:[#allocation489_spill] sm:$0xff] %v12256_v21  ;;  %16748 = vst [vmem:[#allocation490_spill] sm:$0xff] %v12261_v15  ;;  %v12266_v7 = vld [vmem:[%s16270_s23 + $0x1090] sm:$0xff]  ;;  %v12271_v13 = vld [vmem:[%s16270_s23 + $0x1098] sm:$0xff] }
 0x10a   :  { %16749 = vst [vmem:[#allocation491_spill] sm:$0xff] %v12266_v7  ;;  %16750 = vst [vmem:[#allocation492_spill] sm:$0xff] %v12271_v13  ;;  %v12276_v5 = vld [vmem:[%s16270_s23 + $0x10a0] sm:$0xff]  ;;  %v12281_v21 = vld [vmem:[%s16270_s23 + $0x10a8] sm:$0xff] }
 0x10b   :  { %16751 = vst [vmem:[#allocation493_spill] sm:$0xff] %v12276_v5  ;;  %16752 = vst [vmem:[#allocation494_spill] sm:$0xff] %v12281_v21  ;;  %v12286_v15 = vld [vmem:[%s16270_s23 + $0x10b0] sm:$0xff]  ;;  %v12291_v7 = vld [vmem:[%s16270_s23 + $0x10b8] sm:$0xff] }
 0x10c   :  { %16753 = vst [vmem:[#allocation495_spill] sm:$0xff] %v12286_v15  ;;  %16754 = vst [vmem:[#allocation496_spill] sm:$0xff] %v12291_v7  ;;  %v12296_v13 = vld [vmem:[%s16270_s23 + $0x10c0] sm:$0xff]  ;;  %v12301_v5 = vld [vmem:[%s16270_s23 + $0x10c8] sm:$0xff] }
 0x10d   :  { %16755 = vst [vmem:[#allocation497_spill] sm:$0xff] %v12296_v13  ;;  %16756 = vst [vmem:[#allocation498_spill] sm:$0xff] %v12301_v5  ;;  %v12306_v21 = vld [vmem:[%s16270_s23 + $0x10d0] sm:$0xff]  ;;  %v12311_v15 = vld [vmem:[%s16270_s23 + $0x10d8] sm:$0xff] }
 0x10e   :  { %16757 = vst [vmem:[#allocation499_spill] sm:$0xff] %v12306_v21  ;;  %16758 = vst [vmem:[#allocation500_spill] sm:$0xff] %v12311_v15  ;;  %v12316_v7 = vld [vmem:[%s16270_s23 + $0x10e0] sm:$0xff]  ;;  %v12321_v13 = vld [vmem:[%s16270_s23 + $0x10e8] sm:$0xff] }
 0x10f   :  { %16759 = vst [vmem:[#allocation501_spill] sm:$0xff] %v12316_v7  ;;  %16760 = vst [vmem:[#allocation502_spill] sm:$0xff] %v12321_v13  ;;  %v12326_v5 = vld [vmem:[%s16270_s23 + $0x10f0] sm:$0xff]  ;;  %v12331_v21 = vld [vmem:[%s16270_s23 + $0x10f8] sm:$0xff] }
 0x110   :  { %16761 = vst [vmem:[#allocation503_spill] sm:$0xff] %v12326_v5  ;;  %16762 = vst [vmem:[#allocation504_spill] sm:$0xff] %v12331_v21  ;;  %v12336_v15 = vld [vmem:[%s16270_s23 + $0x1100] sm:$0xff]  ;;  %v12341_v7 = vld [vmem:[%s16270_s23 + $0x1108] sm:$0xff] }
 0x111   :  { %16763 = vst [vmem:[#allocation505_spill] sm:$0xff] %v12336_v15  ;;  %16764 = vst [vmem:[#allocation506_spill] sm:$0xff] %v12341_v7  ;;  %v12346_v13 = vld [vmem:[%s16270_s23 + $0x1110] sm:$0xff]  ;;  %v12351_v5 = vld [vmem:[%s16270_s23 + $0x1118] sm:$0xff] }
 0x112   :  { %16765 = vst [vmem:[#allocation507_spill] sm:$0xff] %v12346_v13  ;;  %16766 = vst [vmem:[#allocation508_spill] sm:$0xff] %v12351_v5  ;;  %v12356_v21 = vld [vmem:[%s16270_s23 + $0x1120] sm:$0xff]  ;;  %v12361_v15 = vld [vmem:[%s16270_s23 + $0x1128] sm:$0xff] }
 0x113   :  { %16767 = vst [vmem:[#allocation509_spill] sm:$0xff] %v12356_v21  ;;  %16768 = vst [vmem:[#allocation510_spill] sm:$0xff] %v12361_v15  ;;  %v12366_v7 = vld [vmem:[%s16270_s23 + $0x1130] sm:$0xff]  ;;  %v12371_v13 = vld [vmem:[%s16270_s23 + $0x1138] sm:$0xff] }
 0x114   :  { %16769 = vst [vmem:[#allocation511_spill] sm:$0xff] %v12366_v7  ;;  %16770 = vst [vmem:[#allocation512_spill] sm:$0xff] %v12371_v13  ;;  %v12376_v5 = vld [vmem:[%s16270_s23 + $0x1140] sm:$0xff]  ;;  %v12381_v21 = vld [vmem:[%s16270_s23 + $0x1148] sm:$0xff] }
 0x115   :  { %16771 = vst [vmem:[#allocation513_spill] sm:$0xff] %v12376_v5  ;;  %16772 = vst [vmem:[#allocation514_spill] sm:$0xff] %v12381_v21  ;;  %v12386_v15 = vld [vmem:[%s16270_s23 + $0x1150] sm:$0xff]  ;;  %v12391_v7 = vld [vmem:[%s16270_s23 + $0x1158] sm:$0xff] }
 0x116   :  { %16773 = vst [vmem:[#allocation515_spill] sm:$0xff] %v12386_v15  ;;  %16774 = vst [vmem:[#allocation516_spill] sm:$0xff] %v12391_v7  ;;  %v12396_v13 = vld [vmem:[%s16270_s23 + $0x1160] sm:$0xff]  ;;  %v12401_v5 = vld [vmem:[%s16270_s23 + $0x1168] sm:$0xff] }
 0x117   :  { %16775 = vst [vmem:[#allocation517_spill] sm:$0xff] %v12396_v13  ;;  %16776 = vst [vmem:[#allocation518_spill] sm:$0xff] %v12401_v5  ;;  %v12406_v21 = vld [vmem:[%s16270_s23 + $0x1170] sm:$0xff]  ;;  %v12411_v15 = vld [vmem:[%s16270_s23 + $0x1178] sm:$0xff] }
 0x118   :  { %16777 = vst [vmem:[#allocation519_spill] sm:$0xff] %v12406_v21  ;;  %16778 = vst [vmem:[#allocation520_spill] sm:$0xff] %v12411_v15  ;;  %v12416_v7 = vld [vmem:[%s16270_s23 + $0x1180] sm:$0xff]  ;;  %v12421_v13 = vld [vmem:[%s16270_s23 + $0x1188] sm:$0xff] }
 0x119   :  { %16779 = vst [vmem:[#allocation521_spill] sm:$0xff] %v12416_v7  ;;  %16780 = vst [vmem:[#allocation522_spill] sm:$0xff] %v12421_v13  ;;  %v12426_v5 = vld [vmem:[%s16270_s23 + $0x1190] sm:$0xff]  ;;  %v12431_v21 = vld [vmem:[%s16270_s23 + $0x1198] sm:$0xff] }
 0x11a   :  { %16781 = vst [vmem:[#allocation523_spill] sm:$0xff] %v12426_v5  ;;  %16782 = vst [vmem:[#allocation524_spill] sm:$0xff] %v12431_v21  ;;  %v12436_v15 = vld [vmem:[%s16270_s23 + $0x11a0] sm:$0xff]  ;;  %v12441_v7 = vld [vmem:[%s16270_s23 + $0x11a8] sm:$0xff] }
 0x11b   :  { %16783 = vst [vmem:[#allocation525_spill] sm:$0xff] %v12436_v15  ;;  %16784 = vst [vmem:[#allocation526_spill] sm:$0xff] %v12441_v7  ;;  %v12446_v13 = vld [vmem:[%s16270_s23 + $0x11b0] sm:$0xff]  ;;  %v12451_v5 = vld [vmem:[%s16270_s23 + $0x11b8] sm:$0xff] }
 0x11c   :  { %16785 = vst [vmem:[#allocation527_spill] sm:$0xff] %v12446_v13  ;;  %16786 = vst [vmem:[#allocation528_spill] sm:$0xff] %v12451_v5  ;;  %v12456_v21 = vld [vmem:[%s16270_s23 + $0x11c0] sm:$0xff]  ;;  %v12461_v15 = vld [vmem:[%s16270_s23 + $0x11c8] sm:$0xff] }
 0x11d   :  { %16787 = vst [vmem:[#allocation529_spill] sm:$0xff] %v12456_v21  ;;  %16788 = vst [vmem:[#allocation530_spill] sm:$0xff] %v12461_v15  ;;  %v12466_v7 = vld [vmem:[%s16270_s23 + $0x11d0] sm:$0xff]  ;;  %v12471_v13 = vld [vmem:[%s16270_s23 + $0x11d8] sm:$0xff] }
 0x11e   :  { %16789 = vst [vmem:[#allocation531_spill] sm:$0xff] %v12466_v7  ;;  %16790 = vst [vmem:[#allocation532_spill] sm:$0xff] %v12471_v13  ;;  %v12476_v5 = vld [vmem:[%s16270_s23 + $0x11e0] sm:$0xff]  ;;  %v12481_v21 = vld [vmem:[%s16270_s23 + $0x11e8] sm:$0xff] }
 0x11f   :  { %16791 = vst [vmem:[#allocation533_spill] sm:$0xff] %v12476_v5  ;;  %16792 = vst [vmem:[#allocation534_spill] sm:$0xff] %v12481_v21  ;;  %v12486_v15 = vld [vmem:[%s16270_s23 + $0x11f0] sm:$0xff]  ;;  %v12491_v7 = vld [vmem:[%s16270_s23 + $0x11f8] sm:$0xff] }
 0x120   :  { %16793 = vst [vmem:[#allocation535_spill] sm:$0xff] %v12486_v15  ;;  %16794 = vst [vmem:[#allocation536_spill] sm:$0xff] %v12491_v7  ;;  %v12496_v13 = vld [vmem:[%s16270_s23 + $0x1200] sm:$0xff]  ;;  %v12501_v5 = vld [vmem:[%s16270_s23 + $0x1208] sm:$0xff] }
 0x121   :  { %16795 = vst [vmem:[#allocation537_spill] sm:$0xff] %v12496_v13  ;;  %16796 = vst [vmem:[#allocation538_spill] sm:$0xff] %v12501_v5  ;;  %v12506_v21 = vld [vmem:[%s16270_s23 + $0x1210] sm:$0xff]  ;;  %v12511_v15 = vld [vmem:[%s16270_s23 + $0x1218] sm:$0xff] }
 0x122   :  { %16797 = vst [vmem:[#allocation539_spill] sm:$0xff] %v12506_v21  ;;  %16798 = vst [vmem:[#allocation540_spill] sm:$0xff] %v12511_v15  ;;  %v12516_v7 = vld [vmem:[%s16270_s23 + $0x1220] sm:$0xff]  ;;  %v12521_v13 = vld [vmem:[%s16270_s23 + $0x1228] sm:$0xff] }
 0x123   :  { %16799 = vst [vmem:[#allocation541_spill] sm:$0xff] %v12516_v7  ;;  %16800 = vst [vmem:[#allocation542_spill] sm:$0xff] %v12521_v13  ;;  %v12526_v5 = vld [vmem:[%s16270_s23 + $0x1230] sm:$0xff]  ;;  %v12531_v21 = vld [vmem:[%s16270_s23 + $0x1238] sm:$0xff] }
 0x124   :  { %16801 = vst [vmem:[#allocation543_spill] sm:$0xff] %v12526_v5  ;;  %16802 = vst [vmem:[#allocation544_spill] sm:$0xff] %v12531_v21  ;;  %v12536_v15 = vld [vmem:[%s16270_s23 + $0x1240] sm:$0xff]  ;;  %v12541_v7 = vld [vmem:[%s16270_s23 + $0x1248] sm:$0xff] }
 0x125   :  { %16803 = vst [vmem:[#allocation545_spill] sm:$0xff] %v12536_v15  ;;  %16804 = vst [vmem:[#allocation546_spill] sm:$0xff] %v12541_v7  ;;  %v12546_v13 = vld [vmem:[%s16270_s23 + $0x1250] sm:$0xff]  ;;  %v12551_v5 = vld [vmem:[%s16270_s23 + $0x1258] sm:$0xff] }
 0x126   :  { %16805 = vst [vmem:[#allocation547_spill] sm:$0xff] %v12546_v13  ;;  %16806 = vst [vmem:[#allocation548_spill] sm:$0xff] %v12551_v5  ;;  %v12556_v21 = vld [vmem:[%s16270_s23 + $0x1260] sm:$0xff]  ;;  %v12561_v15 = vld [vmem:[%s16270_s23 + $0x1268] sm:$0xff] }
 0x127   :  { %16807 = vst [vmem:[#allocation549_spill] sm:$0xff] %v12556_v21  ;;  %16808 = vst [vmem:[#allocation550_spill] sm:$0xff] %v12561_v15  ;;  %v12566_v7 = vld [vmem:[%s16270_s23 + $0x1270] sm:$0xff]  ;;  %v12571_v13 = vld [vmem:[%s16270_s23 + $0x1278] sm:$0xff] }
 0x128   :  { %16809 = vst [vmem:[#allocation551_spill] sm:$0xff] %v12566_v7  ;;  %16810 = vst [vmem:[#allocation552_spill] sm:$0xff] %v12571_v13  ;;  %v12576_v5 = vld [vmem:[%s16270_s23 + $0x1280] sm:$0xff]  ;;  %v12581_v21 = vld [vmem:[%s16270_s23 + $0x1288] sm:$0xff] }
 0x129   :  { %16811 = vst [vmem:[#allocation553_spill] sm:$0xff] %v12576_v5  ;;  %16812 = vst [vmem:[#allocation554_spill] sm:$0xff] %v12581_v21  ;;  %v12586_v15 = vld [vmem:[%s16270_s23 + $0x1290] sm:$0xff]  ;;  %v12591_v7 = vld [vmem:[%s16270_s23 + $0x1298] sm:$0xff] }
 0x12a   :  { %16813 = vst [vmem:[#allocation555_spill] sm:$0xff] %v12586_v15  ;;  %16814 = vst [vmem:[#allocation556_spill] sm:$0xff] %v12591_v7  ;;  %v12596_v13 = vld [vmem:[%s16270_s23 + $0x12a0] sm:$0xff]  ;;  %v12601_v5 = vld [vmem:[%s16270_s23 + $0x12a8] sm:$0xff] }
 0x12b   :  { %16815 = vst [vmem:[#allocation557_spill] sm:$0xff] %v12596_v13  ;;  %16816 = vst [vmem:[#allocation558_spill] sm:$0xff] %v12601_v5  ;;  %v12606_v21 = vld [vmem:[%s16270_s23 + $0x12b0] sm:$0xff]  ;;  %v12611_v15 = vld [vmem:[%s16270_s23 + $0x12b8] sm:$0xff] }
 0x12c   :  { %16817 = vst [vmem:[#allocation559_spill] sm:$0xff] %v12606_v21  ;;  %16818 = vst [vmem:[#allocation560_spill] sm:$0xff] %v12611_v15  ;;  %v12616_v7 = vld [vmem:[%s16270_s23 + $0x12c0] sm:$0xff]  ;;  %v12621_v13 = vld [vmem:[%s16270_s23 + $0x12c8] sm:$0xff] }
 0x12d   :  { %16819 = vst [vmem:[#allocation561_spill] sm:$0xff] %v12616_v7  ;;  %16820 = vst [vmem:[#allocation562_spill] sm:$0xff] %v12621_v13  ;;  %v12626_v5 = vld [vmem:[%s16270_s23 + $0x12d0] sm:$0xff]  ;;  %v12631_v21 = vld [vmem:[%s16270_s23 + $0x12d8] sm:$0xff] }
 0x12e   :  { %16821 = vst [vmem:[#allocation563_spill] sm:$0xff] %v12626_v5  ;;  %16822 = vst [vmem:[#allocation564_spill] sm:$0xff] %v12631_v21  ;;  %v12636_v15 = vld [vmem:[%s16270_s23 + $0x12e0] sm:$0xff]  ;;  %v12641_v7 = vld [vmem:[%s16270_s23 + $0x12e8] sm:$0xff] }
 0x12f   :  { %16823 = vst [vmem:[#allocation565_spill] sm:$0xff] %v12636_v15  ;;  %16824 = vst [vmem:[#allocation566_spill] sm:$0xff] %v12641_v7  ;;  %v12646_v13 = vld [vmem:[%s16270_s23 + $0x12f0] sm:$0xff]  ;;  %v12651_v5 = vld [vmem:[%s16270_s23 + $0x12f8] sm:$0xff] }
 0x130   :  { %16825 = vst [vmem:[#allocation567_spill] sm:$0xff] %v12646_v13  ;;  %16826 = vst [vmem:[#allocation568_spill] sm:$0xff] %v12651_v5  ;;  %v12656_v21 = vld [vmem:[%s16270_s23 + $0x1300] sm:$0xff]  ;;  %v12661_v15 = vld [vmem:[%s16270_s23 + $0x1308] sm:$0xff] }
 0x131   :  { %16827 = vst [vmem:[#allocation569_spill] sm:$0xff] %v12656_v21  ;;  %16828 = vst [vmem:[#allocation570_spill] sm:$0xff] %v12661_v15  ;;  %v12666_v7 = vld [vmem:[%s16270_s23 + $0x1310] sm:$0xff]  ;;  %v12671_v13 = vld [vmem:[%s16270_s23 + $0x1318] sm:$0xff] }
 0x132   :  { %16829 = vst [vmem:[#allocation571_spill] sm:$0xff] %v12666_v7  ;;  %16830 = vst [vmem:[#allocation572_spill] sm:$0xff] %v12671_v13  ;;  %v12676_v5 = vld [vmem:[%s16270_s23 + $0x1320] sm:$0xff]  ;;  %v12681_v21 = vld [vmem:[%s16270_s23 + $0x1328] sm:$0xff] }
 0x133   :  { %16831 = vst [vmem:[#allocation573_spill] sm:$0xff] %v12676_v5  ;;  %16832 = vst [vmem:[#allocation574_spill] sm:$0xff] %v12681_v21  ;;  %v12686_v15 = vld [vmem:[%s16270_s23 + $0x1330] sm:$0xff]  ;;  %v12691_v7 = vld [vmem:[%s16270_s23 + $0x1338] sm:$0xff] }
 0x134   :  { %16833 = vst [vmem:[#allocation575_spill] sm:$0xff] %v12686_v15  ;;  %16834 = vst [vmem:[#allocation576_spill] sm:$0xff] %v12691_v7  ;;  %v12696_v13 = vld [vmem:[%s16270_s23 + $0x1340] sm:$0xff]  ;;  %v12701_v5 = vld [vmem:[%s16270_s23 + $0x1348] sm:$0xff] }
 0x135   :  { %16835 = vst [vmem:[#allocation577_spill] sm:$0xff] %v12696_v13  ;;  %16836 = vst [vmem:[#allocation578_spill] sm:$0xff] %v12701_v5  ;;  %v12706_v21 = vld [vmem:[%s16270_s23 + $0x1350] sm:$0xff]  ;;  %v12711_v15 = vld [vmem:[%s16270_s23 + $0x1358] sm:$0xff] }
 0x136   :  { %16837 = vst [vmem:[#allocation579_spill] sm:$0xff] %v12706_v21  ;;  %16838 = vst [vmem:[#allocation580_spill] sm:$0xff] %v12711_v15  ;;  %v12716_v7 = vld [vmem:[%s16270_s23 + $0x1360] sm:$0xff]  ;;  %v12721_v13 = vld [vmem:[%s16270_s23 + $0x1368] sm:$0xff] }
 0x137   :  { %16839 = vst [vmem:[#allocation581_spill] sm:$0xff] %v12716_v7  ;;  %16840 = vst [vmem:[#allocation582_spill] sm:$0xff] %v12721_v13  ;;  %v12726_v5 = vld [vmem:[%s16270_s23 + $0x1370] sm:$0xff]  ;;  %v12731_v21 = vld [vmem:[%s16270_s23 + $0x1378] sm:$0xff] }
 0x138   :  { %16841 = vst [vmem:[#allocation583_spill] sm:$0xff] %v12726_v5  ;;  %16842 = vst [vmem:[#allocation584_spill] sm:$0xff] %v12731_v21  ;;  %v12736_v15 = vld [vmem:[%s16270_s23 + $0x1380] sm:$0xff]  ;;  %v12741_v7 = vld [vmem:[%s16270_s23 + $0x1388] sm:$0xff] }
 0x139   :  { %16843 = vst [vmem:[#allocation585_spill] sm:$0xff] %v12736_v15  ;;  %16844 = vst [vmem:[#allocation586_spill] sm:$0xff] %v12741_v7  ;;  %v12746_v13 = vld [vmem:[%s16270_s23 + $0x1390] sm:$0xff]  ;;  %v12751_v5 = vld [vmem:[%s16270_s23 + $0x1398] sm:$0xff] }
 0x13a   :  { %16845 = vst [vmem:[#allocation587_spill] sm:$0xff] %v12746_v13  ;;  %16846 = vst [vmem:[#allocation588_spill] sm:$0xff] %v12751_v5  ;;  %v12756_v21 = vld [vmem:[%s16270_s23 + $0x13a0] sm:$0xff]  ;;  %v12761_v15 = vld [vmem:[%s16270_s23 + $0x13a8] sm:$0xff] }
 0x13b   :  { %16847 = vst [vmem:[#allocation589_spill] sm:$0xff] %v12756_v21  ;;  %16848 = vst [vmem:[#allocation590_spill] sm:$0xff] %v12761_v15  ;;  %v12766_v7 = vld [vmem:[%s16270_s23 + $0x13b0] sm:$0xff]  ;;  %v12771_v13 = vld [vmem:[%s16270_s23 + $0x13b8] sm:$0xff] }
 0x13c   :  { %16849 = vst [vmem:[#allocation591_spill] sm:$0xff] %v12766_v7  ;;  %16850 = vst [vmem:[#allocation592_spill] sm:$0xff] %v12771_v13  ;;  %v12776_v5 = vld [vmem:[%s16270_s23 + $0x13c0] sm:$0xff]  ;;  %v12781_v21 = vld [vmem:[%s16270_s23 + $0x13c8] sm:$0xff] }
 0x13d   :  { %16851 = vst [vmem:[#allocation593_spill] sm:$0xff] %v12776_v5  ;;  %16852 = vst [vmem:[#allocation594_spill] sm:$0xff] %v12781_v21  ;;  %v12786_v15 = vld [vmem:[%s16270_s23 + $0x13d0] sm:$0xff]  ;;  %v12791_v7 = vld [vmem:[%s16270_s23 + $0x13d8] sm:$0xff] }
 0x13e   :  { %16853 = vst [vmem:[#allocation595_spill] sm:$0xff] %v12786_v15  ;;  %16854 = vst [vmem:[#allocation596_spill] sm:$0xff] %v12791_v7  ;;  %v12796_v13 = vld [vmem:[%s16270_s23 + $0x13e0] sm:$0xff]  ;;  %v12801_v5 = vld [vmem:[%s16270_s23 + $0x13e8] sm:$0xff] }
 0x13f   :  { %16855 = vst [vmem:[#allocation597_spill] sm:$0xff] %v12796_v13  ;;  %16856 = vst [vmem:[#allocation598_spill] sm:$0xff] %v12801_v5  ;;  %v12806_v21 = vld [vmem:[%s16270_s23 + $0x13f0] sm:$0xff]  ;;  %v12811_v15 = vld [vmem:[%s16270_s23 + $0x13f8] sm:$0xff] }
 0x140   :  { %16857 = vst [vmem:[#allocation599_spill] sm:$0xff] %v12806_v21  ;;  %16858 = vst [vmem:[#allocation600_spill] sm:$0xff] %v12811_v15  ;;  %v12816_v7 = vld [vmem:[%s16270_s23 + $0x1400] sm:$0xff]  ;;  %v12821_v13 = vld [vmem:[%s16270_s23 + $0x1408] sm:$0xff] }
 0x141   :  { %16859 = vst [vmem:[#allocation601_spill] sm:$0xff] %v12816_v7  ;;  %16860 = vst [vmem:[#allocation602_spill] sm:$0xff] %v12821_v13  ;;  %v12826_v5 = vld [vmem:[%s16270_s23 + $0x1410] sm:$0xff]  ;;  %v12831_v21 = vld [vmem:[%s16270_s23 + $0x1418] sm:$0xff] }
 0x142   :  { %16861 = vst [vmem:[#allocation603_spill] sm:$0xff] %v12826_v5  ;;  %16862 = vst [vmem:[#allocation604_spill] sm:$0xff] %v12831_v21  ;;  %v12836_v15 = vld [vmem:[%s16270_s23 + $0x1420] sm:$0xff]  ;;  %v12841_v7 = vld [vmem:[%s16270_s23 + $0x1428] sm:$0xff] }
 0x143   :  { %16863 = vst [vmem:[#allocation605_spill] sm:$0xff] %v12836_v15  ;;  %16864 = vst [vmem:[#allocation606_spill] sm:$0xff] %v12841_v7  ;;  %v12846_v13 = vld [vmem:[%s16270_s23 + $0x1430] sm:$0xff]  ;;  %v12851_v5 = vld [vmem:[%s16270_s23 + $0x1438] sm:$0xff] }
 0x144   :  { %16865 = vst [vmem:[#allocation607_spill] sm:$0xff] %v12846_v13  ;;  %16866 = vst [vmem:[#allocation608_spill] sm:$0xff] %v12851_v5  ;;  %v12856_v21 = vld [vmem:[%s16270_s23 + $0x1440] sm:$0xff]  ;;  %v12861_v15 = vld [vmem:[%s16270_s23 + $0x1448] sm:$0xff] }
 0x145   :  { %16867 = vst [vmem:[#allocation609_spill] sm:$0xff] %v12856_v21  ;;  %16868 = vst [vmem:[#allocation610_spill] sm:$0xff] %v12861_v15  ;;  %v12866_v7 = vld [vmem:[%s16270_s23 + $0x1450] sm:$0xff]  ;;  %v12871_v13 = vld [vmem:[%s16270_s23 + $0x1458] sm:$0xff] }
 0x146   :  { %16869 = vst [vmem:[#allocation611_spill] sm:$0xff] %v12866_v7  ;;  %16870 = vst [vmem:[#allocation612_spill] sm:$0xff] %v12871_v13  ;;  %v12876_v5 = vld [vmem:[%s16270_s23 + $0x1460] sm:$0xff]  ;;  %v12881_v21 = vld [vmem:[%s16270_s23 + $0x1468] sm:$0xff] }
 0x147   :  { %16871 = vst [vmem:[#allocation613_spill] sm:$0xff] %v12876_v5  ;;  %16872 = vst [vmem:[#allocation614_spill] sm:$0xff] %v12881_v21  ;;  %v12886_v15 = vld [vmem:[%s16270_s23 + $0x1470] sm:$0xff]  ;;  %v12891_v7 = vld [vmem:[%s16270_s23 + $0x1478] sm:$0xff] }
 0x148   :  { %16873 = vst [vmem:[#allocation615_spill] sm:$0xff] %v12886_v15  ;;  %16874 = vst [vmem:[#allocation616_spill] sm:$0xff] %v12891_v7  ;;  %v12896_v13 = vld [vmem:[%s16270_s23 + $0x1480] sm:$0xff]  ;;  %v12901_v5 = vld [vmem:[%s16270_s23 + $0x1488] sm:$0xff] }
 0x149   :  { %16875 = vst [vmem:[#allocation617_spill] sm:$0xff] %v12896_v13  ;;  %16876 = vst [vmem:[#allocation618_spill] sm:$0xff] %v12901_v5  ;;  %v12906_v21 = vld [vmem:[%s16270_s23 + $0x1490] sm:$0xff]  ;;  %v12911_v15 = vld [vmem:[%s16270_s23 + $0x1498] sm:$0xff] }
 0x14a   :  { %16877 = vst [vmem:[#allocation619_spill] sm:$0xff] %v12906_v21  ;;  %16878 = vst [vmem:[#allocation620_spill] sm:$0xff] %v12911_v15  ;;  %v12916_v7 = vld [vmem:[%s16270_s23 + $0x14a0] sm:$0xff]  ;;  %v12921_v13 = vld [vmem:[%s16270_s23 + $0x14a8] sm:$0xff] }
 0x14b   :  { %16879 = vst [vmem:[#allocation621_spill] sm:$0xff] %v12916_v7  ;;  %16880 = vst [vmem:[#allocation622_spill] sm:$0xff] %v12921_v13  ;;  %v12926_v5 = vld [vmem:[%s16270_s23 + $0x14b0] sm:$0xff]  ;;  %v12931_v21 = vld [vmem:[%s16270_s23 + $0x14b8] sm:$0xff] }
 0x14c   :  { %16881 = vst [vmem:[#allocation623_spill] sm:$0xff] %v12926_v5  ;;  %16882 = vst [vmem:[#allocation624_spill] sm:$0xff] %v12931_v21  ;;  %v12936_v15 = vld [vmem:[%s16270_s23 + $0x14c0] sm:$0xff]  ;;  %v12941_v7 = vld [vmem:[%s16270_s23 + $0x14c8] sm:$0xff] }
 0x14d   :  { %16883 = vst [vmem:[#allocation625_spill] sm:$0xff] %v12936_v15  ;;  %16884 = vst [vmem:[#allocation626_spill] sm:$0xff] %v12941_v7  ;;  %v12946_v13 = vld [vmem:[%s16270_s23 + $0x14d0] sm:$0xff]  ;;  %v12951_v5 = vld [vmem:[%s16270_s23 + $0x14d8] sm:$0xff] }
 0x14e   :  { %16885 = vst [vmem:[#allocation627_spill] sm:$0xff] %v12946_v13  ;;  %16886 = vst [vmem:[#allocation628_spill] sm:$0xff] %v12951_v5  ;;  %v12956_v21 = vld [vmem:[%s16270_s23 + $0x14e0] sm:$0xff]  ;;  %v12961_v15 = vld [vmem:[%s16270_s23 + $0x14e8] sm:$0xff] }
 0x14f   :  { %16887 = vst [vmem:[#allocation629_spill] sm:$0xff] %v12956_v21  ;;  %16888 = vst [vmem:[#allocation630_spill] sm:$0xff] %v12961_v15  ;;  %v12966_v7 = vld [vmem:[%s16270_s23 + $0x14f0] sm:$0xff]  ;;  %v12971_v13 = vld [vmem:[%s16270_s23 + $0x14f8] sm:$0xff] }
 0x150   :  { %16889 = vst [vmem:[#allocation631_spill] sm:$0xff] %v12966_v7  ;;  %16890 = vst [vmem:[#allocation632_spill] sm:$0xff] %v12971_v13  ;;  %v12976_v5 = vld [vmem:[%s16270_s23 + $0x1500] sm:$0xff]  ;;  %v12981_v21 = vld [vmem:[%s16270_s23 + $0x1508] sm:$0xff] }
 0x151   :  { %16891 = vst [vmem:[#allocation633_spill] sm:$0xff] %v12976_v5  ;;  %16892 = vst [vmem:[#allocation634_spill] sm:$0xff] %v12981_v21  ;;  %v12986_v15 = vld [vmem:[%s16270_s23 + $0x1510] sm:$0xff]  ;;  %v12991_v7 = vld [vmem:[%s16270_s23 + $0x1518] sm:$0xff] }
 0x152   :  { %16893 = vst [vmem:[#allocation635_spill] sm:$0xff] %v12986_v15  ;;  %16894 = vst [vmem:[#allocation636_spill] sm:$0xff] %v12991_v7  ;;  %v12996_v13 = vld [vmem:[%s16270_s23 + $0x1520] sm:$0xff]  ;;  %v13001_v5 = vld [vmem:[%s16270_s23 + $0x1528] sm:$0xff] }
 0x153   :  { %16895 = vst [vmem:[#allocation637_spill] sm:$0xff] %v12996_v13  ;;  %16896 = vst [vmem:[#allocation638_spill] sm:$0xff] %v13001_v5  ;;  %v13006_v21 = vld [vmem:[%s16270_s23 + $0x1530] sm:$0xff]  ;;  %v13011_v15 = vld [vmem:[%s16270_s23 + $0x1538] sm:$0xff] }
 0x154   :  { %16897 = vst [vmem:[#allocation639_spill] sm:$0xff] %v13006_v21  ;;  %16898 = vst [vmem:[#allocation640_spill] sm:$0xff] %v13011_v15  ;;  %v13016_v7 = vld [vmem:[%s16270_s23 + $0x1540] sm:$0xff]  ;;  %v13021_v13 = vld [vmem:[%s16270_s23 + $0x1548] sm:$0xff] }
 0x155   :  { %16899 = vst [vmem:[#allocation641_spill] sm:$0xff] %v13016_v7  ;;  %16900 = vst [vmem:[#allocation642_spill] sm:$0xff] %v13021_v13  ;;  %v13026_v5 = vld [vmem:[%s16270_s23 + $0x1550] sm:$0xff]  ;;  %v13031_v21 = vld [vmem:[%s16270_s23 + $0x1558] sm:$0xff] }
 0x156   :  { %16901 = vst [vmem:[#allocation643_spill] sm:$0xff] %v13026_v5  ;;  %16902 = vst [vmem:[#allocation644_spill] sm:$0xff] %v13031_v21  ;;  %v13036_v15 = vld [vmem:[%s16270_s23 + $0x1560] sm:$0xff]  ;;  %v13041_v7 = vld [vmem:[%s16270_s23 + $0x1568] sm:$0xff] }
 0x157   :  { %16903 = vst [vmem:[#allocation645_spill] sm:$0xff] %v13036_v15  ;;  %16904 = vst [vmem:[#allocation646_spill] sm:$0xff] %v13041_v7  ;;  %v13046_v13 = vld [vmem:[%s16270_s23 + $0x1570] sm:$0xff]  ;;  %v13051_v5 = vld [vmem:[%s16270_s23 + $0x1578] sm:$0xff] }
 0x158   :  { %16905 = vst [vmem:[#allocation647_spill] sm:$0xff] %v13046_v13  ;;  %16906 = vst [vmem:[#allocation648_spill] sm:$0xff] %v13051_v5  ;;  %v13056_v21 = vld [vmem:[%s16270_s23 + $0x1580] sm:$0xff]  ;;  %v13061_v15 = vld [vmem:[%s16270_s23 + $0x1588] sm:$0xff] }
 0x159   :  { %16907 = vst [vmem:[#allocation649_spill] sm:$0xff] %v13056_v21  ;;  %16908 = vst [vmem:[#allocation650_spill] sm:$0xff] %v13061_v15  ;;  %v13066_v7 = vld [vmem:[%s16270_s23 + $0x1590] sm:$0xff]  ;;  %v13071_v13 = vld [vmem:[%s16270_s23 + $0x1598] sm:$0xff] }
 0x15a   :  { %16909 = vst [vmem:[#allocation651_spill] sm:$0xff] %v13066_v7  ;;  %16910 = vst [vmem:[#allocation652_spill] sm:$0xff] %v13071_v13  ;;  %v13076_v5 = vld [vmem:[%s16270_s23 + $0x15a0] sm:$0xff]  ;;  %v13081_v21 = vld [vmem:[%s16270_s23 + $0x15a8] sm:$0xff] }
 0x15b   :  { %16911 = vst [vmem:[#allocation653_spill] sm:$0xff] %v13076_v5  ;;  %16912 = vst [vmem:[#allocation654_spill] sm:$0xff] %v13081_v21  ;;  %v13086_v15 = vld [vmem:[%s16270_s23 + $0x15b0] sm:$0xff]  ;;  %v13091_v7 = vld [vmem:[%s16270_s23 + $0x15b8] sm:$0xff] }
 0x15c   :  { %16913 = vst [vmem:[#allocation655_spill] sm:$0xff] %v13086_v15  ;;  %16914 = vst [vmem:[#allocation656_spill] sm:$0xff] %v13091_v7  ;;  %v13096_v13 = vld [vmem:[%s16270_s23 + $0x15c0] sm:$0xff]  ;;  %v13101_v5 = vld [vmem:[%s16270_s23 + $0x15c8] sm:$0xff] }
 0x15d   :  { %16915 = vst [vmem:[#allocation657_spill] sm:$0xff] %v13096_v13  ;;  %16916 = vst [vmem:[#allocation658_spill] sm:$0xff] %v13101_v5  ;;  %v13106_v21 = vld [vmem:[%s16270_s23 + $0x15d0] sm:$0xff]  ;;  %v13111_v15 = vld [vmem:[%s16270_s23 + $0x15d8] sm:$0xff] }
 0x15e   :  { %16917 = vst [vmem:[#allocation659_spill] sm:$0xff] %v13106_v21  ;;  %16918 = vst [vmem:[#allocation660_spill] sm:$0xff] %v13111_v15  ;;  %v13116_v7 = vld [vmem:[%s16270_s23 + $0x15e0] sm:$0xff]  ;;  %v13121_v13 = vld [vmem:[%s16270_s23 + $0x15e8] sm:$0xff] }
 0x15f   :  { %16919 = vst [vmem:[#allocation661_spill] sm:$0xff] %v13116_v7  ;;  %16920 = vst [vmem:[#allocation662_spill] sm:$0xff] %v13121_v13  ;;  %v13126_v5 = vld [vmem:[%s16270_s23 + $0x15f0] sm:$0xff]  ;;  %v13131_v21 = vld [vmem:[%s16270_s23 + $0x15f8] sm:$0xff] }
 0x160   :  { %16921 = vst [vmem:[#allocation663_spill] sm:$0xff] %v13126_v5  ;;  %16922 = vst [vmem:[#allocation664_spill] sm:$0xff] %v13131_v21  ;;  %v13136_v15 = vld [vmem:[%s16270_s23 + $0x1600] sm:$0xff]  ;;  %v13141_v7 = vld [vmem:[%s16270_s23 + $0x1608] sm:$0xff] }
 0x161   :  { %16923 = vst [vmem:[#allocation665_spill] sm:$0xff] %v13136_v15  ;;  %16924 = vst [vmem:[#allocation666_spill] sm:$0xff] %v13141_v7  ;;  %v13146_v13 = vld [vmem:[%s16270_s23 + $0x1610] sm:$0xff]  ;;  %v13151_v5 = vld [vmem:[%s16270_s23 + $0x1618] sm:$0xff] }
 0x162   :  { %16925 = vst [vmem:[#allocation667_spill] sm:$0xff] %v13146_v13  ;;  %16926 = vst [vmem:[#allocation668_spill] sm:$0xff] %v13151_v5  ;;  %v13156_v21 = vld [vmem:[%s16270_s23 + $0x1620] sm:$0xff]  ;;  %v13161_v15 = vld [vmem:[%s16270_s23 + $0x1628] sm:$0xff] }
 0x163   :  { %16927 = vst [vmem:[#allocation669_spill] sm:$0xff] %v13156_v21  ;;  %16928 = vst [vmem:[#allocation670_spill] sm:$0xff] %v13161_v15  ;;  %v13166_v7 = vld [vmem:[%s16270_s23 + $0x1630] sm:$0xff]  ;;  %v13171_v13 = vld [vmem:[%s16270_s23 + $0x1638] sm:$0xff] }
 0x164   :  { %16929 = vst [vmem:[#allocation671_spill] sm:$0xff] %v13166_v7  ;;  %16930 = vst [vmem:[#allocation672_spill] sm:$0xff] %v13171_v13  ;;  %v13176_v5 = vld [vmem:[%s16270_s23 + $0x1640] sm:$0xff]  ;;  %v13181_v21 = vld [vmem:[%s16270_s23 + $0x1648] sm:$0xff] }
 0x165   :  { %16931 = vst [vmem:[#allocation673_spill] sm:$0xff] %v13176_v5  ;;  %16932 = vst [vmem:[#allocation674_spill] sm:$0xff] %v13181_v21  ;;  %v13186_v15 = vld [vmem:[%s16270_s23 + $0x1650] sm:$0xff]  ;;  %v13191_v7 = vld [vmem:[%s16270_s23 + $0x1658] sm:$0xff] }
 0x166   :  { %16933 = vst [vmem:[#allocation675_spill] sm:$0xff] %v13186_v15  ;;  %16934 = vst [vmem:[#allocation676_spill] sm:$0xff] %v13191_v7  ;;  %v13196_v13 = vld [vmem:[%s16270_s23 + $0x1660] sm:$0xff]  ;;  %v13201_v5 = vld [vmem:[%s16270_s23 + $0x1668] sm:$0xff] }
 0x167   :  { %16935 = vst [vmem:[#allocation677_spill] sm:$0xff] %v13196_v13  ;;  %16936 = vst [vmem:[#allocation678_spill] sm:$0xff] %v13201_v5  ;;  %v13206_v21 = vld [vmem:[%s16270_s23 + $0x1670] sm:$0xff]  ;;  %v13211_v15 = vld [vmem:[%s16270_s23 + $0x1678] sm:$0xff] }
 0x168   :  { %16937 = vst [vmem:[#allocation679_spill] sm:$0xff] %v13206_v21  ;;  %16938 = vst [vmem:[#allocation680_spill] sm:$0xff] %v13211_v15  ;;  %v13216_v7 = vld [vmem:[%s16270_s23 + $0x1680] sm:$0xff]  ;;  %v13221_v13 = vld [vmem:[%s16270_s23 + $0x1688] sm:$0xff] }
 0x169   :  { %16939 = vst [vmem:[#allocation681_spill] sm:$0xff] %v13216_v7  ;;  %16940 = vst [vmem:[#allocation682_spill] sm:$0xff] %v13221_v13  ;;  %v13226_v5 = vld [vmem:[%s16270_s23 + $0x1690] sm:$0xff]  ;;  %v13231_v21 = vld [vmem:[%s16270_s23 + $0x1698] sm:$0xff] }
 0x16a   :  { %16941 = vst [vmem:[#allocation683_spill] sm:$0xff] %v13226_v5  ;;  %16942 = vst [vmem:[#allocation684_spill] sm:$0xff] %v13231_v21  ;;  %v13236_v15 = vld [vmem:[%s16270_s23 + $0x16a0] sm:$0xff]  ;;  %v13241_v7 = vld [vmem:[%s16270_s23 + $0x16a8] sm:$0xff] }
 0x16b   :  { %16943 = vst [vmem:[#allocation685_spill] sm:$0xff] %v13236_v15  ;;  %16944 = vst [vmem:[#allocation686_spill] sm:$0xff] %v13241_v7  ;;  %v13246_v13 = vld [vmem:[%s16270_s23 + $0x16b0] sm:$0xff]  ;;  %v13251_v5 = vld [vmem:[%s16270_s23 + $0x16b8] sm:$0xff] }
 0x16c   :  { %16945 = vst [vmem:[#allocation687_spill] sm:$0xff] %v13246_v13  ;;  %16946 = vst [vmem:[#allocation688_spill] sm:$0xff] %v13251_v5  ;;  %v13256_v21 = vld [vmem:[%s16270_s23 + $0x16c0] sm:$0xff]  ;;  %v13261_v15 = vld [vmem:[%s16270_s23 + $0x16c8] sm:$0xff] }
 0x16d   :  { %16947 = vst [vmem:[#allocation689_spill] sm:$0xff] %v13256_v21  ;;  %16948 = vst [vmem:[#allocation690_spill] sm:$0xff] %v13261_v15  ;;  %v13266_v7 = vld [vmem:[%s16270_s23 + $0x16d0] sm:$0xff]  ;;  %v13271_v13 = vld [vmem:[%s16270_s23 + $0x16d8] sm:$0xff] }
 0x16e   :  { %16949 = vst [vmem:[#allocation691_spill] sm:$0xff] %v13266_v7  ;;  %16950 = vst [vmem:[#allocation692_spill] sm:$0xff] %v13271_v13  ;;  %v13276_v5 = vld [vmem:[%s16270_s23 + $0x16e0] sm:$0xff]  ;;  %v13281_v21 = vld [vmem:[%s16270_s23 + $0x16e8] sm:$0xff] }
 0x16f   :  { %16951 = vst [vmem:[#allocation693_spill] sm:$0xff] %v13276_v5  ;;  %16952 = vst [vmem:[#allocation694_spill] sm:$0xff] %v13281_v21  ;;  %v13286_v15 = vld [vmem:[%s16270_s23 + $0x16f0] sm:$0xff]  ;;  %v13291_v7 = vld [vmem:[%s16270_s23 + $0x16f8] sm:$0xff] }
 0x170   :  { %16953 = vst [vmem:[#allocation695_spill] sm:$0xff] %v13286_v15  ;;  %16954 = vst [vmem:[#allocation696_spill] sm:$0xff] %v13291_v7  ;;  %v13296_v13 = vld [vmem:[%s16270_s23 + $0x1700] sm:$0xff]  ;;  %v13301_v5 = vld [vmem:[%s16270_s23 + $0x1708] sm:$0xff] }
 0x171   :  { %16955 = vst [vmem:[#allocation697_spill] sm:$0xff] %v13296_v13  ;;  %16956 = vst [vmem:[#allocation698_spill] sm:$0xff] %v13301_v5  ;;  %v13306_v21 = vld [vmem:[%s16270_s23 + $0x1710] sm:$0xff]  ;;  %v13311_v15 = vld [vmem:[%s16270_s23 + $0x1718] sm:$0xff] }
 0x172   :  { %16957 = vst [vmem:[#allocation699_spill] sm:$0xff] %v13306_v21  ;;  %16958 = vst [vmem:[#allocation700_spill] sm:$0xff] %v13311_v15  ;;  %v13316_v7 = vld [vmem:[%s16270_s23 + $0x1720] sm:$0xff]  ;;  %v13321_v13 = vld [vmem:[%s16270_s23 + $0x1728] sm:$0xff] }
 0x173   :  { %16959 = vst [vmem:[#allocation701_spill] sm:$0xff] %v13316_v7  ;;  %16960 = vst [vmem:[#allocation702_spill] sm:$0xff] %v13321_v13  ;;  %v13326_v5 = vld [vmem:[%s16270_s23 + $0x1730] sm:$0xff]  ;;  %v13331_v21 = vld [vmem:[%s16270_s23 + $0x1738] sm:$0xff] }
 0x174   :  { %16961 = vst [vmem:[#allocation703_spill] sm:$0xff] %v13326_v5  ;;  %16962 = vst [vmem:[#allocation704_spill] sm:$0xff] %v13331_v21  ;;  %v13336_v15 = vld [vmem:[%s16270_s23 + $0x1740] sm:$0xff]  ;;  %v13341_v7 = vld [vmem:[%s16270_s23 + $0x1748] sm:$0xff] }
 0x175   :  { %16963 = vst [vmem:[#allocation705_spill] sm:$0xff] %v13336_v15  ;;  %16964 = vst [vmem:[#allocation706_spill] sm:$0xff] %v13341_v7  ;;  %v13346_v13 = vld [vmem:[%s16270_s23 + $0x1750] sm:$0xff]  ;;  %v13351_v5 = vld [vmem:[%s16270_s23 + $0x1758] sm:$0xff] }
 0x176   :  { %16965 = vst [vmem:[#allocation707_spill] sm:$0xff] %v13346_v13  ;;  %16966 = vst [vmem:[#allocation708_spill] sm:$0xff] %v13351_v5  ;;  %v13356_v21 = vld [vmem:[%s16270_s23 + $0x1760] sm:$0xff]  ;;  %v13361_v15 = vld [vmem:[%s16270_s23 + $0x1768] sm:$0xff] }
 0x177   :  { %16967 = vst [vmem:[#allocation709_spill] sm:$0xff] %v13356_v21  ;;  %16968 = vst [vmem:[#allocation710_spill] sm:$0xff] %v13361_v15  ;;  %v13366_v7 = vld [vmem:[%s16270_s23 + $0x1770] sm:$0xff]  ;;  %v13371_v13 = vld [vmem:[%s16270_s23 + $0x1778] sm:$0xff] }
 0x178   :  { %16969 = vst [vmem:[#allocation711_spill] sm:$0xff] %v13366_v7  ;;  %16970 = vst [vmem:[#allocation712_spill] sm:$0xff] %v13371_v13  ;;  %v13376_v5 = vld [vmem:[%s16270_s23 + $0x1780] sm:$0xff]  ;;  %v13381_v21 = vld [vmem:[%s16270_s23 + $0x1788] sm:$0xff] }
 0x179   :  { %16971 = vst [vmem:[#allocation713_spill] sm:$0xff] %v13376_v5  ;;  %16972 = vst [vmem:[#allocation714_spill] sm:$0xff] %v13381_v21  ;;  %v13386_v15 = vld [vmem:[%s16270_s23 + $0x1790] sm:$0xff]  ;;  %v13391_v7 = vld [vmem:[%s16270_s23 + $0x1798] sm:$0xff] }
 0x17a   :  { %16973 = vst [vmem:[#allocation715_spill] sm:$0xff] %v13386_v15  ;;  %16974 = vst [vmem:[#allocation716_spill] sm:$0xff] %v13391_v7  ;;  %v13396_v13 = vld [vmem:[%s16270_s23 + $0x17a0] sm:$0xff]  ;;  %v13401_v5 = vld [vmem:[%s16270_s23 + $0x17a8] sm:$0xff] }
 0x17b   :  { %16975 = vst [vmem:[#allocation717_spill] sm:$0xff] %v13396_v13  ;;  %16976 = vst [vmem:[#allocation718_spill] sm:$0xff] %v13401_v5  ;;  %v13406_v21 = vld [vmem:[%s16270_s23 + $0x17b0] sm:$0xff]  ;;  %v13411_v15 = vld [vmem:[%s16270_s23 + $0x17b8] sm:$0xff] }
 0x17c   :  { %16977 = vst [vmem:[#allocation719_spill] sm:$0xff] %v13406_v21  ;;  %16978 = vst [vmem:[#allocation720_spill] sm:$0xff] %v13411_v15  ;;  %v13416_v7 = vld [vmem:[%s16270_s23 + $0x17c0] sm:$0xff]  ;;  %v13421_v13 = vld [vmem:[%s16270_s23 + $0x17c8] sm:$0xff] }
 0x17d   :  { %16979 = vst [vmem:[#allocation721_spill] sm:$0xff] %v13416_v7  ;;  %16980 = vst [vmem:[#allocation722_spill] sm:$0xff] %v13421_v13  ;;  %v13426_v5 = vld [vmem:[%s16270_s23 + $0x17d0] sm:$0xff]  ;;  %v13431_v21 = vld [vmem:[%s16270_s23 + $0x17d8] sm:$0xff] }
 0x17e   :  { %16981 = vst [vmem:[#allocation723_spill] sm:$0xff] %v13426_v5  ;;  %16982 = vst [vmem:[#allocation724_spill] sm:$0xff] %v13431_v21  ;;  %v13436_v15 = vld [vmem:[%s16270_s23 + $0x17e0] sm:$0xff]  ;;  %v13441_v7 = vld [vmem:[%s16270_s23 + $0x17e8] sm:$0xff] }
 0x17f   :  { %16983 = vst [vmem:[#allocation725_spill] sm:$0xff] %v13436_v15  ;;  %16984 = vst [vmem:[#allocation726_spill] sm:$0xff] %v13441_v7  ;;  %v13446_v13 = vld [vmem:[%s16270_s23 + $0x17f0] sm:$0xff]  ;;  %v13451_v5 = vld [vmem:[%s16270_s23 + $0x17f8] sm:$0xff] }
 0x180   :  { %16985 = vst [vmem:[#allocation727_spill] sm:$0xff] %v13446_v13  ;;  %16986 = vst [vmem:[#allocation728_spill] sm:$0xff] %v13451_v5 }
 0x181   :  { %1722 = vsyncadd [#allocation4 + $0x2], 32768  ;;  %v13456_v15 = vld [vmem:[%s16251_s18] sm:$0xff]  ;;  %v13461_v7 = vld [vmem:[%s16251_s18 + $0x8] sm:$0xff] }
 0x182   :  { %16987 = vst [vmem:[#allocation729_spill] sm:$0xff] %v13456_v15  ;;  %16988 = vst [vmem:[#allocation730_spill] sm:$0xff] %v13461_v7  ;;  %v13466_v13 = vld [vmem:[%s16251_s18 + $0x10] sm:$0xff]  ;;  %v13471_v5 = vld [vmem:[%s16251_s18 + $0x18] sm:$0xff] }
 0x183   :  { %16989 = vst [vmem:[#allocation731_spill] sm:$0xff] %v13466_v13  ;;  %16990 = vst [vmem:[#allocation732_spill] sm:$0xff] %v13471_v5  ;;  %v13476_v21 = vld [vmem:[%s16251_s18 + $0x20] sm:$0xff]  ;;  %v13481_v15 = vld [vmem:[%s16251_s18 + $0x28] sm:$0xff] }
 0x184   :  { %16991 = vst [vmem:[#allocation733_spill] sm:$0xff] %v13476_v21  ;;  %16992 = vst [vmem:[#allocation734_spill] sm:$0xff] %v13481_v15  ;;  %v13486_v7 = vld [vmem:[%s16251_s18 + $0x30] sm:$0xff]  ;;  %v13491_v13 = vld [vmem:[%s16251_s18 + $0x38] sm:$0xff] }
 0x185   :  { %16993 = vst [vmem:[#allocation735_spill] sm:$0xff] %v13486_v7  ;;  %16994 = vst [vmem:[#allocation736_spill] sm:$0xff] %v13491_v13  ;;  %v13496_v5 = vld [vmem:[%s16251_s18 + $0x40] sm:$0xff]  ;;  %v13501_v21 = vld [vmem:[%s16251_s18 + $0x48] sm:$0xff] }
 0x186   :  { %16995 = vst [vmem:[#allocation737_spill] sm:$0xff] %v13496_v5  ;;  %16996 = vst [vmem:[#allocation738_spill] sm:$0xff] %v13501_v21  ;;  %v13506_v15 = vld [vmem:[%s16251_s18 + $0x50] sm:$0xff]  ;;  %v13511_v7 = vld [vmem:[%s16251_s18 + $0x58] sm:$0xff] }
 0x187   :  { %16997 = vst [vmem:[#allocation739_spill] sm:$0xff] %v13506_v15  ;;  %16998 = vst [vmem:[#allocation740_spill] sm:$0xff] %v13511_v7  ;;  %v13516_v13 = vld [vmem:[%s16251_s18 + $0x60] sm:$0xff]  ;;  %v13521_v5 = vld [vmem:[%s16251_s18 + $0x68] sm:$0xff] }
 0x188   :  { %16999 = vst [vmem:[#allocation741_spill] sm:$0xff] %v13516_v13  ;;  %17000 = vst [vmem:[#allocation742_spill] sm:$0xff] %v13521_v5  ;;  %v13526_v21 = vld [vmem:[%s16251_s18 + $0x70] sm:$0xff]  ;;  %v13531_v15 = vld [vmem:[%s16251_s18 + $0x78] sm:$0xff] }
 0x189   :  { %17001 = vst [vmem:[#allocation743_spill] sm:$0xff] %v13526_v21  ;;  %17002 = vst [vmem:[#allocation744_spill] sm:$0xff] %v13531_v15  ;;  %v13536_v7 = vld [vmem:[%s16251_s18 + $0x80] sm:$0xff]  ;;  %v13541_v13 = vld [vmem:[%s16251_s18 + $0x88] sm:$0xff] }
 0x18a   :  { %17003 = vst [vmem:[#allocation745_spill] sm:$0xff] %v13536_v7  ;;  %17004 = vst [vmem:[#allocation746_spill] sm:$0xff] %v13541_v13  ;;  %v13546_v5 = vld [vmem:[%s16251_s18 + $0x90] sm:$0xff]  ;;  %v13551_v21 = vld [vmem:[%s16251_s18 + $0x98] sm:$0xff] }
 0x18b   :  { %17005 = vst [vmem:[#allocation747_spill] sm:$0xff] %v13546_v5  ;;  %17006 = vst [vmem:[#allocation748_spill] sm:$0xff] %v13551_v21  ;;  %v13556_v15 = vld [vmem:[%s16251_s18 + $0xa0] sm:$0xff]  ;;  %v13561_v7 = vld [vmem:[%s16251_s18 + $0xa8] sm:$0xff] }
 0x18c   :  { %17007 = vst [vmem:[#allocation749_spill] sm:$0xff] %v13556_v15  ;;  %17008 = vst [vmem:[#allocation750_spill] sm:$0xff] %v13561_v7  ;;  %v13566_v13 = vld [vmem:[%s16251_s18 + $0xb0] sm:$0xff]  ;;  %v13571_v5 = vld [vmem:[%s16251_s18 + $0xb8] sm:$0xff] }
 0x18d   :  { %17009 = vst [vmem:[#allocation751_spill] sm:$0xff] %v13566_v13  ;;  %17010 = vst [vmem:[#allocation752_spill] sm:$0xff] %v13571_v5  ;;  %v13576_v21 = vld [vmem:[%s16251_s18 + $0xc0] sm:$0xff]  ;;  %v13581_v15 = vld [vmem:[%s16251_s18 + $0xc8] sm:$0xff] }
 0x18e   :  { %17011 = vst [vmem:[#allocation753_spill] sm:$0xff] %v13576_v21  ;;  %17012 = vst [vmem:[#allocation754_spill] sm:$0xff] %v13581_v15  ;;  %v13586_v7 = vld [vmem:[%s16251_s18 + $0xd0] sm:$0xff]  ;;  %v13591_v13 = vld [vmem:[%s16251_s18 + $0xd8] sm:$0xff] }
 0x18f   :  { %17013 = vst [vmem:[#allocation755_spill] sm:$0xff] %v13586_v7  ;;  %17014 = vst [vmem:[#allocation756_spill] sm:$0xff] %v13591_v13  ;;  %v13596_v5 = vld [vmem:[%s16251_s18 + $0xe0] sm:$0xff]  ;;  %v13601_v21 = vld [vmem:[%s16251_s18 + $0xe8] sm:$0xff] }
 0x190   :  { %17015 = vst [vmem:[#allocation757_spill] sm:$0xff] %v13596_v5  ;;  %17016 = vst [vmem:[#allocation758_spill] sm:$0xff] %v13601_v21  ;;  %v13606_v15 = vld [vmem:[%s16251_s18 + $0xf0] sm:$0xff]  ;;  %v13611_v7 = vld [vmem:[%s16251_s18 + $0xf8] sm:$0xff] }
 0x191   :  { %17017 = vst [vmem:[#allocation759_spill] sm:$0xff] %v13606_v15  ;;  %17018 = vst [vmem:[#allocation760_spill] sm:$0xff] %v13611_v7  ;;  %v13616_v13 = vld [vmem:[%s16251_s18 + $0x100] sm:$0xff]  ;;  %v13621_v5 = vld [vmem:[%s16251_s18 + $0x108] sm:$0xff] }
 0x192   :  { %17019 = vst [vmem:[#allocation761_spill] sm:$0xff] %v13616_v13  ;;  %17020 = vst [vmem:[#allocation762_spill] sm:$0xff] %v13621_v5  ;;  %v13626_v21 = vld [vmem:[%s16251_s18 + $0x110] sm:$0xff]  ;;  %v13631_v15 = vld [vmem:[%s16251_s18 + $0x118] sm:$0xff] }
 0x193   :  { %17021 = vst [vmem:[#allocation763_spill] sm:$0xff] %v13626_v21  ;;  %17022 = vst [vmem:[#allocation764_spill] sm:$0xff] %v13631_v15  ;;  %v13636_v7 = vld [vmem:[%s16251_s18 + $0x120] sm:$0xff]  ;;  %v13641_v13 = vld [vmem:[%s16251_s18 + $0x128] sm:$0xff] }
 0x194   :  { %17023 = vst [vmem:[#allocation765_spill] sm:$0xff] %v13636_v7  ;;  %17024 = vst [vmem:[#allocation766_spill] sm:$0xff] %v13641_v13  ;;  %v13646_v5 = vld [vmem:[%s16251_s18 + $0x130] sm:$0xff]  ;;  %v13651_v21 = vld [vmem:[%s16251_s18 + $0x138] sm:$0xff] }
 0x195   :  { %17025 = vst [vmem:[#allocation767_spill] sm:$0xff] %v13646_v5  ;;  %17026 = vst [vmem:[#allocation768_spill] sm:$0xff] %v13651_v21  ;;  %v13656_v15 = vld [vmem:[%s16251_s18 + $0x140] sm:$0xff]  ;;  %v13661_v7 = vld [vmem:[%s16251_s18 + $0x148] sm:$0xff] }
 0x196   :  { %17027 = vst [vmem:[#allocation769_spill] sm:$0xff] %v13656_v15  ;;  %17028 = vst [vmem:[#allocation770_spill] sm:$0xff] %v13661_v7  ;;  %v13666_v13 = vld [vmem:[%s16251_s18 + $0x150] sm:$0xff]  ;;  %v13671_v5 = vld [vmem:[%s16251_s18 + $0x158] sm:$0xff] }
 0x197   :  { %17029 = vst [vmem:[#allocation771_spill] sm:$0xff] %v13666_v13  ;;  %17030 = vst [vmem:[#allocation772_spill] sm:$0xff] %v13671_v5  ;;  %v13676_v21 = vld [vmem:[%s16251_s18 + $0x160] sm:$0xff]  ;;  %v13681_v15 = vld [vmem:[%s16251_s18 + $0x168] sm:$0xff] }
 0x198   :  { %17031 = vst [vmem:[#allocation773_spill] sm:$0xff] %v13676_v21  ;;  %17032 = vst [vmem:[#allocation774_spill] sm:$0xff] %v13681_v15  ;;  %v13686_v7 = vld [vmem:[%s16251_s18 + $0x170] sm:$0xff]  ;;  %v13691_v13 = vld [vmem:[%s16251_s18 + $0x178] sm:$0xff] }
 0x199   :  { %17033 = vst [vmem:[#allocation775_spill] sm:$0xff] %v13686_v7  ;;  %17034 = vst [vmem:[#allocation776_spill] sm:$0xff] %v13691_v13  ;;  %v13696_v5 = vld [vmem:[%s16251_s18 + $0x180] sm:$0xff]  ;;  %v13701_v21 = vld [vmem:[%s16251_s18 + $0x188] sm:$0xff] }
 0x19a   :  { %17035 = vst [vmem:[#allocation777_spill] sm:$0xff] %v13696_v5  ;;  %17036 = vst [vmem:[#allocation778_spill] sm:$0xff] %v13701_v21  ;;  %v13706_v15 = vld [vmem:[%s16251_s18 + $0x190] sm:$0xff]  ;;  %v13711_v7 = vld [vmem:[%s16251_s18 + $0x198] sm:$0xff] }
 0x19b   :  { %17037 = vst [vmem:[#allocation779_spill] sm:$0xff] %v13706_v15  ;;  %17038 = vst [vmem:[#allocation780_spill] sm:$0xff] %v13711_v7  ;;  %v13716_v13 = vld [vmem:[%s16251_s18 + $0x1a0] sm:$0xff]  ;;  %v13721_v5 = vld [vmem:[%s16251_s18 + $0x1a8] sm:$0xff] }
 0x19c   :  { %17039 = vst [vmem:[#allocation781_spill] sm:$0xff] %v13716_v13  ;;  %17040 = vst [vmem:[#allocation782_spill] sm:$0xff] %v13721_v5  ;;  %v13726_v21 = vld [vmem:[%s16251_s18 + $0x1b0] sm:$0xff]  ;;  %v13731_v15 = vld [vmem:[%s16251_s18 + $0x1b8] sm:$0xff] }
 0x19d   :  { %17041 = vst [vmem:[#allocation783_spill] sm:$0xff] %v13726_v21  ;;  %17042 = vst [vmem:[#allocation784_spill] sm:$0xff] %v13731_v15  ;;  %v13736_v7 = vld [vmem:[%s16251_s18 + $0x1c0] sm:$0xff]  ;;  %v13741_v13 = vld [vmem:[%s16251_s18 + $0x1c8] sm:$0xff] }
 0x19e   :  { %17043 = vst [vmem:[#allocation785_spill] sm:$0xff] %v13736_v7  ;;  %17044 = vst [vmem:[#allocation786_spill] sm:$0xff] %v13741_v13  ;;  %v13746_v5 = vld [vmem:[%s16251_s18 + $0x1d0] sm:$0xff]  ;;  %v13751_v21 = vld [vmem:[%s16251_s18 + $0x1d8] sm:$0xff] }
 0x19f   :  { %17045 = vst [vmem:[#allocation787_spill] sm:$0xff] %v13746_v5  ;;  %17046 = vst [vmem:[#allocation788_spill] sm:$0xff] %v13751_v21  ;;  %v13756_v15 = vld [vmem:[%s16251_s18 + $0x1e0] sm:$0xff]  ;;  %v13761_v7 = vld [vmem:[%s16251_s18 + $0x1e8] sm:$0xff] }
 0x1a0   :  { %17047 = vst [vmem:[#allocation789_spill] sm:$0xff] %v13756_v15  ;;  %17048 = vst [vmem:[#allocation790_spill] sm:$0xff] %v13761_v7  ;;  %v13766_v13 = vld [vmem:[%s16251_s18 + $0x1f0] sm:$0xff]  ;;  %v13771_v5 = vld [vmem:[%s16251_s18 + $0x1f8] sm:$0xff] }
 0x1a1   :  { %17049 = vst [vmem:[#allocation791_spill] sm:$0xff] %v13766_v13  ;;  %17050 = vst [vmem:[#allocation792_spill] sm:$0xff] %v13771_v5  ;;  %v13776_v21 = vld [vmem:[%s16251_s18 + $0x200] sm:$0xff]  ;;  %v13781_v15 = vld [vmem:[%s16251_s18 + $0x208] sm:$0xff] }
 0x1a2   :  { %17051 = vst [vmem:[#allocation793_spill] sm:$0xff] %v13776_v21  ;;  %17052 = vst [vmem:[#allocation794_spill] sm:$0xff] %v13781_v15  ;;  %v13786_v7 = vld [vmem:[%s16251_s18 + $0x210] sm:$0xff]  ;;  %v13791_v13 = vld [vmem:[%s16251_s18 + $0x218] sm:$0xff] }
 0x1a3   :  { %17053 = vst [vmem:[#allocation795_spill] sm:$0xff] %v13786_v7  ;;  %17054 = vst [vmem:[#allocation796_spill] sm:$0xff] %v13791_v13  ;;  %v13796_v5 = vld [vmem:[%s16251_s18 + $0x220] sm:$0xff]  ;;  %v13801_v21 = vld [vmem:[%s16251_s18 + $0x228] sm:$0xff] }
 0x1a4   :  { %17055 = vst [vmem:[#allocation797_spill] sm:$0xff] %v13796_v5  ;;  %17056 = vst [vmem:[#allocation798_spill] sm:$0xff] %v13801_v21  ;;  %v13806_v15 = vld [vmem:[%s16251_s18 + $0x230] sm:$0xff]  ;;  %v13811_v7 = vld [vmem:[%s16251_s18 + $0x238] sm:$0xff] }
 0x1a5   :  { %17057 = vst [vmem:[#allocation799_spill] sm:$0xff] %v13806_v15  ;;  %17058 = vst [vmem:[#allocation800_spill] sm:$0xff] %v13811_v7  ;;  %v13816_v13 = vld [vmem:[%s16251_s18 + $0x240] sm:$0xff]  ;;  %v13821_v5 = vld [vmem:[%s16251_s18 + $0x248] sm:$0xff] }
 0x1a6   :  { %17059 = vst [vmem:[#allocation801_spill] sm:$0xff] %v13816_v13  ;;  %17060 = vst [vmem:[#allocation802_spill] sm:$0xff] %v13821_v5  ;;  %v13826_v21 = vld [vmem:[%s16251_s18 + $0x250] sm:$0xff]  ;;  %v13831_v15 = vld [vmem:[%s16251_s18 + $0x258] sm:$0xff] }
 0x1a7   :  { %17061 = vst [vmem:[#allocation803_spill] sm:$0xff] %v13826_v21  ;;  %17062 = vst [vmem:[#allocation804_spill] sm:$0xff] %v13831_v15  ;;  %v13836_v7 = vld [vmem:[%s16251_s18 + $0x260] sm:$0xff]  ;;  %v13841_v13 = vld [vmem:[%s16251_s18 + $0x268] sm:$0xff] }
 0x1a8   :  { %17063 = vst [vmem:[#allocation805_spill] sm:$0xff] %v13836_v7  ;;  %17064 = vst [vmem:[#allocation806_spill] sm:$0xff] %v13841_v13  ;;  %v13846_v5 = vld [vmem:[%s16251_s18 + $0x270] sm:$0xff]  ;;  %v13851_v21 = vld [vmem:[%s16251_s18 + $0x278] sm:$0xff] }
 0x1a9   :  { %17065 = vst [vmem:[#allocation807_spill] sm:$0xff] %v13846_v5  ;;  %17066 = vst [vmem:[#allocation808_spill] sm:$0xff] %v13851_v21  ;;  %v13856_v15 = vld [vmem:[%s16251_s18 + $0x280] sm:$0xff]  ;;  %v13861_v7 = vld [vmem:[%s16251_s18 + $0x288] sm:$0xff] }
 0x1aa   :  { %17067 = vst [vmem:[#allocation809_spill] sm:$0xff] %v13856_v15  ;;  %17068 = vst [vmem:[#allocation810_spill] sm:$0xff] %v13861_v7  ;;  %v13866_v13 = vld [vmem:[%s16251_s18 + $0x290] sm:$0xff]  ;;  %v13871_v5 = vld [vmem:[%s16251_s18 + $0x298] sm:$0xff] }
 0x1ab   :  { %17069 = vst [vmem:[#allocation811_spill] sm:$0xff] %v13866_v13  ;;  %17070 = vst [vmem:[#allocation812_spill] sm:$0xff] %v13871_v5  ;;  %v13876_v21 = vld [vmem:[%s16251_s18 + $0x2a0] sm:$0xff]  ;;  %v13881_v15 = vld [vmem:[%s16251_s18 + $0x2a8] sm:$0xff] }
 0x1ac   :  { %17071 = vst [vmem:[#allocation813_spill] sm:$0xff] %v13876_v21  ;;  %17072 = vst [vmem:[#allocation814_spill] sm:$0xff] %v13881_v15  ;;  %v13886_v7 = vld [vmem:[%s16251_s18 + $0x2b0] sm:$0xff]  ;;  %v13891_v13 = vld [vmem:[%s16251_s18 + $0x2b8] sm:$0xff] }
 0x1ad   :  { %17073 = vst [vmem:[#allocation815_spill] sm:$0xff] %v13886_v7  ;;  %17074 = vst [vmem:[#allocation816_spill] sm:$0xff] %v13891_v13  ;;  %v13896_v5 = vld [vmem:[%s16251_s18 + $0x2c0] sm:$0xff]  ;;  %v13901_v21 = vld [vmem:[%s16251_s18 + $0x2c8] sm:$0xff] }
 0x1ae   :  { %17075 = vst [vmem:[#allocation817_spill] sm:$0xff] %v13896_v5  ;;  %17076 = vst [vmem:[#allocation818_spill] sm:$0xff] %v13901_v21  ;;  %v13906_v15 = vld [vmem:[%s16251_s18 + $0x2d0] sm:$0xff]  ;;  %v13911_v7 = vld [vmem:[%s16251_s18 + $0x2d8] sm:$0xff] }
 0x1af   :  { %17077 = vst [vmem:[#allocation819_spill] sm:$0xff] %v13906_v15  ;;  %17078 = vst [vmem:[#allocation820_spill] sm:$0xff] %v13911_v7  ;;  %v13916_v13 = vld [vmem:[%s16251_s18 + $0x2e0] sm:$0xff]  ;;  %v13921_v5 = vld [vmem:[%s16251_s18 + $0x2e8] sm:$0xff] }
 0x1b0   :  { %17079 = vst [vmem:[#allocation821_spill] sm:$0xff] %v13916_v13  ;;  %17080 = vst [vmem:[#allocation822_spill] sm:$0xff] %v13921_v5  ;;  %v13926_v21 = vld [vmem:[%s16251_s18 + $0x2f0] sm:$0xff]  ;;  %v13931_v15 = vld [vmem:[%s16251_s18 + $0x2f8] sm:$0xff] }
 0x1b1   :  { %17081 = vst [vmem:[#allocation823_spill] sm:$0xff] %v13926_v21  ;;  %17082 = vst [vmem:[#allocation824_spill] sm:$0xff] %v13931_v15 }
 0x1b2   :  { %1955 = vsyncadd [#allocation4 + $0x3], 12288  ;;  %s17083_s4 = sld [smem:[#allocation826_spill]]  ;;  %vm1992_vm0 = vcmask 31744   ;;  %s17084_s18 = sld [smem:[#allocation825_spill]]  ;;  %vm1996_vm1 = vcmask 1043456  }
 0x1b8   :  { %v1959_v13 = vld [vmem:[%s17083_s4 + $0x8] sm:$0xff]  ;;  %v1961_v7 = vld [vmem:[%s17083_s4 + $0x18] sm:$0xff]  ;;  %v1958_v12 = vld [vmem:[%s17083_s4] sm:$0xff] }
 0x1b9   :  { %v8232_v5 = vpack.c.bf16 %v1961_v7, %v1959_v13  ;;  %v1960_v21 = vld [vmem:[%s17083_s4 + $0x10] sm:$0xff]  ;;  %v1963_v15 = vld [vmem:[%s17083_s4 + $0x28] sm:$0xff]  ;;  %v1965_v37 = vld [vmem:[%s17083_s4 + $0x38] sm:$0xff] }
 0x1ba   :  { %v8234_v23 = vpack.c.bf16 %v1960_v21, %v1958_v12  ;;  %v1962_v7 = vld [vmem:[%s17083_s4 + $0x20] sm:$0xff]  ;;  %v1964_v13 = vld [vmem:[%s17083_s4 + $0x30] sm:$0xff]  ;;  %v8236_v4 = vpack.c.bf16 %v1965_v37, %v1963_v15  ;;  %v1967_v6 = vld [vmem:[%s17083_s4 + $0x48] sm:$0xff] }
 0x1bb   :  { %8233 = vmatprep.subr.bf16.mxu0 %v8232_v5  ;;  %v1969_v12 = vld [vmem:[%s17083_s4 + $0x58] sm:$0xff]  ;;  %v8238_v21 = vpack.c.bf16 %v1964_v13, %v1962_v7  ;;  %v1966_v31 = vld [vmem:[%s17083_s4 + $0x40] sm:$0xff]  ;;  %v1968_v5 = vld [vmem:[%s17083_s4 + $0x50] sm:$0xff] }
 0x1bc   :  { %8235 = vmatpush1.bf16.msra.mxu0 %v8234_v23  ;;  %v8240_v29 = vpack.c.bf16 %v1969_v12, %v1967_v6  ;;  %v1971_v15 = vld [vmem:[%s17083_s4 + $0x68] sm:$0xff]  ;;  %v1973_v37 = vld [vmem:[%s17083_s4 + $0x78] sm:$0xff]  ;;  %v8242_v23 = vpack.c.bf16 %v1968_v5, %v1966_v31  ;;  %v1970_v6 = vld [vmem:[%s17083_s4 + $0x60] sm:$0xff] }
 0x1bd   :  { %8237 = vmatprep.subr.bf16.mxu0 %v8236_v4  ;;  %v8244_v4 = vpack.c.bf16 %v1973_v37, %v1971_v15  ;;  %v1972_v7 = vld [vmem:[%s17083_s4 + $0x70] sm:$0xff]  ;;  %v1975_v13 = vld [vmem:[%s17083_s4 + $0x88] sm:$0xff]  ;;  %v1977_v12 = vld [vmem:[%s17083_s4 + $0x98] sm:$0xff] }
 0x1be   :  { %v8246_v31 = vpack.c.bf16 %v1972_v7, %v1970_v6  ;;  %v1974_v5 = vld [vmem:[%s17083_s4 + $0x80] sm:$0xff]  ;;  %v1976_v15 = vld [vmem:[%s17083_s4 + $0x90] sm:$0xff]  ;;  %v1979_v37 = vld [vmem:[%s17083_s4 + $0xa8] sm:$0xff] }
 0x1bf   :  { %v8250_v6 = vpack.c.bf16 %v1976_v15, %v1974_v5  ;;  %v1978_v7 = vld [vmem:[%s17083_s4 + $0xa0] sm:$0xff]  ;;  %v1984_v15 = vld [vmem:[%s17083_s4 + $0xd0] sm:$0xff] }
 0x1c0   :  { %8239 = vmatpush1.bf16.msra.mxu0 %v8238_v21  ;;  %v8248_v21 = vpack.c.bf16 %v1977_v12, %v1975_v13  ;;  %v1980_v13 = vld [vmem:[%s17083_s4 + $0xb0] sm:$0xff]  ;;  %v1983_v12 = vld [vmem:[%s17083_s4 + $0xc8] sm:$0xff]  ;;  %v1982_v5 = vld [vmem:[%s17083_s4 + $0xc0] sm:$0xff] }
 0x1c1   :  { %8241 = vmatprep.subr.bf16.mxu0 %v8240_v29  ;;  %v1957_v29 = vld [vmem:[%s17084_s18 + $0x8] sm:$0xff] }
 0x1c2   :  { %7724 = vmatprep.mubr.msk.f32.mxu0 %vm1992_vm0, %v1957_v29  ;;  %v1985_v29 = vld [vmem:[%s17083_s4 + $0xd8] sm:$0xff] }
 0x1c4   :  { %8243 = vmatpush1.bf16.msra.mxu0 %v8242_v23  ;;  %v1981_v23 = vld [vmem:[%s17083_s4 + $0xb8] sm:$0xff] }
 0x1c5   :  { %8245 = vmatprep.subr.bf16.mxu0 %v8244_v4  ;;  %v8252_v4 = vpack.c.bf16 %v1981_v23, %v1979_v37  ;;  %v1987_v37 = vld [vmem:[%s17083_s4 + $0xe8] sm:$0xff]  ;;  %v1989_v23 = vld [vmem:[%s17083_s4 + $0xf8] sm:$0xff] }
 0x1c8   :  { %8247 = vmatpush1.bf16.msra.mxu0 %v8246_v31  ;;  %v8254_v31 = vpack.c.bf16 %v1980_v13, %v1978_v7  ;;  %v1986_v7 = vld [vmem:[%s17083_s4 + $0xe0] sm:$0xff]  ;;  %v1988_v13 = vld [vmem:[%s17083_s4 + $0xf0] sm:$0xff] }
 0x1c9   :  { %8249 = vmatprep.subr.bf16.mxu0 %v8248_v21  ;;  %v8256_v21 = vpack.c.bf16 %v1985_v29, %v1983_v12  ;;  %v8262_v12 = vpack.c.bf16 %v1988_v13, %v1986_v7  ;;  %v1991_v29 = vld [vmem:[%s17083_s4 + $0x108] sm:$0xf] }
 0x1cc   :  { %8251 = vmatpush1.bf16.msra.mxu0 %v8250_v6  ;;  %v8258_v6 = vpack.c.bf16 %v1984_v15, %v1982_v5 }
 0x1cd   :  { %8253 = vmatprep.subr.bf16.mxu0 %v8252_v4  ;;  %v8260_v4 = vpack.c.bf16 %v1989_v23, %v1987_v37  ;;  %v8264_v37 = vpack.c.bf16 %v9661_v9, %v9621_v1  ;;  %v8266_v23 = vpack.c.bf16 %v9656_v8, %v9616_v0 }
 0x1d0   :  { %8255 = vmatpush1.bf16.msra.mxu0 %v8254_v31  ;;  %v1990_v31 = vld [vmem:[%s17083_s4 + $0x100] sm:$0xf] }
 0x1d1   :  { %8257 = vmatprep.subr.bf16.mxu0 %v8256_v21  ;;  %v1956_v21 = vld [vmem:[%s17084_s18] sm:$0xff] }
 0x1d4   :  { %8259 = vmatpush1.bf16.msra.mxu0 %v8258_v6  ;;  %v8268_v6 = vpack.c.bf16 %v9741_v25, %v9701_v17 }
 0x1d5   :  { %8261 = vmatprep.subr.bf16.mxu0 %v8260_v4 }
 0x1d8   :  { %8263 = vmatpush1.bf16.msra.mxu0 %v8262_v12 }
 0x1d9   :  { %7722 = vmatprep.subr.msk.mxu0 %vm1996_vm1, %v1991_v29 }
 0x1dc   :  { %7723 = vmatpush1.msk.msra.mxu0 %vm1996_vm1, %v1990_v31 }
 0x1dd   :  { %2068 = vmatmul.mubr.f32.vlgmr.msra.gmra.mrb[0].mxu0 %v1956_v21 }
 0x2b0   :  { %v14041_v5 = vpop.f32.mrb[0].mxu0 }
 0x2b1   :  { %v14043_v15 = vpop.f32.mrb[1].mxu0 }
 0x2b2   :  { %2440 = vmatprep.mubr.f32.mxu1 %v14043_v15 }
 0x2b3   :  { %9499 = dma.done.wait [#allocation4], 32768 }
 0x2b4   :  { %9500 = vsyncadd [#allocation4], 4294934528  ;;  %v8328_v4 = vpack.c.bf16 %v9671_v11, %v9631_v3  ;;  %v8330_v7 = vpack.c.bf16 %v9666_v10, %v9626_v2  ;;  %2511 = vmatprep.mubr.f32.mxu0 %v14043_v15  ;;  %8265 = vmatprep.subr.bf16.mxu1 %v8264_v37  ;;  %v8332_v1 = vpack.c.bf16 %v9751_v27, %v9711_v19  ;;  %v17106_v13 = vld [vmem:[#allocation99_spill] sm:$0xff]  ;;  %v17107_v29 = vld [vmem:[#allocation108_spill] sm:$0xff]  ;;  %s17289_s27 = sld [smem:[#allocation828_spill]]  ;;  %vm2665_vm2 = vcmask 64512  }
 0x2b5   :  { %8267 = vmatpush1.bf16.msra.mxu1 %v8266_v23  ;;  %v8270_v0 = vpack.c.bf16 %v9736_v24, %v9696_v16  ;;  %v8272_v8 = vpack.c.bf16 %v9821_v41, %v9781_v33  ;;  %v8334_v3 = vpack.c.bf16 %v9746_v26, %v9706_v18  ;;  %v8336_v2 = vpack.c.bf16 %v9831_v43, %v9791_v35  ;;  %v17087_v41 = vld [vmem:[#allocation74_spill] sm:$0xff]  ;;  %v17108_v31 = vld [vmem:[#allocation116_spill] sm:$0xff]  ;;  %v17109_v37 = vld [vmem:[#allocation105_spill] sm:$0xff] }
 0x2b6   :  { %8329 = vmatprep.subr.bf16.mxu0 %v8328_v4  ;;  %8269 = vmatprep.subr.bf16.mxu1 %v8268_v6  ;;  %v8274_v9 = vpack.c.bf16 %v9816_v40, %v9776_v32  ;;  %v8276_v10 = vpack.c.bf16 %v9901_v57, %v9861_v49  ;;  %v8338_v11 = vpack.c.bf16 %v9826_v42, %v9786_v34  ;;  %v17086_v40 = vld [vmem:[#allocation67_spill] sm:$0xff]  ;;  %v17088_v42 = vld [vmem:[#allocation82_spill] sm:$0xff]  ;;  %v17101_v57 = vld [vmem:[#allocation89_spill] sm:$0xff]  ;;  %vm3193_vm3 = vcmask 261120  }
 0x2b7   :  { %8331 = vmatpush1.bf16.msra.mxu0 %v8330_v7  ;;  %v8340_v16 = vpack.c.bf16 %v9911_v59, %v9871_v51  ;;  %v8278_v17 = vpack.c.bf16 %v9896_v56, %v9856_v48  ;;  %v8280_v18 = vpack.c.bf16 %v9981_v63, %v9941_v60  ;;  %v8342_v19 = vpack.c.bf16 %v9906_v58, %v9866_v50  ;;  %v17094_v48 = vld [vmem:[#allocation81_spill] sm:$0xff]  ;;  %v17096_v49 = vld [vmem:[#allocation98_spill] sm:$0xff]  ;;  %v17097_v51 = vld [vmem:[#allocation75_spill] sm:$0xff] }
 0x2b8   :  { %8333 = vmatprep.subr.bf16.mxu0 %v8332_v1  ;;  %v8344_v24 = vpack.c.bf16 %v9991_v46, %v9951_v62  ;;  %v8282_v25 = vpack.c.bf16 %v9976_v61, %v9936_v54  ;;  %v8284_v26 = vpack.c.bf16 %v10061_v36, %v10021_v38  ;;  %v8346_v27 = vpack.c.bf16 %v9986_v55, %v9946_v52  ;;  %v17085_v38 = vld [vmem:[#allocation61_spill] sm:$0xff]  ;;  %v17098_v52 = vld [vmem:[#allocation83_spill] sm:$0xff]  ;;  %v17099_v54 = vld [vmem:[#allocation92_spill] sm:$0xff] }
 0x2b9   :  { %8271 = vmatpush1.bf16.msra.mxu1 %v8270_v0  ;;  %v8348_v32 = vpack.c.bf16 %v10071_v30, %v10031_v44  ;;  %v8286_v33 = vpack.c.bf16 %v10056_v45, %v10016_v47  ;;  %v8288_v34 = vpack.c.bf16 %v10141_v20, %v10101_v22  ;;  %v8350_v35 = vpack.c.bf16 %v10066_v39, %v10026_v53  ;;  %v17089_v44 = vld [vmem:[#allocation62_spill] sm:$0xff]  ;;  %v17090_v45 = vld [vmem:[#allocation68_spill] sm:$0xff]  ;;  %v17093_v47 = vld [vmem:[#allocation73_spill] sm:$0xff] }
 0x2ba   :  { %8273 = vmatprep.subr.bf16.mxu1 %v8272_v8  ;;  %v8352_v36 = vpack.c.bf16 %v10151_v14, %v10111_v28  ;;  %v8290_v30 = vpack.c.bf16 %v17086_v40, %v17085_v38  ;;  %v8292_v43 = vpack.c.bf16 %v17088_v42, %v17087_v41  ;;  %v8354_v46 = vpack.c.bf16 %v17090_v45, %v17089_v44  ;;  %v17091_v20 = vld [vmem:[#allocation76_spill] sm:$0xff]  ;;  %v17095_v28 = vld [vmem:[#allocation90_spill] sm:$0xff]  ;;  %v17102_v58 = vld [vmem:[#allocation97_spill] sm:$0xff] }
 0x2bb   :  { %8335 = vmatpush1.bf16.msra.mxu0 %v8334_v3  ;;  %v17092_v22 = vld [vmem:[#allocation84_spill] sm:$0xff]  ;;  %v8294_v14 = vpack.c.bf16 %v17094_v48, %v17093_v47  ;;  %v8296_v50 = vpack.c.bf16 %v17096_v49, %v17095_v28  ;;  %v8358_v53 = vpack.c.bf16 %v17098_v52, %v17097_v51  ;;  %v8298_v59 = vpack.c.bf16 %v17102_v58, %v17101_v57  ;;  %v17103_v60 = vld [vmem:[#allocation106_spill] sm:$0xff]  ;;  %v17105_v63 = vld [vmem:[#allocation91_spill] sm:$0xff] }
 0x2bc   :  { %8337 = vmatprep.subr.bf16.mxu0 %v8336_v2  ;;  %v8356_v39 = vpack.c.bf16 %v17092_v22, %v17091_v20  ;;  %v17100_v55 = vld [vmem:[#allocation100_spill] sm:$0xff]  ;;  %v17104_v61 = vld [vmem:[#allocation114_spill] sm:$0xff]  ;;  %v8362_v12 = vpack.c.bf16 %v17106_v13, %v17105_v63  ;;  %v8364_v21 = vpack.c.bf16 %v17108_v31, %v17107_v29  ;;  %v17110_v23 = vld [vmem:[#allocation113_spill] sm:$0xff] }
 0x2bd   :  { %8275 = vmatpush1.bf16.msra.mxu1 %v8274_v9  ;;  %v8360_v56 = vpack.c.bf16 %v17100_v55, %v17099_v54  ;;  %v8300_v62 = vpack.c.bf16 %v17104_v61, %v17103_v60  ;;  %v8302_v6 = vpack.c.bf16 %v17110_v23, %v17109_v37  ;;  %v17111_v4 = vld [vmem:[#allocation122_spill] sm:$0xff]  ;;  %v17113_v0 = vld [vmem:[#allocation107_spill] sm:$0xff]  ;;  %v17115_v2 = vld [vmem:[#allocation124_spill] sm:$0xff] }
 0x2be   :  { %8277 = vmatprep.subr.bf16.mxu1 %v8276_v10  ;;  %v17112_v7 = vld [vmem:[#allocation130_spill] sm:$0xff]  ;;  %v17114_v8 = vld [vmem:[#allocation115_spill] sm:$0xff]  ;;  %v17116_v9 = vld [vmem:[#allocation132_spill] sm:$0xff] }
 0x2bf   :  { %8339 = vmatpush1.bf16.msra.mxu0 %v8338_v11  ;;  %v8304_v1 = vpack.c.bf16 %v17112_v7, %v17111_v4  ;;  %v8366_v3 = vpack.c.bf16 %v17114_v8, %v17113_v0  ;;  %v8368_v10 = vpack.c.bf16 %v17116_v9, %v17115_v2  ;;  %v17117_v11 = vld [vmem:[#allocation121_spill] sm:$0xff]  ;;  %v17127_v40 = vld [vmem:[#allocation154_spill] sm:$0xff]  ;;  %v17129_v42 = vld [vmem:[#allocation139_spill] sm:$0xff] }
 0x2c0   :  { %8341 = vmatprep.subr.bf16.mxu0 %v8340_v16  ;;  %v17118_v16 = vld [vmem:[#allocation129_spill] sm:$0xff]  ;;  %v17131_v45 = vld [vmem:[#allocation156_spill] sm:$0xff]  ;;  %v17135_v48 = vld [vmem:[#allocation170_spill] sm:$0xff] }
 0x2c1   :  { %8279 = vmatpush1.bf16.msra.mxu1 %v8278_v17  ;;  %v8306_v17 = vpack.c.bf16 %v17118_v16, %v17117_v11  ;;  %v17133_v22 = vld [vmem:[#allocation153_spill] sm:$0xff]  ;;  %v17137_v49 = vld [vmem:[#allocation155_spill] sm:$0xff]  ;;  %v17139_v52 = vld [vmem:[#allocation172_spill] sm:$0xff] }
 0x2c2   :  { %8281 = vmatprep.subr.bf16.mxu1 %v8280_v18  ;;  %v17119_v18 = vld [vmem:[#allocation138_spill] sm:$0xff]  ;;  %v17141_v55 = vld [vmem:[#allocation169_spill] sm:$0xff]  ;;  %v17145_v61 = vld [vmem:[#allocation171_spill] sm:$0xff] }
 0x2c3   :  { %8343 = vmatpush1.bf16.msra.mxu0 %v8342_v19  ;;  %v17120_v19 = vld [vmem:[#allocation146_spill] sm:$0xff]  ;;  %v17147_v13 = vld [vmem:[#allocation188_spill] sm:$0xff]  ;;  %v17149_v31 = vld [vmem:[#allocation185_spill] sm:$0xff] }
 0x2c4   :  { %8345 = vmatprep.subr.bf16.mxu0 %v8344_v24  ;;  %v8308_v24 = vpack.c.bf16 %v17120_v19, %v17119_v18  ;;  %v17143_v58 = vld [vmem:[#allocation186_spill] sm:$0xff]  ;;  %v17153_v7 = vld [vmem:[#allocation187_spill] sm:$0xff]  ;;  %v17155_v8 = vld [vmem:[#allocation204_spill] sm:$0xff] }
 0x2c5   :  { %8283 = vmatpush1.bf16.msra.mxu1 %v8282_v25  ;;  %v17121_v25 = vld [vmem:[#allocation123_spill] sm:$0xff]  ;;  %v17151_v23 = vld [vmem:[#allocation202_spill] sm:$0xff]  ;;  %v17157_v9 = vld [vmem:[#allocation201_spill] sm:$0xff] }
 0x2c6   :  { %8285 = vmatprep.subr.bf16.mxu1 %v8284_v26  ;;  %v17122_v26 = vld [vmem:[#allocation131_spill] sm:$0xff]  ;;  %v17159_v16 = vld [vmem:[#allocation14_spill] sm:$0xff] }
 0x2c7   :  { %8347 = vmatpush1.bf16.msra.mxu0 %v8346_v27  ;;  %v8370_v27 = vpack.c.bf16 %v17122_v26, %v17121_v25  ;;  %v17161_v19 = vld [vmem:[#allocation203_spill] sm:$0xff]  ;;  %v17163_v26 = vld [vmem:[#allocation16_spill] sm:$0xff] }
 0x2c8   :  { %8349 = vmatprep.subr.bf16.mxu0 %v8348_v32  ;;  %v17123_v32 = vld [vmem:[#allocation140_spill] sm:$0xff] }
 0x2c9   :  { %8287 = vmatpush1.bf16.msra.mxu1 %v8286_v33  ;;  %v17124_v33 = vld [vmem:[#allocation148_spill] sm:$0xff] }
 0x2ca   :  { %8289 = vmatprep.subr.bf16.mxu1 %v8288_v34  ;;  %v8372_v34 = vpack.c.bf16 %v17124_v33, %v17123_v32  ;;  %v17165_v33 = vld [vmem:[#allocation13_spill] sm:$0xff] }
 0x2cb   :  { %8351 = vmatpush1.bf16.msra.mxu0 %v8350_v35  ;;  %v17125_v35 = vld [vmem:[#allocation137_spill] sm:$0xff] }
 0x2cc   :  { %8353 = vmatprep.subr.bf16.mxu0 %v8352_v36  ;;  %v17126_v36 = vld [vmem:[#allocation145_spill] sm:$0xff] }
 0x2cd   :  { %8291 = vmatpush1.bf16.msra.mxu1 %v8290_v30  ;;  %v8310_v38 = vpack.c.bf16 %v17126_v36, %v17125_v35  ;;  %v17128_v30 = vld [vmem:[#allocation162_spill] sm:$0xff] }
 0x2ce   :  { %8293 = vmatprep.subr.bf16.mxu1 %v8292_v43  ;;  %v8312_v41 = vpack.c.bf16 %v17128_v30, %v17127_v40  ;;  %v17130_v43 = vld [vmem:[#allocation147_spill] sm:$0xff]  ;;  %v17167_v36 = vld [vmem:[#allocation22_spill] sm:$0xff] }
 0x2cf   :  { %8355 = vmatpush1.bf16.msra.mxu0 %v8354_v46  ;;  %v8374_v44 = vpack.c.bf16 %v17130_v43, %v17129_v42  ;;  %v17132_v46 = vld [vmem:[#allocation164_spill] sm:$0xff]  ;;  %v17169_v30 = vld [vmem:[#allocation15_spill] sm:$0xff] }
 0x2d0   :  { %8357 = vmatprep.subr.bf16.mxu0 %v8356_v39  ;;  %v8376_v20 = vpack.c.bf16 %v17132_v46, %v17131_v45  ;;  %v17134_v39 = vld [vmem:[#allocation161_spill] sm:$0xff]  ;;  %v17171_v43 = vld [vmem:[#allocation24_spill] sm:$0xff] }
 0x2d1   :  { %8295 = vmatpush1.bf16.msra.mxu1 %v8294_v14  ;;  %v8314_v47 = vpack.c.bf16 %v17134_v39, %v17133_v22  ;;  %v17136_v14 = vld [vmem:[#allocation178_spill] sm:$0xff]  ;;  %v17173_v46 = vld [vmem:[#allocation21_spill] sm:$0xff] }
 0x2d2   :  { %8297 = vmatprep.subr.bf16.mxu1 %v8296_v50  ;;  %v8316_v28 = vpack.c.bf16 %v17136_v14, %v17135_v48  ;;  %v17138_v50 = vld [vmem:[#allocation163_spill] sm:$0xff]  ;;  %v17175_v39 = vld [vmem:[#allocation30_spill] sm:$0xff] }
 0x2d3   :  { %8359 = vmatpush1.bf16.msra.mxu0 %v8358_v53  ;;  %v8378_v51 = vpack.c.bf16 %v17138_v50, %v17137_v49  ;;  %v17140_v53 = vld [vmem:[#allocation180_spill] sm:$0xff]  ;;  %v17177_v14 = vld [vmem:[#allocation23_spill] sm:$0xff] }
 0x2d4   :  { %8361 = vmatprep.subr.bf16.mxu0 %v8360_v56  ;;  %v8380_v54 = vpack.c.bf16 %v17140_v53, %v17139_v52  ;;  %v17142_v56 = vld [vmem:[#allocation177_spill] sm:$0xff]  ;;  %v17179_v50 = vld [vmem:[#allocation32_spill] sm:$0xff] }
 0x2d5   :  { %8299 = vmatpush1.bf16.msra.mxu1 %v8298_v59  ;;  %v8318_v57 = vpack.c.bf16 %v17142_v56, %v17141_v55  ;;  %v17144_v59 = vld [vmem:[#allocation194_spill] sm:$0xff]  ;;  %v17181_v53 = vld [vmem:[#allocation29_spill] sm:$0xff] }
 0x2d6   :  { %8301 = vmatprep.subr.bf16.mxu1 %v8300_v62  ;;  %v8320_v60 = vpack.c.bf16 %v17144_v59, %v17143_v58  ;;  %v17146_v62 = vld [vmem:[#allocation179_spill] sm:$0xff]  ;;  %v17183_v56 = vld [vmem:[#allocation38_spill] sm:$0xff] }
 0x2d7   :  { %8363 = vmatpush1.bf16.msra.mxu0 %v8362_v12  ;;  %v8382_v63 = vpack.c.bf16 %v17146_v62, %v17145_v61  ;;  %v17148_v12 = vld [vmem:[#allocation196_spill] sm:$0xff]  ;;  %v17185_v59 = vld [vmem:[#allocation31_spill] sm:$0xff] }
 0x2d8   :  { %8365 = vmatprep.subr.bf16.mxu0 %v8364_v21  ;;  %v8384_v29 = vpack.c.bf16 %v17148_v12, %v17147_v13  ;;  %v17150_v21 = vld [vmem:[#allocation193_spill] sm:$0xff]  ;;  %v17187_v62 = vld [vmem:[#allocation40_spill] sm:$0xff] }
 0x2d9   :  { %8303 = vmatpush1.bf16.msra.mxu1 %v8302_v6  ;;  %v8322_v37 = vpack.c.bf16 %v17150_v21, %v17149_v31  ;;  %v17152_v6 = vld [vmem:[#allocation210_spill] sm:$0xff]  ;;  %v17189_v12 = vld [vmem:[#allocation37_spill] sm:$0xff] }
 0x2da   :  { %8305 = vmatprep.subr.bf16.mxu1 %v8304_v1  ;;  %v8324_v4 = vpack.c.bf16 %v17152_v6, %v17151_v23  ;;  %v17154_v1 = vld [vmem:[#allocation195_spill] sm:$0xff]  ;;  %v17191_v31 = vld [vmem:[#allocation46_spill] sm:$0xff] }
 0x2db   :  { %8367 = vmatpush1.bf16.msra.mxu0 %v8366_v3  ;;  %v8386_v0 = vpack.c.bf16 %v17154_v1, %v17153_v7  ;;  %v17156_v3 = vld [vmem:[#allocation212_spill] sm:$0xff]  ;;  %v17192_v21 = vld [vmem:[#allocation50_spill] sm:$0xff]  ;;  %v17193_v23 = vld [vmem:[#allocation39_spill] sm:$0xff] }
 0x2dc   :  { %8369 = vmatprep.subr.bf16.mxu0 %v8368_v10  ;;  %v8388_v2 = vpack.c.bf16 %v17156_v3, %v17155_v8  ;;  %v17158_v10 = vld [vmem:[#allocation209_spill] sm:$0xff]  ;;  %v17194_v6 = vld [vmem:[#allocation43_spill] sm:$0xff]  ;;  %v17195_v7 = vld [vmem:[#allocation48_spill] sm:$0xff] }
 0x2dd   :  { %8307 = vmatpush1.bf16.msra.mxu1 %v8306_v17  ;;  %v8326_v11 = vpack.c.bf16 %v17158_v10, %v17157_v9  ;;  %v17160_v17 = vld [vmem:[#allocation18_spill] sm:$0xff]  ;;  %v17196_v1 = vld [vmem:[#allocation52_spill] sm:$0xff]  ;;  %v17197_v8 = vld [vmem:[#allocation45_spill] sm:$0xff] }
 0x2de   :  { %8309 = vmatprep.subr.bf16.mxu1 %v8308_v24  ;;  %v8392_v18 = vpack.c.bf16 %v17160_v17, %v17159_v16  ;;  %v17162_v24 = vld [vmem:[#allocation211_spill] sm:$0xff]  ;;  %v17198_v3 = vld [vmem:[#allocation49_spill] sm:$0xff]  ;;  %v17199_v9 = vld [vmem:[#allocation54_spill] sm:$0xff] }
 0x2df   :  { %8371 = vmatpush1.bf16.msra.mxu0 %v8370_v27  ;;  %v8390_v25 = vpack.c.bf16 %v17162_v24, %v17161_v19  ;;  %v17164_v27 = vld [vmem:[#allocation20_spill] sm:$0xff]  ;;  %v17200_v10 = vld [vmem:[#allocation58_spill] sm:$0xff]  ;;  %v17201_v16 = vld [vmem:[#allocation47_spill] sm:$0xff] }
 0x2e0   :  { %8373 = vmatprep.subr.bf16.mxu0 %v8372_v34  ;;  %v8456_v32 = vpack.c.bf16 %v17164_v27, %v17163_v26  ;;  %v17166_v34 = vld [vmem:[#allocation17_spill] sm:$0xff]  ;;  %v17202_v17 = vld [vmem:[#allocation51_spill] sm:$0xff]  ;;  %v17203_v19 = vld [vmem:[#allocation56_spill] sm:$0xff] }
 0x2e1   :  { %8311 = vmatpush1.bf16.msra.mxu1 %v8310_v38  ;;  %v8394_v35 = vpack.c.bf16 %v17166_v34, %v17165_v33  ;;  %v17168_v38 = vld [vmem:[#allocation26_spill] sm:$0xff]  ;;  %v17204_v24 = vld [vmem:[#allocation60_spill] sm:$0xff]  ;;  %v17205_v26 = vld [vmem:[#allocation53_spill] sm:$0xff] }
 0x2e2   :  { %8313 = vmatprep.subr.bf16.mxu1 %v8312_v41  ;;  %v8396_v40 = vpack.c.bf16 %v17168_v38, %v17167_v36  ;;  %v17170_v41 = vld [vmem:[#allocation19_spill] sm:$0xff]  ;;  %v17206_v27 = vld [vmem:[#allocation57_spill] sm:$0xff]  ;;  %v17207_v33 = vld [vmem:[#allocation64_spill] sm:$0xff] }
 0x2e3   :  { %8375 = vmatpush1.bf16.msra.mxu0 %v8374_v44  ;;  %v8458_v42 = vpack.c.bf16 %v17170_v41, %v17169_v30  ;;  %v17172_v44 = vld [vmem:[#allocation28_spill] sm:$0xff]  ;;  %v17208_v34 = vld [vmem:[#allocation70_spill] sm:$0xff]  ;;  %v17209_v36 = vld [vmem:[#allocation55_spill] sm:$0xff] }
 0x2e4   :  { %8377 = vmatprep.subr.bf16.mxu0 %v8376_v20  ;;  %v8460_v45 = vpack.c.bf16 %v17172_v44, %v17171_v43  ;;  %v17174_v20 = vld [vmem:[#allocation25_spill] sm:$0xff]  ;;  %v17210_v38 = vld [vmem:[#allocation59_spill] sm:$0xff]  ;;  %v17211_v30 = vld [vmem:[#allocation66_spill] sm:$0xff] }
 0x2e5   :  { %8315 = vmatpush1.bf16.msra.mxu1 %v8314_v47  ;;  %v8398_v22 = vpack.c.bf16 %v17174_v20, %v17173_v46  ;;  %v17176_v47 = vld [vmem:[#allocation34_spill] sm:$0xff]  ;;  %v17212_v41 = vld [vmem:[#allocation72_spill] sm:$0xff]  ;;  %v17213_v43 = vld [vmem:[#allocation63_spill] sm:$0xff] }
 0x2e6   :  { %8317 = vmatprep.subr.bf16.mxu1 %v8316_v28  ;;  %v8400_v48 = vpack.c.bf16 %v17176_v47, %v17175_v39  ;;  %v17178_v28 = vld [vmem:[#allocation27_spill] sm:$0xff]  ;;  %v17214_v44 = vld [vmem:[#allocation69_spill] sm:$0xff]  ;;  %v17215_v46 = vld [vmem:[#allocation78_spill] sm:$0xff] }
 0x2e7   :  { %8379 = vmatpush1.bf16.msra.mxu0 %v8378_v51  ;;  %v8462_v49 = vpack.c.bf16 %v17178_v28, %v17177_v14  ;;  %v17180_v51 = vld [vmem:[#allocation36_spill] sm:$0xff]  ;;  %v17216_v20 = vld [vmem:[#allocation86_spill] sm:$0xff]  ;;  %v17217_v39 = vld [vmem:[#allocation65_spill] sm:$0xff] }
 0x2e8   :  { %8381 = vmatprep.subr.bf16.mxu0 %v8380_v54  ;;  %v8464_v52 = vpack.c.bf16 %v17180_v51, %v17179_v50  ;;  %v17182_v54 = vld [vmem:[#allocation33_spill] sm:$0xff]  ;;  %v17218_v47 = vld [vmem:[#allocation71_spill] sm:$0xff]  ;;  %v17219_v14 = vld [vmem:[#allocation80_spill] sm:$0xff] }
 0x2e9   :  { %8319 = vmatpush1.bf16.msra.mxu1 %v8318_v57  ;;  %v8402_v55 = vpack.c.bf16 %v17182_v54, %v17181_v53  ;;  %v17184_v57 = vld [vmem:[#allocation42_spill] sm:$0xff]  ;;  %v17220_v28 = vld [vmem:[#allocation88_spill] sm:$0xff]  ;;  %v17221_v50 = vld [vmem:[#allocation77_spill] sm:$0xff] }
 0x2ea   :  { %8321 = vmatprep.subr.bf16.mxu1 %v8320_v60  ;;  %v8404_v58 = vpack.c.bf16 %v17184_v57, %v17183_v56  ;;  %v17186_v60 = vld [vmem:[#allocation35_spill] sm:$0xff]  ;;  %v17222_v51 = vld [vmem:[#allocation85_spill] sm:$0xff]  ;;  %v17223_v53 = vld [vmem:[#allocation94_spill] sm:$0xff] }
 0x2eb   :  { %8383 = vmatpush1.bf16.msra.mxu0 %v8382_v63  ;;  %v8466_v61 = vpack.c.bf16 %v17186_v60, %v17185_v59  ;;  %v17188_v63 = vld [vmem:[#allocation44_spill] sm:$0xff]  ;;  %v17224_v54 = vld [vmem:[#allocation102_spill] sm:$0xff]  ;;  %v17225_v56 = vld [vmem:[#allocation79_spill] sm:$0xff] }
 0x2ec   :  { %8385 = vmatprep.subr.bf16.mxu0 %v8384_v29  ;;  %v8468_v13 = vpack.c.bf16 %v17188_v63, %v17187_v62  ;;  %v17190_v29 = vld [vmem:[#allocation41_spill] sm:$0xff]  ;;  %v17226_v57 = vld [vmem:[#allocation87_spill] sm:$0xff]  ;;  %v17227_v59 = vld [vmem:[#allocation96_spill] sm:$0xff] }
 0x2ed   :  { %8323 = vmatpush1.bf16.msra.mxu1 %v8322_v37  ;;  %v8408_v37 = vpack.c.bf16 %v17192_v21, %v17191_v31  ;;  %v17228_v60 = vld [vmem:[#allocation104_spill] sm:$0xff]  ;;  %v17229_v62 = vld [vmem:[#allocation93_spill] sm:$0xff]  ;;  %v17233_v31 = vld [vmem:[#allocation95_spill] sm:$0xff] }
 0x2ee   :  { %8325 = vmatprep.subr.bf16.mxu1 %v8324_v4  ;;  %v8470_v4 = vpack.c.bf16 %v17194_v6, %v17193_v23  ;;  %v17230_v63 = vld [vmem:[#allocation101_spill] sm:$0xff]  ;;  %v17234_v21 = vld [vmem:[#allocation103_spill] sm:$0xff]  ;;  %v17235_v23 = vld [vmem:[#allocation112_spill] sm:$0xff] }
 0x2ef   :  { %8387 = vmatpush1.bf16.msra.mxu0 %v8386_v0  ;;  %v8472_v0 = vpack.c.bf16 %v17196_v1, %v17195_v7  ;;  %v17236_v6 = vld [vmem:[#allocation120_spill] sm:$0xff]  ;;  %v17237_v7 = vld [vmem:[#allocation109_spill] sm:$0xff] }
 0x2f0   :  { %8389 = vmatprep.subr.bf16.mxu0 %v8388_v2  ;;  %v8410_v2 = vpack.c.bf16 %v17198_v3, %v17197_v8  ;;  %v17238_v1 = vld [vmem:[#allocation117_spill] sm:$0xff]  ;;  %v17239_v8 = vld [vmem:[#allocation126_spill] sm:$0xff] }
 0x2f1   :  { %8327 = vmatpush1.bf16.msra.mxu1 %v8326_v11  ;;  %v8412_v11 = vpack.c.bf16 %v17200_v10, %v17199_v9  ;;  %v17240_v3 = vld [vmem:[#allocation134_spill] sm:$0xff]  ;;  %v17241_v9 = vld [vmem:[#allocation111_spill] sm:$0xff] }
 0x2f2   :  { %8393 = vmatprep.subr.bf16.mxu1 %v8392_v18  ;;  %v8474_v18 = vpack.c.bf16 %v17202_v17, %v17201_v16  ;;  %v17242_v10 = vld [vmem:[#allocation119_spill] sm:$0xff]  ;;  %v17243_v16 = vld [vmem:[#allocation128_spill] sm:$0xff] }
 0x2f3   :  { %8391 = vmatpush1.bf16.msra.mxu0 %v8390_v25  ;;  %v8476_v25 = vpack.c.bf16 %v17204_v24, %v17203_v19  ;;  %v17244_v17 = vld [vmem:[#allocation136_spill] sm:$0xff]  ;;  %v17245_v19 = vld [vmem:[#allocation125_spill] sm:$0xff] }
 0x2f4   :  { %8457 = vmatprep.subr.bf16.mxu0 %v8456_v32  ;;  %2441 = vmatmul.mubr.f32.vlgmr.msra.gmra.mrb[0].mxu1 %v14041_v5  ;;  %v8414_v32 = vpack.c.bf16 %v17206_v27, %v17205_v26  ;;  %v17246_v24 = vld [vmem:[#allocation133_spill] sm:$0xff]  ;;  %v17247_v26 = vld [vmem:[#allocation142_spill] sm:$0xff] }
 0x2f5   :  { %8395 = vmatpush1.bf16.msra.mxu1 %v8394_v35  ;;  %2582 = vmatprep.mubr.f32.mxu1 %v14043_v15  ;;  %v8416_v35 = vpack.c.bf16 %v17208_v34, %v17207_v33  ;;  %v17248_v27 = vld [vmem:[#allocation150_spill] sm:$0xff]  ;;  %v17249_v33 = vld [vmem:[#allocation127_spill] sm:$0xff] }
 0x2f6   :  { %2512 = vmatmul.mubr.f32.vlgmr.msra.gmra.mrb[2].mxu0 %v14041_v5  ;;  %8397 = vmatprep.subr.bf16.mxu1 %v8396_v40  ;;  %v8478_v40 = vpack.c.bf16 %v17210_v38, %v17209_v36  ;;  %v17250_v34 = vld [vmem:[#allocation135_spill] sm:$0xff]  ;;  %v17251_v36 = vld [vmem:[#allocation144_spill] sm:$0xff] }
 0x2f7   :  { %8459 = vmatpush1.bf16.msra.mxu0 %v8458_v42  ;;  %2653 = vmatprep.mubr.f32.mxu0 %v14043_v15  ;;  %v8406_v15 = vpack.c.bf16 %v17190_v29, %v17189_v12  ;;  %v8480_v42 = vpack.c.bf16 %v17212_v41, %v17211_v30  ;;  %v17231_v12 = vld [vmem:[#allocation110_spill] sm:$0xff]  ;;  %v17252_v38 = vld [vmem:[#allocation152_spill] sm:$0xff]  ;;  %v17253_v30 = vld [vmem:[#allocation141_spill] sm:$0xff] }
 0x2f8   :  { %8461 = vmatprep.subr.bf16.mxu0 %v8460_v45  ;;  %v8418_v45 = vpack.c.bf16 %v17214_v44, %v17213_v43  ;;  %v17232_v29 = vld [vmem:[#allocation118_spill] sm:$0xff]  ;;  %v17254_v41 = vld [vmem:[#allocation149_spill] sm:$0xff] }
 0x2f9   :  { %8399 = vmatpush1.bf16.msra.mxu1 %v8398_v22  ;;  %v8420_v22 = vpack.c.bf16 %v17216_v20, %v17215_v46  ;;  %v17255_v43 = vld [vmem:[#allocation158_spill] sm:$0xff]  ;;  %v17257_v46 = vld [vmem:[#allocation143_spill] sm:$0xff] }
 0x2fa   :  { %8401 = vmatprep.subr.bf16.mxu1 %v8400_v48  ;;  %v8482_v48 = vpack.c.bf16 %v17218_v47, %v17217_v39  ;;  %v17256_v44 = vld [vmem:[#allocation166_spill] sm:$0xff]  ;;  %v17258_v20 = vld [vmem:[#allocation151_spill] sm:$0xff]  ;;  %v17259_v39 = vld [vmem:[#allocation160_spill] sm:$0xff] }
 0x2fb   :  { %8463 = vmatpush1.bf16.msra.mxu0 %v8462_v49  ;;  %v8484_v49 = vpack.c.bf16 %v17220_v28, %v17219_v14  ;;  %v17260_v47 = vld [vmem:[#allocation168_spill] sm:$0xff]  ;;  %v17261_v14 = vld [vmem:[#allocation157_spill] sm:$0xff] }
 0x2fc   :  { %8465 = vmatprep.subr.bf16.mxu0 %v8464_v52  ;;  %v8422_v52 = vpack.c.bf16 %v17222_v51, %v17221_v50  ;;  %v17262_v28 = vld [vmem:[#allocation165_spill] sm:$0xff]  ;;  %v17263_v50 = vld [vmem:[#allocation174_spill] sm:$0xff] }
 0x2fd   :  { %8403 = vmatpush1.bf16.msra.mxu1 %v8402_v55  ;;  %v8424_v55 = vpack.c.bf16 %v17224_v54, %v17223_v53  ;;  %v17264_v51 = vld [vmem:[#allocation182_spill] sm:$0xff]  ;;  %v17265_v53 = vld [vmem:[#allocation159_spill] sm:$0xff] }
 0x2fe   :  { %8405 = vmatprep.subr.bf16.mxu1 %v8404_v58  ;;  %v8486_v58 = vpack.c.bf16 %v17226_v57, %v17225_v56  ;;  %v17266_v54 = vld [vmem:[#allocation167_spill] sm:$0xff]  ;;  %v17267_v56 = vld [vmem:[#allocation176_spill] sm:$0xff] }
 0x2ff   :  { %8467 = vmatpush1.bf16.msra.mxu0 %v8466_v61  ;;  %v8488_v61 = vpack.c.bf16 %v17228_v60, %v17227_v59  ;;  %v17268_v57 = vld [vmem:[#allocation184_spill] sm:$0xff]  ;;  %v17269_v59 = vld [vmem:[#allocation173_spill] sm:$0xff] }
 0x300   :  { %8469 = vmatprep.subr.bf16.mxu0 %v8468_v13  ;;  %v8426_v13 = vpack.c.bf16 %v17230_v63, %v17229_v62  ;;  %v17270_v60 = vld [vmem:[#allocation181_spill] sm:$0xff]  ;;  %v17271_v62 = vld [vmem:[#allocation190_spill] sm:$0xff] }
 0x301   :  { %8407 = vmatpush1.bf16.msra.mxu1 %v8406_v15  ;;  %v8428_v15 = vpack.c.bf16 %v17232_v29, %v17231_v12  ;;  %v17272_v63 = vld [vmem:[#allocation198_spill] sm:$0xff]  ;;  %v17273_v12 = vld [vmem:[#allocation175_spill] sm:$0xff] }
 0x302   :  { %8409 = vmatprep.subr.bf16.mxu1 %v8408_v37  ;;  %v8490_v37 = vpack.c.bf16 %v17234_v21, %v17233_v31  ;;  %v17274_v29 = vld [vmem:[#allocation183_spill] sm:$0xff]  ;;  %v17275_v31 = vld [vmem:[#allocation192_spill] sm:$0xff] }
 0x303   :  { %8471 = vmatpush1.bf16.msra.mxu0 %v8470_v4  ;;  %v8492_v4 = vpack.c.bf16 %v17236_v6, %v17235_v23  ;;  %v17276_v21 = vld [vmem:[#allocation200_spill] sm:$0xff]  ;;  %v17277_v23 = vld [vmem:[#allocation189_spill] sm:$0xff] }
 0x304   :  { %8473 = vmatprep.subr.bf16.mxu0 %v8472_v0  ;;  %v8430_v0 = vpack.c.bf16 %v17238_v1, %v17237_v7  ;;  %v17278_v6 = vld [vmem:[#allocation197_spill] sm:$0xff]  ;;  %v17279_v7 = vld [vmem:[#allocation206_spill] sm:$0xff] }
 0x305   :  { %8411 = vmatpush1.bf16.msra.mxu1 %v8410_v2  ;;  %v8432_v2 = vpack.c.bf16 %v17240_v3, %v17239_v8  ;;  %v17280_v1 = vld [vmem:[#allocation214_spill] sm:$0xff]  ;;  %v17281_v8 = vld [vmem:[#allocation191_spill] sm:$0xff] }
 0x306   :  { %8413 = vmatprep.subr.bf16.mxu1 %v8412_v11  ;;  %v8494_v11 = vpack.c.bf16 %v17242_v10, %v17241_v9  ;;  %v17282_v3 = vld [vmem:[#allocation199_spill] sm:$0xff]  ;;  %v17283_v9 = vld [vmem:[#allocation208_spill] sm:$0xff] }
 0x307   :  { %8475 = vmatpush1.bf16.msra.mxu0 %v8474_v18  ;;  %v8496_v18 = vpack.c.bf16 %v17244_v17, %v17243_v16  ;;  %v17284_v10 = vld [vmem:[#allocation216_spill] sm:$0xff]  ;;  %v17285_v16 = vld [vmem:[#allocation205_spill] sm:$0xff] }
 0x308   :  { %8477 = vmatprep.subr.bf16.mxu0 %v8476_v25  ;;  %v8434_v25 = vpack.c.bf16 %v17246_v24, %v17245_v19  ;;  %v17286_v17 = vld [vmem:[#allocation213_spill] sm:$0xff]  ;;  %v17287_v19 = vld [vmem:[#allocation207_spill] sm:$0xff] }
 0x309   :  { %8415 = vmatpush1.bf16.msra.mxu1 %v8414_v32  ;;  %v8436_v32 = vpack.c.bf16 %v17248_v27, %v17247_v26  ;;  %v17288_v24 = vld [vmem:[#allocation215_spill] sm:$0xff]  ;;  %v9507_v26 = vmov 0.0  }
 0x30a   :  { %8417 = vmatprep.subr.bf16.mxu1 %v8416_v35  ;;  %v8498_v35 = vpack.c.bf16 %v17250_v34, %v17249_v33  ;;  %v2660_v34 = vld [vmem:[%s17289_s27] sm:$0xff] }
 0x30b   :  { %8479 = vmatpush1.bf16.msra.mxu0 %v8478_v40  ;;  %v8500_v40 = vpack.c.bf16 %v17252_v38, %v17251_v36  ;;  %v7725_v38 = vld [vmem:[%s17289_s27 + $0x10] sm:$0xff] }
 0x30c   :  { %8481 = vmatprep.subr.bf16.mxu0 %v8480_v42  ;;  %v8438_v42 = vpack.c.bf16 %v17254_v41, %v17253_v30  ;;  %v2335_v30 = vld [vmem:[%s16239_s6 + $0x8] sm:$0xff]  ;;  %v2352_v41 = vld [vmem:[%s16239_s6 + $0x90] sm:$0xff] }
 0x30d   :  { %8419 = vmatpush1.bf16.msra.mxu1 %v8418_v45  ;;  %v8440_v45 = vpack.c.bf16 %v17256_v44, %v17255_v43  ;;  %v2661_v44 = vld [vmem:[%s17289_s27 + $0x8] sm:$0xff] }
 0x30e   :  { %8421 = vmatprep.subr.bf16.mxu1 %v8420_v22  ;;  %v8502_v22 = vpack.c.bf16 %v17258_v20, %v17257_v46  ;;  %v7726_v46 = vld [vmem:[%s17289_s27 + $0x18] sm:$0xff] }
 0x30f   :  { %8483 = vmatpush1.bf16.msra.mxu0 %v8482_v48  ;;  %v8504_v48 = vpack.c.bf16 %v17260_v47, %v17259_v39  ;;  %v2337_v39 = vld [vmem:[%s16239_s6 + $0x18] sm:$0xff]  ;;  %v2354_v47 = vld [vmem:[%s16239_s6 + $0xa0] sm:$0xff] }
 0x310   :  { %8485 = vmatprep.subr.bf16.mxu0 %v8484_v49  ;;  %v8442_v49 = vpack.c.bf16 %v17262_v28, %v17261_v14 }
 0x311   :  { %8423 = vmatpush1.bf16.msra.mxu1 %v8422_v52  ;;  %v8444_v52 = vpack.c.bf16 %v17264_v51, %v17263_v50  ;;  %v7731_v51 = vld [vmem:[%s17289_s27 + $0x20] sm:$0xff] }
 0x312   :  { %8425 = vmatprep.subr.bf16.mxu1 %v8424_v55  ;;  %v8506_v55 = vpack.c.bf16 %v17266_v54, %v17265_v53  ;;  %v7732_v54 = vld [vmem:[%s17289_s27 + $0x28] sm:$0xff] }
 0x313   :  { %8487 = vmatpush1.bf16.msra.mxu0 %v8486_v58  ;;  %v8508_v58 = vpack.c.bf16 %v17268_v57, %v17267_v56  ;;  %v7736_v56 = vld [vmem:[%s17289_s27 + $0x38] sm:$0xff]  ;;  %v2338_v57 = vld [vmem:[%s16239_s6 + $0x20] sm:$0xff] }
 0x314   :  { %8489 = vmatprep.subr.bf16.mxu0 %v8488_v61  ;;  %v8446_v61 = vpack.c.bf16 %v17270_v60, %v17269_v59  ;;  %v2356_v60 = vld [vmem:[%s16239_s6 + $0xb0] sm:$0xff] }
 0x315   :  { %8427 = vmatpush1.bf16.msra.mxu1 %v8426_v13  ;;  %v8448_v13 = vpack.c.bf16 %v17272_v63, %v17271_v62  ;;  %v2340_v63 = vld [vmem:[%s16239_s6 + $0x30] sm:$0xff] }
 0x316   :  { %8429 = vmatprep.subr.bf16.mxu1 %v8428_v15  ;;  %v8510_v15 = vpack.c.bf16 %v17274_v29, %v17273_v12  ;;  %v2358_v29 = vld [vmem:[%s16239_s6 + $0xc0] sm:$0xff] }
 0x317   :  { %8491 = vmatpush1.bf16.msra.mxu0 %v8490_v37  ;;  %v8512_v37 = vpack.c.bf16 %v17276_v21, %v17275_v31  ;;  %v2342_v21 = vld [vmem:[%s16239_s6 + $0x40] sm:$0xff] }
 0x318   :  { %8493 = vmatprep.subr.bf16.mxu0 %v8492_v4  ;;  %v8450_v4 = vpack.c.bf16 %v17278_v6, %v17277_v23  ;;  %v2360_v6 = vld [vmem:[%s16239_s6 + $0xd0] sm:$0xff] }
 0x319   :  { %8431 = vmatpush1.bf16.msra.mxu1 %v8430_v0  ;;  %v8452_v0 = vpack.c.bf16 %v17280_v1, %v17279_v7  ;;  %v2344_v1 = vld [vmem:[%s16239_s6 + $0x50] sm:$0xff] }
 0x31a   :  { %8433 = vmatprep.subr.bf16.mxu1 %v8432_v2  ;;  %v8514_v2 = vpack.c.bf16 %v17282_v3, %v17281_v8  ;;  %v2362_v3 = vld [vmem:[%s16239_s6 + $0xe0] sm:$0xff] }
 0x31b   :  { %8495 = vmatpush1.bf16.msra.mxu0 %v8494_v11  ;;  %v8516_v11 = vpack.c.bf16 %v17284_v10, %v17283_v9  ;;  %v2346_v10 = vld [vmem:[%s16239_s6 + $0x60] sm:$0xff] }
 0x31c   :  { %8497 = vmatprep.subr.bf16.mxu0 %v8496_v18  ;;  %v8454_v18 = vpack.c.bf16 %v17286_v17, %v17285_v16  ;;  %v2364_v17 = vld [vmem:[%s16239_s6 + $0xf0] sm:$0xff] }
 0x31d   :  { %8435 = vmatpush1.bf16.msra.mxu1 %v8434_v25  ;;  %v8518_v25 = vpack.c.bf16 %v17288_v24, %v17287_v19  ;;  %v2348_v24 = vld [vmem:[%s16239_s6 + $0x70] sm:$0xff] }
 0x31e   :  { %8437 = vmatprep.subr.bf16.mxu1 %v8436_v32 }
 0x31f   :  { %8499 = vmatpush1.bf16.msra.mxu0 %v8498_v35  ;;  %v2350_v35 = vld [vmem:[%s16239_s6 + $0x80] sm:$0xff] }
 0x320   :  { %8501 = vmatprep.subr.bf16.mxu0 %v8500_v40  ;;  %v2334_v40 = vld [vmem:[%s16239_s6] sm:$0xff] }
 0x321   :  { %8439 = vmatpush1.bf16.msra.mxu1 %v8438_v42  ;;  %v2353_v42 = vld [vmem:[%s16239_s6 + $0x98] sm:$0xff] }
 0x322   :  { %8441 = vmatprep.subr.bf16.mxu1 %v8440_v45  ;;  %v8522_v45 = vpack.c.bf16 %v2335_v30, %v2334_v40  ;;  %v8524_v20 = vpack.c.bf16 %v2353_v42, %v2352_v41 }
 0x323   :  { %8503 = vmatpush1.bf16.msra.mxu0 %v8502_v22  ;;  %v2336_v22 = vld [vmem:[%s16239_s6 + $0x10] sm:$0xff] }
 0x324   :  { %8505 = vmatprep.subr.bf16.mxu0 %v8504_v48  ;;  %v2355_v48 = vld [vmem:[%s16239_s6 + $0xa8] sm:$0xff]  ;;  %v8526_v14 = vpack.c.bf16 %v2337_v39, %v2336_v22 }
 0x325   :  { %8443 = vmatpush1.bf16.msra.mxu1 %v8442_v49  ;;  %v8528_v28 = vpack.c.bf16 %v2355_v48, %v2354_v47 }
 0x326   :  { %8445 = vmatprep.subr.bf16.mxu1 %v8444_v52 }
 0x327   :  { %8507 = vmatpush1.bf16.msra.mxu0 %v8506_v55  ;;  %v7735_v55 = vld [vmem:[%s17289_s27 + $0x30] sm:$0xff] }
 0x328   :  { %8509 = vmatprep.subr.bf16.mxu0 %v8508_v58  ;;  %v2339_v58 = vld [vmem:[%s16239_s6 + $0x28] sm:$0xff] }
 0x329   :  { %8447 = vmatpush1.bf16.msra.mxu1 %v8446_v61  ;;  %v8530_v59 = vpack.c.bf16 %v2339_v58, %v2338_v57  ;;  %v2357_v61 = vld [vmem:[%s16239_s6 + $0xb8] sm:$0xff] }
 0x32a   :  { %8449 = vmatprep.subr.bf16.mxu1 %v8448_v13  ;;  %v8532_v62 = vpack.c.bf16 %v2357_v61, %v2356_v60  ;;  %v2341_v13 = vld [vmem:[%s16239_s6 + $0x38] sm:$0xff] }
 0x32b   :  { %8511 = vmatpush1.bf16.msra.mxu0 %v8510_v15  ;;  %v8534_v12 = vpack.c.bf16 %v2341_v13, %v2340_v63  ;;  %v2359_v15 = vld [vmem:[%s16239_s6 + $0xc8] sm:$0xff] }
 0x32c   :  { %8513 = vmatprep.subr.bf16.mxu0 %v8512_v37  ;;  %v8536_v31 = vpack.c.bf16 %v2359_v15, %v2358_v29  ;;  %v2343_v37 = vld [vmem:[%s16239_s6 + $0x48] sm:$0xff] }
 0x32d   :  { %8451 = vmatpush1.bf16.msra.mxu1 %v8450_v4  ;;  %v8538_v23 = vpack.c.bf16 %v2343_v37, %v2342_v21  ;;  %v2361_v4 = vld [vmem:[%s16239_s6 + $0xd8] sm:$0xff] }
 0x32e   :  { %8453 = vmatprep.subr.bf16.mxu1 %v8452_v0  ;;  %v8540_v7 = vpack.c.bf16 %v2361_v4, %v2360_v6  ;;  %v2345_v0 = vld [vmem:[%s16239_s6 + $0x58] sm:$0xff]  ;;  %v2366_v4 = vld [vmem:[%s16240_s7] sm:$0xff] }
 0x32f   :  { %8515 = vmatpush1.bf16.msra.mxu0 %v8514_v2  ;;  %v8542_v8 = vpack.c.bf16 %v2345_v0, %v2344_v1  ;;  %v2363_v2 = vld [vmem:[%s16239_s6 + $0xe8] sm:$0xff]  ;;  %v2369_v6 = vld [vmem:[%s16240_s7 + $0x18] sm:$0xff]  ;;  %v2368_v1 = vld [vmem:[%s16240_s7 + $0x10] sm:$0xff] }
 0x330   :  { %8517 = vmatprep.subr.bf16.mxu0 %v8516_v11  ;;  %v8544_v9 = vpack.c.bf16 %v2363_v2, %v2362_v3  ;;  %v2347_v11 = vld [vmem:[%s16239_s6 + $0x68] sm:$0xff]  ;;  %v8586_v3 = vpack.c.bf16 %v2368_v1, %v2366_v4 }
 0x331   :  { %8455 = vmatpush1.bf16.msra.mxu1 %v8454_v18  ;;  %v8546_v16 = vpack.c.bf16 %v2347_v11, %v2346_v10  ;;  %v2365_v18 = vld [vmem:[%s16239_s6 + $0xf8] sm:$0xff]  ;;  %v2371_v0 = vld [vmem:[%s16240_s7 + $0x28] sm:$0xff]  ;;  %v2372_v10 = vld [vmem:[%s16240_s7 + $0x30] sm:$0xff] }
 0x332   :  { %v8548_v19 = vpack.c.bf16 %v2365_v18, %v2364_v17 }
 0x333   :  { %8519 = vmatpush1.bf16.msra.mxu0 %v8518_v25  ;;  %v2349_v25 = vld [vmem:[%s16239_s6 + $0x78] sm:$0xff] }
 0x334   :  { %2583 = vmatmul.mubr.f32.vlgmr.msra.gmra.mrb[2].mxu1 %v14041_v5 }
 0x335   :  { %2819 = vmatprep.mubr.f32.mxu1 %v9507_v26 }
 0x336   :  { %2654 = vmatmul.mubr.f32.vlgmr.msra.gmra.mrb[4].mxu0 %v14041_v5  ;;  %v2351_v5 = vld [vmem:[%s16239_s6 + $0x88] sm:$0xff] }
 0x337   :  { %2736 = vmatprep.mubr.f32.mxu0 %v9507_v26  ;;  %v8520_v43 = vpack.c.bf16 %v2351_v5, %v2350_v35 }
 0x3c7   :  { %v2442_v27 = vpop.f32.mrb[0].mxu1 }
 0x3c8   :  { %v2444_v32 = vpop.f32.mrb[1].mxu1 }
 0x3c9   :  { %v2513_v33 = vpop.f32.mrb[2].mxu0  ;;  %2755 = vmatprep.subr.mxu1 %v2444_v32 }
 0x3ca   :  { %v2515_v36 = vpop.f32.mrb[3].mxu0  ;;  %2756 = vmatpush1.msra.mxu1 %v2442_v27  ;;  %v8550_v27 = vpack.c.bf16 %v2349_v25, %v2348_v24 }
 0x3cb   :  { %2672 = vmatprep.subr.mxu0 %v2515_v36  ;;  %7729 = vmatmul.mubr.msk.f32.vlgmr.msra.gmra.mrb[4].mxu1 %vm2665_vm2, %v2660_v34 }
 0x3cc   :  { %2673 = vmatpush1.msra.mxu0 %v2513_v33  ;;  %2825 = vmatprep.mubr.f32.mxu1 %v9507_v26 }
 0x3cd   :  { %7727 = vmatmul.mubr.msk.f32.vlgmr.msra.gmra.mrb[6].mxu0 %vm2665_vm2, %v7725_v38  ;;  %8553 = vmatprep.subr.bf16.mxu0 %v8520_v43 }
 0x3ce   :  { %2742 = vmatprep.mubr.f32.mxu0 %v9507_v26  ;;  %8555 = vmatpush3.bf16.msra.mxu0 %v8522_v45 }
 0x3cf   :  { %7730 = vmatmul.mubr.msk.f32.gmra.mrb[6].mxu1 %vm2665_vm2, %v2661_v44  ;;  %8557 = vmatprep.subr.bf16.mxu0 %v8524_v20 }
 0x3d0   :  { %2905 = vmatprep.mubr.f32.mxu1 %v9507_v26 }
 0x3d1   :  { %7728 = vmatmul.mubr.msk.f32.gmra.mrb[8].mxu0 %vm2665_vm2, %v7726_v46 }
 0x3d2   :  { %8559 = vmatpush3.bf16.msra.mxu0 %v8526_v14 }
 0x3d3   :  { %8561 = vmatprep.subr.bf16.mxu0 %v8528_v28 }
 0x3d6   :  { %8563 = vmatpush3.bf16.msra.mxu0 %v8530_v59 }
 0x3d7   :  { %8565 = vmatprep.subr.bf16.mxu0 %v8532_v62 }
 0x3da   :  { %8567 = vmatpush3.bf16.msra.mxu0 %v8534_v12 }
 0x3db   :  { %8569 = vmatprep.subr.bf16.mxu0 %v8536_v31 }
 0x3de   :  { %8571 = vmatpush3.bf16.msra.mxu0 %v8538_v23 }
 0x3df   :  { %8573 = vmatprep.subr.bf16.mxu0 %v8540_v7 }
 0x3e2   :  { %8575 = vmatpush3.bf16.msra.mxu0 %v8542_v8 }
 0x3e3   :  { %8577 = vmatprep.subr.bf16.mxu0 %v8544_v9 }
 0x3e6   :  { %8579 = vmatpush3.bf16.msra.mxu0 %v8546_v16 }
 0x3e7   :  { %8581 = vmatprep.subr.bf16.mxu0 %v8548_v19 }
 0x3ea   :  { %8583 = vmatpush3.bf16.msra.mxu0 %v8550_v27 }
 0x407   :  { %v2584_v49 = vpop.f32.mrb[2].mxu1 }
 0x408   :  { %v2586_v50 = vpop.f32.mrb[3].mxu1 }
 0x409   :  { %v2655_v52 = vpop.f32.mrb[4].mxu0  ;;  %2841 = vmatprep.subr.mxu1 %v2586_v50 }
 0x40a   :  { %v2657_v53 = vpop.f32.mrb[5].mxu0  ;;  %2842 = vmatpush1.msra.mxu1 %v2584_v49 }
 0x40b   :  { %7733 = vmatmul.mubr.msk.f32.vlgmr.msra.gmra.mrb[4].mxu1 %vm2665_vm2, %v7731_v51  ;;  %2931 = vmatprep.subr.mxu1 %v2657_v53 }
 0x40c   :  { %2911 = vmatprep.mubr.f32.mxu1 %v9507_v26  ;;  %2932 = vmatpush1.msra.mxu1 %v2655_v52 }
 0x40d   :  { %8521 = vmatprep.subr.bf16.mxu1 %v8520_v43 }
 0x40f   :  { %7734 = vmatmul.mubr.msk.f32.gmra.mrb[6].mxu1 %vm2665_vm2, %v7732_v54 }
 0x410   :  { %2995 = vmatprep.mubr.f32.mxu1 %v9507_v26 }
 0x413   :  { %7737 = vmatmul.mubr.msk.f32.vlgmr.msra.gmra.mrb[4].mxu1 %vm2665_vm2, %v7735_v55 }
 0x414   :  { %3001 = vmatprep.mubr.f32.mxu1 %v9507_v26  ;;  %8523 = vmatpush3.bf16.msra.mxu1 %v8522_v45 }
 0x415   :  { %8525 = vmatprep.subr.bf16.mxu1 %v8524_v20 }
 0x417   :  { %7738 = vmatmul.mubr.msk.f32.gmra.mrb[6].mxu1 %vm2665_vm2, %v7736_v56 }
 0x418   :  { %8527 = vmatpush3.bf16.msra.mxu1 %v8526_v14 }
 0x419   :  { %8529 = vmatprep.subr.bf16.mxu1 %v8528_v28 }
 0x41c   :  { %8531 = vmatpush3.bf16.msra.mxu1 %v8530_v59 }
 0x41d   :  { %8533 = vmatprep.subr.bf16.mxu1 %v8532_v62 }
 0x420   :  { %8535 = vmatpush3.bf16.msra.mxu1 %v8534_v12 }
 0x421   :  { %8537 = vmatprep.subr.bf16.mxu1 %v8536_v31 }
 0x424   :  { %8539 = vmatpush3.bf16.msra.mxu1 %v8538_v23  ;;  %v2367_v23 = vld [vmem:[%s16240_s7 + $0x8] sm:$0xff] }
 0x425   :  { %8541 = vmatprep.subr.bf16.mxu1 %v8540_v7  ;;  %v8584_v7 = vpack.c.bf16 %v2369_v6, %v2367_v23 }
 0x427   :  { %8593 = vmatprep.subr.bf16.mxu0 %v8584_v7 }
 0x428   :  { %8543 = vmatpush3.bf16.msra.mxu1 %v8542_v8  ;;  %v2373_v8 = vld [vmem:[%s16240_s7 + $0x38] sm:$0xff] }
 0x429   :  { %8545 = vmatprep.subr.bf16.mxu1 %v8544_v9  ;;  %v8588_v2 = vpack.c.bf16 %v2373_v8, %v2371_v0  ;;  %v2370_v9 = vld [vmem:[%s16240_s7 + $0x20] sm:$0xff] }
 0x42a   :  { %v8590_v11 = vpack.c.bf16 %v2372_v10, %v2370_v9 }
 0x42c   :  { %8547 = vmatpush3.bf16.msra.mxu1 %v8546_v16 }
 0x42d   :  { %8549 = vmatprep.subr.bf16.mxu1 %v8548_v19 }
 0x430   :  { %8551 = vmatpush3.bf16.msra.mxu1 %v8550_v27 }
 0x431   :  { %8585 = vmatprep.subr.bf16.mxu1 %v8584_v7 }
 0x4a0   :  { %v2738_v32 = vpop.f32.mrb[6].mxu0 }
 0x4a1   :  { %v2740_v33 = vpop.f32.mrb[7].mxu0 }
 0x4a4   :  { %v2744_v34 = vpop.f32.mrb[8].mxu0 }
 0x4a5   :  { %v2746_v35 = vpop.f32.mrb[9].mxu0 }
 0x4e6   :  { %v2997_v5 = vpop.f32.mrb[4].mxu1 }
 0x4e7   :  { %v14445_v36 = vadd.f32 %v2997_v5, %v2738_v32  ;;  %v2999_v38 = vpop.f32.mrb[5].mxu1  ;;  %v2374_v5 = vld [vmem:[%s16245_s12] sm:$0x1] }
 0x4e8   :  { %v14447_v40 = vadd.f32 %v2999_v38, %v2740_v33 }
 0x4e9   :  { %v3026_v44 = vmul.f32 %v14445_v36, %v14445_v36 }
 0x4ea   :  { %v3003_v30 = vpop.f32.mrb[6].mxu1  ;;  %v3027_v20 = vmul.f32 %v14447_v40, %v14447_v40 }
 0x4eb   :  { %v14449_v41 = vadd.f32 %v3003_v30, %v2744_v34  ;;  %v3005_v42 = vpop.f32.mrb[7].mxu1 }
 0x4ec   :  { %v14451_v43 = vadd.f32 %v3005_v42, %v2746_v35  ;;  %v2375_v42 = vld [vmem:[%s16246_s13] sm:$0x1] }
 0x4ed   :  { %v3012_v45 = vadd.f32 %v14449_v41, %v14445_v36  ;;  %v3028_v46 = vmul.f32 %v14449_v41, %v14449_v41 }
 0x4ee   :  { %v3019_v22 = vadd.f32 %v14451_v43, %v14447_v40  ;;  %v3029_v39 = vmul.f32 %v14451_v43, %v14451_v43 }
 0x4ef   :  { %v3013_v47 = vrot.slane %v3012_v45, 4  ;;  %v3030_v48 = vadd.f32 %v3028_v46, %v3026_v44  ;;  %v3342_v46 = vlaneseq }
 0x4f0   :  { %v3020_v14 = vrot.slane %v3019_v22, 4  ;;  %v3037_v28 = vadd.f32 %v3029_v39, %v3027_v20 }
 0x4f1   :  { %v3014_v49 = vadd.f32 %v3013_v47, %v3012_v45  ;;  %v3031_v50 = vrot.slane %v3030_v48, 4  ;;  %v14499_v20 = vshrl.u32 %v3342_v46, 7 }
 0x4f2   :  { %v3021_v51 = vadd.f32 %v3020_v14, %v3019_v22  ;;  %v3038_v52 = vrot.slane %v3037_v28, 4 }
 0x4f3   :  { %v3015_v53 = vrot.slane %v3014_v49, 2  ;;  %v3032_v54 = vadd.f32 %v3031_v50, %v3030_v48  ;;  %v14502_v22 = vsub.s32 0, %v14499_v20 }
 0x4f4   :  { %v3022_v55 = vrot.slane %v3021_v51, 2  ;;  %v3039_v56 = vadd.f32 %v3038_v52, %v3037_v28 }
 0x4f5   :  { %v3016_v57 = vadd.f32 %v3015_v53, %v3014_v49  ;;  %v3033_v58 = vrot.slane %v3032_v54, 2 }
 0x4f6   :  { %v3023_v59 = vadd.f32 %v3022_v55, %v3021_v51  ;;  %v3040_v60 = vrot.slane %v3039_v56, 2 }
 0x4f7   :  { %v3017_v61 = vrot.slane %v3016_v57, 1  ;;  %v3034_v62 = vadd.f32 %v3033_v58, %v3032_v54 }
 0x4f8   :  { %v3024_v63 = vrot.slane %v3023_v59, 1  ;;  %v3041_v13 = vadd.f32 %v3040_v60, %v3039_v56 }
 0x4f9   :  { %v3035_v12 = vrot.slane %v3034_v62, 1  ;;  %v3018_v31 = vadd.f32 %v3017_v61, %v3016_v57 }
 0x4fa   :  { %v3025_v29 = vadd.f32 %v3024_v63, %v3023_v59  ;;  %v3042_v15 = vrot.slane %v3041_v13, 1  ;;  %v17291_v63 = vld [vmem:[#allocation226_spill] sm:$0xff] }
 0x4fb   :  { %v3036_v37 = vadd.f32 %v3035_v12, %v3034_v62  ;;  %v17290_v62 = vld [vmem:[#allocation218_spill] sm:$0xff]  ;;  %v17293_v12 = vld [vmem:[#allocation228_spill] sm:$0xff] }
 0x4fc   :  { %3108 = vmatprep.mubr.f32.mxu1 %v3025_v29  ;;  %v3043_v21 = vadd.f32 %v3042_v15, %v3041_v13  ;;  %v8600_v13 = vpack.c.bf16 %v17291_v63, %v17290_v62  ;;  %v17294_v29 = vld [vmem:[#allocation217_spill] sm:$0xff] }
 0x4fd   :  { %3109 = vmatmul.mubr.f32.vlgmr.msra.gmra.mrb[8].mxu1 %v3018_v31  ;;  %v17295_v15 = vld [vmem:[#allocation225_spill] sm:$0xff] }
 0x4fe   :  { %3179 = vmatprep.mubr.f32.mxu0 %v3043_v21  ;;  %3261 = vmatprep.mubr.f32.mxu1 %v9507_v26  ;;  %v8602_v31 = vpack.c.bf16 %v17295_v15, %v17294_v29  ;;  %v17296_v21 = vld [vmem:[#allocation219_spill] sm:$0xff] }
 0x4ff   :  { %3180 = vmatmul.mubr.f32.vlgmr.msra.gmra.mrb[10].mxu0 %v3036_v37  ;;  %8587 = vmatpush1.bf16.msra.mxu1 %v8586_v3  ;;  %v17297_v37 = vld [vmem:[#allocation227_spill] sm:$0xff] }
 0x500   :  { %3335 = vmatprep.mubr.f32.mxu0 %v9507_v26  ;;  %8595 = vmatpush1.bf16.msra.mxu0 %v8586_v3  ;;  %v8666_v23 = vpack.c.bf16 %v17297_v37, %v17296_v21 }
 0x501   :  { %8589 = vmatprep.subr.bf16.mxu1 %v8588_v2  ;;  %8597 = vmatprep.subr.bf16.mxu0 %v8588_v2 }
 0x503   :  { %8591 = vmatpush1.bf16.msra.mxu1 %v8590_v11 }
 0x504   :  { %8599 = vmatpush1.bf16.msra.mxu0 %v8590_v11 }
 0x5d0   :  { %v7886_v16 = vpop.f32.mrb[8].mxu1 }
 0x5d1   :  { %v7887_v17 = vpop.f32.mrb[9].mxu1 }
 0x5d2   :  { %v7888_v18 = vadd.f32 %v7887_v17, %v7886_v16  ;;  %v7921_v19 = vpop.f32.mrb[10].mxu0 }
 0x5d3   :  { %v7922_v24 = vpop.f32.mrb[11].mxu0 }
 0x5d4   :  { %v3114_v25 = vmul.f32 0.0078125, %v7888_v18  ;;  %v7923_v27 = vadd.f32 %v7922_v24, %v7921_v19 }
 0x5d6   :  { %v3186_v32 = vmul.f32 %v3114_v25, %v3114_v25  ;;  %v3185_v33 = vmul.f32 0.0078125, %v7923_v27 }
 0x5d8   :  { %v3187_v34 = vsub.f32 %v3185_v33, %v3186_v32 }
 0x5da   :  { %v3188_v35 = vadd.f32 1e-05, %v3187_v34 }
 0x5dc   :  { %9477 = vrsqrt.f32 %v3188_v35 }
 0x5e6   :  { %v9478_v38 = vpop.eup %9477 }
 0x5e7   :  { %v3190_v30 = vmul.f32 %v9478_v38, %v2374_v5 }
 0x5e9   :  { %7739 = vmatmul.mubr.msk.f32.vlgmr.msra.gmra.mrb[10].mxu1 %vm3193_vm3, %v3190_v30  ;;  %v3191_v44 = vmul.f32 %v3190_v30, %v3114_v25 }
 0x5eb   :  { %v3192_v45 = vsub.f32 %v2375_v42, %v3191_v44 }
 0x5ed   :  { %7740 = vmatmul.mubr.msk.f32.vlgmr.msra.gmra.mrb[12].mxu0 %vm3193_vm3, %v3192_v45 }
 0x6bc   :  { %v3263_v39 = vpop.f32.mrb[10].mxu1 }
 0x6bd   :  { %v3345_v47 = vrot.slane %v3263_v39, %v14502_v22  ;;  %v3265_v48 = vpop.f32.mrb[11].mxu1 }
 0x6be   :  { %v3349_v14 = vrot.slane %v3265_v48, %v14502_v22 }
 0x6bf   :  { %v3350_v49 = vmul.f32 %v14445_v36, %v3345_v47  ;;  %v3352_v50 = vmul.f32 %v14449_v41, %v3345_v47 }
 0x6c0   :  { %v3337_v28 = vpop.f32.mrb[12].mxu0  ;;  %v3351_v53 = vmul.f32 %v14447_v40, %v3349_v14  ;;  %v3353_v54 = vmul.f32 %v14451_v43, %v3349_v14  ;;  %v17292_v40 = vld [vmem:[#allocation220_spill] sm:$0xff] }
 0x6c1   :  { %v3357_v51 = vrot.slane %v3337_v28, %v14502_v22  ;;  %v3339_v52 = vpop.f32.mrb[13].mxu0  ;;  %v8664_v43 = vpack.c.bf16 %v17293_v12, %v17292_v40 }
 0x6c2   :  { %v3361_v55 = vrot.slane %v3339_v52, %v14502_v22 }
 0x6c3   :  { %v3362_v56 = vadd.f32 %v3357_v51, %v3350_v49  ;;  %v3364_v57 = vadd.f32 %v3357_v51, %v3352_v50 }
 0x6c4   :  { %v3363_v58 = vadd.f32 %v3361_v55, %v3351_v53  ;;  %v3365_v59 = vadd.f32 %v3361_v55, %v3353_v54 }
 0x6c5   :  { %v14512_v60 = vmax.f32 %v3362_v56, 0.0  ;;  %v14514_v61 = vmax.f32 %v3364_v57, 0.0 }
 0x6c6   :  { %v14516_v36 = vmax.f32 %v3363_v58, 0.0  ;;  %v14518_v41 = vmax.f32 %v3365_v59, 0.0 }
 0x6c8   :  { %3730 = vmatprep.mubr.f32.mxu1 %v14516_v36 }
 0x6c9   :  { %9501 = dma.done.wait [#allocation4 + $0x1], 32768 }
 0x6ca   :  { %9502 = vsyncadd [#allocation4 + $0x1], 4294934528  ;;  %v17298_v6 = vld [vmem:[#allocation234_spill] sm:$0xff]  ;;  %v17300_v1 = vld [vmem:[#allocation236_spill] sm:$0xff]  ;;  %3807 = vmatprep.mubr.f32.mxu0 %v14516_v36  ;;  %8601 = vmatprep.subr.bf16.mxu1 %v8600_v13  ;;  %s17546_s23 = sld [smem:[#allocation829_spill]]  ;;  %vm3983_vm4 = vcmask 130048  }
 0x6cb   :  { %v17299_v4 = vld [vmem:[#allocation242_spill] sm:$0xff]  ;;  %v17301_v0 = vld [vmem:[#allocation244_spill] sm:$0xff]  ;;  %8665 = vmatprep.subr.bf16.mxu0 %v8664_v43  ;;  %8603 = vmatpush1.bf16.msra.mxu1 %v8602_v31  ;;  %v17302_v3 = vld [vmem:[#allocation233_spill] sm:$0xff] }
 0x6cc   :  { %v8604_v7 = vpack.c.bf16 %v17299_v4, %v17298_v6  ;;  %v8668_v8 = vpack.c.bf16 %v17301_v0, %v17300_v1  ;;  %8667 = vmatpush1.bf16.msra.mxu0 %v8666_v23  ;;  %v17303_v2 = vld [vmem:[#allocation241_spill] sm:$0xff]  ;;  %v17304_v10 = vld [vmem:[#allocation235_spill] sm:$0xff]  ;;  %v17306_v17 = vld [vmem:[#allocation250_spill] sm:$0xff] }
 0x6cd   :  { %v8606_v9 = vpack.c.bf16 %v17303_v2, %v17302_v3  ;;  %v17305_v11 = vld [vmem:[#allocation243_spill] sm:$0xff]  ;;  %v17307_v18 = vld [vmem:[#allocation258_spill] sm:$0xff]  ;;  %v17308_v24 = vld [vmem:[#allocation252_spill] sm:$0xff] }
 0x6ce   :  { %v8670_v16 = vpack.c.bf16 %v17305_v11, %v17304_v10  ;;  %8605 = vmatprep.subr.bf16.mxu1 %v8604_v7  ;;  %8669 = vmatprep.subr.bf16.mxu0 %v8668_v8  ;;  %v8608_v19 = vpack.c.bf16 %v17307_v18, %v17306_v17  ;;  %v17309_v25 = vld [vmem:[#allocation260_spill] sm:$0xff]  ;;  %v17310_v32 = vld [vmem:[#allocation249_spill] sm:$0xff]  ;;  %v17312_v35 = vld [vmem:[#allocation251_spill] sm:$0xff] }
 0x6cf   :  { %v8672_v27 = vpack.c.bf16 %v17309_v25, %v17308_v24  ;;  %8607 = vmatpush1.bf16.msra.mxu1 %v8606_v9  ;;  %v17311_v33 = vld [vmem:[#allocation257_spill] sm:$0xff]  ;;  %v17313_v5 = vld [vmem:[#allocation259_spill] sm:$0xff]  ;;  %v17314_v30 = vld [vmem:[#allocation266_spill] sm:$0xff] }
 0x6d0   :  { %8671 = vmatpush1.bf16.msra.mxu0 %v8670_v16  ;;  %v8610_v34 = vpack.c.bf16 %v17311_v33, %v17310_v32  ;;  %v8674_v38 = vpack.c.bf16 %v17313_v5, %v17312_v35  ;;  %8609 = vmatprep.subr.bf16.mxu1 %v8608_v19  ;;  %v17315_v42 = vld [vmem:[#allocation274_spill] sm:$0xff]  ;;  %v17316_v45 = vld [vmem:[#allocation268_spill] sm:$0xff]  ;;  %v17318_v47 = vld [vmem:[#allocation265_spill] sm:$0xff] }
 0x6d1   :  { %8673 = vmatprep.subr.bf16.mxu0 %v8672_v27  ;;  %v8612_v44 = vpack.c.bf16 %v17315_v42, %v17314_v30  ;;  %v17317_v46 = vld [vmem:[#allocation276_spill] sm:$0xff]  ;;  %v17319_v48 = vld [vmem:[#allocation273_spill] sm:$0xff]  ;;  %v17320_v28 = vld [vmem:[#allocation267_spill] sm:$0xff] }
 0x6d2   :  { %v8676_v39 = vpack.c.bf16 %v17317_v46, %v17316_v45  ;;  %v8614_v14 = vpack.c.bf16 %v17319_v48, %v17318_v47  ;;  %v17321_v49 = vld [vmem:[#allocation275_spill] sm:$0xff]  ;;  %v17322_v51 = vld [vmem:[#allocation282_spill] sm:$0xff]  ;;  %v17324_v54 = vld [vmem:[#allocation284_spill] sm:$0xff] }
 0x6d3   :  { %8611 = vmatpush1.bf16.msra.mxu1 %v8610_v34  ;;  %v8678_v50 = vpack.c.bf16 %v17321_v49, %v17320_v28  ;;  %v17323_v52 = vld [vmem:[#allocation290_spill] sm:$0xff]  ;;  %v17325_v55 = vld [vmem:[#allocation292_spill] sm:$0xff]  ;;  %v17326_v57 = vld [vmem:[#allocation281_spill] sm:$0xff] }
 0x6d4   :  { %8675 = vmatpush1.bf16.msra.mxu0 %v8674_v38  ;;  %8613 = vmatprep.subr.bf16.mxu1 %v8612_v44  ;;  %v8616_v53 = vpack.c.bf16 %v17323_v52, %v17322_v51  ;;  %v8680_v56 = vpack.c.bf16 %v17325_v55, %v17324_v54  ;;  %v17327_v58 = vld [vmem:[#allocation289_spill] sm:$0xff]  ;;  %v17328_v62 = vld [vmem:[#allocation283_spill] sm:$0xff]  ;;  %v17330_v40 = vld [vmem:[#allocation298_spill] sm:$0xff] }
 0x6d5   :  { %8677 = vmatprep.subr.bf16.mxu0 %v8676_v39  ;;  %v8618_v59 = vpack.c.bf16 %v17327_v58, %v17326_v57  ;;  %v17329_v63 = vld [vmem:[#allocation291_spill] sm:$0xff]  ;;  %v17331_v12 = vld [vmem:[#allocation306_spill] sm:$0xff]  ;;  %v17332_v29 = vld [vmem:[#allocation300_spill] sm:$0xff] }
 0x6d6   :  { %v8682_v13 = vpack.c.bf16 %v17329_v63, %v17328_v62  ;;  %v8620_v43 = vpack.c.bf16 %v17331_v12, %v17330_v40  ;;  %v17333_v15 = vld [vmem:[#allocation308_spill] sm:$0xff]  ;;  %v17334_v21 = vld [vmem:[#allocation297_spill] sm:$0xff]  ;;  %v17336_v6 = vld [vmem:[#allocation299_spill] sm:$0xff] }
 0x6d7   :  { %8615 = vmatpush1.bf16.msra.mxu1 %v8614_v14  ;;  %v8684_v31 = vpack.c.bf16 %v17333_v15, %v17332_v29  ;;  %v17335_v37 = vld [vmem:[#allocation305_spill] sm:$0xff]  ;;  %v17337_v4 = vld [vmem:[#allocation307_spill] sm:$0xff]  ;;  %v17338_v1 = vld [vmem:[#allocation314_spill] sm:$0xff] }
 0x6d8   :  { %8679 = vmatpush1.bf16.msra.mxu0 %v8678_v50  ;;  %8617 = vmatprep.subr.bf16.mxu1 %v8616_v53  ;;  %v8622_v23 = vpack.c.bf16 %v17335_v37, %v17334_v21  ;;  %v8686_v7 = vpack.c.bf16 %v17337_v4, %v17336_v6  ;;  %v17339_v0 = vld [vmem:[#allocation322_spill] sm:$0xff]  ;;  %v17340_v3 = vld [vmem:[#allocation316_spill] sm:$0xff]  ;;  %v17342_v10 = vld [vmem:[#allocation313_spill] sm:$0xff] }
 0x6d9   :  { %8681 = vmatprep.subr.bf16.mxu0 %v8680_v56  ;;  %v8624_v8 = vpack.c.bf16 %v17339_v0, %v17338_v1  ;;  %v17341_v2 = vld [vmem:[#allocation324_spill] sm:$0xff]  ;;  %v17343_v11 = vld [vmem:[#allocation321_spill] sm:$0xff]  ;;  %v17344_v17 = vld [vmem:[#allocation315_spill] sm:$0xff] }
 0x6da   :  { %v8688_v9 = vpack.c.bf16 %v17341_v2, %v17340_v3  ;;  %v8626_v16 = vpack.c.bf16 %v17343_v11, %v17342_v10  ;;  %v17345_v18 = vld [vmem:[#allocation323_spill] sm:$0xff]  ;;  %v17346_v24 = vld [vmem:[#allocation330_spill] sm:$0xff]  ;;  %v17348_v32 = vld [vmem:[#allocation332_spill] sm:$0xff] }
 0x6db   :  { %8619 = vmatpush1.bf16.msra.mxu1 %v8618_v59  ;;  %v8690_v19 = vpack.c.bf16 %v17345_v18, %v17344_v17  ;;  %v17347_v25 = vld [vmem:[#allocation338_spill] sm:$0xff]  ;;  %v17349_v33 = vld [vmem:[#allocation340_spill] sm:$0xff]  ;;  %v17350_v35 = vld [vmem:[#allocation329_spill] sm:$0xff] }
 0x6dc   :  { %8683 = vmatpush1.bf16.msra.mxu0 %v8682_v13  ;;  %8621 = vmatprep.subr.bf16.mxu1 %v8620_v43  ;;  %v8628_v27 = vpack.c.bf16 %v17347_v25, %v17346_v24  ;;  %v8692_v34 = vpack.c.bf16 %v17349_v33, %v17348_v32  ;;  %v17351_v5 = vld [vmem:[#allocation337_spill] sm:$0xff]  ;;  %v17352_v30 = vld [vmem:[#allocation331_spill] sm:$0xff]  ;;  %v17354_v45 = vld [vmem:[#allocation346_spill] sm:$0xff] }
 0x6dd   :  { %8685 = vmatprep.subr.bf16.mxu0 %v8684_v31  ;;  %v8630_v38 = vpack.c.bf16 %v17351_v5, %v17350_v35  ;;  %v17353_v42 = vld [vmem:[#allocation339_spill] sm:$0xff]  ;;  %v17355_v46 = vld [vmem:[#allocation354_spill] sm:$0xff]  ;;  %v17356_v47 = vld [vmem:[#allocation348_spill] sm:$0xff] }
 0x6de   :  { %v8694_v44 = vpack.c.bf16 %v17353_v42, %v17352_v30  ;;  %v8632_v39 = vpack.c.bf16 %v17355_v46, %v17354_v45  ;;  %v17357_v48 = vld [vmem:[#allocation356_spill] sm:$0xff]  ;;  %v17358_v28 = vld [vmem:[#allocation345_spill] sm:$0xff]  ;;  %v17360_v51 = vld [vmem:[#allocation347_spill] sm:$0xff] }
 0x6df   :  { %8623 = vmatpush1.bf16.msra.mxu1 %v8622_v23  ;;  %v8696_v14 = vpack.c.bf16 %v17357_v48, %v17356_v47  ;;  %v17359_v49 = vld [vmem:[#allocation353_spill] sm:$0xff]  ;;  %v17361_v52 = vld [vmem:[#allocation355_spill] sm:$0xff]  ;;  %v17362_v54 = vld [vmem:[#allocation362_spill] sm:$0xff] }
 0x6e0   :  { %8687 = vmatpush1.bf16.msra.mxu0 %v8686_v7  ;;  %8625 = vmatprep.subr.bf16.mxu1 %v8624_v8  ;;  %v8634_v50 = vpack.c.bf16 %v17359_v49, %v17358_v28  ;;  %v8698_v53 = vpack.c.bf16 %v17361_v52, %v17360_v51  ;;  %v17363_v55 = vld [vmem:[#allocation370_spill] sm:$0xff]  ;;  %v17364_v57 = vld [vmem:[#allocation364_spill] sm:$0xff]  ;;  %v17366_v62 = vld [vmem:[#allocation361_spill] sm:$0xff] }
 0x6e1   :  { %8689 = vmatprep.subr.bf16.mxu0 %v8688_v9  ;;  %v8636_v56 = vpack.c.bf16 %v17363_v55, %v17362_v54  ;;  %v17365_v58 = vld [vmem:[#allocation372_spill] sm:$0xff]  ;;  %v17367_v63 = vld [vmem:[#allocation369_spill] sm:$0xff]  ;;  %v17368_v40 = vld [vmem:[#allocation363_spill] sm:$0xff] }
 0x6e2   :  { %v8700_v59 = vpack.c.bf16 %v17365_v58, %v17364_v57  ;;  %v8638_v13 = vpack.c.bf16 %v17367_v63, %v17366_v62  ;;  %v17369_v12 = vld [vmem:[#allocation371_spill] sm:$0xff]  ;;  %v17370_v29 = vld [vmem:[#allocation378_spill] sm:$0xff]  ;;  %v17372_v21 = vld [vmem:[#allocation380_spill] sm:$0xff] }
 0x6e3   :  { %8627 = vmatpush1.bf16.msra.mxu1 %v8626_v16  ;;  %v8702_v43 = vpack.c.bf16 %v17369_v12, %v17368_v40  ;;  %v17371_v15 = vld [vmem:[#allocation386_spill] sm:$0xff]  ;;  %v17373_v37 = vld [vmem:[#allocation388_spill] sm:$0xff]  ;;  %v17374_v6 = vld [vmem:[#allocation377_spill] sm:$0xff] }
 0x6e4   :  { %8691 = vmatpush1.bf16.msra.mxu0 %v8690_v19  ;;  %8629 = vmatprep.subr.bf16.mxu1 %v8628_v27  ;;  %v8640_v31 = vpack.c.bf16 %v17371_v15, %v17370_v29  ;;  %v8704_v23 = vpack.c.bf16 %v17373_v37, %v17372_v21  ;;  %v17375_v4 = vld [vmem:[#allocation385_spill] sm:$0xff]  ;;  %v17376_v1 = vld [vmem:[#allocation379_spill] sm:$0xff]  ;;  %v17378_v3 = vld [vmem:[#allocation394_spill] sm:$0xff] }
 0x6e5   :  { %8693 = vmatprep.subr.bf16.mxu0 %v8692_v34  ;;  %v8642_v7 = vpack.c.bf16 %v17375_v4, %v17374_v6  ;;  %v17377_v0 = vld [vmem:[#allocation387_spill] sm:$0xff]  ;;  %v17379_v2 = vld [vmem:[#allocation402_spill] sm:$0xff]  ;;  %v17380_v10 = vld [vmem:[#allocation396_spill] sm:$0xff] }
 0x6e6   :  { %v8706_v8 = vpack.c.bf16 %v17377_v0, %v17376_v1  ;;  %v8644_v9 = vpack.c.bf16 %v17379_v2, %v17378_v3  ;;  %v17381_v11 = vld [vmem:[#allocation404_spill] sm:$0xff]  ;;  %v17382_v17 = vld [vmem:[#allocation393_spill] sm:$0xff]  ;;  %v17384_v24 = vld [vmem:[#allocation395_spill] sm:$0xff] }
 0x6e7   :  { %8631 = vmatpush1.bf16.msra.mxu1 %v8630_v38  ;;  %v8708_v16 = vpack.c.bf16 %v17381_v11, %v17380_v10  ;;  %v17383_v18 = vld [vmem:[#allocation401_spill] sm:$0xff]  ;;  %v17385_v25 = vld [vmem:[#allocation403_spill] sm:$0xff]  ;;  %v17386_v32 = vld [vmem:[#allocation410_spill] sm:$0xff] }
 0x6e8   :  { %8695 = vmatpush1.bf16.msra.mxu0 %v8694_v44  ;;  %8633 = vmatprep.subr.bf16.mxu1 %v8632_v39  ;;  %v8646_v19 = vpack.c.bf16 %v17383_v18, %v17382_v17  ;;  %v8710_v27 = vpack.c.bf16 %v17385_v25, %v17384_v24  ;;  %v17387_v33 = vld [vmem:[#allocation418_spill] sm:$0xff]  ;;  %v17388_v35 = vld [vmem:[#allocation412_spill] sm:$0xff]  ;;  %v17390_v30 = vld [vmem:[#allocation409_spill] sm:$0xff] }
 0x6e9   :  { %8697 = vmatprep.subr.bf16.mxu0 %v8696_v14  ;;  %v8648_v34 = vpack.c.bf16 %v17387_v33, %v17386_v32  ;;  %v17389_v5 = vld [vmem:[#allocation420_spill] sm:$0xff]  ;;  %v17391_v42 = vld [vmem:[#allocation417_spill] sm:$0xff]  ;;  %v17392_v45 = vld [vmem:[#allocation411_spill] sm:$0xff] }
 0x6ea   :  { %v8712_v38 = vpack.c.bf16 %v17389_v5, %v17388_v35  ;;  %v8650_v44 = vpack.c.bf16 %v17391_v42, %v17390_v30  ;;  %v17393_v46 = vld [vmem:[#allocation419_spill] sm:$0xff]  ;;  %v17394_v47 = vld [vmem:[#allocation426_spill] sm:$0xff]  ;;  %v17396_v28 = vld [vmem:[#allocation428_spill] sm:$0xff] }
 0x6eb   :  { %8635 = vmatpush1.bf16.msra.mxu1 %v8634_v50  ;;  %v8714_v39 = vpack.c.bf16 %v17393_v46, %v17392_v45  ;;  %v17395_v48 = vld [vmem:[#allocation434_spill] sm:$0xff]  ;;  %v17397_v49 = vld [vmem:[#allocation436_spill] sm:$0xff]  ;;  %v17398_v51 = vld [vmem:[#allocation425_spill] sm:$0xff] }
 0x6ec   :  { %8699 = vmatpush1.bf16.msra.mxu0 %v8698_v53  ;;  %8637 = vmatprep.subr.bf16.mxu1 %v8636_v56  ;;  %v8652_v14 = vpack.c.bf16 %v17395_v48, %v17394_v47  ;;  %v8716_v50 = vpack.c.bf16 %v17397_v49, %v17396_v28  ;;  %v17399_v52 = vld [vmem:[#allocation433_spill] sm:$0xff]  ;;  %v17400_v54 = vld [vmem:[#allocation427_spill] sm:$0xff]  ;;  %v17402_v57 = vld [vmem:[#allocation442_spill] sm:$0xff] }
 0x6ed   :  { %8701 = vmatprep.subr.bf16.mxu0 %v8700_v59  ;;  %v8654_v53 = vpack.c.bf16 %v17399_v52, %v17398_v51  ;;  %v17401_v55 = vld [vmem:[#allocation435_spill] sm:$0xff]  ;;  %v17403_v58 = vld [vmem:[#allocation450_spill] sm:$0xff]  ;;  %v17404_v62 = vld [vmem:[#allocation444_spill] sm:$0xff] }
 0x6ee   :  { %v8718_v56 = vpack.c.bf16 %v17401_v55, %v17400_v54  ;;  %v8656_v59 = vpack.c.bf16 %v17403_v58, %v17402_v57  ;;  %v17405_v63 = vld [vmem:[#allocation452_spill] sm:$0xff]  ;;  %v17406_v40 = vld [vmem:[#allocation441_spill] sm:$0xff]  ;;  %v17408_v29 = vld [vmem:[#allocation443_spill] sm:$0xff] }
 0x6ef   :  { %8639 = vmatpush1.bf16.msra.mxu1 %v8638_v13  ;;  %v8720_v13 = vpack.c.bf16 %v17405_v63, %v17404_v62  ;;  %v17407_v12 = vld [vmem:[#allocation449_spill] sm:$0xff]  ;;  %v17409_v15 = vld [vmem:[#allocation451_spill] sm:$0xff]  ;;  %v17410_v21 = vld [vmem:[#allocation458_spill] sm:$0xff] }
 0x6f0   :  { %8703 = vmatpush1.bf16.msra.mxu0 %v8702_v43  ;;  %8641 = vmatprep.subr.bf16.mxu1 %v8640_v31  ;;  %v8658_v43 = vpack.c.bf16 %v17407_v12, %v17406_v40  ;;  %v8722_v31 = vpack.c.bf16 %v17409_v15, %v17408_v29  ;;  %v17411_v37 = vld [vmem:[#allocation466_spill] sm:$0xff]  ;;  %v17412_v6 = vld [vmem:[#allocation460_spill] sm:$0xff]  ;;  %v17414_v1 = vld [vmem:[#allocation457_spill] sm:$0xff] }
 0x6f1   :  { %8705 = vmatprep.subr.bf16.mxu0 %v8704_v23  ;;  %v8660_v23 = vpack.c.bf16 %v17411_v37, %v17410_v21  ;;  %v17413_v4 = vld [vmem:[#allocation468_spill] sm:$0xff]  ;;  %v17415_v0 = vld [vmem:[#allocation465_spill] sm:$0xff]  ;;  %v17416_v3 = vld [vmem:[#allocation459_spill] sm:$0xff] }
 0x6f2   :  { %v17417_v2 = vld [vmem:[#allocation467_spill] sm:$0xff]  ;;  %v17418_v10 = vld [vmem:[#allocation222_spill] sm:$0xff]  ;;  %v17420_v17 = vld [vmem:[#allocation224_spill] sm:$0xff] }
 0x6f3   :  { %8643 = vmatpush1.bf16.msra.mxu1 %v8642_v7  ;;  %v8724_v7 = vpack.c.bf16 %v17413_v4, %v17412_v6  ;;  %v17419_v11 = vld [vmem:[#allocation230_spill] sm:$0xff]  ;;  %v17421_v18 = vld [vmem:[#allocation232_spill] sm:$0xff]  ;;  %v17422_v24 = vld [vmem:[#allocation221_spill] sm:$0xff] }
 0x6f4   :  { %8707 = vmatpush1.bf16.msra.mxu0 %v8706_v8  ;;  %8645 = vmatprep.subr.bf16.mxu1 %v8644_v9  ;;  %v8662_v8 = vpack.c.bf16 %v17415_v0, %v17414_v1  ;;  %v8726_v9 = vpack.c.bf16 %v17417_v2, %v17416_v3  ;;  %v17423_v25 = vld [vmem:[#allocation229_spill] sm:$0xff]  ;;  %v17424_v32 = vld [vmem:[#allocation238_spill] sm:$0xff]  ;;  %v17426_v35 = vld [vmem:[#allocation223_spill] sm:$0xff] }
 0x6f5   :  { %8709 = vmatprep.subr.bf16.mxu0 %v8708_v16  ;;  %v8728_v16 = vpack.c.bf16 %v17419_v11, %v17418_v10  ;;  %v17425_v33 = vld [vmem:[#allocation246_spill] sm:$0xff]  ;;  %v17427_v5 = vld [vmem:[#allocation231_spill] sm:$0xff]  ;;  %v17428_v30 = vld [vmem:[#allocation237_spill] sm:$0xff] }
 0x6f6   :  { %v17429_v42 = vld [vmem:[#allocation245_spill] sm:$0xff]  ;;  %v17430_v45 = vld [vmem:[#allocation240_spill] sm:$0xff]  ;;  %v17432_v47 = vld [vmem:[#allocation254_spill] sm:$0xff] }
 0x6f7   :  { %8647 = vmatpush1.bf16.msra.mxu1 %v8646_v19  ;;  %v8792_v19 = vpack.c.bf16 %v17421_v18, %v17420_v17  ;;  %v17431_v46 = vld [vmem:[#allocation248_spill] sm:$0xff]  ;;  %v17433_v48 = vld [vmem:[#allocation262_spill] sm:$0xff]  ;;  %v17434_v28 = vld [vmem:[#allocation239_spill] sm:$0xff] }
 0x6f8   :  { %8711 = vmatpush1.bf16.msra.mxu0 %v8710_v27  ;;  %8649 = vmatprep.subr.bf16.mxu1 %v8648_v34  ;;  %v8730_v27 = vpack.c.bf16 %v17423_v25, %v17422_v24  ;;  %v8732_v34 = vpack.c.bf16 %v17425_v33, %v17424_v32  ;;  %v17435_v49 = vld [vmem:[#allocation247_spill] sm:$0xff]  ;;  %v17436_v51 = vld [vmem:[#allocation256_spill] sm:$0xff]  ;;  %v17438_v54 = vld [vmem:[#allocation253_spill] sm:$0xff] }
 0x6f9   :  { %8713 = vmatprep.subr.bf16.mxu0 %v8712_v38  ;;  %v8794_v38 = vpack.c.bf16 %v17427_v5, %v17426_v35  ;;  %v17437_v52 = vld [vmem:[#allocation264_spill] sm:$0xff]  ;;  %v17439_v55 = vld [vmem:[#allocation261_spill] sm:$0xff]  ;;  %v17440_v57 = vld [vmem:[#allocation270_spill] sm:$0xff] }
 0x6fa   :  { %v17441_v58 = vld [vmem:[#allocation278_spill] sm:$0xff]  ;;  %v17442_v62 = vld [vmem:[#allocation255_spill] sm:$0xff]  ;;  %v17444_v40 = vld [vmem:[#allocation272_spill] sm:$0xff] }
 0x6fb   :  { %8651 = vmatpush1.bf16.msra.mxu1 %v8650_v44  ;;  %v8734_v44 = vpack.c.bf16 %v17429_v42, %v17428_v30  ;;  %v17443_v63 = vld [vmem:[#allocation263_spill] sm:$0xff]  ;;  %v17445_v12 = vld [vmem:[#allocation280_spill] sm:$0xff]  ;;  %v17446_v29 = vld [vmem:[#allocation269_spill] sm:$0xff] }
 0x6fc   :  { %8715 = vmatpush1.bf16.msra.mxu0 %v8714_v39  ;;  %8653 = vmatprep.subr.bf16.mxu1 %v8652_v14  ;;  %v8796_v39 = vpack.c.bf16 %v17431_v46, %v17430_v45  ;;  %v8736_v14 = vpack.c.bf16 %v17433_v48, %v17432_v47  ;;  %v17447_v15 = vld [vmem:[#allocation277_spill] sm:$0xff]  ;;  %v17448_v21 = vld [vmem:[#allocation286_spill] sm:$0xff]  ;;  %v17450_v6 = vld [vmem:[#allocation271_spill] sm:$0xff] }
 0x6fd   :  { %8717 = vmatprep.subr.bf16.mxu0 %v8716_v50  ;;  %v8798_v50 = vpack.c.bf16 %v17435_v49, %v17434_v28  ;;  %v17449_v37 = vld [vmem:[#allocation294_spill] sm:$0xff]  ;;  %v17451_v4 = vld [vmem:[#allocation279_spill] sm:$0xff]  ;;  %v17452_v1 = vld [vmem:[#allocation288_spill] sm:$0xff] }
 0x6fe   :  { %v17453_v0 = vld [vmem:[#allocation296_spill] sm:$0xff]  ;;  %v17455_v3 = vld [vmem:[#allocation293_spill] sm:$0xff]  ;;  %v17457_v10 = vld [vmem:[#allocation310_spill] sm:$0xff] }
 0x6ff   :  { %8655 = vmatpush1.bf16.msra.mxu1 %v8654_v53  ;;  %v8800_v53 = vpack.c.bf16 %v17437_v52, %v17436_v51  ;;  %v17459_v17 = vld [vmem:[#allocation295_spill] sm:$0xff]  ;;  %v17461_v24 = vld [vmem:[#allocation312_spill] sm:$0xff]  ;;  %v17463_v32 = vld [vmem:[#allocation309_spill] sm:$0xff] }
 0x700   :  { %8719 = vmatpush1.bf16.msra.mxu0 %v8718_v56  ;;  %8657 = vmatprep.subr.bf16.mxu1 %v8656_v59  ;;  %v8738_v56 = vpack.c.bf16 %v17439_v55, %v17438_v54  ;;  %v8740_v59 = vpack.c.bf16 %v17441_v58, %v17440_v57  ;;  %v17465_v35 = vld [vmem:[#allocation326_spill] sm:$0xff]  ;;  %v17467_v30 = vld [vmem:[#allocation311_spill] sm:$0xff]  ;;  %v17469_v45 = vld [vmem:[#allocation328_spill] sm:$0xff] }
 0x701   :  { %8721 = vmatprep.subr.bf16.mxu0 %v8720_v13  ;;  %v8802_v13 = vpack.c.bf16 %v17443_v63, %v17442_v62  ;;  %v17471_v47 = vld [vmem:[#allocation325_spill] sm:$0xff]  ;;  %v17473_v28 = vld [vmem:[#allocation342_spill] sm:$0xff]  ;;  %v17475_v51 = vld [vmem:[#allocation327_spill] sm:$0xff] }
 0x702   :  { %v17477_v54 = vld [vmem:[#allocation344_spill] sm:$0xff]  ;;  %v17479_v57 = vld [vmem:[#allocation341_spill] sm:$0xff]  ;;  %v17481_v62 = vld [vmem:[#allocation358_spill] sm:$0xff] }
 0x703   :  { %8659 = vmatpush1.bf16.msra.mxu1 %v8658_v43  ;;  %v8804_v43 = vpack.c.bf16 %v17445_v12, %v17444_v40  ;;  %v17483_v40 = vld [vmem:[#allocation343_spill] sm:$0xff] }
 0x704   :  { %8723 = vmatpush1.bf16.msra.mxu0 %v8722_v31  ;;  %8661 = vmatprep.subr.bf16.mxu1 %v8660_v23  ;;  %v8742_v31 = vpack.c.bf16 %v17447_v15, %v17446_v29  ;;  %v8744_v23 = vpack.c.bf16 %v17449_v37, %v17448_v21  ;;  %v17485_v29 = vld [vmem:[#allocation360_spill] sm:$0xff]  ;;  %v17487_v21 = vld [vmem:[#allocation357_spill] sm:$0xff] }
 0x705   :  { %8725 = vmatprep.subr.bf16.mxu0 %v8724_v7  ;;  %v8806_v7 = vpack.c.bf16 %v17451_v4, %v17450_v6  ;;  %v17489_v6 = vld [vmem:[#allocation374_spill] sm:$0xff] }
 0x707   :  { %8663 = vmatpush1.bf16.msra.mxu1 %v8662_v8  ;;  %v17454_v8 = vld [vmem:[#allocation285_spill] sm:$0xff] }
 0x708   :  { %8727 = vmatpush1.bf16.msra.mxu0 %v8726_v9  ;;  %8729 = vmatprep.subr.bf16.mxu1 %v8728_v16  ;;  %v8746_v2 = vpack.c.bf16 %v17455_v3, %v17454_v8  ;;  %v17456_v9 = vld [vmem:[#allocation302_spill] sm:$0xff]  ;;  %v17458_v16 = vld [vmem:[#allocation287_spill] sm:$0xff]  ;;  %v17493_v8 = vld [vmem:[#allocation376_spill] sm:$0xff] }
 0x709   :  { %8793 = vmatprep.subr.bf16.mxu0 %v8792_v19  ;;  %v8748_v11 = vpack.c.bf16 %v17457_v10, %v17456_v9  ;;  %v8810_v18 = vpack.c.bf16 %v17459_v17, %v17458_v16  ;;  %v17460_v19 = vld [vmem:[#allocation304_spill] sm:$0xff]  ;;  %v17495_v9 = vld [vmem:[#allocation373_spill] sm:$0xff]  ;;  %v17497_v16 = vld [vmem:[#allocation390_spill] sm:$0xff] }
 0x70a   :  { %3731 = vmatmul.mubr.f32.vlgmr.msra.gmra.mrb[12].mxu1 %v14512_v60  ;;  %v8812_v25 = vpack.c.bf16 %v17461_v24, %v17460_v19  ;;  %v17499_v19 = vld [vmem:[#allocation375_spill] sm:$0xff] }
 0x70b   :  { %3808 = vmatmul.mubr.f32.vlgmr.msra.gmra.mrb[14].mxu0 %v14512_v60  ;;  %8731 = vmatpush1.bf16.msra.mxu1 %v8730_v27  ;;  %v17462_v27 = vld [vmem:[#allocation301_spill] sm:$0xff] }
 0x70c   :  { %3736 = vmatprep.mubr.f32.mxu1 %v14518_v41  ;;  %3813 = vmatprep.mubr.f32.mxu0 %v14518_v41  ;;  %v8750_v33 = vpack.c.bf16 %v17463_v32, %v17462_v27  ;;  %v17501_v27 = vld [vmem:[#allocation392_spill] sm:$0xff] }
 0x70d   :  { %8733 = vmatprep.subr.bf16.mxu1 %v8732_v34  ;;  %8795 = vmatpush1.bf16.msra.mxu0 %v8794_v38  ;;  %v17464_v34 = vld [vmem:[#allocation318_spill] sm:$0xff]  ;;  %v17466_v38 = vld [vmem:[#allocation303_spill] sm:$0xff] }
 0x70e   :  { %3737 = vmatmul.mubr.f32.gmra.mrb[14].mxu1 %v14514_v61  ;;  %8797 = vmatprep.subr.bf16.mxu0 %v8796_v39  ;;  %v8752_v5 = vpack.c.bf16 %v17465_v35, %v17464_v34  ;;  %v8814_v42 = vpack.c.bf16 %v17467_v30, %v17466_v38  ;;  %v17470_v39 = vld [vmem:[#allocation317_spill] sm:$0xff]  ;;  %v17505_v38 = vld [vmem:[#allocation406_spill] sm:$0xff] }
 0x70f   :  { %3814 = vmatmul.mubr.f32.gmra.mrb[16].mxu0 %v14514_v61  ;;  %8735 = vmatpush1.bf16.msra.mxu1 %v8734_v44  ;;  %v17468_v44 = vld [vmem:[#allocation320_spill] sm:$0xff]  ;;  %v8754_v48 = vpack.c.bf16 %v17471_v47, %v17470_v39  ;;  %v17503_v34 = vld [vmem:[#allocation389_spill] sm:$0xff] }
 0x710   :  { %8737 = vmatprep.subr.bf16.mxu1 %v8736_v14  ;;  %3884 = vmatprep.mubr.f32.mxu1 %v14516_v36  ;;  %v8816_v46 = vpack.c.bf16 %v17469_v45, %v17468_v44  ;;  %v17472_v14 = vld [vmem:[#allocation334_spill] sm:$0xff]  ;;  %v17507_v44 = vld [vmem:[#allocation391_spill] sm:$0xff]  ;;  %v17509_v39 = vld [vmem:[#allocation408_spill] sm:$0xff] }
 0x711   :  { %8799 = vmatpush1.bf16.msra.mxu0 %v8798_v50  ;;  %3961 = vmatprep.mubr.f32.mxu0 %v14516_v36  ;;  %v8808_v36 = vpack.c.bf16 %v17453_v0, %v17452_v1  ;;  %v8756_v49 = vpack.c.bf16 %v17473_v28, %v17472_v14  ;;  %v17474_v50 = vld [vmem:[#allocation319_spill] sm:$0xff]  ;;  %v17511_v14 = vld [vmem:[#allocation405_spill] sm:$0xff] }
 0x712   :  { %8801 = vmatprep.subr.bf16.mxu0 %v8800_v53  ;;  %v8818_v52 = vpack.c.bf16 %v17475_v51, %v17474_v50  ;;  %v17476_v53 = vld [vmem:[#allocation336_spill] sm:$0xff]  ;;  %v17491_v1 = vld [vmem:[#allocation359_spill] sm:$0xff]  ;;  %v17513_v50 = vld [vmem:[#allocation422_spill] sm:$0xff] }
 0x713   :  { %8739 = vmatpush1.bf16.msra.mxu1 %v8738_v56  ;;  %v8820_v55 = vpack.c.bf16 %v17477_v54, %v17476_v53  ;;  %v17478_v56 = vld [vmem:[#allocation333_spill] sm:$0xff]  ;;  %v17515_v53 = vld [vmem:[#allocation407_spill] sm:$0xff] }
 0x714   :  { %8741 = vmatprep.subr.bf16.mxu1 %v8740_v59  ;;  %v8758_v58 = vpack.c.bf16 %v17479_v57, %v17478_v56  ;;  %v17480_v59 = vld [vmem:[#allocation350_spill] sm:$0xff]  ;;  %v17517_v56 = vld [vmem:[#allocation424_spill] sm:$0xff] }
 0x715   :  { %8803 = vmatpush1.bf16.msra.mxu0 %v8802_v13  ;;  %v8760_v63 = vpack.c.bf16 %v17481_v62, %v17480_v59  ;;  %v17482_v13 = vld [vmem:[#allocation335_spill] sm:$0xff]  ;;  %v17519_v59 = vld [vmem:[#allocation421_spill] sm:$0xff] }
 0x716   :  { %8805 = vmatprep.subr.bf16.mxu0 %v8804_v43  ;;  %v8822_v12 = vpack.c.bf16 %v17483_v40, %v17482_v13  ;;  %v17484_v43 = vld [vmem:[#allocation352_spill] sm:$0xff]  ;;  %v17521_v13 = vld [vmem:[#allocation438_spill] sm:$0xff] }
 0x717   :  { %8743 = vmatpush1.bf16.msra.mxu1 %v8742_v31  ;;  %v8824_v15 = vpack.c.bf16 %v17485_v29, %v17484_v43  ;;  %v17486_v31 = vld [vmem:[#allocation349_spill] sm:$0xff]  ;;  %v17523_v43 = vld [vmem:[#allocation423_spill] sm:$0xff] }
 0x718   :  { %8745 = vmatprep.subr.bf16.mxu1 %v8744_v23  ;;  %v8762_v37 = vpack.c.bf16 %v17487_v21, %v17486_v31  ;;  %v17488_v23 = vld [vmem:[#allocation366_spill] sm:$0xff]  ;;  %v17525_v31 = vld [vmem:[#allocation440_spill] sm:$0xff] }
 0x719   :  { %8807 = vmatpush1.bf16.msra.mxu0 %v8806_v7  ;;  %v8764_v4 = vpack.c.bf16 %v17489_v6, %v17488_v23  ;;  %v17490_v7 = vld [vmem:[#allocation351_spill] sm:$0xff]  ;;  %v17527_v23 = vld [vmem:[#allocation437_spill] sm:$0xff] }
 0x71a   :  { %8809 = vmatprep.subr.bf16.mxu0 %v8808_v36  ;;  %v8826_v0 = vpack.c.bf16 %v17491_v1, %v17490_v7  ;;  %v17492_v36 = vld [vmem:[#allocation368_spill] sm:$0xff]  ;;  %v17529_v7 = vld [vmem:[#allocation454_spill] sm:$0xff] }
 0x71b   :  { %8747 = vmatpush1.bf16.msra.mxu1 %v8746_v2  ;;  %v8828_v3 = vpack.c.bf16 %v17493_v8, %v17492_v36  ;;  %v17494_v2 = vld [vmem:[#allocation365_spill] sm:$0xff]  ;;  %v17531_v36 = vld [vmem:[#allocation439_spill] sm:$0xff] }
 0x71c   :  { %8749 = vmatprep.subr.bf16.mxu1 %v8748_v11  ;;  %v8766_v10 = vpack.c.bf16 %v17495_v9, %v17494_v2  ;;  %v17496_v11 = vld [vmem:[#allocation382_spill] sm:$0xff]  ;;  %v17533_v2 = vld [vmem:[#allocation456_spill] sm:$0xff] }
 0x71d   :  { %8811 = vmatpush1.bf16.msra.mxu0 %v8810_v18  ;;  %v8768_v17 = vpack.c.bf16 %v17497_v16, %v17496_v11  ;;  %v17498_v18 = vld [vmem:[#allocation367_spill] sm:$0xff]  ;;  %v17535_v11 = vld [vmem:[#allocation453_spill] sm:$0xff] }
 0x71e   :  { %8813 = vmatprep.subr.bf16.mxu0 %v8812_v25  ;;  %v8830_v24 = vpack.c.bf16 %v17499_v19, %v17498_v18  ;;  %v17500_v25 = vld [vmem:[#allocation384_spill] sm:$0xff]  ;;  %v17537_v18 = vld [vmem:[#allocation470_spill] sm:$0xff] }
 0x71f   :  { %8751 = vmatpush1.bf16.msra.mxu1 %v8750_v33  ;;  %v8832_v32 = vpack.c.bf16 %v17501_v27, %v17500_v25  ;;  %v17502_v33 = vld [vmem:[#allocation381_spill] sm:$0xff]  ;;  %v17539_v25 = vld [vmem:[#allocation455_spill] sm:$0xff] }
 0x720   :  { %8753 = vmatprep.subr.bf16.mxu1 %v8752_v5  ;;  %v8770_v35 = vpack.c.bf16 %v17503_v34, %v17502_v33  ;;  %v17504_v5 = vld [vmem:[#allocation398_spill] sm:$0xff]  ;;  %v17541_v33 = vld [vmem:[#allocation472_spill] sm:$0xff] }
 0x721   :  { %8815 = vmatpush1.bf16.msra.mxu0 %v8814_v42  ;;  %v8772_v30 = vpack.c.bf16 %v17505_v38, %v17504_v5  ;;  %v17506_v42 = vld [vmem:[#allocation383_spill] sm:$0xff]  ;;  %v17543_v5 = vld [vmem:[#allocation469_spill] sm:$0xff] }
 0x722   :  { %8817 = vmatprep.subr.bf16.mxu0 %v8816_v46  ;;  %v8834_v45 = vpack.c.bf16 %v17507_v44, %v17506_v42  ;;  %v17508_v46 = vld [vmem:[#allocation400_spill] sm:$0xff]  ;;  %v17545_v42 = vld [vmem:[#allocation471_spill] sm:$0xff] }
 0x723   :  { %8755 = vmatpush1.bf16.msra.mxu1 %v8754_v48  ;;  %v8836_v47 = vpack.c.bf16 %v17509_v39, %v17508_v46  ;;  %v17510_v48 = vld [vmem:[#allocation397_spill] sm:$0xff]  ;;  %v3645_v46 = vld [vmem:[%s16241_s8 + $0x88] sm:$0xff] }
 0x724   :  { %8757 = vmatprep.subr.bf16.mxu1 %v8756_v49  ;;  %v8774_v28 = vpack.c.bf16 %v17511_v14, %v17510_v48  ;;  %v17512_v49 = vld [vmem:[#allocation414_spill] sm:$0xff] }
 0x725   :  { %8819 = vmatpush1.bf16.msra.mxu0 %v8818_v52  ;;  %v8776_v51 = vpack.c.bf16 %v17513_v50, %v17512_v49  ;;  %v17514_v52 = vld [vmem:[#allocation399_spill] sm:$0xff] }
 0x726   :  { %8821 = vmatprep.subr.bf16.mxu0 %v8820_v55  ;;  %v8838_v54 = vpack.c.bf16 %v17515_v53, %v17514_v52  ;;  %v17516_v55 = vld [vmem:[#allocation416_spill] sm:$0xff] }
 0x727   :  { %8759 = vmatpush1.bf16.msra.mxu1 %v8758_v58  ;;  %v8840_v57 = vpack.c.bf16 %v17517_v56, %v17516_v55  ;;  %v17518_v58 = vld [vmem:[#allocation413_spill] sm:$0xff] }
 0x728   :  { %8761 = vmatprep.subr.bf16.mxu1 %v8760_v63  ;;  %v8778_v62 = vpack.c.bf16 %v17519_v59, %v17518_v58  ;;  %v17520_v63 = vld [vmem:[#allocation430_spill] sm:$0xff]  ;;  %v7743_v59 = vld [vmem:[%s17546_s23 + $0x30] sm:$0xff] }
 0x729   :  { %8823 = vmatpush1.bf16.msra.mxu0 %v8822_v12  ;;  %v8780_v40 = vpack.c.bf16 %v17521_v13, %v17520_v63  ;;  %v17522_v12 = vld [vmem:[#allocation415_spill] sm:$0xff]  ;;  %v7742_v58 = vld [vmem:[%s17546_s23 + $0x28] sm:$0xff]  ;;  %v3974_v63 = vld [vmem:[%s17546_s23] sm:$0xff] }
 0x72a   :  { %8825 = vmatprep.subr.bf16.mxu0 %v8824_v15  ;;  %v8842_v29 = vpack.c.bf16 %v17523_v43, %v17522_v12  ;;  %v17524_v15 = vld [vmem:[#allocation432_spill] sm:$0xff]  ;;  %v3975_v13 = vld [vmem:[%s17546_s23 + $0x8] sm:$0xff] }
 0x72b   :  { %8763 = vmatpush1.bf16.msra.mxu1 %v8762_v37  ;;  %v8844_v21 = vpack.c.bf16 %v17525_v31, %v17524_v15  ;;  %v17526_v37 = vld [vmem:[#allocation429_spill] sm:$0xff]  ;;  %v3977_v12 = vld [vmem:[%s17546_s23 + $0x18] sm:$0xff] }
 0x72c   :  { %8765 = vmatprep.subr.bf16.mxu1 %v8764_v4  ;;  %v8782_v6 = vpack.c.bf16 %v17527_v23, %v17526_v37  ;;  %v17528_v4 = vld [vmem:[#allocation446_spill] sm:$0xff] }
 0x72d   :  { %8827 = vmatpush1.bf16.msra.mxu0 %v8826_v0  ;;  %v8784_v1 = vpack.c.bf16 %v17529_v7, %v17528_v4  ;;  %v17530_v0 = vld [vmem:[#allocation431_spill] sm:$0xff] }
 0x72e   :  { %8829 = vmatprep.subr.bf16.mxu0 %v8828_v3  ;;  %v8846_v8 = vpack.c.bf16 %v17531_v36, %v17530_v0  ;;  %v17532_v3 = vld [vmem:[#allocation448_spill] sm:$0xff]  ;;  %v7753_v36 = vld [vmem:[%s17546_s23 + $0x40] sm:$0xff] }
 0x72f   :  { %8767 = vmatpush1.bf16.msra.mxu1 %v8766_v10  ;;  %v8848_v9 = vpack.c.bf16 %v17533_v2, %v17532_v3  ;;  %v17534_v10 = vld [vmem:[#allocation445_spill] sm:$0xff]  ;;  %v7755_v3 = vld [vmem:[%s17546_s23 + $0x50] sm:$0xff]  ;;  %v7756_v2 = vld [vmem:[%s17546_s23 + $0x58] sm:$0xff] }
 0x730   :  { %8769 = vmatprep.subr.bf16.mxu1 %v8768_v17  ;;  %v8786_v16 = vpack.c.bf16 %v17535_v11, %v17534_v10  ;;  %v17536_v17 = vld [vmem:[#allocation462_spill] sm:$0xff]  ;;  %v7763_v11 = vld [vmem:[%s17546_s23 + $0x70] sm:$0xff] }
 0x731   :  { %8831 = vmatpush1.bf16.msra.mxu0 %v8830_v24  ;;  %v8788_v19 = vpack.c.bf16 %v17537_v18, %v17536_v17  ;;  %v17538_v24 = vld [vmem:[#allocation447_spill] sm:$0xff]  ;;  %v7762_v10 = vld [vmem:[%s17546_s23 + $0x68] sm:$0xff]  ;;  %v3647_v18 = vld [vmem:[%s16241_s8 + $0x98] sm:$0xff] }
 0x732   :  { %8833 = vmatprep.subr.bf16.mxu0 %v8832_v32  ;;  %v8850_v27 = vpack.c.bf16 %v17539_v25, %v17538_v24  ;;  %v17540_v32 = vld [vmem:[#allocation464_spill] sm:$0xff]  ;;  %v3646_v17 = vld [vmem:[%s16241_s8 + $0x90] sm:$0xff] }
 0x733   :  { %8771 = vmatpush1.bf16.msra.mxu1 %v8770_v35  ;;  %v8852_v34 = vpack.c.bf16 %v17541_v33, %v17540_v32  ;;  %v17542_v35 = vld [vmem:[#allocation461_spill] sm:$0xff]  ;;  %v3630_v24 = vld [vmem:[%s16241_s8 + $0x10] sm:$0xff]  ;;  %v3631_v25 = vld [vmem:[%s16241_s8 + $0x18] sm:$0xff] }
 0x734   :  { %8773 = vmatprep.subr.bf16.mxu1 %v8772_v30  ;;  %v8790_v38 = vpack.c.bf16 %v17543_v5, %v17542_v35  ;;  %v17544_v30 = vld [vmem:[#allocation463_spill] sm:$0xff]  ;;  %v3648_v32 = vld [vmem:[%s16241_s8 + $0xa0] sm:$0xff]  ;;  %v3649_v33 = vld [vmem:[%s16241_s8 + $0xa8] sm:$0xff] }
 0x735   :  { %8835 = vmatpush1.bf16.msra.mxu0 %v8834_v45  ;;  %v8854_v44 = vpack.c.bf16 %v17545_v42, %v17544_v30  ;;  %v3644_v45 = vld [vmem:[%s16241_s8 + $0x80] sm:$0xff]  ;;  %v3633_v5 = vld [vmem:[%s16241_s8 + $0x28] sm:$0xff]  ;;  %v3650_v30 = vld [vmem:[%s16241_s8 + $0xb0] sm:$0xff] }
 0x736   :  { %8837 = vmatprep.subr.bf16.mxu0 %v8836_v47  ;;  %v14802_v39 = vpack.c.bf16 %v3645_v46, %v3644_v45  ;;  %v3632_v35 = vld [vmem:[%s16241_s8 + $0x20] sm:$0xff]  ;;  %v3651_v42 = vld [vmem:[%s16241_s8 + $0xb8] sm:$0xff]  ;;  %v3634_v45 = vld [vmem:[%s16241_s8 + $0x30] sm:$0xff] }
 0x737   :  { %8775 = vmatpush1.bf16.msra.mxu1 %v8774_v28  ;;  %v3635_v46 = vld [vmem:[%s16241_s8 + $0x38] sm:$0xff] }
 0x738   :  { %8777 = vmatprep.subr.bf16.mxu1 %v8776_v51 }
 0x739   :  { %8839 = vmatpush1.bf16.msra.mxu0 %v8838_v54 }
 0x73a   :  { %8841 = vmatprep.subr.bf16.mxu0 %v8840_v57  ;;  %v7741_v57 = vld [vmem:[%s17546_s23 + $0x20] sm:$0xff] }
 0x73b   :  { %8779 = vmatpush1.bf16.msra.mxu1 %v8778_v62  ;;  %v7744_v62 = vld [vmem:[%s17546_s23 + $0x38] sm:$0xff] }
 0x73c   :  { %8781 = vmatprep.subr.bf16.mxu1 %v8780_v40  ;;  %v3976_v40 = vld [vmem:[%s17546_s23 + $0x10] sm:$0xff] }
 0x73d   :  { %8843 = vmatpush1.bf16.msra.mxu0 %v8842_v29 }
 0x73e   :  { %8845 = vmatprep.subr.bf16.mxu0 %v8844_v21 }
 0x73f   :  { %8783 = vmatpush1.bf16.msra.mxu1 %v8782_v6 }
 0x740   :  { %8785 = vmatprep.subr.bf16.mxu1 %v8784_v1 }
 0x741   :  { %8847 = vmatpush1.bf16.msra.mxu0 %v8846_v8  ;;  %v7754_v8 = vld [vmem:[%s17546_s23 + $0x48] sm:$0xff] }
 0x742   :  { %8849 = vmatprep.subr.bf16.mxu0 %v8848_v9  ;;  %v7761_v9 = vld [vmem:[%s17546_s23 + $0x60] sm:$0xff] }
 0x743   :  { %8787 = vmatpush1.bf16.msra.mxu1 %v8786_v16  ;;  %v7764_v16 = vld [vmem:[%s17546_s23 + $0x78] sm:$0xff] }
 0x744   :  { %8789 = vmatprep.subr.bf16.mxu1 %v8788_v19  ;;  %v14897_v19 = vpack.c.bf16 %v3647_v18, %v3646_v17 }
 0x745   :  { %8851 = vmatpush1.bf16.msra.mxu0 %v8850_v27  ;;  %v14905_v27 = vpack.c.bf16 %v3631_v25, %v3630_v24 }
 0x746   :  { %8853 = vmatprep.subr.bf16.mxu0 %v8852_v34  ;;  %v14915_v34 = vpack.c.bf16 %v3649_v33, %v3648_v32 }
 0x747   :  { %8791 = vmatpush1.bf16.msra.mxu1 %v8790_v38  ;;  %v14923_v38 = vpack.c.bf16 %v3633_v5, %v3632_v35 }
 0x749   :  { %8855 = vmatpush1.bf16.msra.mxu0 %v8854_v44  ;;  %v14933_v44 = vpack.c.bf16 %v3651_v42, %v3650_v30 }
 0x74a   :  { %3885 = vmatmul.mubr.f32.vlgmr.msra.gmra.mrb[16].mxu1 %v14512_v60  ;;  %8873 = vmatprep.subr.bf16.mxu0 %v14802_v39 }
 0x74b   :  { %3890 = vmatprep.mubr.f32.mxu1 %v14518_v41 }
 0x74c   :  { %3962 = vmatmul.mubr.f32.vlgmr.msra.gmra.mrb[18].mxu0 %v14512_v60  ;;  %v3628_v60 = vld [vmem:[%s16241_s8] sm:$0xff] }
 0x74d   :  { %3967 = vmatprep.mubr.f32.mxu0 %v14518_v41  ;;  %v3629_v41 = vld [vmem:[%s16241_s8 + $0x8] sm:$0xff] }
 0x74e   :  { %3891 = vmatmul.mubr.f32.gmra.mrb[18].mxu1 %v14514_v61  ;;  %v14807_v47 = vpack.c.bf16 %v3629_v41, %v3628_v60  ;;  %v14941_v60 = vpack.c.bf16 %v3635_v46, %v3634_v45  ;;  %v3652_v41 = vld [vmem:[%s16241_s8 + $0xc0] sm:$0xff] }
 0x74f   :  { %4060 = vmatprep.mubr.f32.mxu1 %v9507_v26 }
 0x750   :  { %3968 = vmatmul.mubr.f32.gmra.mrb[20].mxu0 %v14514_v61 }
 0x751   :  { %8875 = vmatpush3.bf16.msra.mxu0 %v14807_v47 }
 0x752   :  { %8877 = vmatprep.subr.bf16.mxu0 %v14897_v19 }
 0x755   :  { %8879 = vmatpush3.bf16.msra.mxu0 %v14905_v27 }
 0x756   :  { %8881 = vmatprep.subr.bf16.mxu0 %v14915_v34 }
 0x759   :  { %8883 = vmatpush3.bf16.msra.mxu0 %v14923_v38 }
 0x75a   :  { %8885 = vmatprep.subr.bf16.mxu0 %v14933_v44 }
 0x75d   :  { %8887 = vmatpush3.bf16.msra.mxu0 %v14941_v60 }
 0x7dd   :  { %v3732_v61 = vpop.f32.mrb[12].mxu1 }
 0x7de   :  { %v3809_v48 = vpop.f32.mrb[14].mxu0  ;;  %v3734_v14 = vpop.f32.mrb[13].mxu1 }
 0x7df   :  { %v3811_v28 = vpop.f32.mrb[15].mxu0 }
 0x7e1   :  { %v3738_v49 = vpop.f32.mrb[14].mxu1 }
 0x7e2   :  { %v3815_v50 = vpop.f32.mrb[16].mxu0  ;;  %v8862_v51 = vpack.c.bf16 %v3738_v49, %v3732_v61  ;;  %v3740_v53 = vpop.f32.mrb[15].mxu1  ;;  %v3653_v61 = vld [vmem:[%s16241_s8 + $0xc8] sm:$0xff] }
 0x7e3   :  { %v8858_v52 = vpack.c.bf16 %v3815_v50, %v3809_v48  ;;  %v3817_v54 = vpop.f32.mrb[17].mxu0  ;;  %v8860_v55 = vpack.c.bf16 %v3740_v53, %v3734_v14  ;;  %v14951_v48 = vpack.c.bf16 %v3653_v61, %v3652_v41  ;;  %v3636_v14 = vld [vmem:[%s16241_s8 + $0x40] sm:$0xff]  ;;  %v3654_v50 = vld [vmem:[%s16241_s8 + $0xd0] sm:$0xff] }
 0x7e4   :  { %v8856_v56 = vpack.c.bf16 %v3817_v54, %v3811_v28  ;;  %v3637_v28 = vld [vmem:[%s16241_s8 + $0x48] sm:$0xff]  ;;  %v3638_v53 = vld [vmem:[%s16241_s8 + $0x50] sm:$0xff]  ;;  %v3639_v54 = vld [vmem:[%s16241_s8 + $0x58] sm:$0xff] }
 0x7e5   :  { %v14959_v49 = vpack.c.bf16 %v3637_v28, %v3636_v14  ;;  %8889 = vmatprep.subr.bf16.mxu0 %v14951_v48 }
 0x7e6   :  { %8857 = vmatprep.subr.bf16.mxu1 %v8856_v56  ;;  %v3656_v56 = vld [vmem:[%s16241_s8 + $0xe0] sm:$0xff] }
 0x7e7   :  { %8859 = vmatpush1.bf16.msra.mxu1 %v8858_v52  ;;  %8891 = vmatpush3.bf16.msra.mxu0 %v14959_v49 }
 0x7e8   :  { %8861 = vmatprep.subr.bf16.mxu1 %v8860_v55  ;;  %v14977_v55 = vpack.c.bf16 %v3639_v54, %v3638_v53 }
 0x7ea   :  { %7745 = vmatmul.mubr.msk.f32.vlgmr.msra.gmra.mrb[20].mxu1 %vm3983_vm4, %v7741_v57  ;;  %v3657_v57 = vld [vmem:[%s16241_s8 + $0xe8] sm:$0xff] }
 0x7eb   :  { %8863 = vmatpush1.bf16.msra.mxu1 %v8862_v51  ;;  %4066 = vmatprep.mubr.f32.mxu1 %v9507_v26  ;;  %v3655_v51 = vld [vmem:[%s16241_s8 + $0xd8] sm:$0xff] }
 0x7ec   :  { %v14969_v52 = vpack.c.bf16 %v3655_v51, %v3654_v50 }
 0x7ee   :  { %7746 = vmatmul.mubr.msk.f32.gmra.mrb[22].mxu1 %vm3983_vm4, %v7742_v58  ;;  %8893 = vmatprep.subr.bf16.mxu0 %v14969_v52  ;;  %v14987_v58 = vpack.c.bf16 %v3657_v57, %v3656_v56 }
 0x7ef   :  { %4072 = vmatprep.mubr.f32.mxu1 %v9507_v26  ;;  %8895 = vmatpush3.bf16.msra.mxu0 %v14977_v55 }
 0x7f0   :  { %8897 = vmatprep.subr.bf16.mxu0 %v14987_v58 }
 0x7f2   :  { %7747 = vmatmul.mubr.msk.f32.gmra.mrb[24].mxu1 %vm3983_vm4, %v7743_v59  ;;  %v3640_v59 = vld [vmem:[%s16241_s8 + $0x60] sm:$0xff] }
 0x7f3   :  { %4078 = vmatprep.mubr.f32.mxu1 %v9507_v26 }
 0x7f6   :  { %7748 = vmatmul.mubr.msk.f32.gmra.mrb[26].mxu1 %vm3983_vm4, %v7744_v62  ;;  %v3641_v62 = vld [vmem:[%s16241_s8 + $0x68] sm:$0xff] }
 0x7f7   :  { %4161 = vmatprep.mubr.f32.mxu1 %v9507_v26 }
 0x7fa   :  { %7749 = vmatmul.mubr.msk.f32.vlgmr.msra.gmra.mrb[20].mxu1 %vm3983_vm4, %v3974_v63  ;;  %v14995_v63 = vpack.c.bf16 %v3641_v62, %v3640_v59 }
 0x7fb   :  { %4167 = vmatprep.mubr.f32.mxu1 %v9507_v26 }
 0x7fc   :  { %8899 = vmatpush3.bf16.msra.mxu0 %v14995_v63 }
 0x7fe   :  { %7750 = vmatmul.mubr.msk.f32.gmra.mrb[22].mxu1 %vm3983_vm4, %v3975_v13  ;;  %v3658_v13 = vld [vmem:[%s16241_s8 + $0xf0] sm:$0xff] }
 0x7ff   :  { %4173 = vmatprep.mubr.f32.mxu1 %v9507_v26 }
 0x802   :  { %7751 = vmatmul.mubr.msk.f32.gmra.mrb[24].mxu1 %vm3983_vm4, %v3976_v40  ;;  %v3659_v40 = vld [vmem:[%s16241_s8 + $0xf8] sm:$0xff] }
 0x803   :  { %4179 = vmatprep.mubr.f32.mxu1 %v9507_v26 }
 0x806   :  { %7752 = vmatmul.mubr.msk.f32.gmra.mrb[26].mxu1 %vm3983_vm4, %v3977_v12  ;;  %v15005_v12 = vpack.c.bf16 %v3659_v40, %v3658_v13 }
 0x807   :  { %4267 = vmatprep.mubr.f32.mxu1 %v9507_v26 }
 0x808   :  { %8901 = vmatprep.subr.bf16.mxu0 %v15005_v12 }
 0x81d   :  { %v3886_v43 = vpop.f32.mrb[16].mxu1 }
 0x81e   :  { %v3888_v29 = vpop.f32.mrb[17].mxu1 }
 0x81f   :  { %v3963_v15 = vpop.f32.mrb[18].mxu0 }
 0x820   :  { %v3965_v31 = vpop.f32.mrb[19].mxu0 }
 0x821   :  { %v3892_v21 = vpop.f32.mrb[18].mxu1 }
 0x822   :  { %v8866_v37 = vpack.c.bf16 %v3892_v21, %v3886_v43  ;;  %v3894_v23 = vpop.f32.mrb[19].mxu1  ;;  %v3642_v43 = vld [vmem:[%s16241_s8 + $0x70] sm:$0xff] }
 0x823   :  { %v8864_v6 = vpack.c.bf16 %v3894_v23, %v3888_v29  ;;  %v3969_v4 = vpop.f32.mrb[20].mxu0  ;;  %v3643_v29 = vld [vmem:[%s16241_s8 + $0x78] sm:$0xff] }
 0x824   :  { %v8870_v7 = vpack.c.bf16 %v3969_v4, %v3963_v15  ;;  %v3971_v1 = vpop.f32.mrb[21].mxu0  ;;  %v15013_v15 = vpack.c.bf16 %v3643_v29, %v3642_v43 }
 0x825   :  { %8865 = vmatprep.subr.bf16.mxu1 %v8864_v6  ;;  %v8868_v0 = vpack.c.bf16 %v3971_v1, %v3965_v31 }
 0x826   :  { %8867 = vmatpush1.bf16.msra.mxu1 %v8866_v37  ;;  %8903 = vmatpush3.bf16.msra.mxu0 %v15013_v15 }
 0x827   :  { %8869 = vmatprep.subr.bf16.mxu1 %v8868_v0  ;;  %8905 = vmatprep.subr.bf16.mxu0 %v14802_v39 }
 0x829   :  { %7757 = vmatmul.mubr.msk.f32.vlgmr.msra.gmra.mrb[20].mxu1 %vm3983_vm4, %v7753_v36 }
 0x82a   :  { %4273 = vmatprep.mubr.f32.mxu1 %v9507_v26  ;;  %8871 = vmatpush1.bf16.msra.mxu1 %v8870_v7 }
 0x82d   :  { %7758 = vmatmul.mubr.msk.f32.gmra.mrb[22].mxu1 %vm3983_vm4, %v7754_v8 }
 0x82e   :  { %4279 = vmatprep.mubr.f32.mxu1 %v9507_v26 }
 0x831   :  { %7759 = vmatmul.mubr.msk.f32.gmra.mrb[24].mxu1 %vm3983_vm4, %v7755_v3 }
 0x832   :  { %4285 = vmatprep.mubr.f32.mxu1 %v9507_v26 }
 0x835   :  { %7760 = vmatmul.mubr.msk.f32.gmra.mrb[26].mxu1 %vm3983_vm4, %v7756_v2 }
 0x836   :  { %4381 = vmatprep.mubr.f32.mxu1 %v9507_v26 }
 0x839   :  { %7765 = vmatmul.mubr.msk.f32.vlgmr.msra.gmra.mrb[20].mxu1 %vm3983_vm4, %v7761_v9 }
 0x83a   :  { %4387 = vmatprep.mubr.f32.mxu1 %v9507_v26 }
 0x83d   :  { %7766 = vmatmul.mubr.msk.f32.gmra.mrb[22].mxu1 %vm3983_vm4, %v7762_v10 }
 0x83e   :  { %4393 = vmatprep.mubr.f32.mxu1 %v9507_v26 }
 0x841   :  { %7767 = vmatmul.mubr.msk.f32.gmra.mrb[24].mxu1 %vm3983_vm4, %v7763_v11 }
 0x842   :  { %4399 = vmatprep.mubr.f32.mxu1 %v9507_v26 }
 0x845   :  { %7768 = vmatmul.mubr.msk.f32.gmra.mrb[26].mxu1 %vm3983_vm4, %v7764_v16 }
 0x846   :  { %4674 = vmatprep.mubr.f32.mxu1 %v9507_v26 }
 0x90c   :  { %v15018_v31 = vpop.f32.mrb[20].mxu1 }
 0x90d   :  { %v15020_v21 = vpop.f32.mrb[21].mxu1  ;;  %v4432_v23 = vmul.f32 %v15018_v31, %v15018_v31 }
 0x90e   :  { %v4433_v39 = vmul.f32 %v15020_v21, %v15020_v21 }
 0x910   :  { %v15022_v37 = vpop.f32.mrb[22].mxu1 }
 0x911   :  { %v4414_v6 = vadd.f32 %v15022_v37, %v15018_v31  ;;  %v4434_v4 = vmul.f32 %v15022_v37, %v15022_v37  ;;  %v15030_v7 = vpop.f32.mrb[23].mxu1 }
 0x912   :  { %v4423_v1 = vadd.f32 %v15030_v7, %v15020_v21  ;;  %v4435_v0 = vmul.f32 %v15030_v7, %v15030_v7 }
 0x913   :  { %v4440_v36 = vadd.f32 %v4434_v4, %v4432_v23 }
 0x914   :  { %v4449_v8 = vadd.f32 %v4435_v0, %v4433_v39  ;;  %v15038_v3 = vpop.f32.mrb[24].mxu1 }
 0x915   :  { %v4415_v2 = vadd.f32 %v4414_v6, %v15038_v3  ;;  %v4436_v9 = vmul.f32 %v15038_v3, %v15038_v3  ;;  %v15043_v10 = vpop.f32.mrb[25].mxu1 }
 0x916   :  { %v4424_v11 = vadd.f32 %v4423_v1, %v15043_v10  ;;  %v4437_v16 = vmul.f32 %v15043_v10, %v15043_v10 }
 0x917   :  { %v4441_v17 = vadd.f32 %v4440_v36, %v4436_v9 }
 0x918   :  { %v4450_v18 = vadd.f32 %v4449_v8, %v4437_v16  ;;  %v15048_v24 = vpop.f32.mrb[26].mxu1  ;;  %v3665_v16 = vld [vmem:[%s16248_s15] sm:$0x1] }
 0x919   :  { %v4416_v25 = vadd.f32 %v4415_v2, %v15048_v24  ;;  %v4438_v32 = vmul.f32 %v15048_v24, %v15048_v24  ;;  %v15053_v33 = vpop.f32.mrb[27].mxu1  ;;  %v3664_v2 = vld [vmem:[%s16247_s14] sm:$0x1] }
 0x91a   :  { %v4425_v35 = vadd.f32 %v4424_v11, %v15053_v33  ;;  %v4439_v5 = vmul.f32 %v15053_v33, %v15053_v33 }
 0x91b   :  { %v4417_v30 = vrot.slane %v4416_v25, 4  ;;  %v4442_v42 = vadd.f32 %v4441_v17, %v4438_v32 }
 0x91c   :  { %v4426_v45 = vrot.slane %v4425_v35, 4  ;;  %v4451_v46 = vadd.f32 %v4450_v18, %v4439_v5 }
 0x91d   :  { %v4418_v41 = vadd.f32 %v4417_v30, %v4416_v25  ;;  %v4443_v23 = vrot.slane %v4442_v42, 4 }
 0x91e   :  { %v4427_v61 = vadd.f32 %v4426_v45, %v4425_v35  ;;  %v4452_v14 = vrot.slane %v4451_v46, 4 }
 0x91f   :  { %v4419_v28 = vrot.slane %v4418_v41, 2  ;;  %v4444_v6 = vadd.f32 %v4443_v23, %v4442_v42  ;;  %v17547_v23 = vld [vmem:[#allocation474_spill] sm:$0xff] }
 0x920   :  { %v4428_v50 = vrot.slane %v4427_v61, 2  ;;  %v4453_v51 = vadd.f32 %v4452_v14, %v4451_v46 }
 0x921   :  { %v4420_v53 = vadd.f32 %v4419_v28, %v4418_v41 }
 0x922   :  { %v4429_v54 = vadd.f32 %v4428_v50, %v4427_v61  ;;  %v4454_v56 = vrot.slane %v4453_v51, 2 }
 0x923   :  { %v4421_v57 = vrot.slane %v4420_v53, 1 }
 0x924   :  { %v4430_v59 = vrot.slane %v4429_v54, 1  ;;  %v4455_v62 = vadd.f32 %v4454_v56, %v4453_v51 }
 0x925   :  { %v4422_v43 = vadd.f32 %v4421_v57, %v4420_v53 }
 0x926   :  { %v4431_v13 = vadd.f32 %v4430_v59, %v4429_v54  ;;  %v4456_v40 = vrot.slane %v4455_v62, 1 }
 0x928   :  { %4522 = vmatprep.mubr.f32.mxu0 %v4431_v13  ;;  %v4457_v29 = vadd.f32 %v4456_v40, %v4455_v62 }
 0x929   :  { %4523 = vmatmul.mubr.f32.vlgmr.msra.gmra.mrb[22].mxu0 %v4422_v43 }
 0x92a   :  { %8907 = vmatpush3.bf16.msra.mxu0 %v14807_v47  ;;  %4593 = vmatprep.mubr.f32.mxu0 %v4457_v29  ;;  %v4445_v47 = vrot.slane %v4444_v6, 2 }
 0x92b   :  { %8909 = vmatprep.subr.bf16.mxu0 %v14897_v19 }
 0x92c   :  { %v4446_v19 = vadd.f32 %v4445_v47, %v4444_v6  ;;  %v17548_v6 = vld [vmem:[#allocation482_spill] sm:$0xff] }
 0x92d   :  { %v8944_v47 = vpack.c.bf16 %v17548_v6, %v17547_v23 }
 0x92e   :  { %8911 = vmatpush3.bf16.msra.mxu0 %v14905_v27  ;;  %v4447_v27 = vrot.slane %v4446_v19, 1 }
 0x92f   :  { %8913 = vmatprep.subr.bf16.mxu0 %v14915_v34 }
 0x930   :  { %v4448_v34 = vadd.f32 %v4447_v27, %v4446_v19  ;;  %v17549_v19 = vld [vmem:[#allocation476_spill] sm:$0xff] }
 0x931   :  { %v17550_v27 = vld [vmem:[#allocation484_spill] sm:$0xff] }
 0x932   :  { %8915 = vmatpush3.bf16.msra.mxu0 %v14923_v38  ;;  %v3661_v38 = vld [vmem:[%s16242_s9 + $0x8] sm:$0xff] }
 0x933   :  { %8917 = vmatprep.subr.bf16.mxu0 %v14933_v44  ;;  %v3663_v44 = vld [vmem:[%s16242_s9 + $0x18] sm:$0xff] }
 0x936   :  { %8919 = vmatpush3.bf16.msra.mxu0 %v14941_v60  ;;  %v8936_v60 = vpack.c.bf16 %v3663_v44, %v3661_v38  ;;  %v17551_v38 = vld [vmem:[#allocation473_spill] sm:$0xff] }
 0x937   :  { %8921 = vmatprep.subr.bf16.mxu0 %v14951_v48  ;;  %v3660_v48 = vld [vmem:[%s16242_s9] sm:$0xff] }
 0x938   :  { %8937 = vmatprep.subr.bf16.mxu1 %v8936_v60  ;;  %v17552_v44 = vld [vmem:[#allocation481_spill] sm:$0xff] }
 0x93a   :  { %8923 = vmatpush3.bf16.msra.mxu0 %v14959_v49  ;;  %v3662_v49 = vld [vmem:[%s16242_s9 + $0x10] sm:$0xff] }
 0x93b   :  { %8925 = vmatprep.subr.bf16.mxu0 %v14969_v52  ;;  %v8938_v52 = vpack.c.bf16 %v3662_v49, %v3660_v48  ;;  %v17553_v48 = vld [vmem:[#allocation475_spill] sm:$0xff] }
 0x93c   :  { %v17554_v49 = vld [vmem:[#allocation483_spill] sm:$0xff] }
 0x93d   :  { %8939 = vmatpush1.bf16.msra.mxu1 %v8938_v52 }
 0x93e   :  { %8927 = vmatpush3.bf16.msra.mxu0 %v14977_v55  ;;  %8941 = vmatprep.subr.bf16.mxu1 %v8936_v60  ;;  %v8946_v60 = vpack.c.bf16 %v17552_v44, %v17551_v38 }
 0x93f   :  { %8929 = vmatprep.subr.bf16.mxu0 %v14987_v58 }
 0x942   :  { %8931 = vmatpush3.bf16.msra.mxu0 %v14995_v63 }
 0x943   :  { %8933 = vmatprep.subr.bf16.mxu0 %v15005_v12 }
 0x946   :  { %8935 = vmatpush3.bf16.msra.mxu0 %v15013_v15 }
 0x949   :  { %4594 = vmatmul.mubr.f32.vlgmr.msra.gmra.mrb[24].mxu0 %v4448_v34  ;;  %v9008_v34 = vpack.c.bf16 %v17550_v27, %v17549_v19 }
 0x9fc   :  { %v7956_v55 = vpop.f32.mrb[22].mxu0 }
 0x9fd   :  { %v7957_v58 = vpop.f32.mrb[23].mxu0 }
 0x9fe   :  { %v7958_v63 = vadd.f32 %v7957_v58, %v7956_v55 }
 0xa00   :  { %v4528_v12 = vmul.f32 0.001953125, %v7958_v63 }
 0xa02   :  { %v4600_v1 = vmul.f32 %v4528_v12, %v4528_v12 }
 0xa1c   :  { %v7991_v15 = vpop.f32.mrb[24].mxu0 }
 0xa1d   :  { %v7992_v4 = vpop.f32.mrb[25].mxu0 }
 0xa1e   :  { %v7993_v39 = vadd.f32 %v7992_v4, %v7991_v15 }
 0xa20   :  { %v4599_v0 = vmul.f32 0.001953125, %v7993_v39 }
 0xa22   :  { %v4601_v36 = vsub.f32 %v4599_v0, %v4600_v1 }
 0xa24   :  { %v4602_v8 = vadd.f32 1e-05, %v4601_v36 }
 0xa26   :  { %9479 = vrsqrt.f32 %v4602_v8 }
 0xa30   :  { %v9480_v9 = vpop.eup %9479 }
 0xa31   :  { %v4604_v11 = vmul.f32 %v9480_v9, %v3664_v2 }
 0xa33   :  { %7769 = vmatmul.mubr.msk.f32.vlgmr.msra.gmra.mrb[28].mxu1 %vm3983_vm4, %v4604_v11  ;;  %v4605_v17 = vmul.f32 %v4604_v11, %v4528_v12 }
 0xa34   :  { %8943 = vmatpush1.bf16.msra.mxu1 %v8938_v52  ;;  %4748 = vmatprep.mubr.f32.mxu1 %v9507_v26  ;;  %v9010_v52 = vpack.c.bf16 %v17554_v49, %v17553_v48 }
 0xa35   :  { %v4606_v18 = vsub.f32 %v3665_v16, %v4605_v17 }
 0xa37   :  { %7770 = vmatmul.mubr.msk.f32.vlgmr.msra.gmra.mrb[30].mxu1 %vm3983_vm4, %v4606_v18 }
 0xb06   :  { %v4676_v25 = vpop.f32.mrb[28].mxu1 }
 0xb07   :  { %v4758_v32 = vrot.slane %v4676_v25, %v14502_v22  ;;  %v4678_v35 = vpop.f32.mrb[29].mxu1 }
 0xb08   :  { %v4762_v5 = vrot.slane %v4678_v35, %v14502_v22 }
 0xb09   :  { %v4763_v30 = vmul.f32 %v4758_v32, %v15018_v31  ;;  %v4765_v42 = vmul.f32 %v4758_v32, %v15022_v37  ;;  %v4767_v45 = vmul.f32 %v4758_v32, %v15038_v3  ;;  %v4769_v46 = vmul.f32 %v4758_v32, %v15048_v24 }
 0xb0a   :  { %v4764_v41 = vmul.f32 %v4762_v5, %v15020_v21  ;;  %v4766_v61 = vmul.f32 %v4762_v5, %v15030_v7  ;;  %v4768_v14 = vmul.f32 %v4762_v5, %v15043_v10  ;;  %v4770_v28 = vmul.f32 %v4762_v5, %v15053_v33  ;;  %v4750_v50 = vpop.f32.mrb[30].mxu1 }
 0xb0b   :  { %v4774_v51 = vrot.slane %v4750_v50, %v14502_v22  ;;  %v4752_v53 = vpop.f32.mrb[31].mxu1 }
 0xb0c   :  { %v4778_v31 = vrot.slane %v4752_v53, %v14502_v22 }
 0xb0d   :  { %v4779_v54 = vadd.f32 %v4774_v51, %v4763_v30  ;;  %v4781_v37 = vadd.f32 %v4774_v51, %v4765_v42  ;;  %v4783_v56 = vadd.f32 %v4774_v51, %v4767_v45  ;;  %v4785_v3 = vadd.f32 %v4774_v51, %v4769_v46 }
 0xb0e   :  { %v4780_v57 = vadd.f32 %v4778_v31, %v4764_v41  ;;  %v4782_v24 = vadd.f32 %v4778_v31, %v4766_v61  ;;  %v4784_v59 = vadd.f32 %v4778_v31, %v4768_v14  ;;  %v4786_v21 = vadd.f32 %v4778_v31, %v4770_v28 }
 0xb0f   :  { %v15106_v62 = vmax.f32 %v4779_v54, 0.0  ;;  %v15108_v7 = vmax.f32 %v4781_v37, 0.0  ;;  %v15110_v10 = vmax.f32 %v4783_v56, 0.0  ;;  %v15112_v33 = vmax.f32 %v4785_v3, 0.0 }
 0xb10   :  { %v15114_v13 = vmax.f32 %v4780_v57, 0.0  ;;  %v15116_v40 = vmax.f32 %v4782_v24, 0.0  ;;  %v15118_v43 = vmax.f32 %v4784_v59, 0.0  ;;  %v15120_v29 = vmax.f32 %v4786_v21, 0.0 }
 0xb12   :  { %5153 = vmatprep.mubr.f32.mxu1 %v15114_v13 }
 0xb13   :  { %9503 = dma.done.wait [#allocation4 + $0x2], 32768 }
 0xb14   :  { %9504 = vsyncadd [#allocation4 + $0x2], 4294934528  ;;  %v17555_v55 = vld [vmem:[#allocation490_spill] sm:$0xff]  ;;  %v17557_v12 = vld [vmem:[#allocation492_spill] sm:$0xff]  ;;  %5242 = vmatprep.mubr.f32.mxu0 %v15114_v13  ;;  %8945 = vmatprep.subr.bf16.mxu1 %v8944_v47  ;;  %vm6618_vm5 = vcmp.lt.s32.totalorder %v14499_v20, 1  ;;  %vm6675_vm6 = vcmp.lt.s32.totalorder %v14499_v20, 7 }
 0xb15   :  { %v17556_v58 = vld [vmem:[#allocation498_spill] sm:$0xff]  ;;  %v17558_v15 = vld [vmem:[#allocation500_spill] sm:$0xff]  ;;  %9009 = vmatprep.subr.bf16.mxu0 %v9008_v34  ;;  %8947 = vmatpush1.bf16.msra.mxu1 %v8946_v60  ;;  %v17559_v39 = vld [vmem:[#allocation489_spill] sm:$0xff] }
 0xb16   :  { %v8948_v63 = vpack.c.bf16 %v17556_v58, %v17555_v55  ;;  %v9012_v4 = vpack.c.bf16 %v17558_v15, %v17557_v12  ;;  %9011 = vmatpush1.bf16.msra.mxu0 %v9010_v52  ;;  %v17560_v1 = vld [vmem:[#allocation497_spill] sm:$0xff]  ;;  %v17561_v36 = vld [vmem:[#allocation491_spill] sm:$0xff]  ;;  %v17563_v9 = vld [vmem:[#allocation506_spill] sm:$0xff] }
 0xb17   :  { %v8950_v0 = vpack.c.bf16 %v17560_v1, %v17559_v39  ;;  %v17562_v8 = vld [vmem:[#allocation499_spill] sm:$0xff]  ;;  %v17564_v11 = vld [vmem:[#allocation514_spill] sm:$0xff]  ;;  %v17565_v17 = vld [vmem:[#allocation508_spill] sm:$0xff] }
 0xb18   :  { %v9014_v2 = vpack.c.bf16 %v17562_v8, %v17561_v36  ;;  %8949 = vmatprep.subr.bf16.mxu1 %v8948_v63  ;;  %9013 = vmatprep.subr.bf16.mxu0 %v9012_v4  ;;  %v8952_v16 = vpack.c.bf16 %v17564_v11, %v17563_v9  ;;  %v17566_v18 = vld [vmem:[#allocation516_spill] sm:$0xff]  ;;  %v17567_v32 = vld [vmem:[#allocation505_spill] sm:$0xff]  ;;  %v17569_v30 = vld [vmem:[#allocation507_spill] sm:$0xff] }
 0xb19   :  { %v9016_v25 = vpack.c.bf16 %v17566_v18, %v17565_v17  ;;  %8951 = vmatpush1.bf16.msra.mxu1 %v8950_v0  ;;  %v17568_v35 = vld [vmem:[#allocation513_spill] sm:$0xff]  ;;  %v17570_v42 = vld [vmem:[#allocation515_spill] sm:$0xff]  ;;  %v17571_v46 = vld [vmem:[#allocation522_spill] sm:$0xff] }
 0xb1a   :  { %9015 = vmatpush1.bf16.msra.mxu0 %v9014_v2  ;;  %v8954_v5 = vpack.c.bf16 %v17568_v35, %v17567_v32  ;;  %v9018_v45 = vpack.c.bf16 %v17570_v42, %v17569_v30  ;;  %8953 = vmatprep.subr.bf16.mxu1 %v8952_v16  ;;  %v17572_v41 = vld [vmem:[#allocation530_spill] sm:$0xff]  ;;  %v17573_v14 = vld [vmem:[#allocation524_spill] sm:$0xff]  ;;  %v17575_v51 = vld [vmem:[#allocation521_spill] sm:$0xff] }
 0xb1b   :  { %9017 = vmatprep.subr.bf16.mxu0 %v9016_v25  ;;  %v8956_v61 = vpack.c.bf16 %v17572_v41, %v17571_v46  ;;  %v17574_v28 = vld [vmem:[#allocation532_spill] sm:$0xff]  ;;  %v17576_v53 = vld [vmem:[#allocation529_spill] sm:$0xff]  ;;  %v17577_v54 = vld [vmem:[#allocation523_spill] sm:$0xff] }
 0xb1c   :  { %v9020_v50 = vpack.c.bf16 %v17574_v28, %v17573_v14  ;;  %v8958_v31 = vpack.c.bf16 %v17576_v53, %v17575_v51  ;;  %v17578_v37 = vld [vmem:[#allocation531_spill] sm:$0xff]  ;;  %v17579_v3 = vld [vmem:[#allocation538_spill] sm:$0xff]  ;;  %v17581_v59 = vld [vmem:[#allocation540_spill] sm:$0xff] }
 0xb1d   :  { %8955 = vmatpush1.bf16.msra.mxu1 %v8954_v5  ;;  %v9022_v56 = vpack.c.bf16 %v17578_v37, %v17577_v54  ;;  %v17580_v57 = vld [vmem:[#allocation546_spill] sm:$0xff]  ;;  %v17582_v21 = vld [vmem:[#allocation548_spill] sm:$0xff]  ;;  %v17583_v6 = vld [vmem:[#allocation537_spill] sm:$0xff] }
 0xb1e   :  { %9019 = vmatpush1.bf16.msra.mxu0 %v9018_v45  ;;  %8957 = vmatprep.subr.bf16.mxu1 %v8956_v61  ;;  %v8960_v24 = vpack.c.bf16 %v17580_v57, %v17579_v3  ;;  %v9024_v23 = vpack.c.bf16 %v17582_v21, %v17581_v59  ;;  %v17584_v47 = vld [vmem:[#allocation545_spill] sm:$0xff]  ;;  %v17585_v27 = vld [vmem:[#allocation539_spill] sm:$0xff]  ;;  %v17587_v44 = vld [vmem:[#allocation554_spill] sm:$0xff] }
 0xb1f   :  { %9021 = vmatprep.subr.bf16.mxu0 %v9020_v50  ;;  %v8962_v19 = vpack.c.bf16 %v17584_v47, %v17583_v6  ;;  %v17586_v34 = vld [vmem:[#allocation547_spill] sm:$0xff]  ;;  %v17588_v60 = vld [vmem:[#allocation562_spill] sm:$0xff]  ;;  %v17589_v49 = vld [vmem:[#allocation556_spill] sm:$0xff] }
 0xb20   :  { %v9026_v38 = vpack.c.bf16 %v17586_v34, %v17585_v27  ;;  %v8964_v48 = vpack.c.bf16 %v17588_v60, %v17587_v44  ;;  %v17590_v52 = vld [vmem:[#allocation564_spill] sm:$0xff]  ;;  %v17591_v58 = vld [vmem:[#allocation553_spill] sm:$0xff]  ;;  %v17593_v15 = vld [vmem:[#allocation555_spill] sm:$0xff] }
 0xb21   :  { %8959 = vmatpush1.bf16.msra.mxu1 %v8958_v31  ;;  %v9028_v55 = vpack.c.bf16 %v17590_v52, %v17589_v49  ;;  %v17592_v63 = vld [vmem:[#allocation561_spill] sm:$0xff]  ;;  %v17594_v4 = vld [vmem:[#allocation563_spill] sm:$0xff]  ;;  %v17595_v1 = vld [vmem:[#allocation570_spill] sm:$0xff] }
 0xb22   :  { %9023 = vmatpush1.bf16.msra.mxu0 %v9022_v56  ;;  %8961 = vmatprep.subr.bf16.mxu1 %v8960_v24  ;;  %v8966_v12 = vpack.c.bf16 %v17592_v63, %v17591_v58  ;;  %v9030_v39 = vpack.c.bf16 %v17594_v4, %v17593_v15  ;;  %v17596_v0 = vld [vmem:[#allocation578_spill] sm:$0xff]  ;;  %v17597_v8 = vld [vmem:[#allocation572_spill] sm:$0xff]  ;;  %v17599_v11 = vld [vmem:[#allocation569_spill] sm:$0xff] }
 0xb23   :  { %9025 = vmatprep.subr.bf16.mxu0 %v9024_v23  ;;  %v8968_v36 = vpack.c.bf16 %v17596_v0, %v17595_v1  ;;  %v17598_v2 = vld [vmem:[#allocation580_spill] sm:$0xff]  ;;  %v17600_v16 = vld [vmem:[#allocation577_spill] sm:$0xff]  ;;  %v17601_v18 = vld [vmem:[#allocation571_spill] sm:$0xff] }
 0xb24   :  { %v9032_v9 = vpack.c.bf16 %v17598_v2, %v17597_v8  ;;  %v8970_v17 = vpack.c.bf16 %v17600_v16, %v17599_v11  ;;  %v17602_v25 = vld [vmem:[#allocation579_spill] sm:$0xff]  ;;  %v17603_v35 = vld [vmem:[#allocation586_spill] sm:$0xff]  ;;  %v17605_v42 = vld [vmem:[#allocation588_spill] sm:$0xff] }
 0xb25   :  { %8963 = vmatpush1.bf16.msra.mxu1 %v8962_v19  ;;  %v9034_v32 = vpack.c.bf16 %v17602_v25, %v17601_v18  ;;  %v17604_v5 = vld [vmem:[#allocation594_spill] sm:$0xff]  ;;  %v17606_v45 = vld [vmem:[#allocation596_spill] sm:$0xff]  ;;  %v17607_v41 = vld [vmem:[#allocation585_spill] sm:$0xff] }
 0xb26   :  { %9027 = vmatpush1.bf16.msra.mxu0 %v9026_v38  ;;  %8965 = vmatprep.subr.bf16.mxu1 %v8964_v48  ;;  %v8972_v30 = vpack.c.bf16 %v17604_v5, %v17603_v35  ;;  %v9036_v46 = vpack.c.bf16 %v17606_v45, %v17605_v42  ;;  %v17608_v61 = vld [vmem:[#allocation593_spill] sm:$0xff]  ;;  %v17609_v28 = vld [vmem:[#allocation587_spill] sm:$0xff]  ;;  %v17611_v53 = vld [vmem:[#allocation602_spill] sm:$0xff] }
 0xb27   :  { %9029 = vmatprep.subr.bf16.mxu0 %v9028_v55  ;;  %v8974_v14 = vpack.c.bf16 %v17608_v61, %v17607_v41  ;;  %v17610_v50 = vld [vmem:[#allocation595_spill] sm:$0xff]  ;;  %v17612_v31 = vld [vmem:[#allocation610_spill] sm:$0xff]  ;;  %v17613_v37 = vld [vmem:[#allocation604_spill] sm:$0xff] }
 0xb28   :  { %v9038_v51 = vpack.c.bf16 %v17610_v50, %v17609_v28  ;;  %v8976_v54 = vpack.c.bf16 %v17612_v31, %v17611_v53  ;;  %v17614_v56 = vld [vmem:[#allocation612_spill] sm:$0xff]  ;;  %v17615_v57 = vld [vmem:[#allocation601_spill] sm:$0xff]  ;;  %v17617_v21 = vld [vmem:[#allocation603_spill] sm:$0xff] }
 0xb29   :  { %8967 = vmatpush1.bf16.msra.mxu1 %v8966_v12  ;;  %v9040_v3 = vpack.c.bf16 %v17614_v56, %v17613_v37  ;;  %v17616_v24 = vld [vmem:[#allocation609_spill] sm:$0xff]  ;;  %v17618_v23 = vld [vmem:[#allocation611_spill] sm:$0xff]  ;;  %v17619_v47 = vld [vmem:[#allocation618_spill] sm:$0xff] }
 0xb2a   :  { %9031 = vmatpush1.bf16.msra.mxu0 %v9030_v39  ;;  %8969 = vmatprep.subr.bf16.mxu1 %v8968_v36  ;;  %v8978_v59 = vpack.c.bf16 %v17616_v24, %v17615_v57  ;;  %v9042_v6 = vpack.c.bf16 %v17618_v23, %v17617_v21  ;;  %v17620_v19 = vld [vmem:[#allocation626_spill] sm:$0xff]  ;;  %v17621_v34 = vld [vmem:[#allocation620_spill] sm:$0xff]  ;;  %v17623_v60 = vld [vmem:[#allocation617_spill] sm:$0xff] }
 0xb2b   :  { %9033 = vmatprep.subr.bf16.mxu0 %v9032_v9  ;;  %v8980_v27 = vpack.c.bf16 %v17620_v19, %v17619_v47  ;;  %v17622_v38 = vld [vmem:[#allocation628_spill] sm:$0xff]  ;;  %v17624_v48 = vld [vmem:[#allocation625_spill] sm:$0xff]  ;;  %v17625_v52 = vld [vmem:[#allocation619_spill] sm:$0xff] }
 0xb2c   :  { %v9044_v44 = vpack.c.bf16 %v17622_v38, %v17621_v34  ;;  %v8982_v49 = vpack.c.bf16 %v17624_v48, %v17623_v60  ;;  %v17626_v55 = vld [vmem:[#allocation627_spill] sm:$0xff]  ;;  %v17627_v63 = vld [vmem:[#allocation634_spill] sm:$0xff]  ;;  %v17629_v4 = vld [vmem:[#allocation636_spill] sm:$0xff] }
 0xb2d   :  { %8971 = vmatpush1.bf16.msra.mxu1 %v8970_v17  ;;  %v9046_v58 = vpack.c.bf16 %v17626_v55, %v17625_v52  ;;  %v17628_v12 = vld [vmem:[#allocation642_spill] sm:$0xff]  ;;  %v17630_v39 = vld [vmem:[#allocation644_spill] sm:$0xff]  ;;  %v17631_v0 = vld [vmem:[#allocation633_spill] sm:$0xff] }
 0xb2e   :  { %9035 = vmatpush1.bf16.msra.mxu0 %v9034_v32  ;;  %8973 = vmatprep.subr.bf16.mxu1 %v8972_v30  ;;  %v8984_v15 = vpack.c.bf16 %v17628_v12, %v17627_v63  ;;  %v9048_v1 = vpack.c.bf16 %v17630_v39, %v17629_v4  ;;  %v17632_v36 = vld [vmem:[#allocation641_spill] sm:$0xff]  ;;  %v17633_v2 = vld [vmem:[#allocation635_spill] sm:$0xff]  ;;  %v17635_v16 = vld [vmem:[#allocation650_spill] sm:$0xff] }
 0xb2f   :  { %9037 = vmatprep.subr.bf16.mxu0 %v9036_v46  ;;  %v8986_v8 = vpack.c.bf16 %v17632_v36, %v17631_v0  ;;  %v17634_v9 = vld [vmem:[#allocation643_spill] sm:$0xff]  ;;  %v17636_v17 = vld [vmem:[#allocation658_spill] sm:$0xff]  ;;  %v17637_v25 = vld [vmem:[#allocation652_spill] sm:$0xff] }
 0xb30   :  { %v9050_v11 = vpack.c.bf16 %v17634_v9, %v17633_v2  ;;  %v8988_v18 = vpack.c.bf16 %v17636_v17, %v17635_v16  ;;  %v17638_v32 = vld [vmem:[#allocation660_spill] sm:$0xff]  ;;  %v17639_v5 = vld [vmem:[#allocation649_spill] sm:$0xff]  ;;  %v17641_v45 = vld [vmem:[#allocation651_spill] sm:$0xff] }
 0xb31   :  { %8975 = vmatpush1.bf16.msra.mxu1 %v8974_v14  ;;  %v9052_v35 = vpack.c.bf16 %v17638_v32, %v17637_v25  ;;  %v17640_v30 = vld [vmem:[#allocation657_spill] sm:$0xff]  ;;  %v17642_v46 = vld [vmem:[#allocation659_spill] sm:$0xff]  ;;  %v17643_v61 = vld [vmem:[#allocation666_spill] sm:$0xff] }
 0xb32   :  { %9039 = vmatpush1.bf16.msra.mxu0 %v9038_v51  ;;  %8977 = vmatprep.subr.bf16.mxu1 %v8976_v54  ;;  %v8990_v42 = vpack.c.bf16 %v17640_v30, %v17639_v5  ;;  %v9054_v41 = vpack.c.bf16 %v17642_v46, %v17641_v45  ;;  %v17644_v14 = vld [vmem:[#allocation674_spill] sm:$0xff]  ;;  %v17645_v50 = vld [vmem:[#allocation668_spill] sm:$0xff]  ;;  %v17647_v31 = vld [vmem:[#allocation665_spill] sm:$0xff] }
 0xb33   :  { %9041 = vmatprep.subr.bf16.mxu0 %v9040_v3  ;;  %v8992_v28 = vpack.c.bf16 %v17644_v14, %v17643_v61  ;;  %v17646_v51 = vld [vmem:[#allocation676_spill] sm:$0xff]  ;;  %v17648_v54 = vld [vmem:[#allocation673_spill] sm:$0xff]  ;;  %v17649_v56 = vld [vmem:[#allocation667_spill] sm:$0xff] }
 0xb34   :  { %v9056_v53 = vpack.c.bf16 %v17646_v51, %v17645_v50  ;;  %v8994_v37 = vpack.c.bf16 %v17648_v54, %v17647_v31  ;;  %v17650_v3 = vld [vmem:[#allocation675_spill] sm:$0xff]  ;;  %v17651_v24 = vld [vmem:[#allocation682_spill] sm:$0xff]  ;;  %v17653_v23 = vld [vmem:[#allocation684_spill] sm:$0xff] }
 0xb35   :  { %8979 = vmatpush1.bf16.msra.mxu1 %v8978_v59  ;;  %v9058_v57 = vpack.c.bf16 %v17650_v3, %v17649_v56  ;;  %v17652_v59 = vld [vmem:[#allocation690_spill] sm:$0xff]  ;;  %v17655_v19 = vld [vmem:[#allocation681_spill] sm:$0xff]  ;;  %v17657_v38 = vld [vmem:[#allocation683_spill] sm:$0xff] }
 0xb36   :  { %9043 = vmatpush1.bf16.msra.mxu0 %v9042_v6  ;;  %8981 = vmatprep.subr.bf16.mxu1 %v8980_v27  ;;  %v8996_v21 = vpack.c.bf16 %v17652_v59, %v17651_v24  ;;  %v17654_v6 = vld [vmem:[#allocation692_spill] sm:$0xff]  ;;  %v17656_v27 = vld [vmem:[#allocation689_spill] sm:$0xff]  ;;  %v17659_v48 = vld [vmem:[#allocation698_spill] sm:$0xff] }
 0xb37   :  { %9045 = vmatprep.subr.bf16.mxu0 %v9044_v44  ;;  %v9060_v47 = vpack.c.bf16 %v17654_v6, %v17653_v23  ;;  %v8998_v34 = vpack.c.bf16 %v17656_v27, %v17655_v19  ;;  %v17658_v44 = vld [vmem:[#allocation691_spill] sm:$0xff]  ;;  %v17661_v55 = vld [vmem:[#allocation700_spill] sm:$0xff]  ;;  %v17663_v12 = vld [vmem:[#allocation697_spill] sm:$0xff] }
 0xb38   :  { %v9062_v60 = vpack.c.bf16 %v17658_v44, %v17657_v38  ;;  %v17665_v39 = vld [vmem:[#allocation699_spill] sm:$0xff]  ;;  %v17667_v36 = vld [vmem:[#allocation714_spill] sm:$0xff]  ;;  %v17669_v9 = vld [vmem:[#allocation716_spill] sm:$0xff] }
 0xb39   :  { %8983 = vmatpush1.bf16.msra.mxu1 %v8982_v49  ;;  %v17660_v49 = vld [vmem:[#allocation706_spill] sm:$0xff]  ;;  %v17671_v17 = vld [vmem:[#allocation713_spill] sm:$0xff]  ;;  %v17673_v32 = vld [vmem:[#allocation715_spill] sm:$0xff] }
 0xb3a   :  { %9047 = vmatpush1.bf16.msra.mxu0 %v9046_v58  ;;  %8985 = vmatprep.subr.bf16.mxu1 %v8984_v15  ;;  %v9000_v52 = vpack.c.bf16 %v17660_v49, %v17659_v48  ;;  %v17662_v58 = vld [vmem:[#allocation708_spill] sm:$0xff]  ;;  %v17664_v15 = vld [vmem:[#allocation705_spill] sm:$0xff]  ;;  %v17675_v30 = vld [vmem:[#allocation478_spill] sm:$0xff] }
 0xb3b   :  { %9049 = vmatprep.subr.bf16.mxu0 %v9048_v1  ;;  %v9064_v63 = vpack.c.bf16 %v17662_v58, %v17661_v55  ;;  %v9002_v4 = vpack.c.bf16 %v17664_v15, %v17663_v12  ;;  %v17666_v1 = vld [vmem:[#allocation707_spill] sm:$0xff]  ;;  %v17677_v46 = vld [vmem:[#allocation480_spill] sm:$0xff]  ;;  %v17679_v14 = vld [vmem:[#allocation477_spill] sm:$0xff] }
 0xb3c   :  { %v9066_v0 = vpack.c.bf16 %v17666_v1, %v17665_v39  ;;  %v17681_v51 = vld [vmem:[#allocation494_spill] sm:$0xff]  ;;  %v17683_v54 = vld [vmem:[#allocation479_spill] sm:$0xff]  ;;  %v17685_v3 = vld [vmem:[#allocation493_spill] sm:$0xff] }
 0xb3d   :  { %8987 = vmatpush1.bf16.msra.mxu1 %v8986_v8  ;;  %v17668_v8 = vld [vmem:[#allocation722_spill] sm:$0xff]  ;;  %v17689_v6 = vld [vmem:[#allocation496_spill] sm:$0xff]  ;;  %v17691_v27 = vld [vmem:[#allocation495_spill] sm:$0xff] }
 0xb3e   :  { %9051 = vmatpush1.bf16.msra.mxu0 %v9050_v11  ;;  %8989 = vmatprep.subr.bf16.mxu1 %v8988_v18  ;;  %v9004_v2 = vpack.c.bf16 %v17668_v8, %v17667_v36  ;;  %v17670_v11 = vld [vmem:[#allocation724_spill] sm:$0xff]  ;;  %v17672_v18 = vld [vmem:[#allocation721_spill] sm:$0xff]  ;;  %v17687_v59 = vld [vmem:[#allocation510_spill] sm:$0xff] }
 0xb3f   :  { %9053 = vmatprep.subr.bf16.mxu0 %v9052_v35  ;;  %v9068_v16 = vpack.c.bf16 %v17670_v11, %v17669_v9  ;;  %v9006_v25 = vpack.c.bf16 %v17672_v18, %v17671_v17  ;;  %v17674_v35 = vld [vmem:[#allocation723_spill] sm:$0xff]  ;;  %v17693_v44 = vld [vmem:[#allocation512_spill] sm:$0xff]  ;;  %v17695_v49 = vld [vmem:[#allocation509_spill] sm:$0xff] }
 0xb40   :  { %v9070_v5 = vpack.c.bf16 %v17674_v35, %v17673_v32  ;;  %v17697_v58 = vld [vmem:[#allocation526_spill] sm:$0xff]  ;;  %v17699_v15 = vld [vmem:[#allocation511_spill] sm:$0xff]  ;;  %v17701_v1 = vld [vmem:[#allocation528_spill] sm:$0xff] }
 0xb41   :  { %8991 = vmatpush1.bf16.msra.mxu1 %v8990_v42  ;;  %v17676_v42 = vld [vmem:[#allocation486_spill] sm:$0xff]  ;;  %v17703_v8 = vld [vmem:[#allocation525_spill] sm:$0xff]  ;;  %v17707_v18 = vld [vmem:[#allocation527_spill] sm:$0xff] }
 0xb42   :  { %9055 = vmatpush1.bf16.msra.mxu0 %v9054_v41  ;;  %8993 = vmatprep.subr.bf16.mxu1 %v8992_v28  ;;  %v9072_v45 = vpack.c.bf16 %v17676_v42, %v17675_v30  ;;  %v17678_v41 = vld [vmem:[#allocation488_spill] sm:$0xff]  ;;  %v17680_v28 = vld [vmem:[#allocation485_spill] sm:$0xff]  ;;  %v17705_v11 = vld [vmem:[#allocation542_spill] sm:$0xff] }
 0xb43   :  { %9057 = vmatprep.subr.bf16.mxu0 %v9056_v53  ;;  %v9136_v61 = vpack.c.bf16 %v17678_v41, %v17677_v46  ;;  %v9074_v50 = vpack.c.bf16 %v17680_v28, %v17679_v14  ;;  %v17682_v53 = vld [vmem:[#allocation502_spill] sm:$0xff]  ;;  %v17709_v35 = vld [vmem:[#allocation544_spill] sm:$0xff]  ;;  %v17711_v42 = vld [vmem:[#allocation541_spill] sm:$0xff] }
 0xb44   :  { %v9076_v31 = vpack.c.bf16 %v17682_v53, %v17681_v51  ;;  %v17713_v41 = vld [vmem:[#allocation558_spill] sm:$0xff]  ;;  %v17715_v28 = vld [vmem:[#allocation543_spill] sm:$0xff]  ;;  %v17717_v53 = vld [vmem:[#allocation560_spill] sm:$0xff] }
 0xb45   :  { %8995 = vmatpush1.bf16.msra.mxu1 %v8994_v37  ;;  %v17684_v37 = vld [vmem:[#allocation487_spill] sm:$0xff] }
 0xb46   :  { %9059 = vmatpush1.bf16.msra.mxu0 %v9058_v57  ;;  %8997 = vmatprep.subr.bf16.mxu1 %v8996_v21  ;;  %v9138_v56 = vpack.c.bf16 %v17684_v37, %v17683_v54  ;;  %v17686_v57 = vld [vmem:[#allocation501_spill] sm:$0xff]  ;;  %v17688_v21 = vld [vmem:[#allocation518_spill] sm:$0xff] }
 0xb47   :  { %9061 = vmatprep.subr.bf16.mxu0 %v9060_v47  ;;  %v9078_v24 = vpack.c.bf16 %v17686_v57, %v17685_v3  ;;  %v9080_v23 = vpack.c.bf16 %v17688_v21, %v17687_v59  ;;  %v17690_v47 = vld [vmem:[#allocation504_spill] sm:$0xff]  ;;  %v17719_v37 = vld [vmem:[#allocation557_spill] sm:$0xff]  ;;  %v17721_v57 = vld [vmem:[#allocation574_spill] sm:$0xff] }
 0xb48   :  { %v9140_v19 = vpack.c.bf16 %v17690_v47, %v17689_v6  ;;  %v17723_v21 = vld [vmem:[#allocation559_spill] sm:$0xff]  ;;  %v17725_v47 = vld [vmem:[#allocation576_spill] sm:$0xff] }
 0xb49   :  { %8999 = vmatpush1.bf16.msra.mxu1 %v8998_v34  ;;  %v17692_v34 = vld [vmem:[#allocation503_spill] sm:$0xff] }
 0xb4a   :  { %9063 = vmatpush1.bf16.msra.mxu0 %v9062_v60  ;;  %9001 = vmatprep.subr.bf16.mxu1 %v9000_v52  ;;  %v9142_v38 = vpack.c.bf16 %v17692_v34, %v17691_v27  ;;  %v17694_v60 = vld [vmem:[#allocation520_spill] sm:$0xff]  ;;  %v17696_v52 = vld [vmem:[#allocation517_spill] sm:$0xff] }
 0xb4b   :  { %9065 = vmatprep.subr.bf16.mxu0 %v9064_v63  ;;  %v9144_v48 = vpack.c.bf16 %v17694_v60, %v17693_v44  ;;  %v9082_v55 = vpack.c.bf16 %v17696_v52, %v17695_v49  ;;  %v17698_v63 = vld [vmem:[#allocation534_spill] sm:$0xff]  ;;  %v17727_v27 = vld [vmem:[#allocation573_spill] sm:$0xff]  ;;  %v17731_v49 = vld [vmem:[#allocation575_spill] sm:$0xff] }
 0xb4c   :  { %v9084_v12 = vpack.c.bf16 %v17698_v63, %v17697_v58  ;;  %v17728_v34 = vld [vmem:[#allocation581_spill] sm:$0xff]  ;;  %v17729_v44 = vld [vmem:[#allocation590_spill] sm:$0xff]  ;;  %v17732_v52 = vld [vmem:[#allocation583_spill] sm:$0xff] }
 0xb4d   :  { %9003 = vmatpush1.bf16.msra.mxu1 %v9002_v4  ;;  %v17700_v4 = vld [vmem:[#allocation519_spill] sm:$0xff]  ;;  %v17730_v60 = vld [vmem:[#allocation598_spill] sm:$0xff]  ;;  %v17733_v58 = vld [vmem:[#allocation592_spill] sm:$0xff] }
 0xb4e   :  { %9067 = vmatpush1.bf16.msra.mxu0 %v9066_v0  ;;  %9005 = vmatprep.subr.bf16.mxu1 %v9004_v2  ;;  %v9146_v39 = vpack.c.bf16 %v17700_v4, %v17699_v15  ;;  %v17702_v0 = vld [vmem:[#allocation536_spill] sm:$0xff]  ;;  %v17704_v2 = vld [vmem:[#allocation533_spill] sm:$0xff] }
 0xb4f   :  { %9069 = vmatprep.subr.bf16.mxu0 %v9068_v16  ;;  %v9148_v36 = vpack.c.bf16 %v17702_v0, %v17701_v1  ;;  %v9086_v9 = vpack.c.bf16 %v17704_v2, %v17703_v8  ;;  %v17706_v16 = vld [vmem:[#allocation550_spill] sm:$0xff]  ;;  %v17734_v63 = vld [vmem:[#allocation600_spill] sm:$0xff]  ;;  %v17735_v15 = vld [vmem:[#allocation589_spill] sm:$0xff] }
 0xb50   :  { %v9088_v17 = vpack.c.bf16 %v17706_v16, %v17705_v11  ;;  %v17736_v4 = vld [vmem:[#allocation597_spill] sm:$0xff]  ;;  %v17737_v1 = vld [vmem:[#allocation606_spill] sm:$0xff]  ;;  %v17739_v8 = vld [vmem:[#allocation591_spill] sm:$0xff] }
 0xb51   :  { %9007 = vmatpush1.bf16.msra.mxu1 %v9006_v25  ;;  %v17708_v25 = vld [vmem:[#allocation535_spill] sm:$0xff]  ;;  %v17738_v0 = vld [vmem:[#allocation614_spill] sm:$0xff]  ;;  %v17741_v11 = vld [vmem:[#allocation608_spill] sm:$0xff] }
 0xb52   :  { %9071 = vmatpush1.bf16.msra.mxu0 %v9070_v5  ;;  %9073 = vmatprep.subr.bf16.mxu1 %v9072_v45  ;;  %v9150_v32 = vpack.c.bf16 %v17708_v25, %v17707_v18  ;;  %v17710_v5 = vld [vmem:[#allocation552_spill] sm:$0xff]  ;;  %v17712_v45 = vld [vmem:[#allocation549_spill] sm:$0xff]  ;;  %v17740_v2 = vld [vmem:[#allocation599_spill] sm:$0xff] }
 0xb53   :  { %9137 = vmatprep.subr.bf16.mxu0 %v9136_v61  ;;  %v9152_v30 = vpack.c.bf16 %v17710_v5, %v17709_v35  ;;  %v9090_v46 = vpack.c.bf16 %v17712_v45, %v17711_v42  ;;  %v17714_v61 = vld [vmem:[#allocation566_spill] sm:$0xff]  ;;  %v17742_v16 = vld [vmem:[#allocation616_spill] sm:$0xff]  ;;  %v17743_v18 = vld [vmem:[#allocation605_spill] sm:$0xff] }
 0xb54   :  { %5154 = vmatmul.mubr.f32.vlgmr.msra.gmra.mrb[32].mxu1 %v15106_v62  ;;  %v9092_v14 = vpack.c.bf16 %v17714_v61, %v17713_v41  ;;  %v17744_v25 = vld [vmem:[#allocation613_spill] sm:$0xff]  ;;  %v17745_v35 = vld [vmem:[#allocation622_spill] sm:$0xff]  ;;  %v17747_v42 = vld [vmem:[#allocation607_spill] sm:$0xff] }
 0xb55   :  { %5243 = vmatmul.mubr.f32.vlgmr.msra.gmra.mrb[26].mxu0 %v15106_v62  ;;  %9075 = vmatpush1.bf16.msra.mxu1 %v9074_v50  ;;  %v17716_v50 = vld [vmem:[#allocation551_spill] sm:$0xff]  ;;  %v17746_v5 = vld [vmem:[#allocation630_spill] sm:$0xff]  ;;  %v17749_v41 = vld [vmem:[#allocation624_spill] sm:$0xff] }
 0xb56   :  { %5159 = vmatprep.mubr.f32.mxu1 %v15116_v40  ;;  %5248 = vmatprep.mubr.f32.mxu0 %v15116_v40  ;;  %v9154_v51 = vpack.c.bf16 %v17716_v50, %v17715_v28  ;;  %v17748_v45 = vld [vmem:[#allocation615_spill] sm:$0xff]  ;;  %v17750_v61 = vld [vmem:[#allocation632_spill] sm:$0xff]  ;;  %v17751_v28 = vld [vmem:[#allocation621_spill] sm:$0xff] }
 0xb57   :  { %9077 = vmatprep.subr.bf16.mxu1 %v9076_v31  ;;  %9139 = vmatpush1.bf16.msra.mxu0 %v9138_v56  ;;  %v17718_v31 = vld [vmem:[#allocation568_spill] sm:$0xff]  ;;  %v17720_v56 = vld [vmem:[#allocation565_spill] sm:$0xff] }
 0xb58   :  { %5160 = vmatmul.mubr.f32.gmra.mrb[34].mxu1 %v15108_v7  ;;  %9141 = vmatprep.subr.bf16.mxu0 %v9140_v19  ;;  %v9156_v54 = vpack.c.bf16 %v17718_v31, %v17717_v53  ;;  %v9094_v3 = vpack.c.bf16 %v17720_v56, %v17719_v37  ;;  %v17726_v19 = vld [vmem:[#allocation584_spill] sm:$0xff]  ;;  %v17752_v50 = vld [vmem:[#allocation629_spill] sm:$0xff]  ;;  %v17753_v53 = vld [vmem:[#allocation638_spill] sm:$0xff] }
 0xb59   :  { %5249 = vmatmul.mubr.f32.gmra.mrb[28].mxu0 %v15108_v7  ;;  %9079 = vmatpush1.bf16.msra.mxu1 %v9078_v24  ;;  %v17722_v24 = vld [vmem:[#allocation582_spill] sm:$0xff]  ;;  %v17755_v37 = vld [vmem:[#allocation623_spill] sm:$0xff] }
 0xb5a   :  { %5254 = vmatprep.mubr.f32.mxu0 %v15118_v43  ;;  %9081 = vmatprep.subr.bf16.mxu1 %v9080_v23  ;;  %v9096_v59 = vpack.c.bf16 %v17722_v24, %v17721_v57  ;;  %v17724_v23 = vld [vmem:[#allocation567_spill] sm:$0xff]  ;;  %v17754_v31 = vld [vmem:[#allocation646_spill] sm:$0xff]  ;;  %v17757_v57 = vld [vmem:[#allocation640_spill] sm:$0xff] }
 0xb5b   :  { %9143 = vmatpush1.bf16.msra.mxu0 %v9142_v38  ;;  %5165 = vmatprep.mubr.f32.mxu1 %v15118_v43  ;;  %v9158_v6 = vpack.c.bf16 %v17724_v23, %v17723_v21  ;;  %v9098_v38 = vpack.c.bf16 %v17728_v34, %v17727_v27  ;;  %v17756_v56 = vld [vmem:[#allocation631_spill] sm:$0xff]  ;;  %v17758_v24 = vld [vmem:[#allocation648_spill] sm:$0xff]  ;;  %v17759_v21 = vld [vmem:[#allocation637_spill] sm:$0xff] }
 0xb5c   :  { %9145 = vmatprep.subr.bf16.mxu0 %v9144_v48  ;;  %5166 = vmatmul.mubr.f32.gmra.mrb[36].mxu1 %v15110_v10  ;;  %v9100_v48 = vpack.c.bf16 %v17730_v60, %v17729_v44  ;;  %v17760_v23 = vld [vmem:[#allocation645_spill] sm:$0xff]  ;;  %v17763_v27 = vld [vmem:[#allocation639_spill] sm:$0xff]  ;;  %v17765_v44 = vld [vmem:[#allocation656_spill] sm:$0xff] }
 0xb5d   :  { %5255 = vmatmul.mubr.f32.gmra.mrb[30].mxu0 %v15110_v10  ;;  %9083 = vmatpush1.bf16.msra.mxu1 %v9082_v55  ;;  %v9162_v55 = vpack.c.bf16 %v17732_v52, %v17731_v49  ;;  %v17764_v34 = vld [vmem:[#allocation647_spill] sm:$0xff]  ;;  %v17766_v60 = vld [vmem:[#allocation664_spill] sm:$0xff]  ;;  %v17767_v49 = vld [vmem:[#allocation653_spill] sm:$0xff] }
 0xb5e   :  { %5260 = vmatprep.mubr.f32.mxu0 %v15120_v29  ;;  %9085 = vmatprep.subr.bf16.mxu1 %v9084_v12  ;;  %v9164_v12 = vpack.c.bf16 %v17734_v63, %v17733_v58  ;;  %v17768_v52 = vld [vmem:[#allocation661_spill] sm:$0xff]  ;;  %v17769_v58 = vld [vmem:[#allocation670_spill] sm:$0xff] }
 0xb5f   :  { %9147 = vmatpush1.bf16.msra.mxu0 %v9146_v39  ;;  %5171 = vmatprep.mubr.f32.mxu1 %v15120_v29  ;;  %v9102_v39 = vpack.c.bf16 %v17736_v4, %v17735_v15  ;;  %v17770_v63 = vld [vmem:[#allocation678_spill] sm:$0xff]  ;;  %v17771_v15 = vld [vmem:[#allocation655_spill] sm:$0xff] }
 0xb60   :  { %9149 = vmatprep.subr.bf16.mxu0 %v9148_v36  ;;  %5172 = vmatmul.mubr.f32.gmra.mrb[38].mxu1 %v15112_v33  ;;  %v9104_v36 = vpack.c.bf16 %v17738_v0, %v17737_v1  ;;  %v17772_v4 = vld [vmem:[#allocation663_spill] sm:$0xff]  ;;  %v17773_v1 = vld [vmem:[#allocation672_spill] sm:$0xff] }
 0xb61   :  { %5261 = vmatmul.mubr.f32.gmra.mrb[32].mxu0 %v15112_v33  ;;  %9087 = vmatpush1.bf16.msra.mxu1 %v9086_v9  ;;  %v9166_v9 = vpack.c.bf16 %v17740_v2, %v17739_v8  ;;  %v17774_v0 = vld [vmem:[#allocation680_spill] sm:$0xff]  ;;  %v17775_v8 = vld [vmem:[#allocation669_spill] sm:$0xff] }
 0xb62   :  { %5420 = vmatprep.mubr.f32.mxu0 %v15114_v13  ;;  %9089 = vmatprep.subr.bf16.mxu1 %v9088_v17  ;;  %v9168_v17 = vpack.c.bf16 %v17742_v16, %v17741_v11  ;;  %v17776_v2 = vld [vmem:[#allocation677_spill] sm:$0xff]  ;;  %v17777_v11 = vld [vmem:[#allocation686_spill] sm:$0xff] }
 0xb63   :  { %9151 = vmatpush1.bf16.msra.mxu0 %v9150_v32  ;;  %5331 = vmatprep.mubr.f32.mxu1 %v15114_v13  ;;  %v9160_v13 = vpack.c.bf16 %v17726_v19, %v17725_v47  ;;  %v9106_v32 = vpack.c.bf16 %v17744_v25, %v17743_v18  ;;  %v17761_v47 = vld [vmem:[#allocation654_spill] sm:$0xff]  ;;  %v17779_v18 = vld [vmem:[#allocation671_spill] sm:$0xff] }
 0xb64   :  { %9153 = vmatprep.subr.bf16.mxu0 %v9152_v30  ;;  %v9108_v30 = vpack.c.bf16 %v17746_v5, %v17745_v35  ;;  %v17762_v19 = vld [vmem:[#allocation662_spill] sm:$0xff]  ;;  %v17780_v25 = vld [vmem:[#allocation679_spill] sm:$0xff]  ;;  %v17781_v35 = vld [vmem:[#allocation688_spill] sm:$0xff] }
 0xb65   :  { %9091 = vmatpush1.bf16.msra.mxu1 %v9090_v46  ;;  %v9170_v46 = vpack.c.bf16 %v17748_v45, %v17747_v42  ;;  %v17778_v16 = vld [vmem:[#allocation694_spill] sm:$0xff]  ;;  %v17782_v5 = vld [vmem:[#allocation696_spill] sm:$0xff]  ;;  %v17783_v42 = vld [vmem:[#allocation685_spill] sm:$0xff] }
 0xb66   :  { %9093 = vmatprep.subr.bf16.mxu1 %v9092_v14  ;;  %v9172_v14 = vpack.c.bf16 %v17750_v61, %v17749_v41  ;;  %v17784_v45 = vld [vmem:[#allocation693_spill] sm:$0xff]  ;;  %v17785_v41 = vld [vmem:[#allocation702_spill] sm:$0xff] }
 0xb67   :  { %9155 = vmatpush1.bf16.msra.mxu0 %v9154_v51  ;;  %v9110_v51 = vpack.c.bf16 %v17752_v50, %v17751_v28  ;;  %v17786_v61 = vld [vmem:[#allocation710_spill] sm:$0xff]  ;;  %v17787_v28 = vld [vmem:[#allocation687_spill] sm:$0xff] }
 0xb68   :  { %9157 = vmatprep.subr.bf16.mxu0 %v9156_v54  ;;  %v9112_v54 = vpack.c.bf16 %v17754_v31, %v17753_v53  ;;  %v17788_v50 = vld [vmem:[#allocation695_spill] sm:$0xff]  ;;  %v17789_v53 = vld [vmem:[#allocation704_spill] sm:$0xff] }
 0xb69   :  { %9095 = vmatpush1.bf16.msra.mxu1 %v9094_v3  ;;  %v9174_v3 = vpack.c.bf16 %v17756_v56, %v17755_v37  ;;  %v17790_v31 = vld [vmem:[#allocation712_spill] sm:$0xff]  ;;  %v17791_v37 = vld [vmem:[#allocation701_spill] sm:$0xff] }
 0xb6a   :  { %9097 = vmatprep.subr.bf16.mxu1 %v9096_v59  ;;  %v9176_v59 = vpack.c.bf16 %v17758_v24, %v17757_v57  ;;  %v17792_v56 = vld [vmem:[#allocation709_spill] sm:$0xff]  ;;  %v17793_v57 = vld [vmem:[#allocation718_spill] sm:$0xff] }
 0xb6b   :  { %9159 = vmatpush1.bf16.msra.mxu0 %v9158_v6  ;;  %v9114_v6 = vpack.c.bf16 %v17760_v23, %v17759_v21  ;;  %v17794_v24 = vld [vmem:[#allocation726_spill] sm:$0xff]  ;;  %v17795_v21 = vld [vmem:[#allocation703_spill] sm:$0xff] }
 0xb6c   :  { %9161 = vmatprep.subr.bf16.mxu0 %v9160_v13  ;;  %v9116_v13 = vpack.c.bf16 %v17762_v19, %v17761_v47  ;;  %v17796_v23 = vld [vmem:[#allocation711_spill] sm:$0xff]  ;;  %v17797_v47 = vld [vmem:[#allocation720_spill] sm:$0xff] }
 0xb6d   :  { %9099 = vmatpush1.bf16.msra.mxu1 %v9098_v38  ;;  %v9178_v38 = vpack.c.bf16 %v17764_v34, %v17763_v27  ;;  %v17798_v19 = vld [vmem:[#allocation728_spill] sm:$0xff]  ;;  %v17799_v27 = vld [vmem:[#allocation717_spill] sm:$0xff] }
 0xb6e   :  { %9101 = vmatprep.subr.bf16.mxu1 %v9100_v48  ;;  %v9180_v48 = vpack.c.bf16 %v17766_v60, %v17765_v44  ;;  %v17800_v34 = vld [vmem:[#allocation725_spill] sm:$0xff]  ;;  %v17801_v44 = vld [vmem:[#allocation719_spill] sm:$0xff] }
 0xb6f   :  { %9163 = vmatpush1.bf16.msra.mxu0 %v9162_v55  ;;  %v9118_v55 = vpack.c.bf16 %v17768_v52, %v17767_v49  ;;  %v17802_v60 = vld [vmem:[#allocation727_spill] sm:$0xff] }
 0xb70   :  { %9165 = vmatprep.subr.bf16.mxu0 %v9164_v12  ;;  %v9120_v12 = vpack.c.bf16 %v17770_v63, %v17769_v58 }
 0xb71   :  { %9103 = vmatpush1.bf16.msra.mxu1 %v9102_v39  ;;  %v9182_v39 = vpack.c.bf16 %v17772_v4, %v17771_v15 }
 0xb72   :  { %9105 = vmatprep.subr.bf16.mxu1 %v9104_v36  ;;  %v9184_v36 = vpack.c.bf16 %v17774_v0, %v17773_v1 }
 0xb73   :  { %9167 = vmatpush1.bf16.msra.mxu0 %v9166_v9  ;;  %v9122_v9 = vpack.c.bf16 %v17776_v2, %v17775_v8 }
 0xb74   :  { %9169 = vmatprep.subr.bf16.mxu0 %v9168_v17  ;;  %v9124_v17 = vpack.c.bf16 %v17778_v16, %v17777_v11 }
 0xb75   :  { %9107 = vmatpush1.bf16.msra.mxu1 %v9106_v32  ;;  %v9186_v32 = vpack.c.bf16 %v17780_v25, %v17779_v18  ;;  %v7772_v18 = vld [vmem:[%s16238_s5 + $0x48] sm:$0xff]  ;;  %v7773_v25 = vld [vmem:[%s16238_s5 + $0x50] sm:$0xff] }
 0xb76   :  { %9109 = vmatprep.subr.bf16.mxu1 %v9108_v30  ;;  %v9188_v30 = vpack.c.bf16 %v17782_v5, %v17781_v35  ;;  %v7775_v35 = vld [vmem:[%s16238_s5 + $0x60] sm:$0xff]  ;;  %v7776_v5 = vld [vmem:[%s16238_s5 + $0x68] sm:$0xff] }
 0xb77   :  { %9171 = vmatpush1.bf16.msra.mxu0 %v9170_v46  ;;  %v9126_v46 = vpack.c.bf16 %v17784_v45, %v17783_v42  ;;  %v7778_v42 = vld [vmem:[%s16238_s5 + $0x78] sm:$0xff]  ;;  %v5445_v45 = vld [vmem:[%s16238_s5] sm:$0xff] }
 0xb78   :  { %9173 = vmatprep.subr.bf16.mxu0 %v9172_v14  ;;  %v9128_v14 = vpack.c.bf16 %v17786_v61, %v17785_v41  ;;  %v5447_v41 = vld [vmem:[%s16238_s5 + $0x10] sm:$0xff]  ;;  %v5448_v61 = vld [vmem:[%s16238_s5 + $0x18] sm:$0xff] }
 0xb79   :  { %9111 = vmatpush1.bf16.msra.mxu1 %v9110_v51  ;;  %v9190_v51 = vpack.c.bf16 %v17788_v50, %v17787_v28  ;;  %v5449_v50 = vld [vmem:[%s16238_s5 + $0x20] sm:$0xff] }
 0xb7a   :  { %9113 = vmatprep.subr.bf16.mxu1 %v9112_v54  ;;  %v9192_v54 = vpack.c.bf16 %v17790_v31, %v17789_v53 }
 0xb7b   :  { %9175 = vmatpush1.bf16.msra.mxu0 %v9174_v3  ;;  %v9130_v3 = vpack.c.bf16 %v17792_v56, %v17791_v37  ;;  %v5450_v56 = vld [vmem:[%s16238_s5 + $0x28] sm:$0xff] }
 0xb7c   :  { %9177 = vmatprep.subr.bf16.mxu0 %v9176_v59  ;;  %v9132_v59 = vpack.c.bf16 %v17794_v24, %v17793_v57 }
 0xb7d   :  { %9115 = vmatpush1.bf16.msra.mxu1 %v9114_v6  ;;  %v9194_v6 = vpack.c.bf16 %v17796_v23, %v17795_v21 }
 0xb7e   :  { %9117 = vmatprep.subr.bf16.mxu1 %v9116_v13  ;;  %v9196_v13 = vpack.c.bf16 %v17798_v19, %v17797_v47  ;;  %v5451_v47 = vld [vmem:[%s16238_s5 + $0x30] sm:$0xff] }
 0xb7f   :  { %9179 = vmatpush1.bf16.msra.mxu0 %v9178_v38  ;;  %v9134_v38 = vpack.c.bf16 %v17800_v34, %v17799_v27 }
 0xb80   :  { %9181 = vmatprep.subr.bf16.mxu0 %v9180_v48  ;;  %v9198_v48 = vpack.c.bf16 %v17802_v60, %v17801_v44  ;;  %v5452_v44 = vld [vmem:[%s16238_s5 + $0x38] sm:$0xff] }
 0xb81   :  { %9119 = vmatpush1.bf16.msra.mxu1 %v9118_v55 }
 0xb82   :  { %9121 = vmatprep.subr.bf16.mxu1 %v9120_v12 }
 0xb83   :  { %9183 = vmatpush1.bf16.msra.mxu0 %v9182_v39 }
 0xb84   :  { %9185 = vmatprep.subr.bf16.mxu0 %v9184_v36 }
 0xb85   :  { %9123 = vmatpush1.bf16.msra.mxu1 %v9122_v9 }
 0xb86   :  { %9125 = vmatprep.subr.bf16.mxu1 %v9124_v17  ;;  %v7771_v17 = vld [vmem:[%s16238_s5 + $0x40] sm:$0xff] }
 0xb87   :  { %9187 = vmatpush1.bf16.msra.mxu0 %v9186_v32  ;;  %v7774_v32 = vld [vmem:[%s16238_s5 + $0x58] sm:$0xff] }
 0xb88   :  { %9189 = vmatprep.subr.bf16.mxu0 %v9188_v30  ;;  %v7777_v30 = vld [vmem:[%s16238_s5 + $0x70] sm:$0xff] }
 0xb89   :  { %9127 = vmatpush1.bf16.msra.mxu1 %v9126_v46  ;;  %v5446_v46 = vld [vmem:[%s16238_s5 + $0x8] sm:$0xff] }
 0xb8a   :  { %9129 = vmatprep.subr.bf16.mxu1 %v9128_v14 }
 0xb8b   :  { %9191 = vmatpush1.bf16.msra.mxu0 %v9190_v51 }
 0xb8c   :  { %9193 = vmatprep.subr.bf16.mxu0 %v9192_v54 }
 0xb8d   :  { %9131 = vmatpush1.bf16.msra.mxu1 %v9130_v3 }
 0xb8e   :  { %9133 = vmatprep.subr.bf16.mxu1 %v9132_v59 }
 0xb8f   :  { %9195 = vmatpush1.bf16.msra.mxu0 %v9194_v6 }
 0xb90   :  { %9197 = vmatprep.subr.bf16.mxu0 %v9196_v13 }
 0xb91   :  { %9135 = vmatpush1.bf16.msra.mxu1 %v9134_v38 }
 0xb93   :  { %9199 = vmatpush1.bf16.msra.mxu0 %v9198_v48 }
 0xb94   :  { %5332 = vmatmul.mubr.f32.vlgmr.msra.gmra.mrb[40].mxu1 %v15106_v62 }
 0xb95   :  { %5337 = vmatprep.mubr.f32.mxu1 %v15116_v40 }
 0xb96   :  { %5421 = vmatmul.mubr.f32.vlgmr.msra.gmra.mrb[34].mxu0 %v15106_v62 }
 0xb97   :  { %5426 = vmatprep.mubr.f32.mxu0 %v15116_v40 }
 0xb98   :  { %5338 = vmatmul.mubr.f32.gmra.mrb[42].mxu1 %v15108_v7 }
 0xb99   :  { %5343 = vmatprep.mubr.f32.mxu1 %v15118_v43 }
 0xb9a   :  { %5427 = vmatmul.mubr.f32.gmra.mrb[36].mxu0 %v15108_v7 }
 0xb9b   :  { %5432 = vmatprep.mubr.f32.mxu0 %v15118_v43 }
 0xb9c   :  { %5344 = vmatmul.mubr.f32.gmra.mrb[44].mxu1 %v15110_v10 }
 0xb9d   :  { %5349 = vmatprep.mubr.f32.mxu1 %v15120_v29 }
 0xb9e   :  { %5433 = vmatmul.mubr.f32.gmra.mrb[38].mxu0 %v15110_v10 }
 0xb9f   :  { %5438 = vmatprep.mubr.f32.mxu0 %v15120_v29 }
 0xba0   :  { %5350 = vmatmul.mubr.f32.gmra.mrb[46].mxu1 %v15112_v33 }
 0xba1   :  { %5550 = vmatprep.mubr.f32.mxu1 %v9507_v26 }
 0xba2   :  { %5439 = vmatmul.mubr.f32.gmra.mrb[40].mxu0 %v15112_v33 }
 0xc27   :  { %v5155_v62 = vpop.f32.mrb[32].mxu1 }
 0xc28   :  { %v5244_v40 = vpop.f32.mrb[26].mxu0  ;;  %v5157_v49 = vpop.f32.mrb[33].mxu1 }
 0xc29   :  { %v5246_v7 = vpop.f32.mrb[27].mxu0 }
 0xc2b   :  { %v5161_v52 = vpop.f32.mrb[34].mxu1 }
 0xc2c   :  { %v5250_v43 = vpop.f32.mrb[28].mxu0  ;;  %v9210_v55 = vpack.c.bf16 %v5161_v52, %v5155_v62  ;;  %v5163_v58 = vpop.f32.mrb[35].mxu1  ;;  %v7796_v52 = vld [vmem:[%s16238_s5 + $0x88] sm:$0xff] }
 0xc2d   :  { %v9202_v63 = vpack.c.bf16 %v5250_v43, %v5244_v40  ;;  %v5252_v12 = vpop.f32.mrb[29].mxu0  ;;  %v9208_v15 = vpack.c.bf16 %v5163_v58, %v5157_v49  ;;  %v7797_v43 = vld [vmem:[%s16238_s5 + $0x90] sm:$0xff]  ;;  %v7799_v58 = vld [vmem:[%s16238_s5 + $0xa0] sm:$0xff] }
 0xc2e   :  { %v9200_v10 = vpack.c.bf16 %v5252_v12, %v5246_v7  ;;  %v7795_v7 = vld [vmem:[%s16238_s5 + $0x80] sm:$0xff]  ;;  %v7801_v12 = vld [vmem:[%s16238_s5 + $0xb0] sm:$0xff] }
 0xc2f   :  { %v5167_v39 = vpop.f32.mrb[36].mxu1 }
 0xc30   :  { %v5256_v4 = vpop.f32.mrb[30].mxu0  ;;  %9201 = vmatprep.subr.bf16.mxu1 %v9200_v10  ;;  %v5169_v1 = vpop.f32.mrb[37].mxu1  ;;  %v7811_v10 = vld [vmem:[%s16238_s5 + $0xc0] sm:$0xff] }
 0xc31   :  { %v5258_v29 = vpop.f32.mrb[31].mxu0  ;;  %9203 = vmatpush1.bf16.msra.mxu1 %v9202_v63  ;;  %v7800_v63 = vld [vmem:[%s16238_s5 + $0xa8] sm:$0xff] }
 0xc33   :  { %v5173_v2 = vpop.f32.mrb[38].mxu1 }
 0xc34   :  { %v5262_v0 = vpop.f32.mrb[32].mxu0  ;;  %v9214_v9 = vpack.c.bf16 %v5173_v2, %v5167_v39  ;;  %v5175_v11 = vpop.f32.mrb[39].mxu1  ;;  %v7814_v39 = vld [vmem:[%s16238_s5 + $0xd8] sm:$0xff]  ;;  %v5070_v2 = vld [vmem:[%s16243_s10 + $0x88] sm:$0xff] }
 0xc35   :  { %v9206_v33 = vpack.c.bf16 %v5262_v0, %v5256_v4  ;;  %v5264_v36 = vpop.f32.mrb[33].mxu0  ;;  %v9212_v16 = vpack.c.bf16 %v5175_v11, %v5169_v1  ;;  %v7812_v4 = vld [vmem:[%s16238_s5 + $0xc8] sm:$0xff]  ;;  %v7815_v1 = vld [vmem:[%s16238_s5 + $0xe0] sm:$0xff] }
 0xc36   :  { %v9204_v8 = vpack.c.bf16 %v5264_v36, %v5258_v29  ;;  %v7813_v29 = vld [vmem:[%s16238_s5 + $0xd0] sm:$0xff]  ;;  %v7816_v0 = vld [vmem:[%s16238_s5 + $0xe8] sm:$0xff]  ;;  %v7818_v36 = vld [vmem:[%s16238_s5 + $0xf8] sm:$0xff] }
 0xc37   :  { %v5053_v11 = vld [vmem:[%s16243_s10] sm:$0xff] }
 0xc38   :  { %9205 = vmatprep.subr.bf16.mxu1 %v9204_v8  ;;  %v5069_v8 = vld [vmem:[%s16243_s10 + $0x80] sm:$0xff] }
 0xc39   :  { %9207 = vmatpush1.bf16.msra.mxu1 %v9206_v33  ;;  %v7817_v33 = vld [vmem:[%s16238_s5 + $0xf0] sm:$0xff] }
 0xc3a   :  { %9209 = vmatprep.subr.bf16.mxu1 %v9208_v15  ;;  %v7802_v15 = vld [vmem:[%s16238_s5 + $0xb8] sm:$0xff] }
 0xc3c   :  { %7779 = vmatmul.mubr.msk.f32.vlgmr.msra.gmra.mrb[48].mxu1 %vm3193_vm3, %v7771_v17 }
 0xc3d   :  { %9211 = vmatpush1.bf16.msra.mxu1 %v9210_v55  ;;  %5556 = vmatprep.mubr.f32.mxu1 %v9507_v26  ;;  %v7798_v55 = vld [vmem:[%s16238_s5 + $0x98] sm:$0xff] }
 0xc3e   :  { %9213 = vmatprep.subr.bf16.mxu1 %v9212_v16  ;;  %v5054_v16 = vld [vmem:[%s16243_s10 + $0x8] sm:$0xff] }
 0xc3f   :  { %v15582_v17 = vpack.c.bf16 %v5054_v16, %v5053_v11 }
 0xc40   :  { %7780 = vmatmul.mubr.msk.f32.gmra.mrb[50].mxu1 %vm3193_vm3, %v7772_v18  ;;  %v5071_v18 = vld [vmem:[%s16243_s10 + $0x90] sm:$0xff] }
 0xc41   :  { %5562 = vmatprep.mubr.f32.mxu1 %v9507_v26  ;;  %9215 = vmatpush1.bf16.msra.mxu1 %v9214_v9  ;;  %v9232_v9 = vpack.c.bf16 %v5070_v2, %v5069_v8 }
 0xc43   :  { %9233 = vmatprep.subr.bf16.mxu0 %v9232_v9 }
 0xc44   :  { %7781 = vmatmul.mubr.msk.f32.gmra.mrb[52].mxu1 %vm3193_vm3, %v7773_v25  ;;  %9235 = vmatpush3.bf16.msra.mxu0 %v15582_v17  ;;  %v5072_v25 = vld [vmem:[%s16243_s10 + $0x98] sm:$0xff] }
 0xc45   :  { %5568 = vmatprep.mubr.f32.mxu1 %v9507_v26 }
 0xc48   :  { %7782 = vmatmul.mubr.msk.f32.gmra.mrb[54].mxu1 %vm3193_vm3, %v7774_v32  ;;  %v15591_v32 = vpack.c.bf16 %v5072_v25, %v5071_v18 }
 0xc49   :  { %5574 = vmatprep.mubr.f32.mxu1 %v9507_v26 }
 0xc4a   :  { %9237 = vmatprep.subr.bf16.mxu0 %v15591_v32 }
 0xc4c   :  { %7783 = vmatmul.mubr.msk.f32.gmra.mrb[56].mxu1 %vm3193_vm3, %v7775_v35  ;;  %v5055_v35 = vld [vmem:[%s16243_s10 + $0x10] sm:$0xff] }
 0xc4d   :  { %5580 = vmatprep.mubr.f32.mxu1 %v9507_v26 }
 0xc50   :  { %7784 = vmatmul.mubr.msk.f32.gmra.mrb[58].mxu1 %vm3193_vm3, %v7776_v5  ;;  %v5056_v5 = vld [vmem:[%s16243_s10 + $0x18] sm:$0xff] }
 0xc51   :  { %5586 = vmatprep.mubr.f32.mxu1 %v9507_v26 }
 0xc54   :  { %7785 = vmatmul.mubr.msk.f32.gmra.mrb[60].mxu1 %vm3193_vm3, %v7777_v30  ;;  %v15599_v30 = vpack.c.bf16 %v5056_v5, %v5055_v35 }
 0xc55   :  { %5592 = vmatprep.mubr.f32.mxu1 %v9507_v26 }
 0xc56   :  { %9239 = vmatpush3.bf16.msra.mxu0 %v15599_v30 }
 0xc58   :  { %7786 = vmatmul.mubr.msk.f32.gmra.mrb[62].mxu1 %vm3193_vm3, %v7778_v42  ;;  %v5073_v42 = vld [vmem:[%s16243_s10 + $0xa0] sm:$0xff] }
 0xc59   :  { %5687 = vmatprep.mubr.f32.mxu1 %v9507_v26 }
 0xc5c   :  { %7787 = vmatmul.mubr.msk.f32.vlgmr.msra.gmra.mrb[48].mxu1 %vm3193_vm3, %v5445_v45  ;;  %v5074_v45 = vld [vmem:[%s16243_s10 + $0xa8] sm:$0xff] }
 0xc5d   :  { %5693 = vmatprep.mubr.f32.mxu1 %v9507_v26 }
 0xc60   :  { %7788 = vmatmul.mubr.msk.f32.gmra.mrb[50].mxu1 %vm3193_vm3, %v5446_v46  ;;  %v15609_v46 = vpack.c.bf16 %v5074_v45, %v5073_v42 }
 0xc61   :  { %5699 = vmatprep.mubr.f32.mxu1 %v9507_v26 }
 0xc62   :  { %9241 = vmatprep.subr.bf16.mxu0 %v15609_v46 }
 0xc64   :  { %7789 = vmatmul.mubr.msk.f32.gmra.mrb[52].mxu1 %vm3193_vm3, %v5447_v41  ;;  %v5057_v41 = vld [vmem:[%s16243_s10 + $0x20] sm:$0xff] }
 0xc65   :  { %5705 = vmatprep.mubr.f32.mxu1 %v9507_v26 }
 0xc67   :  { %v5333_v14 = vpop.f32.mrb[40].mxu1 }
 0xc68   :  { %7790 = vmatmul.mubr.msk.f32.gmra.mrb[54].mxu1 %vm3193_vm3, %v5448_v61  ;;  %v5335_v28 = vpop.f32.mrb[41].mxu1  ;;  %v5058_v61 = vld [vmem:[%s16243_s10 + $0x28] sm:$0xff] }
 0xc69   :  { %5711 = vmatprep.mubr.f32.mxu1 %v9507_v26  ;;  %v5422_v51 = vpop.f32.mrb[34].mxu0 }
 0xc6a   :  { %v5424_v53 = vpop.f32.mrb[35].mxu0 }
 0xc6b   :  { %v5339_v31 = vpop.f32.mrb[42].mxu1 }
 0xc6c   :  { %7791 = vmatmul.mubr.msk.f32.gmra.mrb[56].mxu1 %vm3193_vm3, %v5449_v50  ;;  %v9218_v54 = vpack.c.bf16 %v5339_v31, %v5333_v14  ;;  %v5341_v37 = vpop.f32.mrb[43].mxu1  ;;  %v15617_v14 = vpack.c.bf16 %v5058_v61, %v5057_v41  ;;  %v5076_v50 = vld [vmem:[%s16243_s10 + $0xb8] sm:$0xff] }
 0xc6d   :  { %5717 = vmatprep.mubr.f32.mxu1 %v9507_v26  ;;  %v9216_v3 = vpack.c.bf16 %v5341_v37, %v5335_v28  ;;  %v5428_v57 = vpop.f32.mrb[36].mxu0  ;;  %v5075_v28 = vld [vmem:[%s16243_s10 + $0xb0] sm:$0xff]  ;;  %v5060_v31 = vld [vmem:[%s16243_s10 + $0x38] sm:$0xff]  ;;  %v5077_v37 = vld [vmem:[%s16243_s10 + $0xc0] sm:$0xff] }
 0xc6e   :  { %v9226_v24 = vpack.c.bf16 %v5428_v57, %v5422_v51  ;;  %v5430_v59 = vpop.f32.mrb[37].mxu0  ;;  %9243 = vmatpush3.bf16.msra.mxu0 %v15617_v14  ;;  %v15627_v51 = vpack.c.bf16 %v5076_v50, %v5075_v28  ;;  %v5061_v57 = vld [vmem:[%s16243_s10 + $0x40] sm:$0xff] }
 0xc6f   :  { %9217 = vmatprep.subr.bf16.mxu1 %v9216_v3  ;;  %v5345_v21 = vpop.f32.mrb[44].mxu1  ;;  %v9224_v23 = vpack.c.bf16 %v5430_v59, %v5424_v53  ;;  %v5059_v53 = vld [vmem:[%s16243_s10 + $0x30] sm:$0xff] }
 0xc70   :  { %7792 = vmatmul.mubr.msk.f32.gmra.mrb[58].mxu1 %vm3193_vm3, %v5450_v56  ;;  %v5347_v6 = vpop.f32.mrb[45].mxu1  ;;  %9245 = vmatprep.subr.bf16.mxu0 %v15627_v51  ;;  %v5078_v56 = vld [vmem:[%s16243_s10 + $0xc8] sm:$0xff] }
 0xc71   :  { %9219 = vmatpush1.bf16.msra.mxu1 %v9218_v54  ;;  %5723 = vmatprep.mubr.f32.mxu1 %v9507_v26  ;;  %v5434_v19 = vpop.f32.mrb[38].mxu0  ;;  %v15635_v54 = vpack.c.bf16 %v5060_v31, %v5059_v53  ;;  %v15645_v3 = vpack.c.bf16 %v5078_v56, %v5077_v37 }
 0xc72   :  { %v5436_v13 = vpop.f32.mrb[39].mxu0 }
 0xc73   :  { %v5351_v27 = vpop.f32.mrb[46].mxu1  ;;  %9247 = vmatpush3.bf16.msra.mxu0 %v15635_v54 }
 0xc74   :  { %7793 = vmatmul.mubr.msk.f32.gmra.mrb[60].mxu1 %vm3193_vm3, %v5451_v47  ;;  %v9222_v34 = vpack.c.bf16 %v5351_v27, %v5345_v21  ;;  %v5353_v38 = vpop.f32.mrb[47].mxu1  ;;  %9249 = vmatprep.subr.bf16.mxu0 %v15645_v3  ;;  %v5079_v21 = vld [vmem:[%s16243_s10 + $0xd0] sm:$0xff]  ;;  %v5081_v27 = vld [vmem:[%s16243_s10 + $0xe0] sm:$0xff] }
 0xc75   :  { %5729 = vmatprep.mubr.f32.mxu1 %v9507_v26  ;;  %v9220_v60 = vpack.c.bf16 %v5353_v38, %v5347_v6  ;;  %v5440_v48 = vpop.f32.mrb[40].mxu0  ;;  %v5063_v47 = vld [vmem:[%s16243_s10 + $0x50] sm:$0xff] }
 0xc76   :  { %v9230_v62 = vpack.c.bf16 %v5440_v48, %v5434_v19  ;;  %v5442_v40 = vpop.f32.mrb[41].mxu0  ;;  %v5064_v19 = vld [vmem:[%s16243_s10 + $0x58] sm:$0xff] }
 0xc77   :  { %9221 = vmatprep.subr.bf16.mxu1 %v9220_v60  ;;  %v9228_v49 = vpack.c.bf16 %v5442_v40, %v5436_v13  ;;  %v15671_v13 = vpack.c.bf16 %v5064_v19, %v5063_v47  ;;  %v5066_v60 = vld [vmem:[%s16243_s10 + $0x68] sm:$0xff]  ;;  %v5084_v40 = vld [vmem:[%s16243_s10 + $0xf8] sm:$0xff] }
 0xc78   :  { %7794 = vmatmul.mubr.msk.f32.gmra.mrb[62].mxu1 %vm3193_vm3, %v5452_v44  ;;  %v5065_v44 = vld [vmem:[%s16243_s10 + $0x60] sm:$0xff] }
 0xc79   :  { %9223 = vmatpush1.bf16.msra.mxu1 %v9222_v34  ;;  %5833 = vmatprep.mubr.f32.mxu1 %v9507_v26  ;;  %v5082_v34 = vld [vmem:[%s16243_s10 + $0xe8] sm:$0xff]  ;;  %v15689_v48 = vpack.c.bf16 %v5066_v60, %v5065_v44 }
 0xc7a   :  { %9225 = vmatprep.subr.bf16.mxu1 %v9224_v23  ;;  %v5080_v23 = vld [vmem:[%s16243_s10 + $0xd8] sm:$0xff]  ;;  %v15681_v38 = vpack.c.bf16 %v5082_v34, %v5081_v27 }
 0xc7b   :  { %v15663_v6 = vpack.c.bf16 %v5080_v23, %v5079_v21 }
 0xc7c   :  { %7803 = vmatmul.mubr.msk.f32.vlgmr.msra.gmra.mrb[48].mxu1 %vm3193_vm3, %v7795_v7  ;;  %v5067_v7 = vld [vmem:[%s16243_s10 + $0x70] sm:$0xff] }
 0xc7d   :  { %5839 = vmatprep.mubr.f32.mxu1 %v9507_v26  ;;  %9227 = vmatpush1.bf16.msra.mxu1 %v9226_v24  ;;  %v5062_v24 = vld [vmem:[%s16243_s10 + $0x48] sm:$0xff] }
 0xc7e   :  { %9229 = vmatprep.subr.bf16.mxu1 %v9228_v49  ;;  %v15653_v59 = vpack.c.bf16 %v5062_v24, %v5061_v57 }
 0xc80   :  { %7804 = vmatmul.mubr.msk.f32.gmra.mrb[50].mxu1 %vm3193_vm3, %v7796_v52  ;;  %9251 = vmatpush3.bf16.msra.mxu0 %v15653_v59  ;;  %v5068_v52 = vld [vmem:[%s16243_s10 + $0x78] sm:$0xff] }
 0xc81   :  { %5845 = vmatprep.mubr.f32.mxu1 %v9507_v26  ;;  %9231 = vmatpush1.bf16.msra.mxu1 %v9230_v62  ;;  %v5083_v62 = vld [vmem:[%s16243_s10 + $0xf0] sm:$0xff] }
 0xc82   :  { %9253 = vmatprep.subr.bf16.mxu0 %v15663_v6  ;;  %v15699_v49 = vpack.c.bf16 %v5084_v40, %v5083_v62 }
 0xc84   :  { %7805 = vmatmul.mubr.msk.f32.gmra.mrb[52].mxu1 %vm3193_vm3, %v7797_v43  ;;  %9255 = vmatpush3.bf16.msra.mxu0 %v15671_v13  ;;  %v15707_v43 = vpack.c.bf16 %v5068_v52, %v5067_v7 }
 0xc85   :  { %5851 = vmatprep.mubr.f32.mxu1 %v9507_v26  ;;  %9257 = vmatprep.subr.bf16.mxu0 %v15681_v38 }
 0xc88   :  { %7806 = vmatmul.mubr.msk.f32.gmra.mrb[54].mxu1 %vm3193_vm3, %v7798_v55  ;;  %9259 = vmatpush3.bf16.msra.mxu0 %v15689_v48 }
 0xc89   :  { %5857 = vmatprep.mubr.f32.mxu1 %v9507_v26  ;;  %9261 = vmatprep.subr.bf16.mxu0 %v15699_v49 }
 0xc8c   :  { %7807 = vmatmul.mubr.msk.f32.gmra.mrb[56].mxu1 %vm3193_vm3, %v7799_v58  ;;  %9263 = vmatpush3.bf16.msra.mxu0 %v15707_v43 }
 0xc8d   :  { %5863 = vmatprep.mubr.f32.mxu1 %v9507_v26  ;;  %9265 = vmatprep.subr.bf16.mxu0 %v9232_v9 }
 0xc90   :  { %7808 = vmatmul.mubr.msk.f32.gmra.mrb[58].mxu1 %vm3193_vm3, %v7800_v63 }
 0xc91   :  { %5869 = vmatprep.mubr.f32.mxu1 %v9507_v26 }
 0xc94   :  { %7809 = vmatmul.mubr.msk.f32.gmra.mrb[60].mxu1 %vm3193_vm3, %v7801_v12 }
 0xc95   :  { %5875 = vmatprep.mubr.f32.mxu1 %v9507_v26 }
 0xc98   :  { %7810 = vmatmul.mubr.msk.f32.gmra.mrb[62].mxu1 %vm3193_vm3, %v7802_v15 }
 0xc99   :  { %5995 = vmatprep.mubr.f32.mxu1 %v9507_v26 }
 0xc9c   :  { %7819 = vmatmul.mubr.msk.f32.vlgmr.msra.gmra.mrb[48].mxu1 %vm3193_vm3, %v7811_v10 }
 0xc9d   :  { %6001 = vmatprep.mubr.f32.mxu1 %v9507_v26 }
 0xca0   :  { %7820 = vmatmul.mubr.msk.f32.gmra.mrb[50].mxu1 %vm3193_vm3, %v7812_v4 }
 0xca1   :  { %6007 = vmatprep.mubr.f32.mxu1 %v9507_v26 }
 0xca4   :  { %7821 = vmatmul.mubr.msk.f32.gmra.mrb[52].mxu1 %vm3193_vm3, %v7813_v29 }
 0xca5   :  { %6013 = vmatprep.mubr.f32.mxu1 %v9507_v26 }
 0xca8   :  { %7822 = vmatmul.mubr.msk.f32.gmra.mrb[54].mxu1 %vm3193_vm3, %v7814_v39 }
 0xca9   :  { %6019 = vmatprep.mubr.f32.mxu1 %v9507_v26 }
 0xcac   :  { %7823 = vmatmul.mubr.msk.f32.gmra.mrb[56].mxu1 %vm3193_vm3, %v7815_v1 }
 0xcad   :  { %6025 = vmatprep.mubr.f32.mxu1 %v9507_v26 }
 0xcb0   :  { %7824 = vmatmul.mubr.msk.f32.gmra.mrb[58].mxu1 %vm3193_vm3, %v7816_v0 }
 0xcb1   :  { %6031 = vmatprep.mubr.f32.mxu1 %v9507_v26 }
 0xcb4   :  { %7825 = vmatmul.mubr.msk.f32.gmra.mrb[60].mxu1 %vm3193_vm3, %v7817_v33 }
 0xcb5   :  { %6037 = vmatprep.mubr.f32.mxu1 %v9507_v26 }
 0xcb8   :  { %7826 = vmatmul.mubr.msk.f32.gmra.mrb[62].mxu1 %vm3193_vm3, %v7818_v36 }
 0xd6f   :  { %v15711_v55 = vpop.f32.mrb[48].mxu1 }
 0xd70   :  { %v15713_v58 = vpop.f32.mrb[49].mxu1  ;;  %v6086_v12 = vmul.f32 %v15711_v55, %v15711_v55 }
 0xd71   :  { %v6087_v29 = vmul.f32 %v15713_v58, %v15713_v58 }
 0xd73   :  { %v15715_v63 = vpop.f32.mrb[50].mxu1 }
 0xd74   :  { %v6060_v15 = vadd.f32 %v15715_v63, %v15711_v55  ;;  %v6088_v10 = vmul.f32 %v15715_v63, %v15715_v63  ;;  %v15723_v4 = vpop.f32.mrb[51].mxu1 }
 0xd75   :  { %v6073_v39 = vadd.f32 %v15723_v4, %v15713_v58  ;;  %v6089_v1 = vmul.f32 %v15723_v4, %v15723_v4 }
 0xd76   :  { %v6102_v0 = vadd.f32 %v6088_v10, %v6086_v12 }
 0xd77   :  { %v6115_v33 = vadd.f32 %v6089_v1, %v6087_v29  ;;  %v15731_v36 = vpop.f32.mrb[52].mxu1 }
 0xd78   :  { %v6061_v8 = vadd.f32 %v6060_v15, %v15731_v36  ;;  %v6090_v2 = vmul.f32 %v15731_v36, %v15731_v36  ;;  %v15736_v9 = vpop.f32.mrb[53].mxu1 }
 0xd79   :  { %v6074_v11 = vadd.f32 %v6073_v39, %v15736_v9  ;;  %v6091_v16 = vmul.f32 %v15736_v9, %v15736_v9 }
 0xd7a   :  { %v6103_v18 = vadd.f32 %v6102_v0, %v6090_v2 }
 0xd7b   :  { %v6116_v25 = vadd.f32 %v6115_v33, %v6091_v16  ;;  %v15741_v35 = vpop.f32.mrb[54].mxu1 }
 0xd7c   :  { %v6062_v5 = vadd.f32 %v6061_v8, %v15741_v35  ;;  %v6092_v42 = vmul.f32 %v15741_v35, %v15741_v35  ;;  %v15746_v45 = vpop.f32.mrb[55].mxu1 }
 0xd7d   :  { %v6075_v41 = vadd.f32 %v6074_v11, %v15746_v45  ;;  %v6093_v61 = vmul.f32 %v15746_v45, %v15746_v45 }
 0xd7e   :  { %v6104_v28 = vadd.f32 %v6103_v18, %v6092_v42 }
 0xd7f   :  { %v6117_v50 = vadd.f32 %v6116_v25, %v6093_v61  ;;  %v15751_v53 = vpop.f32.mrb[56].mxu1 }
 0xd80   :  { %v6063_v31 = vadd.f32 %v6062_v5, %v15751_v53  ;;  %v6094_v37 = vmul.f32 %v15751_v53, %v15751_v53  ;;  %v15756_v56 = vpop.f32.mrb[57].mxu1 }
 0xd81   :  { %v6076_v57 = vadd.f32 %v6075_v41, %v15756_v56  ;;  %v6095_v24 = vmul.f32 %v15756_v56, %v15756_v56 }
 0xd82   :  { %v6105_v21 = vadd.f32 %v6104_v28, %v6094_v37 }
 0xd83   :  { %v6118_v23 = vadd.f32 %v6117_v50, %v6095_v24  ;;  %v15761_v47 = vpop.f32.mrb[58].mxu1 }
 0xd84   :  { %v6064_v19 = vadd.f32 %v6063_v31, %v15761_v47  ;;  %v6096_v27 = vmul.f32 %v15761_v47, %v15761_v47  ;;  %v15766_v34 = vpop.f32.mrb[59].mxu1 }
 0xd85   :  { %v6077_v44 = vadd.f32 %v6076_v57, %v15766_v34  ;;  %v6097_v60 = vmul.f32 %v15766_v34, %v15766_v34 }
 0xd86   :  { %v6106_v62 = vadd.f32 %v6105_v21, %v6096_v27 }
 0xd87   :  { %v6119_v40 = vadd.f32 %v6118_v23, %v6097_v60  ;;  %v15771_v7 = vpop.f32.mrb[60].mxu1 }
 0xd88   :  { %v6065_v52 = vadd.f32 %v6064_v19, %v15771_v7  ;;  %v6098_v12 = vmul.f32 %v15771_v7, %v15771_v7  ;;  %v15776_v15 = vpop.f32.mrb[61].mxu1 }
 0xd89   :  { %v6078_v10 = vadd.f32 %v6077_v44, %v15776_v15  ;;  %v6099_v29 = vmul.f32 %v15776_v15, %v15776_v15 }
 0xd8a   :  { %v6107_v39 = vadd.f32 %v6106_v62, %v6098_v12 }
 0xd8b   :  { %v6120_v1 = vadd.f32 %v6119_v40, %v6099_v29  ;;  %v15781_v0 = vpop.f32.mrb[62].mxu1 }
 0xd8c   :  { %v6066_v33 = vadd.f32 %v6065_v52, %v15781_v0  ;;  %v6100_v8 = vmul.f32 %v15781_v0, %v15781_v0  ;;  %v15786_v2 = vpop.f32.mrb[63].mxu1 }
 0xd8d   :  { %v6079_v11 = vadd.f32 %v6078_v10, %v15786_v2  ;;  %v6101_v16 = vmul.f32 %v15786_v2, %v15786_v2 }
 0xd8e   :  { %v6067_v18 = vrot.slane %v6066_v33, 4  ;;  %v6108_v25 = vadd.f32 %v6107_v39, %v6100_v8  ;;  %v5087_v39 = vld [vmem:[%s16249_s16] sm:$0x1] }
 0xd8f   :  { %v6080_v5 = vrot.slane %v6079_v11, 4  ;;  %v6121_v42 = vadd.f32 %v6120_v1, %v6101_v16  ;;  %v5088_v8 = vld [vmem:[%s16250_s17] sm:$0x1] }
 0xd90   :  { %v6068_v41 = vadd.f32 %v6067_v18, %v6066_v33  ;;  %v6109_v52 = vrot.slane %v6108_v25, 4  ;;  %v15823_v18 = vadd.s32 24, %v14499_v20 }
 0xd91   :  { %v6081_v61 = vadd.f32 %v6080_v5, %v6079_v11  ;;  %v6122_v28 = vrot.slane %v6121_v42, 4  ;;  %v15829_v5 = vadd.s32 56, %v14499_v20 }
 0xd92   :  { %v6069_v50 = vrot.slane %v6068_v41, 2  ;;  %v6110_v12 = vadd.f32 %v6109_v52, %v6108_v25  ;;  %v15826_v25 = vadd.s32 32, %v14499_v20 }
 0xd93   :  { %v6082_v31 = vrot.slane %v6081_v61, 2  ;;  %v6123_v37 = vadd.f32 %v6122_v28, %v6121_v42 }
 0xd94   :  { %v6070_v57 = vadd.f32 %v6069_v50, %v6068_v41  ;;  %v17811_v41 = vld [vmem:[#allocation729_spill] sm:$0xff] }
 0xd95   :  { %v6083_v24 = vadd.f32 %v6082_v31, %v6081_v61  ;;  %v6124_v21 = vrot.slane %v6123_v37, 2  ;;  %v17812_v61 = vld [vmem:[#allocation730_spill] sm:$0xff] }
 0xd96   :  { %v6071_v23 = vrot.slane %v6070_v57, 1  ;;  %v9298_v42 = vpack.c.bf16 %v17812_v61, %v17811_v41 }
 0xd97   :  { %v6084_v19 = vrot.slane %v6083_v24, 1  ;;  %v6125_v27 = vadd.f32 %v6124_v21, %v6123_v37 }
 0xd98   :  { %v6072_v62 = vadd.f32 %v6071_v23, %v6070_v57 }
 0xd99   :  { %v6085_v44 = vadd.f32 %v6084_v19, %v6083_v24  ;;  %v6126_v60 = vrot.slane %v6125_v27, 1 }
 0xd9b   :  { %6192 = vmatprep.mubr.f32.mxu0 %v6085_v44  ;;  %v6127_v40 = vadd.f32 %v6126_v60, %v6125_v27 }
 0xd9c   :  { %6193 = vmatmul.mubr.f32.vlgmr.msra.gmra.mrb[42].mxu0 %v6072_v62 }
 0xd9d   :  { %9267 = vmatpush3.bf16.msra.mxu0 %v15582_v17  ;;  %6263 = vmatprep.mubr.f32.mxu0 %v6127_v40  ;;  %v6111_v17 = vrot.slane %v6110_v12, 2 }
 0xd9e   :  { %9269 = vmatprep.subr.bf16.mxu0 %v15591_v32 }
 0xd9f   :  { %v6112_v32 = vadd.f32 %v6111_v17, %v6110_v12 }
 0xda1   :  { %9271 = vmatpush3.bf16.msra.mxu0 %v15599_v30  ;;  %v6113_v30 = vrot.slane %v6112_v32, 1 }
 0xda2   :  { %9273 = vmatprep.subr.bf16.mxu0 %v15609_v46 }
 0xda3   :  { %v6114_v46 = vadd.f32 %v6113_v30, %v6112_v32 }
 0xda5   :  { %9275 = vmatpush3.bf16.msra.mxu0 %v15617_v14  ;;  %v5086_v14 = vld [vmem:[%s16244_s11 + $0x8] sm:$0xff] }
 0xda6   :  { %9277 = vmatprep.subr.bf16.mxu0 %v15627_v51  ;;  %v5085_v51 = vld [vmem:[%s16244_s11] sm:$0xff] }
 0xda9   :  { %9279 = vmatpush3.bf16.msra.mxu0 %v15635_v54 }
 0xdaa   :  { %9281 = vmatprep.subr.bf16.mxu0 %v15645_v3 }
 0xdad   :  { %9283 = vmatpush3.bf16.msra.mxu0 %v15653_v59 }
 0xdae   :  { %9285 = vmatprep.subr.bf16.mxu0 %v15663_v6 }
 0xdb1   :  { %9287 = vmatpush3.bf16.msra.mxu0 %v15671_v13 }
 0xdb2   :  { %9289 = vmatprep.subr.bf16.mxu0 %v15681_v38 }
 0xdb5   :  { %9291 = vmatpush3.bf16.msra.mxu0 %v15689_v48 }
 0xdb6   :  { %9293 = vmatprep.subr.bf16.mxu0 %v15699_v49 }
 0xdb9   :  { %9295 = vmatpush3.bf16.msra.mxu0 %v15707_v43 }
 0xdba   :  { %6280 = vmatprep.subr.mxu0 %v5086_v14 }
 0xdbc   :  { %6264 = vmatmul.mubr.f32.vlgmr.msra.gmra.mrb[44].mxu0 %v6114_v46 }
 0xdbd   :  { %6344 = vmatprep.mubr.f32.mxu0 %v9507_v26  ;;  %6281 = vmatpush1.msra.mxu0 %v5085_v51 }
 0xdbe   :  { %6354 = vmatprep.subr.mxu0 %v5086_v14 }
 0xe6f   :  { %v8026_v54 = vpop.f32.mrb[42].mxu0 }
 0xe70   :  { %v8027_v3 = vpop.f32.mrb[43].mxu0 }
 0xe71   :  { %v8028_v59 = vadd.f32 %v8027_v3, %v8026_v54 }
 0xe73   :  { %v6198_v6 = vmul.f32 0.00048828125, %v8028_v59 }
 0xe75   :  { %v6270_v49 = vmul.f32 %v6198_v6, %v6198_v6 }
 0xe8f   :  { %v8061_v13 = vpop.f32.mrb[44].mxu0 }
 0xe90   :  { %v8062_v38 = vpop.f32.mrb[45].mxu0 }
 0xe91   :  { %v8063_v48 = vadd.f32 %v8062_v38, %v8061_v13 }
 0xe93   :  { %v6269_v43 = vmul.f32 0.00048828125, %v8063_v48 }
 0xe95   :  { %v6271_v10 = vsub.f32 %v6269_v43, %v6270_v49 }
 0xe97   :  { %v6272_v29 = vadd.f32 1e-05, %v6271_v10 }
 0xe99   :  { %9481 = vrsqrt.f32 %v6272_v29 }
 0xea3   :  { %v9482_v1 = vpop.eup %9481 }
 0xea4   :  { %v6274_v33 = vmul.f32 %v9482_v1, %v5087_v39 }
 0xea6   :  { %7827 = vmatmul.mubr.msk.f32.vlgmr.msra.gmra.mrb[46].mxu0 %vm2665_vm2, %v6274_v33  ;;  %v6275_v11 = vmul.f32 %v6274_v33, %v6198_v6 }
 0xea7   :  { %6355 = vmatpush1.msra.mxu0 %v5085_v51  ;;  %6418 = vmatprep.mubr.f32.mxu0 %v9507_v26 }
 0xea8   :  { %v6276_v16 = vsub.f32 %v5088_v8, %v6275_v11 }
 0xeaa   :  { %7828 = vmatmul.mubr.msk.f32.vlgmr.msra.gmra.mrb[48].mxu0 %vm2665_vm2, %v6276_v16 }
 0xf79   :  { %v6346_v28 = vpop.f32.mrb[46].mxu0 }
 0xf7a   :  { %v6428_v50 = vrot.slane %v6346_v28, %v14502_v22  ;;  %v6348_v31 = vpop.f32.mrb[47].mxu0 }
 0xf7b   :  { %v6432_v37 = vrot.slane %v6348_v31, %v14502_v22 }
 0xf7c   :  { %v6433_v57 = vmul.f32 %v6428_v50, %v15711_v55  ;;  %v6435_v24 = vmul.f32 %v6428_v50, %v15715_v63  ;;  %v6437_v21 = vmul.f32 %v6428_v50, %v15731_v36  ;;  %v6439_v23 = vmul.f32 %v6428_v50, %v15741_v35 }
 0xf7d   :  { %v6441_v19 = vmul.f32 %v6428_v50, %v15751_v53  ;;  %v6443_v27 = vmul.f32 %v6428_v50, %v15761_v47  ;;  %v6445_v44 = vmul.f32 %v6428_v50, %v15771_v7  ;;  %v6447_v60 = vmul.f32 %v6428_v50, %v15781_v0  ;;  %v6420_v62 = vpop.f32.mrb[48].mxu0 }
 0xf7e   :  { %v6434_v40 = vmul.f32 %v6432_v37, %v15713_v58  ;;  %v6436_v52 = vmul.f32 %v6432_v37, %v15723_v4  ;;  %v6438_v55 = vmul.f32 %v6432_v37, %v15736_v9  ;;  %v6440_v63 = vmul.f32 %v6432_v37, %v15746_v45  ;;  %v6422_v36 = vpop.f32.mrb[49].mxu0 }
 0xf7f   :  { %v6442_v35 = vmul.f32 %v6432_v37, %v15756_v56  ;;  %v6444_v53 = vmul.f32 %v6432_v37, %v15766_v34  ;;  %v6446_v47 = vmul.f32 %v6432_v37, %v15776_v15  ;;  %v6448_v7 = vmul.f32 %v6432_v37, %v15786_v2 }
 0xf80   :  { %v6452_v0 = vrot.slane %v6420_v62, %v14502_v22  ;;  %v6456_v58 = vrot.slane %v6422_v36, %v14502_v22 }
 0xf82   :  { %v6457_v4 = vadd.f32 %v6452_v0, %v6433_v57  ;;  %v6459_v9 = vadd.f32 %v6452_v0, %v6435_v24  ;;  %v6461_v45 = vadd.f32 %v6452_v0, %v6437_v21  ;;  %v6463_v12 = vadd.f32 %v6452_v0, %v6439_v23 }
 0xf83   :  { %v6465_v17 = vadd.f32 %v6452_v0, %v6441_v19  ;;  %v6467_v56 = vadd.f32 %v6452_v0, %v6443_v27  ;;  %v6469_v32 = vadd.f32 %v6452_v0, %v6445_v44  ;;  %v6471_v34 = vadd.f32 %v6452_v0, %v6447_v60 }
 0xf84   :  { %v15857_v30 = vmax.f32 %v6457_v4, 0.0  ;;  %v15859_v15 = vmax.f32 %v6459_v9, 0.0  ;;  %v15861_v2 = vmax.f32 %v6461_v45, 0.0  ;;  %v15863_v46 = vmax.f32 %v6463_v12, 0.0 }
 0xf85   :  { %v15865_v14 = vmax.f32 %v6465_v17, 0.0  ;;  %v15867_v51 = vmax.f32 %v6467_v56, 0.0  ;;  %v15869_v22 = vmax.f32 %v6469_v32, 0.0  ;;  %v15871_v54 = vmax.f32 %v6471_v34, 0.0 }
 0xf86   :  { %v6602_v3 = vrot.slane %v15857_v30, 7  ;;  %v6604_v59 = vrot.slane %v15859_v15, 7  ;;  %v6606_v6 = vrot.slane %v15861_v2, 7  ;;  %v6608_v13 = vrot.slane %v15863_v46, 7 }
 0xf87   :  { %17803 = vst [vmem:[#allocation61_spill] sm:$0xff] %v15867_v51  ;;  %17804 = vst [vmem:[#allocation67_spill] sm:$0xff] %v15869_v22  ;;  %v6610_v38 = vrot.slane %v15865_v14, 7  ;;  %v6612_v48 = vrot.slane %v15867_v51, 7  ;;  %v6614_v49 = vrot.slane %v15869_v22, 7  ;;  %v6616_v43 = vrot.slane %v15871_v54, 7 }
 0xf88   :  { %17805 = vst [vmem:[#allocation74_spill] sm:$0xff] %v15871_v54  ;;  %v15883_v10 = vsel %vm6618_vm5, %v6606_v6, %v6608_v13  ;;  %v15887_v29 = vsel %vm6618_vm5, %v6604_v59, %v6606_v6  ;;  %v15891_v39 = vsel %vm6618_vm5, %v6602_v3, %v6604_v59  ;;  %v6659_v1 = vrot.slane %v15857_v30, 1 }
 0xf89   :  { %v15896_v33 = vsel %vm6618_vm5, %v6614_v49, %v6616_v43  ;;  %v15900_v8 = vsel %vm6618_vm5, %v6612_v48, %v6614_v49  ;;  %v15904_v11 = vsel %vm6618_vm5, %v6610_v38, %v6612_v48  ;;  %v15908_v16 = vsel %vm6618_vm5, %v6608_v13, %v6610_v38 }
 0xf8a   :  { %v15912_v28 = vsel %vm6618_vm5, %v6616_v43, %v6602_v3  ;;  %v6661_v50 = vrot.slane %v15859_v15, 1  ;;  %v6663_v31 = vrot.slane %v15861_v2, 1  ;;  %v6665_v37 = vrot.slane %v15863_v46, 1 }
 0xf8b   :  { %v6667_v57 = vrot.slane %v15865_v14, 1  ;;  %v6669_v24 = vrot.slane %v15867_v51, 1  ;;  %v6671_v21 = vrot.slane %v15869_v22, 1  ;;  %v6673_v23 = vrot.slane %v15871_v54, 1  ;;  %v17814_v54 = vld [vmem:[#allocation748_spill] sm:$0xff] }
 0xf8c   :  { %v15923_v19 = vsel %vm6675_vm6, %v6663_v31, %v6665_v37  ;;  %v15927_v27 = vsel %vm6675_vm6, %v6661_v50, %v6663_v31  ;;  %v15931_v44 = vsel %vm6675_vm6, %v6659_v1, %v6661_v50  ;;  %v6458_v60 = vadd.f32 %v6456_v58, %v6434_v40 }
 0xf8d   :  { %v15935_v62 = vsel %vm6675_vm6, %v6671_v21, %v6673_v23  ;;  %v15939_v36 = vsel %vm6675_vm6, %v6669_v24, %v6671_v21  ;;  %v15943_v0 = vsel %vm6675_vm6, %v6667_v57, %v6669_v24  ;;  %v15947_v4 = vsel %vm6675_vm6, %v6665_v37, %v6667_v57 }
 0xf8e   :  { %v15951_v9 = vsel %vm6675_vm6, %v6673_v23, %v6659_v1  ;;  %v6460_v40 = vadd.f32 %v6456_v58, %v6436_v52  ;;  %v6462_v45 = vadd.f32 %v6456_v58, %v6438_v55  ;;  %v6464_v12 = vadd.f32 %v6456_v58, %v6440_v63 }
 0xf8f   :  { %v6466_v17 = vadd.f32 %v6456_v58, %v6442_v35  ;;  %v6468_v56 = vadd.f32 %v6456_v58, %v6444_v53  ;;  %v6470_v32 = vadd.f32 %v6456_v58, %v6446_v47  ;;  %v6472_v34 = vadd.f32 %v6456_v58, %v6448_v7 }
 0xf90   :  { %v15953_v3 = vmax.f32 %v6458_v60, 0.0  ;;  %v15955_v59 = vmax.f32 %v6460_v40, 0.0  ;;  %v15957_v6 = vmax.f32 %v6462_v45, 0.0  ;;  %v15959_v13 = vmax.f32 %v6464_v12, 0.0 }
 0xf91   :  { %v15961_v38 = vmax.f32 %v6466_v17, 0.0  ;;  %v15963_v48 = vmax.f32 %v6468_v56, 0.0  ;;  %v15965_v49 = vmax.f32 %v6470_v32, 0.0  ;;  %v15967_v52 = vmax.f32 %v6472_v34, 0.0 }
 0xf92   :  { %v6603_v55 = vrot.slane %v15953_v3, 7  ;;  %v6605_v63 = vrot.slane %v15955_v59, 7  ;;  %v6607_v35 = vrot.slane %v15957_v6, 7  ;;  %v6609_v53 = vrot.slane %v15959_v13, 7 }
 0xf93   :  { %17806 = vst [vmem:[#allocation82_spill] sm:$0xff] %v15963_v48  ;;  %17807 = vst [vmem:[#allocation62_spill] sm:$0xff] %v15965_v49  ;;  %v6611_v47 = vrot.slane %v15961_v38, 7  ;;  %v6613_v7 = vrot.slane %v15963_v48, 7  ;;  %v6615_v58 = vrot.slane %v15965_v49, 7  ;;  %v6617_v43 = vrot.slane %v15967_v52, 7 }
 0xf94   :  { %17808 = vst [vmem:[#allocation68_spill] sm:$0xff] %v15967_v52  ;;  %v15979_v1 = vsel %vm6618_vm5, %v6607_v35, %v6609_v53  ;;  %v15983_v50 = vsel %vm6618_vm5, %v6605_v63, %v6607_v35  ;;  %v15987_v31 = vsel %vm6618_vm5, %v6603_v55, %v6605_v63  ;;  %v6660_v37 = vrot.slane %v15953_v3, 1 }
 0xf95   :  { %v15992_v57 = vsel %vm6618_vm5, %v6615_v58, %v6617_v43  ;;  %v15996_v24 = vsel %vm6618_vm5, %v6613_v7, %v6615_v58  ;;  %v16000_v21 = vsel %vm6618_vm5, %v6611_v47, %v6613_v7  ;;  %v16004_v23 = vsel %vm6618_vm5, %v6609_v53, %v6611_v47 }
 0xf96   :  { %v6634_v60 = vsel %vm6618_vm5, %v6617_v43, %v6603_v55  ;;  %v6662_v40 = vrot.slane %v15955_v59, 1  ;;  %v6664_v45 = vrot.slane %v15957_v6, 1  ;;  %v6666_v12 = vrot.slane %v15959_v13, 1 }
 0xf97   :  { %v6668_v17 = vrot.slane %v15961_v38, 1  ;;  %v6670_v56 = vrot.slane %v15963_v48, 1  ;;  %v6672_v32 = vrot.slane %v15965_v49, 1  ;;  %v6674_v34 = vrot.slane %v15967_v52, 1 }
 0xf98   :  { %v16017_v63 = vsel %vm6675_vm6, %v6664_v45, %v6666_v12  ;;  %v16021_v55 = vsel %vm6675_vm6, %v6662_v40, %v6664_v45  ;;  %v6689_v35 = vsel %vm6675_vm6, %v6660_v37, %v6662_v40  ;;  %v17809_v40 = vld [vmem:[#allocation745_spill] sm:$0xff]  ;;  %v17810_v45 = vld [vmem:[#allocation746_spill] sm:$0xff] }
 0xf99   :  { %v16027_v53 = vsel %vm6675_vm6, %v6672_v32, %v6674_v34  ;;  %v16031_v47 = vsel %vm6675_vm6, %v6670_v56, %v6672_v32  ;;  %v16035_v7 = vsel %vm6675_vm6, %v6668_v17, %v6670_v56  ;;  %v16039_v58 = vsel %vm6675_vm6, %v6666_v12, %v6668_v17  ;;  %v17813_v32 = vld [vmem:[#allocation747_spill] sm:$0xff]  ;;  %7088 = vmatprep.mubr.f32.mxu1 %v6689_v35 }
 0xf9a   :  { %v16043_v43 = vsel %vm6675_vm6, %v6674_v34, %v6660_v37  ;;  %v9296_v26 = vpack.c.bf16 %v17810_v45, %v17809_v40  ;;  %v9300_v52 = vpack.c.bf16 %v17814_v54, %v17813_v32 }
 0xf9b   :  { %9505 = dma.done.wait [#allocation4 + $0x3], 12288 }
 0xf9c   :  { %9506 = vsyncadd [#allocation4 + $0x3], 4294955008  ;;  %9297 = vmatprep.subr.bf16.mxu0 %v9296_v26  ;;  %v17815_v12 = vld [vmem:[#allocation731_spill] sm:$0xff]  ;;  %v17816_v17 = vld [vmem:[#allocation732_spill] sm:$0xff]  ;;  %v17819_v40 = vand.u32 31, %v14499_v20 }
 0xf9d   :  { %9299 = vmatpush3.bf16.msra.mxu0 %v9298_v42  ;;  %v9302_v56 = vpack.c.bf16 %v17816_v17, %v17815_v12  ;;  %v17817_v37 = vld [vmem:[#allocation749_spill] sm:$0xff]  ;;  %v17818_v34 = vld [vmem:[#allocation750_spill] sm:$0xff]  ;;  %v17826_v32 = vld [vmem:[#allocation811_spill] sm:$0xff] }
 0xf9e   :  { %9301 = vmatprep.subr.bf16.mxu0 %v9300_v52  ;;  %v9304_v22 = vpack.c.bf16 %v17818_v34, %v17817_v37  ;;  %vm16057_vm7 = vcmp.ne.s32.totalorder %v17819_v40, 0  ;;  %v17822_v41 = vld [vmem:[#allocation809_spill] sm:$0xff]  ;;  %v17823_v61 = vld [vmem:[#allocation810_spill] sm:$0xff]  ;;  %v17827_v52 = vld [vmem:[#allocation812_spill] sm:$0xff] }
 0xf9f   :  { %v9360_v54 = vpack.c.bf16 %v17823_v61, %v17822_v41  ;;  %7831 = vmatprep.mubr.msk.f32.mxu0 %vm16057_vm7, %v6634_v60  ;;  %v17824_v42 = vld [vmem:[#allocation793_spill] sm:$0xff]  ;;  %v17825_v26 = vld [vmem:[#allocation794_spill] sm:$0xff]  ;;  %v9364_v12 = vpack.c.bf16 %v17827_v52, %v17826_v32  ;;  %v17830_v34 = vld [vmem:[#allocation795_spill] sm:$0xff] }
 0xfa0   :  { %v9362_v35 = vpack.c.bf16 %v17825_v26, %v17824_v42  ;;  %v17828_v17 = vld [vmem:[#allocation733_spill] sm:$0xff]  ;;  %v17829_v20 = vld [vmem:[#allocation734_spill] sm:$0xff]  ;;  %v17831_v40 = vld [vmem:[#allocation796_spill] sm:$0xff] }
 0xfa1   :  { %9361 = vmatprep.subr.bf16.mxu1 %v9360_v54  ;;  %9303 = vmatpush3.bf16.msra.mxu0 %v9302_v56  ;;  %v9306_v37 = vpack.c.bf16 %v17829_v20, %v17828_v17  ;;  %v9366_v49 = vpack.c.bf16 %v17831_v40, %v17830_v34  ;;  %v17832_v41 = vld [vmem:[#allocation751_spill] sm:$0xff]  ;;  %v17833_v61 = vld [vmem:[#allocation752_spill] sm:$0xff]  ;;  %v17834_v60 = vld [vmem:[#allocation813_spill] sm:$0xff] }
 0xfa2   :  { %9363 = vmatpush3.bf16.msra.mxu1 %v9362_v35  ;;  %9305 = vmatprep.subr.bf16.mxu0 %v9304_v22  ;;  %v9308_v51 = vpack.c.bf16 %v17833_v61, %v17832_v41  ;;  %v17835_v48 = vld [vmem:[#allocation814_spill] sm:$0xff]  ;;  %v17836_v26 = vld [vmem:[#allocation735_spill] sm:$0xff]  ;;  %v17837_v32 = vld [vmem:[#allocation736_spill] sm:$0xff] }
 0xfa3   :  { %9365 = vmatprep.subr.bf16.mxu1 %v9364_v12  ;;  %v9368_v42 = vpack.c.bf16 %v17835_v48, %v17834_v60  ;;  %v9310_v54 = vpack.c.bf16 %v17837_v32, %v17836_v26  ;;  %v17838_v56 = vld [vmem:[#allocation797_spill] sm:$0xff]  ;;  %v17839_v52 = vld [vmem:[#allocation798_spill] sm:$0xff]  ;;  %v17842_v22 = vld [vmem:[#allocation815_spill] sm:$0xff] }
 0xfa4   :  { %v9370_v17 = vpack.c.bf16 %v17839_v52, %v17838_v56  ;;  %v17840_v35 = vld [vmem:[#allocation753_spill] sm:$0xff]  ;;  %v17841_v20 = vld [vmem:[#allocation754_spill] sm:$0xff]  ;;  %v17843_v40 = vld [vmem:[#allocation816_spill] sm:$0xff] }
 0xfa5   :  { %9307 = vmatpush3.bf16.msra.mxu0 %v9306_v37  ;;  %v9312_v34 = vpack.c.bf16 %v17841_v20, %v17840_v35  ;;  %v9372_v41 = vpack.c.bf16 %v17843_v40, %v17842_v22  ;;  %v17844_v12 = vld [vmem:[#allocation737_spill] sm:$0xff]  ;;  %v17845_v61 = vld [vmem:[#allocation738_spill] sm:$0xff]  ;;  %v17846_v37 = vld [vmem:[#allocation799_spill] sm:$0xff] }
 0xfa6   :  { %9367 = vmatpush3.bf16.msra.mxu1 %v9366_v49  ;;  %9309 = vmatprep.subr.bf16.mxu0 %v9308_v51  ;;  %v9314_v48 = vpack.c.bf16 %v17845_v61, %v17844_v12  ;;  %v17847_v60 = vld [vmem:[#allocation800_spill] sm:$0xff]  ;;  %v17848_v49 = vld [vmem:[#allocation755_spill] sm:$0xff]  ;;  %v17850_v51 = vld [vmem:[#allocation817_spill] sm:$0xff] }
 0xfa7   :  { %9369 = vmatprep.subr.bf16.mxu1 %v9368_v42  ;;  %v9374_v26 = vpack.c.bf16 %v17847_v60, %v17846_v37  ;;  %v17849_v32 = vld [vmem:[#allocation756_spill] sm:$0xff]  ;;  %v17851_v52 = vld [vmem:[#allocation818_spill] sm:$0xff]  ;;  %v17852_v42 = vld [vmem:[#allocation739_spill] sm:$0xff] }
 0xfa8   :  { %v9316_v56 = vpack.c.bf16 %v17849_v32, %v17848_v49  ;;  %v9376_v35 = vpack.c.bf16 %v17851_v52, %v17850_v51  ;;  %v17853_v20 = vld [vmem:[#allocation740_spill] sm:$0xff]  ;;  %v17855_v40 = vld [vmem:[#allocation802_spill] sm:$0xff] }
 0xfa9   :  { %9311 = vmatpush3.bf16.msra.mxu0 %v9310_v54  ;;  %v9318_v22 = vpack.c.bf16 %v17853_v20, %v17852_v42  ;;  %v17854_v54 = vld [vmem:[#allocation801_spill] sm:$0xff]  ;;  %v17857_v61 = vld [vmem:[#allocation758_spill] sm:$0xff]  ;;  %v17859_v60 = vld [vmem:[#allocation820_spill] sm:$0xff] }
 0xfaa   :  { %9371 = vmatpush3.bf16.msra.mxu1 %v9370_v17  ;;  %9313 = vmatprep.subr.bf16.mxu0 %v9312_v34  ;;  %v9378_v12 = vpack.c.bf16 %v17855_v40, %v17854_v54  ;;  %v17856_v17 = vld [vmem:[#allocation757_spill] sm:$0xff]  ;;  %v17858_v34 = vld [vmem:[#allocation819_spill] sm:$0xff]  ;;  %v17861_v32 = vld [vmem:[#allocation742_spill] sm:$0xff] }
 0xfab   :  { %9373 = vmatprep.subr.bf16.mxu1 %v9372_v41  ;;  %v9320_v37 = vpack.c.bf16 %v17857_v61, %v17856_v17  ;;  %v9380_v49 = vpack.c.bf16 %v17859_v60, %v17858_v34  ;;  %v17860_v41 = vld [vmem:[#allocation741_spill] sm:$0xff]  ;;  %v17863_v52 = vld [vmem:[#allocation804_spill] sm:$0xff]  ;;  %v17867_v40 = vld [vmem:[#allocation822_spill] sm:$0xff] }
 0xfac   :  { %v9322_v51 = vpack.c.bf16 %v17861_v32, %v17860_v41  ;;  %v17865_v20 = vld [vmem:[#allocation760_spill] sm:$0xff]  ;;  %v17871_v60 = vld [vmem:[#allocation806_spill] sm:$0xff] }
 0xfad   :  { %9315 = vmatpush3.bf16.msra.mxu0 %v9314_v48  ;;  %v17862_v48 = vld [vmem:[#allocation803_spill] sm:$0xff]  ;;  %v17869_v61 = vld [vmem:[#allocation744_spill] sm:$0xff]  ;;  %v17873_v32 = vld [vmem:[#allocation778_spill] sm:$0xff] }
 0xfae   :  { %9375 = vmatpush3.bf16.msra.mxu1 %v9374_v26  ;;  %9317 = vmatprep.subr.bf16.mxu0 %v9316_v56  ;;  %v9382_v42 = vpack.c.bf16 %v17863_v52, %v17862_v48  ;;  %v17864_v26 = vld [vmem:[#allocation759_spill] sm:$0xff]  ;;  %v17866_v56 = vld [vmem:[#allocation821_spill] sm:$0xff]  ;;  %v17875_v52 = vld [vmem:[#allocation824_spill] sm:$0xff] }
 0xfaf   :  { %9377 = vmatprep.subr.bf16.mxu1 %v9376_v35  ;;  %v9324_v54 = vpack.c.bf16 %v17865_v20, %v17864_v26  ;;  %v9384_v17 = vpack.c.bf16 %v17867_v40, %v17866_v56  ;;  %v17868_v35 = vld [vmem:[#allocation743_spill] sm:$0xff]  ;;  %v17877_v20 = vld [vmem:[#allocation762_spill] sm:$0xff]  ;;  %v17879_v40 = vld [vmem:[#allocation780_spill] sm:$0xff] }
 0xfb0   :  { %v9326_v34 = vpack.c.bf16 %v17869_v61, %v17868_v35  ;;  %v17880_v35 = vld [vmem:[#allocation807_spill] sm:$0xff]  ;;  %v17881_v61 = vld [vmem:[#allocation808_spill] sm:$0xff] }
 0xfb1   :  { %9319 = vmatpush3.bf16.msra.mxu0 %v9318_v22  ;;  %v17870_v22 = vld [vmem:[#allocation805_spill] sm:$0xff] }
 0xfb2   :  { %9379 = vmatpush3.bf16.msra.mxu1 %v9378_v12  ;;  %9321 = vmatprep.subr.bf16.mxu0 %v9320_v37  ;;  %v9386_v41 = vpack.c.bf16 %v17871_v60, %v17870_v22  ;;  %v17872_v12 = vld [vmem:[#allocation777_spill] sm:$0xff]  ;;  %v17874_v37 = vld [vmem:[#allocation823_spill] sm:$0xff] }
 0xfb3   :  { %9381 = vmatprep.subr.bf16.mxu1 %v9380_v49  ;;  %v9328_v48 = vpack.c.bf16 %v17873_v32, %v17872_v12  ;;  %v9388_v26 = vpack.c.bf16 %v17875_v52, %v17874_v37  ;;  %v17876_v49 = vld [vmem:[#allocation761_spill] sm:$0xff]  ;;  %v17889_v37 = vld [vmem:[#allocation784_spill] sm:$0xff] }
 0xfb4   :  { %v9330_v56 = vpack.c.bf16 %v17877_v20, %v17876_v49  ;;  %v17884_v60 = vld [vmem:[#allocation781_spill] sm:$0xff]  ;;  %v17891_v52 = vld [vmem:[#allocation768_spill] sm:$0xff]  ;;  %v17894_v20 = vld [vmem:[#allocation786_spill] sm:$0xff] }
 0xfb5   :  { %9323 = vmatpush3.bf16.msra.mxu0 %v9322_v51  ;;  %v17878_v51 = vld [vmem:[#allocation779_spill] sm:$0xff]  ;;  %v17886_v32 = vld [vmem:[#allocation765_spill] sm:$0xff] }
 0xfb6   :  { %9383 = vmatpush3.bf16.msra.mxu1 %v9382_v42  ;;  %9325 = vmatprep.subr.bf16.mxu0 %v9324_v54  ;;  %v9332_v42 = vpack.c.bf16 %v17879_v40, %v17878_v51  ;;  %v9390_v54 = vpack.c.bf16 %v17881_v61, %v17880_v35  ;;  %v17893_v49 = vld [vmem:[#allocation785_spill] sm:$0xff]  ;;  %v17899_v51 = vld [vmem:[#allocation788_spill] sm:$0xff] }
 0xfb7   :  { %9385 = vmatprep.subr.bf16.mxu1 %v9384_v17  ;;  %v17882_v17 = vld [vmem:[#allocation763_spill] sm:$0xff]  ;;  %v17907_v35 = vld [vmem:[#allocation792_spill] sm:$0xff] }
 0xfb9   :  { %9327 = vmatpush3.bf16.msra.mxu0 %v9326_v34  ;;  %v17883_v34 = vld [vmem:[#allocation764_spill] sm:$0xff] }
 0xfba   :  { %9387 = vmatpush3.bf16.msra.mxu1 %v9386_v41  ;;  %9329 = vmatprep.subr.bf16.mxu0 %v9328_v48  ;;  %v9334_v22 = vpack.c.bf16 %v17883_v34, %v17882_v17  ;;  %v17885_v41 = vld [vmem:[#allocation782_spill] sm:$0xff] }
 0xfbb   :  { %9389 = vmatprep.subr.bf16.mxu1 %v9388_v26  ;;  %v9336_v12 = vpack.c.bf16 %v17885_v41, %v17884_v60  ;;  %v17887_v48 = vld [vmem:[#allocation766_spill] sm:$0xff] }
 0xfbc   :  { %7833 = vmatmul.mubr.msk.f32.vlgmr.msra.gmra.mrb[50].mxu0 %vm16057_vm7, %v15912_v28  ;;  %v9338_v45 = vpack.c.bf16 %v17887_v48, %v17886_v32  ;;  %v17888_v28 = vld [vmem:[#allocation783_spill] sm:$0xff] }
 0xfbd   :  { %9331 = vmatpush3.bf16.msra.mxu0 %v9330_v56  ;;  %6883 = vmatprep.mubr.f32.mxu0 %v15987_v31  ;;  %v9340_v31 = vpack.c.bf16 %v17889_v37, %v17888_v28  ;;  %v9344_v56 = vpack.c.bf16 %v17894_v20, %v17893_v49 }
 0xfbe   :  { %9333 = vmatprep.subr.bf16.mxu0 %v9332_v42  ;;  %9391 = vmatpush3.bf16.msra.mxu1 %v9390_v54 }
 0xfc0   :  { %6884 = vmatmul.mubr.f32.gmra.mrb[52].mxu0 %v15891_v39  ;;  %v17890_v39 = vld [vmem:[#allocation767_spill] sm:$0xff] }
 0xfc1   :  { %9335 = vmatpush3.bf16.msra.mxu0 %v9334_v22  ;;  %6888 = vmatprep.mubr.f32.mxu0 %v15983_v50  ;;  %v9342_v26 = vpack.c.bf16 %v17891_v52, %v17890_v39  ;;  %v17892_v50 = vand.u32 31, %v15826_v25  ;;  %v17898_v25 = vld [vmem:[#allocation787_spill] sm:$0xff] }
 0xfc2   :  { %9337 = vmatprep.subr.bf16.mxu0 %v9336_v12  ;;  %7089 = vmatmul.mubr.f32.vlgmr.msra.gmra.mrb[64].mxu1 %v15931_v44  ;;  %v17896_v44 = vld [vmem:[#allocation769_spill] sm:$0xff]  ;;  %v9348_v40 = vpack.c.bf16 %v17899_v51, %v17898_v25 }
 0xfc3   :  { %7093 = vmatprep.mubr.f32.mxu1 %v16021_v55  ;;  %vm7851_vm8 = vcmp.ne.s32.totalorder %v17892_v50, 0 }
 0xfc4   :  { %6889 = vmatmul.mubr.f32.gmra.mrb[54].mxu0 %v15887_v29  ;;  %v17895_v29 = vand.u32 31, %v15823_v18  ;;  %v17900_v18 = vld [vmem:[#allocation771_spill] sm:$0xff] }
 0xfc5   :  { %9339 = vmatpush3.bf16.msra.mxu0 %v9338_v45  ;;  %6893 = vmatprep.mubr.f32.mxu0 %v15979_v1  ;;  %v17897_v1 = vld [vmem:[#allocation770_spill] sm:$0xff] }
 0xfc6   :  { %9341 = vmatprep.subr.bf16.mxu0 %v9340_v31  ;;  %7094 = vmatmul.mubr.f32.gmra.mrb[66].mxu1 %v15927_v27  ;;  %vm7852_vm9 = vcmp.ne.s32.totalorder %v17895_v29, 31  ;;  %v9346_v55 = vpack.c.bf16 %v17897_v1, %v17896_v44 }
 0xfc7   :  { %7098 = vmatprep.mubr.f32.mxu1 %v16017_v63  ;;  %v17903_v63 = vld [vmem:[#allocation790_spill] sm:$0xff] }
 0xfc8   :  { %6894 = vmatmul.mubr.f32.gmra.mrb[56].mxu0 %v15883_v10  ;;  %v17901_v10 = vld [vmem:[#allocation772_spill] sm:$0xff] }
 0xfc9   :  { %9343 = vmatpush3.bf16.msra.mxu0 %v9342_v26  ;;  %7835 = vmatprep.mubr.msk.f32.mxu0 %vm7851_vm8, %v16004_v23  ;;  %v9350_v27 = vpack.c.bf16 %v17901_v10, %v17900_v18  ;;  %v17902_v23 = vld [vmem:[#allocation789_spill] sm:$0xff] }
 0xfca   :  { %9345 = vmatprep.subr.bf16.mxu0 %v9344_v56  ;;  %7099 = vmatmul.mubr.f32.gmra.mrb[68].mxu1 %v15923_v19  ;;  %v9352_v42 = vpack.c.bf16 %v17903_v63, %v17902_v23  ;;  %v17905_v19 = vld [vmem:[#allocation774_spill] sm:$0xff]  ;;  %v7829_v10 = vld [vmem:[%s16252_s19] ss:$0 sm:$0xff] }
 0xfcb   :  { %7839 = vmatprep.mubr.msk.f32.mxu1 %vm7852_vm9, %v16039_v58 }
 0xfcc   :  { %7837 = vmatmul.mubr.msk.f32.gmra.mrb[58].mxu0 %vm7851_vm8, %v15908_v16  ;;  %v17904_v16 = vld [vmem:[#allocation773_spill] sm:$0xff] }
 0xfcd   :  { %9347 = vmatpush3.bf16.msra.mxu0 %v9346_v55  ;;  %6903 = vmatprep.mubr.f32.mxu0 %v16000_v21  ;;  %v9354_v58 = vpack.c.bf16 %v17905_v19, %v17904_v16  ;;  %v17906_v21 = vld [vmem:[#allocation791_spill] sm:$0xff] }
 0xfce   :  { %9349 = vmatprep.subr.bf16.mxu0 %v9348_v40  ;;  %7841 = vmatmul.mubr.msk.f32.gmra.mrb[70].mxu1 %vm7852_vm9, %v15947_v4  ;;  %v9356_v61 = vpack.c.bf16 %v17907_v35, %v17906_v21  ;;  %v17909_v4 = vld [vmem:[#allocation776_spill] sm:$0xff] }
 0xfcf   :  { %7108 = vmatprep.mubr.f32.mxu1 %v16035_v7 }
 0xfd0   :  { %6904 = vmatmul.mubr.f32.gmra.mrb[60].mxu0 %v15904_v11  ;;  %v17908_v11 = vld [vmem:[#allocation775_spill] sm:$0xff] }
 0xfd1   :  { %9351 = vmatpush3.bf16.msra.mxu0 %v9350_v27  ;;  %6908 = vmatprep.mubr.f32.mxu0 %v15996_v24  ;;  %v9358_v7 = vpack.c.bf16 %v17909_v4, %v17908_v11  ;;  %v17910_v24 = vand.u32 31, %v15829_v5  ;;  %v17911_v5 = vld [vmem:[#allocation82_spill] sm:$0xff] }
 0xfd2   :  { %9353 = vmatprep.subr.bf16.mxu0 %v9352_v42  ;;  %7109 = vmatmul.mubr.f32.gmra.mrb[72].mxu1 %v15943_v0 }
 0xfd3   :  { %7113 = vmatprep.mubr.f32.mxu1 %v16031_v47  ;;  %vm7853_vm10 = vcmp.ne.s32.totalorder %v17910_v24, 31 }
 0xfd4   :  { %6909 = vmatmul.mubr.f32.gmra.mrb[62].mxu0 %v15900_v8  ;;  %v17914_v8 = vld [vmem:[#allocation67_spill] sm:$0xff] }
 0xfd5   :  { %9355 = vmatpush3.bf16.msra.mxu0 %v9354_v58  ;;  %6913 = vmatprep.mubr.f32.mxu0 %v15992_v57 }
 0xfd6   :  { %9357 = vmatprep.subr.bf16.mxu0 %v9356_v61  ;;  %7114 = vmatmul.mubr.f32.gmra.mrb[74].mxu1 %v15939_v36 }
 0xfd7   :  { %7118 = vmatprep.mubr.f32.mxu1 %v16027_v53 }
 0xfd8   :  { %6914 = vmatmul.mubr.f32.gmra.mrb[64].mxu0 %v15896_v33  ;;  %v17913_v33 = vld [vmem:[#allocation62_spill] sm:$0xff] }
 0xfd9   :  { %9359 = vmatpush3.bf16.msra.mxu0 %v9358_v7  ;;  %6983 = vmatprep.mubr.f32.mxu0 %v15953_v3 }
 0xfda   :  { %7119 = vmatmul.mubr.f32.gmra.mrb[76].mxu1 %v15935_v62  ;;  %v17916_v62 = vld [vmem:[#allocation74_spill] sm:$0xff] }
 0xfdb   :  { %7843 = vmatprep.mubr.msk.f32.mxu1 %vm7853_vm10, %v16043_v43 }
 0xfdc   :  { %6984 = vmatmul.mubr.f32.vlgmr.msra.gmra.mrb[66].mxu0 %v15857_v30  ;;  %v17912_v30 = vld [vmem:[#allocation61_spill] sm:$0xff] }
 0xfdd   :  { %6988 = vmatprep.mubr.f32.mxu0 %v15955_v59 }
 0xfde   :  { %7845 = vmatmul.mubr.msk.f32.gmra.mrb[78].mxu1 %vm7853_vm10, %v15951_v9 }
 0xfe0   :  { %6989 = vmatmul.mubr.f32.gmra.mrb[68].mxu0 %v15859_v15  ;;  %v17915_v15 = vld [vmem:[#allocation68_spill] sm:$0xff] }
 0xfe1   :  { %6993 = vmatprep.mubr.f32.mxu0 %v15957_v6 }
 0xfe4   :  { %6994 = vmatmul.mubr.f32.gmra.mrb[70].mxu0 %v15861_v2 }
 0xfe5   :  { %6998 = vmatprep.mubr.f32.mxu0 %v15959_v13 }
 0xfe8   :  { %6999 = vmatmul.mubr.f32.gmra.mrb[72].mxu0 %v15863_v46 }
 0xfe9   :  { %7003 = vmatprep.mubr.f32.mxu0 %v15961_v38 }
 0xfec   :  { %7004 = vmatmul.mubr.f32.gmra.mrb[74].mxu0 %v15865_v14 }
 0xfed   :  { %7008 = vmatprep.mubr.f32.mxu0 %v17911_v5 }
 0xff0   :  { %7009 = vmatmul.mubr.f32.gmra.mrb[76].mxu0 %v17912_v30 }
 0xff1   :  { %7013 = vmatprep.mubr.f32.mxu0 %v17913_v33 }
 0xff4   :  { %7014 = vmatmul.mubr.f32.gmra.mrb[78].mxu0 %v17914_v8 }
 0xff5   :  { %7018 = vmatprep.mubr.f32.mxu0 %v17915_v15 }
 0xff8   :  { %7019 = vmatmul.mubr.f32.gmra.mrb[80].mxu0 %v17916_v62 }
0x108f   :  { %v8096_v2 = vpop.f32.mrb[50].mxu0 }
0x1090   :  { %v8097_v36 = vpop.f32.mrb[51].mxu0 }
0x1091   :  { %v8098_v0 = vadd.f32 %v8097_v36, %v8096_v2 }
0x1093   :  { %v8099_v46 = vpop.f32.mrb[52].mxu0  ;;  %v6881_v16 = vadd.f32 %v8098_v0, %v7829_v10 }
0x1094   :  { %v8100_v9 = vpop.f32.mrb[53].mxu0 }
0x1095   :  { %v8101_v3 = vadd.f32 %v8100_v9, %v8099_v46  ;;  %v8208_v59 = vpop.f32.mrb[64].mxu1 }
0x1096   :  { %v8209_v14 = vpop.f32.mrb[65].mxu1 }
0x1097   :  { %v8102_v6 = vpop.f32.mrb[54].mxu0  ;;  %v8210_v13 = vadd.f32 %v8209_v14, %v8208_v59  ;;  %v6886_v7 = vadd.f32 %v8101_v3, %v7829_v10 }
0x1098   :  { %v8103_v38 = vpop.f32.mrb[55].mxu0 }
0x1099   :  { %v8104_v57 = vadd.f32 %v8103_v38, %v8102_v6  ;;  %v8211_v53 = vpop.f32.mrb[66].mxu1 }
0x109a   :  { %v8212_v47 = vpop.f32.mrb[67].mxu1 }
0x109b   :  { %v8105_v43 = vpop.f32.mrb[56].mxu0  ;;  %v8213_v54 = vadd.f32 %v8212_v47, %v8211_v53  ;;  %v6891_v15 = vadd.f32 %v8104_v57, %v7829_v10 }
0x109c   :  { %v8106_v17 = vpop.f32.mrb[57].mxu0 }
0x109d   :  { %v8107_v34 = vadd.f32 %v8106_v17, %v8105_v43  ;;  %v8214_v22 = vpop.f32.mrb[68].mxu1 }
0x109e   :  { %v8215_v60 = vpop.f32.mrb[69].mxu1 }
0x109f   :  { %v8108_v41 = vpop.f32.mrb[58].mxu0  ;;  %v8216_v12 = vadd.f32 %v8215_v60, %v8214_v22  ;;  %v6896_v9 = vadd.f32 %v8107_v34, %v7829_v10 }
0x10a0   :  { %v8109_v32 = vpop.f32.mrb[59].mxu0 }
0x10a1   :  { %v8110_v48 = vadd.f32 %v8109_v32, %v8108_v41  ;;  %v8217_v45 = vpop.f32.mrb[70].mxu1 }
0x10a2   :  { %v8218_v28 = vpop.f32.mrb[71].mxu1 }
0x10a3   :  { %v8111_v37 = vpop.f32.mrb[60].mxu0  ;;  %v8219_v31 = vadd.f32 %v8218_v28, %v8217_v45  ;;  %v6901_v53 = vadd.f32 %v8110_v48, %v7829_v10 }
0x10a4   :  { %v8112_v39 = vpop.f32.mrb[61].mxu0 }
0x10a5   :  { %v8113_v52 = vadd.f32 %v8112_v39, %v8111_v37  ;;  %v8220_v26 = vpop.f32.mrb[72].mxu1 }
0x10a6   :  { %v8221_v50 = vpop.f32.mrb[73].mxu1 }
0x10a7   :  { %v8114_v49 = vpop.f32.mrb[62].mxu0  ;;  %v8222_v20 = vadd.f32 %v8221_v50, %v8220_v26  ;;  %v6906_v34 = vadd.f32 %v8113_v52, %v7829_v10 }
0x10a8   :  { %v8115_v56 = vpop.f32.mrb[63].mxu0 }
0x10a9   :  { %v8116_v29 = vadd.f32 %v8115_v56, %v8114_v49  ;;  %v8223_v44 = vpop.f32.mrb[74].mxu1 }
0x10aa   :  { %v8224_v1 = vpop.f32.mrb[75].mxu1 }
0x10ab   :  { %v8117_v55 = vpop.f32.mrb[64].mxu0  ;;  %v8225_v25 = vadd.f32 %v8224_v1, %v8223_v44  ;;  %v6911_v28 = vadd.f32 %v8116_v29, %v7829_v10 }
0x10ac   :  { %v8118_v51 = vpop.f32.mrb[65].mxu0 }
0x10ad   :  { %v16203_v40 = vadd.f32 %v8118_v51, %v8117_v55  ;;  %v8226_v18 = vpop.f32.mrb[76].mxu1 }
0x10ae   :  { %v8227_v27 = vpop.f32.mrb[77].mxu1 }
0x10af   :  { %v8152_v23 = vpop.f32.mrb[66].mxu0  ;;  %v8228_v63 = vadd.f32 %v8227_v27, %v8226_v18  ;;  %v6916_v49 = vadd.f32 %v16203_v40, %v7829_v10 }
0x10b0   :  { %v8153_v42 = vpop.f32.mrb[67].mxu0 }
0x10b1   :  { %v8154_v19 = vadd.f32 %v8153_v42, %v8152_v23  ;;  %v8229_v58 = vpop.f32.mrb[78].mxu1 }
0x10b2   :  { %v8230_v21 = vpop.f32.mrb[79].mxu1 }
0x10b3   :  { %v6986_v35 = vadd.f32 %v8154_v19, %v6881_v16  ;;  %v8155_v61 = vpop.f32.mrb[68].mxu0  ;;  %v8231_v11 = vadd.f32 %v8230_v21, %v8229_v58 }
0x10b4   :  { %v8156_v4 = vpop.f32.mrb[69].mxu0 }
0x10b5   :  { %v7091_v24 = vadd.f32 %v8210_v13, %v6986_v35  ;;  %v8157_v5 = vadd.f32 %v8156_v4, %v8155_v61 }
0x10b7   :  { %9483 = vtanh.f32 %v7091_v24  ;;  %v6991_v30 = vadd.f32 %v8157_v5, %v6886_v7  ;;  %v8158_v33 = vpop.f32.mrb[70].mxu0 }
0x10b8   :  { %v8159_v8 = vpop.f32.mrb[71].mxu0 }
0x10b9   :  { %v7096_v62 = vadd.f32 %v8213_v54, %v6991_v30  ;;  %v8160_v2 = vadd.f32 %v8159_v8, %v8158_v33 }
0x10bb   :  { %9485 = vtanh.f32 %v7096_v62  ;;  %v6996_v36 = vadd.f32 %v8160_v2, %v6891_v15  ;;  %v8161_v0 = vpop.f32.mrb[72].mxu0 }
0x10bc   :  { %v8162_v46 = vpop.f32.mrb[73].mxu0 }
0x10bd   :  { %v7101_v59 = vadd.f32 %v8216_v12, %v6996_v36  ;;  %v8163_v14 = vadd.f32 %v8162_v46, %v8161_v0 }
0x10bf   :  { %9487 = vtanh.f32 %v7101_v59  ;;  %v7001_v6 = vadd.f32 %v8163_v14, %v6896_v9  ;;  %v8164_v38 = vpop.f32.mrb[74].mxu0 }
0x10c0   :  { %v8165_v3 = vpop.f32.mrb[75].mxu0 }
0x10c1   :  { %v9484_v13 = vpop.eup %9483  ;;  %v7106_v47 = vadd.f32 %v8219_v31, %v7001_v6  ;;  %v8166_v43 = vadd.f32 %v8165_v3, %v8164_v38 }
0x10c2   :  { %7137 = vst [vmem:[%s16253_s20] sm:$0xff] %v9484_v13 }
0x10c3   :  { %9489 = vtanh.f32 %v7106_v47  ;;  %v7006_v57 = vadd.f32 %v8166_v43, %v6901_v53  ;;  %v8167_v54 = vpop.f32.mrb[76].mxu0 }
0x10c4   :  { %v8168_v17 = vpop.f32.mrb[77].mxu0 }
0x10c5   :  { %v9486_v22 = vpop.eup %9485  ;;  %v7111_v60 = vadd.f32 %v8222_v20, %v7006_v57  ;;  %v8169_v41 = vadd.f32 %v8168_v17, %v8167_v54 }
0x10c6   :  { %7138 = vst [vmem:[%s16253_s20 + $0x8] sm:$0xff] %v9486_v22 }
0x10c7   :  { %9491 = vtanh.f32 %v7111_v60  ;;  %v7011_v12 = vadd.f32 %v8169_v41, %v6906_v34  ;;  %v8170_v32 = vpop.f32.mrb[78].mxu0 }
0x10c8   :  { %v8171_v48 = vpop.f32.mrb[79].mxu0 }
0x10c9   :  { %v9488_v45 = vpop.eup %9487  ;;  %v7116_v37 = vadd.f32 %v8225_v25, %v7011_v12  ;;  %v8172_v31 = vadd.f32 %v8171_v48, %v8170_v32 }
0x10ca   :  { %7139 = vst [vmem:[%s16253_s20 + $0x10] sm:$0xff] %v9488_v45 }
0x10cb   :  { %9493 = vtanh.f32 %v7116_v37  ;;  %v7016_v39 = vadd.f32 %v8172_v31, %v6911_v28  ;;  %v8173_v52 = vpop.f32.mrb[80].mxu0 }
0x10cc   :  { %v8174_v26 = vpop.f32.mrb[81].mxu0 }
0x10cd   :  { %v9490_v50 = vpop.eup %9489  ;;  %v7121_v20 = vadd.f32 %v8228_v63, %v7016_v39  ;;  %v8175_v56 = vadd.f32 %v8174_v26, %v8173_v52 }
0x10ce   :  { %7140 = vst [vmem:[%s16253_s20 + $0x18] sm:$0xff] %v9490_v50 }
0x10cf   :  { %9495 = vtanh.f32 %v7121_v20  ;;  %v7021_v29 = vadd.f32 %v8175_v56, %v6916_v49 }
0x10d1   :  { %v9492_v44 = vpop.eup %9491  ;;  %v7126_v1 = vadd.f32 %v8231_v11, %v7021_v29 }
0x10d2   :  { %7141 = vst [vmem:[%s16253_s20 + $0x20] sm:$0xff] %v9492_v44 }
0x10d3   :  { %9497 = vtanh.f32 %v7126_v1 }
0x10d5   :  { %v9494_v55 = vpop.eup %9493 }
0x10d6   :  { %7142 = vst [vmem:[%s16253_s20 + $0x28] sm:$0xff] %v9494_v55 }
0x10d9   :  { %v9496_v25 = vpop.eup %9495 }
0x10da   :  { %7143 = vst [vmem:[%s16253_s20 + $0x30] sm:$0xff] %v9496_v25 }
0x10dd   :  { %v9498_v51 = vpop.eup %9497 }
0x10de   :  { %7144 = vst [vmem:[%s16253_s20 + $0x38] sm:$0xff] %v9498_v51 }
0x10df   :  { %7149 = vsyncmov [#allocation4] }
0x10e2   :  { %s7150_s15 = vpop.sfrf %7149 }
0x10e3   :  { %p7846_p0 = scmp.ne.s32.totalorder %s7150_s15, 0 }
0x10e5   :  { %7154 = shalt.err (%p7846_p0)  }
0x10e6   :  { %7156 = vsyncmov [#allocation4 + $0x1] }
0x10e9   :  { %s7157_s24 = vpop.sfrf %7156 }
0x10ea   :  { %p7847_p1 = scmp.ne.s32.totalorder %s7157_s24, 0 }
0x10ec   :  { %7161 = shalt.err (%p7847_p1)  }
0x10ed   :  { %7163 = vsyncmov [#allocation4 + $0x2] }
0x10f0   :  { %s7164_s23 = vpop.sfrf %7163 }
0x10f1   :  { %p7848_p2 = scmp.ne.s32.totalorder %s7164_s23, 0 }
0x10f3   :  { %7168 = shalt.err (%p7848_p2)  }
0x10f4   :  { %7170 = vsyncmov [#allocation4 + $0x3] }
0x10f7   :  { %s7171_s2 = vpop.sfrf %7170 }
0x10f8   :  { %p7849_p3 = scmp.ne.s32.totalorder %s7171_s2, 0 }
0x10fa   :  { %7175 = shalt.err (%p7849_p3)  }

</bundles_post_ra>
